<compile_context>
chip_gen: v7x
topology: tpu7x:2x2x1
jax: 0.10.0
libtpu: 0.0.40
codegen_flags: <defaults>
</compile_context>

<pallas_src>
import functools

import jax
import jax.numpy as jnp
from jax import lax
from jax.experimental import pallas as pl
from jax.experimental.pallas import tpu as pltpu

EMB = 64
EPS = 1e-5                       # torch.nn.LayerNorm default eps
MM_DTYPE = jnp.bfloat16          # matmul-operand / node-table dtype (f32 accumulation)

_VMEM = pl.BlockSpec(memory_space=pltpu.MemorySpace.VMEM)


def _ln(x, g, b):
    """PyTorch-style LayerNorm over the last axis (biased variance, eps inside sqrt)."""
    mu = jnp.mean(x, axis=-1, keepdims=True)
    var = jnp.mean((x - mu) ** 2, axis=-1, keepdims=True)
    return (x - mu) * lax.rsqrt(var + EPS) * g + b


def _round_up(x, m):
    return (x + m - 1) // m * m


# =============================================================================
# fused forward kernel
# =============================================================================
def gnn_kernel(
        # ---- inputs ---------------------------------------------------------
        cons_x, var_x,                               # [Nc_pad,4], [Nv_pad,6] f32
        ci_col, ci_row, vi_col, vi_row,              # tiled edge indices (int32)
        cg, cb, cw1, cb1, cw2, cb2,                  # constraint embedding
        vg, vb, vw1, vb1, vw2, vb2,                  # variable embedding
        wr_s, wl_s, bmsg_s, lnfg_s, lnfb_s, wf_s, bf_s,   # stacked conv params [4,...]
        lnpg_s, lnpb_s, wo1a_s, wo1b_s, bo1_s, wo2_s, bo2_s,
        hw1, hb1, hw2p,                              # policy head (hw2p: [64,128])
        # ---- output ---------------------------------------------------------
        out_ref,                                     # [Nv_pad, 128] f32
        # ---- VMEM scratch ---------------------------------------------------
        c_tab, v_tab,                                # node tables   (mm_dtype)
        proj_c, proj_v,                              # projections   (mm_dtype)
        agg_c, agg_v,                                # accumulators  (f32)
        *, n_tiles, tile_e, mm_dtype):
    f32 = jnp.float32

    def mm(a, b):
        # matmul with mm_dtype operands and f32 accumulation on the MXU
        return jnp.dot(a.astype(mm_dtype), b.astype(mm_dtype),
                       preferred_element_type=f32)

    # ---- node embeddings: LayerNorm -> Linear -> ReLU -> Linear -> ReLU ------
    h = _ln(cons_x[...], cg[...], cb[...])
    h = jnp.maximum(mm(h, cw1[...]) + cb1[...], 0.0)
    c_tab[...] = jnp.maximum(mm(h, cw2[...]) + cb2[...], 0.0).astype(mm_dtype)

    h = _ln(var_x[...], vg[...], vb[...])
    h = jnp.maximum(mm(h, vw1[...]) + vb1[...], 0.0)
    v_tab[...] = jnp.maximum(mm(h, vw2[...]) + vb2[...], 0.0).astype(mm_dtype)

    nc_pad = c_tab.shape[0]
    nv_pad = v_tab.shape[0]

    # ---- one BipartiteGraphConvolution ---------------------------------------
    def run_conv(k, left, right, src_col, tgt_col, tgt_row,
                 proj_l, proj_r, agg, n_left, n_right):
        lnfg, lnfb = lnfg_s[k], lnfb_s[k]
        wf, bf = wf_s[k], bf_s[k]

        # Per-conv projections of the node tables (applied once, not per edge).
        # The message bias (incl. folded edge-LayerNorm output) is added to the
        # target-side projection -- exact, since each edge has exactly one target.
        proj_l[...] = mm(left[...], wr_s[k]).astype(mm_dtype)
        proj_r[...] = (mm(right[...], wl_s[k]) + bmsg_s[k]).astype(mm_dtype)
        agg[...] = jnp.zeros(agg.shape, f32)

        def tile_body(t, carry):
            ids_s = src_col[t]                        # [tile_e, 1]  int32
            ids_t = tgt_col[t]                        # [tile_e, 1]  int32
            ids_tr = tgt_row[t]                       # [1, tile_e]  int32

            # in-vreg one-hot gather on the MXU
            oh_s = (ids_s == lax.broadcasted_iota(
                jnp.int32, (tile_e, n_left), 1)).astype(mm_dtype)
            oh_t = (ids_t == lax.broadcasted_iota(
                jnp.int32, (tile_e, n_right), 1)).astype(mm_dtype)
            pre = mm(oh_s, proj_l[...]) + mm(oh_t, proj_r[...])   # [tile_e, 64] f32

            # feature_module_final: LayerNorm -> ReLU -> Linear
            z = jnp.maximum(_ln(pre, lnfg, lnfb), 0.0)
            msg = mm(z, wf) + bf                                  # [tile_e, 64] f32

            # 'add' aggregation: one-hot^T scatter-add on the MXU (f32 accumulate;
            # duplicate targets within a tile are summed exactly by the matmul)
            oh_tT = (ids_tr == lax.broadcasted_iota(
                jnp.int32, (n_right, tile_e), 0)).astype(mm_dtype)
            agg[...] = agg[...] + mm(oh_tT, msg)
            return carry

        lax.fori_loop(0, n_tiles, tile_body, 0)

        # post_conv LayerNorm + output MLP (wo1 applied as two K=64 matmuls,
        # avoiding an [N, 128] concatenated temporary)
        pc = _ln(agg[...], lnpg_s[k], lnpb_s[k])
        hcat = jnp.maximum(
            mm(pc, wo1a_s[k]) + mm(right[...], wo1b_s[k]) + bo1_s[k], 0.0)
        return mm(hcat, wo2_s[k]) + bo2_s[k]                      # [n_right, 64] f32

    # ---- 4 convolutions, ping-ponging between the two resident node tables ---
    for k in range(4):
        if k % 2 == 0:   # variables -> constraints
            new = run_conv(k, v_tab, c_tab, vi_col, ci_col, ci_row,
                           proj_v, proj_c, agg_c, nv_pad, nc_pad)
        else:            # constraints -> variables
            new = run_conv(k, c_tab, v_tab, ci_col, vi_col, vi_row,
                           proj_c, proj_v, agg_v, nc_pad, nv_pad)
        if k < 3:
            tab = c_tab if k % 2 == 0 else v_tab
            tab[...] = new.astype(mm_dtype)
        else:
            # fused policy head, written as a lane-dense 128-wide output block
            hh = jnp.maximum(mm(new, hw1[...]) + hb1[...], 0.0)
            out_ref[...] = mm(hh, hw2p[...])


# =============================================================================
# wrapper
# =============================================================================
def gnn_forward(constraint_features, edge_indices, edge_features, variable_features,
                params, *, tile_e=1024, mm_dtype=MM_DTYPE):
    """Pallas forward pass of GNNPolicy.  Returns a [num_variables] vector."""
    # edge_features only enter the reference network through a LayerNorm over a single
    # feature, whose output is identically its bias -> folded analytically into the
    # per-conv message bias (exact; edge values never influence the output).
    del edge_features

    nc = constraint_features.shape[0]
    nv = variable_features.shape[0]
    e = edge_indices.shape[1]

    # Node tables padded to a multiple of 16 rows with >= 1 spare (dummy) row.
    # Padded (dummy) edges gather/scatter only that dummy row, so padding never
    # leaks into real outputs; the first nv rows are sliced out at the end.
    nc_pad = _round_up(nc + 1, 16)
    nv_pad = _round_up(nv + 1, 16)

    # Edge tiles: lane-aligned (multiple of 128), large to amortize per-tile overhead.
    # There is always at least one tile, so an empty edge set is handled too.
    tile_e = _round_up(max(tile_e, 128), 128)
    tile_e = min(tile_e, _round_up(max(e, 1), 128))
    e_pad = _round_up(max(e, 1), tile_e)
    n_tiles = e_pad // tile_e

    cons_p = jnp.pad(constraint_features.astype(jnp.float32), ((0, nc_pad - nc), (0, 0)))
    var_p = jnp.pad(variable_features.astype(jnp.float32), ((0, nv_pad - nv), (0, 0)))

    ci = edge_indices[0].astype(jnp.int32)            # constraint index per edge
    vi = edge_indices[1].astype(jnp.int32)            # variable index per edge
    ci_p = jnp.pad(ci, (0, e_pad - e), constant_values=nc_pad - 1)   # dummy cons row
    vi_p = jnp.pad(vi, (0, e_pad - e), constant_values=nv_pad - 1)   # dummy var row
    # column ([tile_e,1], gather one-hots) and row ([1,tile_e], scatter one-hot) layouts
    ci_col = ci_p.reshape(n_tiles, tile_e, 1)
    ci_row = ci_p.reshape(n_tiles, 1, tile_e)
    vi_col = vi_p.reshape(n_tiles, tile_e, 1)
    vi_row = vi_p.reshape(n_tiles, 1, tile_e)

    # Stack the 4 convolutions' parameters ([4, ...]), fold the constant edge-LayerNorm
    # output (== its bias) into the message bias, split wo1 into its two K=64 halves.
    edge_b = params['edge_ln_b'][0, 0]
    convs = [params[n] for n in
             ('conv_v_to_c', 'conv_c_to_v', 'conv_v_to_c2', 'conv_c_to_v2')]

    def stack(fn):
        return jnp.stack([fn(c) for c in convs], axis=0)

    conv_stacks = (
        stack(lambda c: c['wr']), stack(lambda c: c['wl']),
        stack(lambda c: c['bl'] + edge_b * c['we']),
        stack(lambda c: c['lnfg']), stack(lambda c: c['lnfb']),
        stack(lambda c: c['wf']), stack(lambda c: c['bf']),
        stack(lambda c: c['lnpg']), stack(lambda c: c['lnpb']),
        stack(lambda c: c['wo1'][:EMB]), stack(lambda c: c['wo1'][EMB:]),
        stack(lambda c: c['bo1']), stack(lambda c: c['wo2']), stack(lambda c: c['bo2']),
    )

    # Lane-dense head output: zero-pad the [64, 1] projection to [64, 128].
    hw2p = jnp.pad(params['head_w2'], ((0, 0), (0, 128 - params['head_w2'].shape[1])))

    args = (cons_p, var_p,
            ci_col, ci_row, vi_col, vi_row,
            *params['cons_embed'], *params['var_embed'],
            *conv_stacks,
            params['head_w1'], params['head_b1'], hw2p)

    kernel = functools.partial(gnn_kernel, n_tiles=n_tiles, tile_e=tile_e,
                               mm_dtype=mm_dtype)

    out = pl.pallas_call(
        kernel,
        out_shape=jax.ShapeDtypeStruct((nv_pad, 128), jnp.float32),
        in_specs=[_VMEM] * len(args),
        out_specs=_VMEM,
        scratch_shapes=[
            pltpu.VMEM((nc_pad, EMB), mm_dtype),      # constraint node table
            pltpu.VMEM((nv_pad, EMB), mm_dtype),      # variable node table
            pltpu.VMEM((nc_pad, EMB), mm_dtype),      # projected constraints
            pltpu.VMEM((nv_pad, EMB), mm_dtype),      # projected variables
            pltpu.VMEM((nc_pad, EMB), jnp.float32),   # aggregation -> constraints
            pltpu.VMEM((nv_pad, EMB), jnp.float32),   # aggregation -> variables
        ],
        compiler_params=pltpu.CompilerParams(
            # single invocation (no grid) => no block double-buffering; the limit
            # leaves headroom under v7x's 64 MiB physical VMEM.
            vmem_limit_bytes=48 * 1024 * 1024),
    )(*args)

    return out[:nv, 0]


# =============================================================================
# pure-JAX reference (correctness check only)
# =============================================================================
def _ref_embed(x, p):
    g, b, w1, b1, w2, b2 = p
    h = _ln(x, g, b)
    h = jnp.maximum(h @ w1 + b1, 0.0)
    return jnp.maximum(h @ w2 + b2, 0.0)


def _ref_conv(left, edge_idx, edge_feat, right, p):
    nf_j = left[edge_idx[0]]
    nf_i = right[edge_idx[1]]
    z = nf_i @ p['wl'] + p['bl'] + edge_feat @ p['we'] + nf_j @ p['wr']
    z = jnp.maximum(_ln(z, p['lnfg'], p['lnfb']), 0.0)
    msg = z @ p['wf'] + p['bf']
    agg = jax.ops.segment_sum(msg, edge_idx[1], num_segments=right.shape[0])
    pc = _ln(agg, p['lnpg'], p['lnpb'])
    cat = jnp.concatenate([pc, right], axis=-1)
    h = jnp.maximum(cat @ p['wo1'] + p['bo1'], 0.0)
    return h @ p['wo2'] + p['bo2']


def ref_forward(cons, edge_indices, ef, var, P):
    rev = jnp.stack([edge_indices[1], edge_indices[0]], axis=0)
    c = _ref_embed(cons, P['cons_embed'])
    e = _ln(ef, P['edge_ln_g'], P['edge_ln_b'])
    v = _ref_embed(var, P['var_embed'])
    c = _ref_conv(v, rev, e, c, P['conv_v_to_c'])
    v = _ref_conv(c, edge_indices, e, v, P['conv_c_to_v'])
    c = _ref_conv(v, rev, e, c, P['conv_v_to_c2'])
    v = _ref_conv(c, edge_indices, e, v, P['conv_c_to_v2'])
    h = jnp.maximum(v @ P['head_w1'] + P['head_b1'], 0.0)
    return (h @ P['head_w2'])[:, 0]


# =============================================================================
# deterministic synthetic parameter init (weights stored as [in, out])
# =============================================================================
def _w(key, fan_in, fan_out, scale=0.1):
    return scale * jax.random.normal(key, (fan_in, fan_out), jnp.float32)


def init_embed_params(key, in_feats):
    k = jax.random.split(key, 6)
    return (1.0 + 0.1 * jax.random.normal(k[0], (1, in_feats), jnp.float32),
            0.1 * jax.random.normal(k[1], (1, in_feats), jnp.float32),
            _w(k[2], in_feats, EMB),
            0.1 * jax.random.normal(k[3], (1, EMB), jnp.float32),
            _w(k[4], EMB, EMB),
            0.1 * jax.random.normal(k[5], (1, EMB), jnp.float32))


def init_conv_params(key):
    k = jax.random.split(key, 14)
    return dict(
        wl=_w(k[0], EMB, EMB), bl=0.1 * jax.random.normal(k[1], (1, EMB), jnp.float32),
        we=_w(k[2], 1, EMB),
        wr=_w(k[3], EMB, EMB),
        lnfg=1.0 + 0.1 * jax.random.normal(k[4], (1, EMB), jnp.float32),
        lnfb=0.1 * jax.random.normal(k[5], (1, EMB), jnp.float32),
        wf=_w(k[6], EMB, EMB), bf=0.1 * jax.random.normal(k[7], (1, EMB), jnp.float32),
        lnpg=1.0 + 0.1 * jax.random.normal(k[8], (1, EMB), jnp.float32),
        lnpb=0.1 * jax.random.normal(k[9], (1, EMB), jnp.float32),
        wo1=_w(k[10], 2 * EMB, EMB), bo1=0.1 * jax.random.normal(k[11], (1, EMB), jnp.float32),
        wo2=_w(k[12], EMB, EMB), bo2=0.1 * jax.random.normal(k[13], (1, EMB), jnp.float32))


def init_params(key):
    ks = jax.random.split(key, 9)
    return dict(
        cons_embed=init_embed_params(ks[0], 4),
        edge_ln_g=1.0 + 0.1 * jax.random.normal(ks[1], (1, 1), jnp.float32),
        edge_ln_b=0.1 * jax.random.normal(ks[2], (1, 1), jnp.float32),
        var_embed=init_embed_params(ks[3], 6),
        conv_v_to_c=init_conv_params(ks[4]),
        conv_c_to_v=init_conv_params(ks[5]),
        conv_v_to_c2=init_conv_params(ks[6]),
        conv_c_to_v2=init_conv_params(ks[7]),
        head_w1=_w(jax.random.fold_in(ks[8], 0), EMB, EMB),
        head_b1=0.1 * jax.random.normal(jax.random.fold_in(ks[8], 1), (1, EMB), jnp.float32),
        head_w2=_w(jax.random.fold_in(ks[8], 2), EMB, 1))


# =============================================================================
if __name__ == "__main__":
    key = jax.random.PRNGKey(0)
    k_cons, k_var, k_edge, k_ci, k_vi, k_params = jax.random.split(key, 6)

    N_CONS, N_VARS, N_EDGES = 16, 24, 48
    constraint_features = jax.random.normal(k_cons, (N_CONS, 4), jnp.float32)
    variable_features = jax.random.normal(k_var, (N_VARS, 6), jnp.float32)
    edge_features = jax.random.normal(k_edge, (N_EDGES, 1), jnp.float32)
    cons_idx = jax.random.randint(k_ci, (N_EDGES,), 0, N_CONS, dtype=jnp.int32)
    var_idx = jax.random.randint(k_vi, (N_EDGES,), 0, N_VARS, dtype=jnp.int32)
    edge_indices = jnp.stack([cons_idx, var_idx], axis=0)  # [2, E]

    params = init_params(k_params)

    ref = ref_forward(constraint_features, edge_indices, edge_features,
                      variable_features, params)

    # f32 matmul operands: tight check against the pure-JAX reference.
    out_f32 = jax.block_until_ready(
        gnn_forward(constraint_features, edge_indices, edge_features,
                    variable_features, params, mm_dtype=jnp.float32))
    assert out_f32.shape == (N_VARS,)
    assert jnp.allclose(out_f32, ref, rtol=1e-3, atol=1e-3), (out_f32, ref)

    # bf16 matmul operands (default; recommended for v6e/v7x): looser tolerance.
    out_bf16 = jax.block_until_ready(
        gnn_forward(constraint_features, edge_indices, edge_features,
                    variable_features, params))
    assert out_bf16.shape == (N_VARS,)
    assert jnp.allclose(out_bf16, ref, rtol=5e-2, atol=5e-2), (out_bf16, ref)

    print("KERNEL_OK")
</pallas_src>

<mosaic_0001>
module attributes {stable_mosaic.version = 11 : i64} {
  func.func @gnn_kernel(%arg0: memref<32x4xf32, #tpu.memory_space<vmem>>, %arg1: memref<32x6xf32, #tpu.memory_space<vmem>>, %arg2: memref<1x128x1xi32, #tpu.memory_space<vmem>>, %arg3: memref<1x1x128xi32, #tpu.memory_space<vmem>>, %arg4: memref<1x128x1xi32, #tpu.memory_space<vmem>>, %arg5: memref<1x1x128xi32, #tpu.memory_space<vmem>>, %arg6: memref<1x4xf32, #tpu.memory_space<vmem>>, %arg7: memref<1x4xf32, #tpu.memory_space<vmem>>, %arg8: memref<4x64xf32, #tpu.memory_space<vmem>>, %arg9: memref<1x64xf32, #tpu.memory_space<vmem>>, %arg10: memref<64x64xf32, #tpu.memory_space<vmem>>, %arg11: memref<1x64xf32, #tpu.memory_space<vmem>>, %arg12: memref<1x6xf32, #tpu.memory_space<vmem>>, %arg13: memref<1x6xf32, #tpu.memory_space<vmem>>, %arg14: memref<6x64xf32, #tpu.memory_space<vmem>>, %arg15: memref<1x64xf32, #tpu.memory_space<vmem>>, %arg16: memref<64x64xf32, #tpu.memory_space<vmem>>, %arg17: memref<1x64xf32, #tpu.memory_space<vmem>>, %arg18: memref<4x64x64xf32, #tpu.memory_space<vmem>>, %arg19: memref<4x64x64xf32, #tpu.memory_space<vmem>>, %arg20: memref<4x1x64xf32, #tpu.memory_space<vmem>>, %arg21: memref<4x1x64xf32, #tpu.memory_space<vmem>>, %arg22: memref<4x1x64xf32, #tpu.memory_space<vmem>>, %arg23: memref<4x64x64xf32, #tpu.memory_space<vmem>>, %arg24: memref<4x1x64xf32, #tpu.memory_space<vmem>>, %arg25: memref<4x1x64xf32, #tpu.memory_space<vmem>>, %arg26: memref<4x1x64xf32, #tpu.memory_space<vmem>>, %arg27: memref<4x64x64xf32, #tpu.memory_space<vmem>>, %arg28: memref<4x64x64xf32, #tpu.memory_space<vmem>>, %arg29: memref<4x1x64xf32, #tpu.memory_space<vmem>>, %arg30: memref<4x64x64xf32, #tpu.memory_space<vmem>>, %arg31: memref<4x1x64xf32, #tpu.memory_space<vmem>>, %arg32: memref<64x64xf32, #tpu.memory_space<vmem>>, %arg33: memref<1x64xf32, #tpu.memory_space<vmem>>, %arg34: memref<64x128xf32, #tpu.memory_space<vmem>>, %arg35: memref<32x128xf32, #tpu.memory_space<vmem>>, %arg36: memref<32x64xf32, #tpu.memory_space<vmem>>, %arg37: memref<32x64xf32, #tpu.memory_space<vmem>>, %arg38: memref<32x64xf32, #tpu.memory_space<vmem>>, %arg39: memref<32x64xf32, #tpu.memory_space<vmem>>, %arg40: memref<32x64xf32, #tpu.memory_space<vmem>>, %arg41: memref<32x64xf32, #tpu.memory_space<vmem>>) attributes {dimension_semantics = [], scalar_prefetch = 0 : i64, scratch_operands = 6 : i64, tpu.core_type = #tpu.core_type<tc>} {
    %c0 = arith.constant 0 : index
    %c0_0 = arith.constant 0 : index
    %0 = vector.load %arg0[%c0, %c0_0] : memref<32x4xf32, #tpu.memory_space<vmem>>, vector<32x4xf32>
    %c0_1 = arith.constant 0 : index
    %c0_2 = arith.constant 0 : index
    %1 = vector.load %arg6[%c0_1, %c0_2] : memref<1x4xf32, #tpu.memory_space<vmem>>, vector<1x4xf32>
    %c0_3 = arith.constant 0 : index
    %c0_4 = arith.constant 0 : index
    %2 = vector.load %arg7[%c0_3, %c0_4] : memref<1x4xf32, #tpu.memory_space<vmem>>, vector<1x4xf32>
    %cst = arith.constant dense<0.000000e+00> : vector<32xf32>
    %3 = vector.multi_reduction <add>, %0, %cst [1] : vector<32x4xf32> to vector<32xf32>
    %4 = vector.shape_cast %3 : vector<32xf32> to vector<32x1xf32>
    %cst_5 = arith.constant 4.000000e+00 : f32
    %5 = vector.broadcast %cst_5 : f32 to vector<32x1xf32>
    %6 = arith.divf %4, %5 : vector<32x1xf32>
    %7 = vector.broadcast %6 : vector<32x1xf32> to vector<32x4xf32>
    %8 = arith.subf %0, %7 : vector<32x4xf32>
    %9 = arith.mulf %8, %8 : vector<32x4xf32>
    %cst_6 = arith.constant dense<0.000000e+00> : vector<32xf32>
    %10 = vector.multi_reduction <add>, %9, %cst_6 [1] : vector<32x4xf32> to vector<32xf32>
    %11 = vector.shape_cast %10 : vector<32xf32> to vector<32x1xf32>
    %cst_7 = arith.constant 4.000000e+00 : f32
    %12 = vector.broadcast %cst_7 : f32 to vector<32x1xf32>
    %13 = arith.divf %11, %12 : vector<32x1xf32>
    %14 = vector.broadcast %6 : vector<32x1xf32> to vector<32x4xf32>
    %15 = arith.subf %0, %14 : vector<32x4xf32>
    %cst_8 = arith.constant 9.99999974E-6 : f32
    %16 = vector.broadcast %cst_8 : f32 to vector<32x1xf32>
    %17 = arith.addf %13, %16 : vector<32x1xf32>
    %18 = math.rsqrt %17 : vector<32x1xf32>
    %19 = vector.broadcast %18 : vector<32x1xf32> to vector<32x4xf32>
    %20 = arith.mulf %15, %19 : vector<32x4xf32>
    %21 = vector.broadcast %1 : vector<1x4xf32> to vector<32x4xf32>
    %22 = arith.mulf %20, %21 : vector<32x4xf32>
    %23 = vector.broadcast %2 : vector<1x4xf32> to vector<32x4xf32>
    %24 = arith.addf %22, %23 : vector<32x4xf32>
    %c0_9 = arith.constant 0 : index
    %c0_10 = arith.constant 0 : index
    %25 = vector.load %arg8[%c0_9, %c0_10] : memref<4x64xf32, #tpu.memory_space<vmem>>, vector<4x64xf32>
    %cst_11 = arith.constant dense<0.000000e+00> : vector<32x64xf32>
    %26 = tpu.matmul %24, %25, %cst_11 {dimension_numbers = #tpu.dot_dimension_numbers<[1], [0], [0], [1], [0, 0, 1, 1], [], []>} : vector<32x4xf32>, vector<4x64xf32>, vector<32x64xf32> -> vector<32x64xf32>
    %c0_12 = arith.constant 0 : index
    %c0_13 = arith.constant 0 : index
    %27 = vector.load %arg9[%c0_12, %c0_13] : memref<1x64xf32, #tpu.memory_space<vmem>>, vector<1x64xf32>
    %28 = vector.broadcast %27 : vector<1x64xf32> to vector<32x64xf32>
    %29 = arith.addf %26, %28 : vector<32x64xf32>
    %cst_14 = arith.constant 0.000000e+00 : f32
    %30 = vector.broadcast %cst_14 : f32 to vector<32x64xf32>
    %31 = arith.maximumf %29, %30 : vector<32x64xf32>
    %c0_15 = arith.constant 0 : index
    %c0_16 = arith.constant 0 : index
    %32 = vector.load %arg10[%c0_15, %c0_16] : memref<64x64xf32, #tpu.memory_space<vmem>>, vector<64x64xf32>
    %cst_17 = arith.constant dense<0.000000e+00> : vector<32x64xf32>
    %33 = tpu.matmul %31, %32, %cst_17 {dimension_numbers = #tpu.dot_dimension_numbers<[1], [0], [0], [1], [0, 0, 1, 1], [], []>} : vector<32x64xf32>, vector<64x64xf32>, vector<32x64xf32> -> vector<32x64xf32>
    %c0_18 = arith.constant 0 : index
    %c0_19 = arith.constant 0 : index
    %34 = vector.load %arg11[%c0_18, %c0_19] : memref<1x64xf32, #tpu.memory_space<vmem>>, vector<1x64xf32>
    %35 = vector.broadcast %34 : vector<1x64xf32> to vector<32x64xf32>
    %36 = arith.addf %33, %35 : vector<32x64xf32>
    %cst_20 = arith.constant 0.000000e+00 : f32
    %37 = vector.broadcast %cst_20 : f32 to vector<32x64xf32>
    %38 = arith.maximumf %36, %37 : vector<32x64xf32>
    %c0_21 = arith.constant 0 : index
    %c0_22 = arith.constant 0 : index
    %39 = vector.load %arg36[%c0_21, %c0_22] : memref<32x64xf32, #tpu.memory_space<vmem>>, vector<32x64xf32>
    tpu.vector_store %arg36[%c0_21, %c0_22], %38 {strides = array<i32>} : memref<32x64xf32, #tpu.memory_space<vmem>>, vector<32x64xf32>,
    %c0_23 = arith.constant 0 : index
    %c0_24 = arith.constant 0 : index
    %40 = vector.load %arg1[%c0_23, %c0_24] : memref<32x6xf32, #tpu.memory_space<vmem>>, vector<32x6xf32>
    %c0_25 = arith.constant 0 : index
    %c0_26 = arith.constant 0 : index
    %41 = vector.load %arg12[%c0_25, %c0_26] : memref<1x6xf32, #tpu.memory_space<vmem>>, vector<1x6xf32>
    %c0_27 = arith.constant 0 : index
    %c0_28 = arith.constant 0 : index
    %42 = vector.load %arg13[%c0_27, %c0_28] : memref<1x6xf32, #tpu.memory_space<vmem>>, vector<1x6xf32>
    %cst_29 = arith.constant dense<0.000000e+00> : vector<32xf32>
    %43 = vector.multi_reduction <add>, %40, %cst_29 [1] : vector<32x6xf32> to vector<32xf32>
    %44 = vector.shape_cast %43 : vector<32xf32> to vector<32x1xf32>
    %cst_30 = arith.constant 6.000000e+00 : f32
    %45 = vector.broadcast %cst_30 : f32 to vector<32x1xf32>
    %46 = arith.divf %44, %45 : vector<32x1xf32>
    %47 = vector.broadcast %46 : vector<32x1xf32> to vector<32x6xf32>
    %48 = arith.subf %40, %47 : vector<32x6xf32>
    %49 = arith.mulf %48, %48 : vector<32x6xf32>
    %cst_31 = arith.constant dense<0.000000e+00> : vector<32xf32>
    %50 = vector.multi_reduction <add>, %49, %cst_31 [1] : vector<32x6xf32> to vector<32xf32>
    %51 = vector.shape_cast %50 : vector<32xf32> to vector<32x1xf32>
    %cst_32 = arith.constant 6.000000e+00 : f32
    %52 = vector.broadcast %cst_32 : f32 to vector<32x1xf32>
    %53 = arith.divf %51, %52 : vector<32x1xf32>
    %54 = vector.broadcast %46 : vector<32x1xf32> to vector<32x6xf32>
    %55 = arith.subf %40, %54 : vector<32x6xf32>
    %cst_33 = arith.constant 9.99999974E-6 : f32
    %56 = vector.broadcast %cst_33 : f32 to vector<32x1xf32>
    %57 = arith.addf %53, %56 : vector<32x1xf32>
    %58 = math.rsqrt %57 : vector<32x1xf32>
    %59 = vector.broadcast %58 : vector<32x1xf32> to vector<32x6xf32>
    %60 = arith.mulf %55, %59 : vector<32x6xf32>
    %61 = vector.broadcast %41 : vector<1x6xf32> to vector<32x6xf32>
    %62 = arith.mulf %60, %61 : vector<32x6xf32>
    %63 = vector.broadcast %42 : vector<1x6xf32> to vector<32x6xf32>
    %64 = arith.addf %62, %63 : vector<32x6xf32>
    %c0_34 = arith.constant 0 : index
    %c0_35 = arith.constant 0 : index
    %65 = vector.load %arg14[%c0_34, %c0_35] : memref<6x64xf32, #tpu.memory_space<vmem>>, vector<6x64xf32>
    %cst_36 = arith.constant dense<0.000000e+00> : vector<32x64xf32>
    %66 = tpu.matmul %64, %65, %cst_36 {dimension_numbers = #tpu.dot_dimension_numbers<[1], [0], [0], [1], [0, 0, 1, 1], [], []>} : vector<32x6xf32>, vector<6x64xf32>, vector<32x64xf32> -> vector<32x64xf32>
    %c0_37 = arith.constant 0 : index
    %c0_38 = arith.constant 0 : index
    %67 = vector.load %arg15[%c0_37, %c0_38] : memref<1x64xf32, #tpu.memory_space<vmem>>, vector<1x64xf32>
    %68 = vector.broadcast %67 : vector<1x64xf32> to vector<32x64xf32>
    %69 = arith.addf %66, %68 : vector<32x64xf32>
    %cst_39 = arith.constant 0.000000e+00 : f32
    %70 = vector.broadcast %cst_39 : f32 to vector<32x64xf32>
    %71 = arith.maximumf %69, %70 : vector<32x64xf32>
    %c0_40 = arith.constant 0 : index
    %c0_41 = arith.constant 0 : index
    %72 = vector.load %arg16[%c0_40, %c0_41] : memref<64x64xf32, #tpu.memory_space<vmem>>, vector<64x64xf32>
    %cst_42 = arith.constant dense<0.000000e+00> : vector<32x64xf32>
    %73 = tpu.matmul %71, %72, %cst_42 {dimension_numbers = #tpu.dot_dimension_numbers<[1], [0], [0], [1], [0, 0, 1, 1], [], []>} : vector<32x64xf32>, vector<64x64xf32>, vector<32x64xf32> -> vector<32x64xf32>
    %c0_43 = arith.constant 0 : index
    %c0_44 = arith.constant 0 : index
    %74 = vector.load %arg17[%c0_43, %c0_44] : memref<1x64xf32, #tpu.memory_space<vmem>>, vector<1x64xf32>
    %75 = vector.broadcast %74 : vector<1x64xf32> to vector<32x64xf32>
    %76 = arith.addf %73, %75 : vector<32x64xf32>
    %cst_45 = arith.constant 0.000000e+00 : f32
    %77 = vector.broadcast %cst_45 : f32 to vector<32x64xf32>
    %78 = arith.maximumf %76, %77 : vector<32x64xf32>
    %c0_46 = arith.constant 0 : index
    %c0_47 = arith.constant 0 : index
    %79 = vector.load %arg37[%c0_46, %c0_47] : memref<32x64xf32, #tpu.memory_space<vmem>>, vector<32x64xf32>
    tpu.vector_store %arg37[%c0_46, %c0_47], %78 {strides = array<i32>} : memref<32x64xf32, #tpu.memory_space<vmem>>, vector<32x64xf32>,
    %c0_48 = arith.constant 0 : index
    %c0_49 = arith.constant 0 : index
    %c0_50 = arith.constant 0 : index
    %80 = vector.load %arg21[%c0_48, %c0_49, %c0_50] : memref<4x1x64xf32, #tpu.memory_space<vmem>>, vector<1x1x64xf32>
    %81 = vector.shape_cast %80 : vector<1x1x64xf32> to vector<1x64xf32>
    %c0_51 = arith.constant 0 : index
    %c0_52 = arith.constant 0 : index
    %c0_53 = arith.constant 0 : index
    %82 = vector.load %arg22[%c0_51, %c0_52, %c0_53] : memref<4x1x64xf32, #tpu.memory_space<vmem>>, vector<1x1x64xf32>
    %83 = vector.shape_cast %82 : vector<1x1x64xf32> to vector<1x64xf32>
    %c0_54 = arith.constant 0 : index
    %c0_55 = arith.constant 0 : index
    %c0_56 = arith.constant 0 : index
    %84 = vector.load %arg23[%c0_54, %c0_55, %c0_56] : memref<4x64x64xf32, #tpu.memory_space<vmem>>, vector<1x64x64xf32>
    %85 = vector.shape_cast %84 : vector<1x64x64xf32> to vector<64x64xf32>
    %c0_57 = arith.constant 0 : index
    %c0_58 = arith.constant 0 : index
    %c0_59 = arith.constant 0 : index
    %86 = vector.load %arg24[%c0_57, %c0_58, %c0_59] : memref<4x1x64xf32, #tpu.memory_space<vmem>>, vector<1x1x64xf32>
    %87 = vector.shape_cast %86 : vector<1x1x64xf32> to vector<1x64xf32>
    %c0_60 = arith.constant 0 : index
    %c0_61 = arith.constant 0 : index
    %88 = vector.load %arg37[%c0_60, %c0_61] : memref<32x64xf32, #tpu.memory_space<vmem>>, vector<32x64xf32>
    %c0_62 = arith.constant 0 : index
    %c0_63 = arith.constant 0 : index
    %c0_64 = arith.constant 0 : index
    %89 = vector.load %arg18[%c0_62, %c0_63, %c0_64] : memref<4x64x64xf32, #tpu.memory_space<vmem>>, vector<1x64x64xf32>
    %90 = vector.shape_cast %89 : vector<1x64x64xf32> to vector<64x64xf32>
    %cst_65 = arith.constant dense<0.000000e+00> : vector<32x64xf32>
    %91 = tpu.matmul %88, %90, %cst_65 {dimension_numbers = #tpu.dot_dimension_numbers<[1], [0], [0], [1], [0, 0, 1, 1], [], []>} : vector<32x64xf32>, vector<64x64xf32>, vector<32x64xf32> -> vector<32x64xf32>
    %c0_66 = arith.constant 0 : index
    %c0_67 = arith.constant 0 : index
    %92 = vector.load %arg39[%c0_66, %c0_67] : memref<32x64xf32, #tpu.memory_space<vmem>>, vector<32x64xf32>
    tpu.vector_store %arg39[%c0_66, %c0_67], %91 {strides = array<i32>} : memref<32x64xf32, #tpu.memory_space<vmem>>, vector<32x64xf32>,
    %c0_68 = arith.constant 0 : index
    %c0_69 = arith.constant 0 : index
    %93 = vector.load %arg36[%c0_68, %c0_69] : memref<32x64xf32, #tpu.memory_space<vmem>>, vector<32x64xf32>
    %c0_70 = arith.constant 0 : index
    %c0_71 = arith.constant 0 : index
    %c0_72 = arith.constant 0 : index
    %94 = vector.load %arg19[%c0_70, %c0_71, %c0_72] : memref<4x64x64xf32, #tpu.memory_space<vmem>>, vector<1x64x64xf32>
    %95 = vector.shape_cast %94 : vector<1x64x64xf32> to vector<64x64xf32>
    %cst_73 = arith.constant dense<0.000000e+00> : vector<32x64xf32>
    %96 = tpu.matmul %93, %95, %cst_73 {dimension_numbers = #tpu.dot_dimension_numbers<[1], [0], [0], [1], [0, 0, 1, 1], [], []>} : vector<32x64xf32>, vector<64x64xf32>, vector<32x64xf32> -> vector<32x64xf32>
    %c0_74 = arith.constant 0 : index
    %c0_75 = arith.constant 0 : index
    %c0_76 = arith.constant 0 : index
    %97 = vector.load %arg20[%c0_74, %c0_75, %c0_76] : memref<4x1x64xf32, #tpu.memory_space<vmem>>, vector<1x1x64xf32>
    %98 = vector.shape_cast %97 : vector<1x1x64xf32> to vector<1x64xf32>
    %99 = vector.broadcast %98 : vector<1x64xf32> to vector<32x64xf32>
    %100 = arith.addf %96, %99 : vector<32x64xf32>
    %c0_77 = arith.constant 0 : index
    %c0_78 = arith.constant 0 : index
    %101 = vector.load %arg38[%c0_77, %c0_78] : memref<32x64xf32, #tpu.memory_space<vmem>>, vector<32x64xf32>
    tpu.vector_store %arg38[%c0_77, %c0_78], %100 {strides = array<i32>} : memref<32x64xf32, #tpu.memory_space<vmem>>, vector<32x64xf32>,
    %cst_79 = arith.constant 0.000000e+00 : f32
    %102 = vector.broadcast %cst_79 : f32 to vector<32x64xf32>
    %c0_80 = arith.constant 0 : index
    %c0_81 = arith.constant 0 : index
    %103 = vector.load %arg40[%c0_80, %c0_81] : memref<32x64xf32, #tpu.memory_space<vmem>>, vector<32x64xf32>
    tpu.vector_store %arg40[%c0_80, %c0_81], %102 {strides = array<i32>} : memref<32x64xf32, #tpu.memory_space<vmem>>, vector<32x64xf32>,
    %c0_i32 = arith.constant 0 : i32
    %104 = arith.index_cast %c0_i32 : i32 to index
    %c0_82 = arith.constant 0 : index
    %c0_83 = arith.constant 0 : index
    %105 = vector.load %arg4[%104, %c0_82, %c0_83] : memref<1x128x1xi32, #tpu.memory_space<vmem>>, vector<1x128x1xi32>
    %106 = vector.shape_cast %105 : vector<1x128x1xi32> to vector<128x1xi32>
    %107 = arith.index_cast %c0_i32 : i32 to index
    %c0_84 = arith.constant 0 : index
    %c0_85 = arith.constant 0 : index
    %108 = vector.load %arg2[%107, %c0_84, %c0_85] : memref<1x128x1xi32, #tpu.memory_space<vmem>>, vector<1x128x1xi32>
    %109 = vector.shape_cast %108 : vector<1x128x1xi32> to vector<128x1xi32>
    %110 = arith.index_cast %c0_i32 : i32 to index
    %c0_86 = arith.constant 0 : index
    %c0_87 = arith.constant 0 : index
    %111 = vector.load %arg3[%110, %c0_86, %c0_87] : memref<1x1x128xi32, #tpu.memory_space<vmem>>, vector<1x1x128xi32>
    %112 = vector.shape_cast %111 : vector<1x1x128xi32> to vector<1x128xi32>
    %113 = tpu.iota {dimensions = array<i32: 1>} : vector<128x32xi32>
    %114 = vector.broadcast %106 : vector<128x1xi32> to vector<128x32xi32>
    %115 = arith.cmpi eq, %114, %113 : vector<128x32xi32>
    %116 = arith.extui %115 : vector<128x32xi1> to vector<128x32xi32>
    %117 = arith.sitofp %116 : vector<128x32xi32> to vector<128x32xf32>
    %118 = tpu.iota {dimensions = array<i32: 1>} : vector<128x32xi32>
    %119 = vector.broadcast %109 : vector<128x1xi32> to vector<128x32xi32>
    %120 = arith.cmpi eq, %119, %118 : vector<128x32xi32>
    %121 = arith.extui %120 : vector<128x32xi1> to vector<128x32xi32>
    %122 = arith.sitofp %121 : vector<128x32xi32> to vector<128x32xf32>
    %c0_88 = arith.constant 0 : index
    %c0_89 = arith.constant 0 : index
    %123 = vector.load %arg39[%c0_88, %c0_89] : memref<32x64xf32, #tpu.memory_space<vmem>>, vector<32x64xf32>
    %cst_90 = arith.constant dense<0.000000e+00> : vector<128x64xf32>
    %124 = tpu.matmul %117, %123, %cst_90 {dimension_numbers = #tpu.dot_dimension_numbers<[1], [0], [0], [1], [0, 0, 1, 1], [], []>} : vector<128x32xf32>, vector<32x64xf32>, vector<128x64xf32> -> vector<128x64xf32>
    %c0_91 = arith.constant 0 : index
    %c0_92 = arith.constant 0 : index
    %125 = vector.load %arg38[%c0_91, %c0_92] : memref<32x64xf32, #tpu.memory_space<vmem>>, vector<32x64xf32>
    %cst_93 = arith.constant dense<0.000000e+00> : vector<128x64xf32>
    %126 = tpu.matmul %122, %125, %cst_93 {dimension_numbers = #tpu.dot_dimension_numbers<[1], [0], [0], [1], [0, 0, 1, 1], [], []>} : vector<128x32xf32>, vector<32x64xf32>, vector<128x64xf32> -> vector<128x64xf32>
    %127 = arith.addf %124, %126 : vector<128x64xf32>
    %cst_94 = arith.constant dense<0.000000e+00> : vector<128xf32>
    %128 = vector.multi_reduction <add>, %127, %cst_94 [1] : vector<128x64xf32> to vector<128xf32>
    %129 = vector.shape_cast %128 : vector<128xf32> to vector<128x1xf32>
    %cst_95 = arith.constant 6.400000e+01 : f32
    %130 = vector.broadcast %cst_95 : f32 to vector<128x1xf32>
    %131 = arith.divf %129, %130 : vector<128x1xf32>
    %132 = vector.broadcast %131 : vector<128x1xf32> to vector<128x64xf32>
    %133 = arith.subf %127, %132 : vector<128x64xf32>
    %134 = arith.mulf %133, %133 : vector<128x64xf32>
    %cst_96 = arith.constant dense<0.000000e+00> : vector<128xf32>
    %135 = vector.multi_reduction <add>, %134, %cst_96 [1] : vector<128x64xf32> to vector<128xf32>
    %136 = vector.shape_cast %135 : vector<128xf32> to vector<128x1xf32>
    %cst_97 = arith.constant 6.400000e+01 : f32
    %137 = vector.broadcast %cst_97 : f32 to vector<128x1xf32>
    %138 = arith.divf %136, %137 : vector<128x1xf32>
    %139 = vector.broadcast %131 : vector<128x1xf32> to vector<128x64xf32>
    %140 = arith.subf %127, %139 : vector<128x64xf32>
    %cst_98 = arith.constant 9.99999974E-6 : f32
    %141 = vector.broadcast %cst_98 : f32 to vector<128x1xf32>
    %142 = arith.addf %138, %141 : vector<128x1xf32>
    %143 = math.rsqrt %142 : vector<128x1xf32>
    %144 = vector.broadcast %143 : vector<128x1xf32> to vector<128x64xf32>
    %145 = arith.mulf %140, %144 : vector<128x64xf32>
    %146 = vector.broadcast %81 : vector<1x64xf32> to vector<128x64xf32>
    %147 = arith.mulf %145, %146 : vector<128x64xf32>
    %148 = vector.broadcast %83 : vector<1x64xf32> to vector<128x64xf32>
    %149 = arith.addf %147, %148 : vector<128x64xf32>
    %cst_99 = arith.constant 0.000000e+00 : f32
    %150 = vector.broadcast %cst_99 : f32 to vector<128x64xf32>
    %151 = arith.maximumf %149, %150 : vector<128x64xf32>
    %cst_100 = arith.constant dense<0.000000e+00> : vector<128x64xf32>
    %152 = tpu.matmul %151, %85, %cst_100 {dimension_numbers = #tpu.dot_dimension_numbers<[1], [0], [0], [1], [0, 0, 1, 1], [], []>} : vector<128x64xf32>, vector<64x64xf32>, vector<128x64xf32> -> vector<128x64xf32>
    %153 = vector.broadcast %87 : vector<1x64xf32> to vector<128x64xf32>
    %154 = arith.addf %152, %153 : vector<128x64xf32>
    %155 = tpu.iota {dimensions = array<i32: 0>} : vector<32x128xi32>
    %156 = vector.broadcast %112 : vector<1x128xi32> to vector<32x128xi32>
    %157 = arith.cmpi eq, %156, %155 : vector<32x128xi32>
    %158 = arith.extui %157 : vector<32x128xi1> to vector<32x128xi32>
    %159 = arith.sitofp %158 : vector<32x128xi32> to vector<32x128xf32>
    %c0_101 = arith.constant 0 : index
    %c0_102 = arith.constant 0 : index
    %160 = vector.load %arg40[%c0_101, %c0_102] : memref<32x64xf32, #tpu.memory_space<vmem>>, vector<32x64xf32>
    %cst_103 = arith.constant dense<0.000000e+00> : vector<32x64xf32>
    %161 = tpu.matmul %159, %154, %cst_103 {dimension_numbers = #tpu.dot_dimension_numbers<[1], [0], [0], [1], [0, 0, 1, 1], [], []>} : vector<32x128xf32>, vector<128x64xf32>, vector<32x64xf32> -> vector<32x64xf32>
    %162 = arith.addf %160, %161 : vector<32x64xf32>
    %c0_104 = arith.constant 0 : index
    %c0_105 = arith.constant 0 : index
    %163 = vector.load %arg40[%c0_104, %c0_105] : memref<32x64xf32, #tpu.memory_space<vmem>>, vector<32x64xf32>
    tpu.vector_store %arg40[%c0_104, %c0_105], %162 {strides = array<i32>} : memref<32x64xf32, #tpu.memory_space<vmem>>, vector<32x64xf32>,
    %c1_i32 = arith.constant 1 : i32
    %c0_106 = arith.constant 0 : index
    %c0_107 = arith.constant 0 : index
    %164 = vector.load %arg40[%c0_106, %c0_107] : memref<32x64xf32, #tpu.memory_space<vmem>>, vector<32x64xf32>
    %c0_108 = arith.constant 0 : index
    %c0_109 = arith.constant 0 : index
    %c0_110 = arith.constant 0 : index
    %165 = vector.load %arg25[%c0_108, %c0_109, %c0_110] : memref<4x1x64xf32, #tpu.memory_space<vmem>>, vector<1x1x64xf32>
    %166 = vector.shape_cast %165 : vector<1x1x64xf32> to vector<1x64xf32>
    %c0_111 = arith.constant 0 : index
    %c0_112 = arith.constant 0 : index
    %c0_113 = arith.constant 0 : index
    %167 = vector.load %arg26[%c0_111, %c0_112, %c0_113] : memref<4x1x64xf32, #tpu.memory_space<vmem>>, vector<1x1x64xf32>
    %168 = vector.shape_cast %167 : vector<1x1x64xf32> to vector<1x64xf32>
    %cst_114 = arith.constant dense<0.000000e+00> : vector<32xf32>
    %169 = vector.multi_reduction <add>, %164, %cst_114 [1] : vector<32x64xf32> to vector<32xf32>
    %170 = vector.shape_cast %169 : vector<32xf32> to vector<32x1xf32>
    %cst_115 = arith.constant 6.400000e+01 : f32
    %171 = vector.broadcast %cst_115 : f32 to vector<32x1xf32>
    %172 = arith.divf %170, %171 : vector<32x1xf32>
    %173 = vector.broadcast %172 : vector<32x1xf32> to vector<32x64xf32>
    %174 = arith.subf %164, %173 : vector<32x64xf32>
    %175 = arith.mulf %174, %174 : vector<32x64xf32>
    %cst_116 = arith.constant dense<0.000000e+00> : vector<32xf32>
    %176 = vector.multi_reduction <add>, %175, %cst_116 [1] : vector<32x64xf32> to vector<32xf32>
    %177 = vector.shape_cast %176 : vector<32xf32> to vector<32x1xf32>
    %cst_117 = arith.constant 6.400000e+01 : f32
    %178 = vector.broadcast %cst_117 : f32 to vector<32x1xf32>
    %179 = arith.divf %177, %178 : vector<32x1xf32>
    %180 = vector.broadcast %172 : vector<32x1xf32> to vector<32x64xf32>
    %181 = arith.subf %164, %180 : vector<32x64xf32>
    %cst_118 = arith.constant 9.99999974E-6 : f32
    %182 = vector.broadcast %cst_118 : f32 to vector<32x1xf32>
    %183 = arith.addf %179, %182 : vector<32x1xf32>
    %184 = math.rsqrt %183 : vector<32x1xf32>
    %185 = vector.broadcast %184 : vector<32x1xf32> to vector<32x64xf32>
    %186 = arith.mulf %181, %185 : vector<32x64xf32>
    %187 = vector.broadcast %166 : vector<1x64xf32> to vector<32x64xf32>
    %188 = arith.mulf %186, %187 : vector<32x64xf32>
    %189 = vector.broadcast %168 : vector<1x64xf32> to vector<32x64xf32>
    %190 = arith.addf %188, %189 : vector<32x64xf32>
    %c0_119 = arith.constant 0 : index
    %c0_120 = arith.constant 0 : index
    %c0_121 = arith.constant 0 : index
    %191 = vector.load %arg27[%c0_119, %c0_120, %c0_121] : memref<4x64x64xf32, #tpu.memory_space<vmem>>, vector<1x64x64xf32>
    %192 = vector.shape_cast %191 : vector<1x64x64xf32> to vector<64x64xf32>
    %cst_122 = arith.constant dense<0.000000e+00> : vector<32x64xf32>
    %193 = tpu.matmul %190, %192, %cst_122 {dimension_numbers = #tpu.dot_dimension_numbers<[1], [0], [0], [1], [0, 0, 1, 1], [], []>} : vector<32x64xf32>, vector<64x64xf32>, vector<32x64xf32> -> vector<32x64xf32>
    %c0_123 = arith.constant 0 : index
    %c0_124 = arith.constant 0 : index
    %194 = vector.load %arg36[%c0_123, %c0_124] : memref<32x64xf32, #tpu.memory_space<vmem>>, vector<32x64xf32>
    %c0_125 = arith.constant 0 : index
    %c0_126 = arith.constant 0 : index
    %c0_127 = arith.constant 0 : index
    %195 = vector.load %arg28[%c0_125, %c0_126, %c0_127] : memref<4x64x64xf32, #tpu.memory_space<vmem>>, vector<1x64x64xf32>
    %196 = vector.shape_cast %195 : vector<1x64x64xf32> to vector<64x64xf32>
    %cst_128 = arith.constant dense<0.000000e+00> : vector<32x64xf32>
    %197 = tpu.matmul %194, %196, %cst_128 {dimension_numbers = #tpu.dot_dimension_numbers<[1], [0], [0], [1], [0, 0, 1, 1], [], []>} : vector<32x64xf32>, vector<64x64xf32>, vector<32x64xf32> -> vector<32x64xf32>
    %198 = arith.addf %193, %197 : vector<32x64xf32>
    %c0_129 = arith.constant 0 : index
    %c0_130 = arith.constant 0 : index
    %c0_131 = arith.constant 0 : index
    %199 = vector.load %arg29[%c0_129, %c0_130, %c0_131] : memref<4x1x64xf32, #tpu.memory_space<vmem>>, vector<1x1x64xf32>
    %200 = vector.shape_cast %199 : vector<1x1x64xf32> to vector<1x64xf32>
    %201 = vector.broadcast %200 : vector<1x64xf32> to vector<32x64xf32>
    %202 = arith.addf %198, %201 : vector<32x64xf32>
    %cst_132 = arith.constant 0.000000e+00 : f32
    %203 = vector.broadcast %cst_132 : f32 to vector<32x64xf32>
    %204 = arith.maximumf %202, %203 : vector<32x64xf32>
    %c0_133 = arith.constant 0 : index
    %c0_134 = arith.constant 0 : index
    %c0_135 = arith.constant 0 : index
    %205 = vector.load %arg30[%c0_133, %c0_134, %c0_135] : memref<4x64x64xf32, #tpu.memory_space<vmem>>, vector<1x64x64xf32>
    %206 = vector.shape_cast %205 : vector<1x64x64xf32> to vector<64x64xf32>
    %cst_136 = arith.constant dense<0.000000e+00> : vector<32x64xf32>
    %207 = tpu.matmul %204, %206, %cst_136 {dimension_numbers = #tpu.dot_dimension_numbers<[1], [0], [0], [1], [0, 0, 1, 1], [], []>} : vector<32x64xf32>, vector<64x64xf32>, vector<32x64xf32> -> vector<32x64xf32>
    %c0_137 = arith.constant 0 : index
    %c0_138 = arith.constant 0 : index
    %c0_139 = arith.constant 0 : index
    %208 = vector.load %arg31[%c0_137, %c0_138, %c0_139] : memref<4x1x64xf32, #tpu.memory_space<vmem>>, vector<1x1x64xf32>
    %209 = vector.shape_cast %208 : vector<1x1x64xf32> to vector<1x64xf32>
    %210 = vector.broadcast %209 : vector<1x64xf32> to vector<32x64xf32>
    %211 = arith.addf %207, %210 : vector<32x64xf32>
    %c0_140 = arith.constant 0 : index
    %c0_141 = arith.constant 0 : index
    %212 = vector.load %arg36[%c0_140, %c0_141] : memref<32x64xf32, #tpu.memory_space<vmem>>, vector<32x64xf32>
    tpu.vector_store %arg36[%c0_140, %c0_141], %211 {strides = array<i32>} : memref<32x64xf32, #tpu.memory_space<vmem>>, vector<32x64xf32>,
    %c1 = arith.constant 1 : index
    %c0_142 = arith.constant 0 : index
    %c0_143 = arith.constant 0 : index
    %213 = vector.load %arg21[%c1, %c0_142, %c0_143] : memref<4x1x64xf32, #tpu.memory_space<vmem>>, vector<1x1x64xf32>
    %214 = vector.shape_cast %213 : vector<1x1x64xf32> to vector<1x64xf32>
    %c1_144 = arith.constant 1 : index
    %c0_145 = arith.constant 0 : index
    %c0_146 = arith.constant 0 : index
    %215 = vector.load %arg22[%c1_144, %c0_145, %c0_146] : memref<4x1x64xf32, #tpu.memory_space<vmem>>, vector<1x1x64xf32>
    %216 = vector.shape_cast %215 : vector<1x1x64xf32> to vector<1x64xf32>
    %c1_147 = arith.constant 1 : index
    %c0_148 = arith.constant 0 : index
    %c0_149 = arith.constant 0 : index
    %217 = vector.load %arg23[%c1_147, %c0_148, %c0_149] : memref<4x64x64xf32, #tpu.memory_space<vmem>>, vector<1x64x64xf32>
    %218 = vector.shape_cast %217 : vector<1x64x64xf32> to vector<64x64xf32>
    %c1_150 = arith.constant 1 : index
    %c0_151 = arith.constant 0 : index
    %c0_152 = arith.constant 0 : index
    %219 = vector.load %arg24[%c1_150, %c0_151, %c0_152] : memref<4x1x64xf32, #tpu.memory_space<vmem>>, vector<1x1x64xf32>
    %220 = vector.shape_cast %219 : vector<1x1x64xf32> to vector<1x64xf32>
    %c0_153 = arith.constant 0 : index
    %c0_154 = arith.constant 0 : index
    %221 = vector.load %arg36[%c0_153, %c0_154] : memref<32x64xf32, #tpu.memory_space<vmem>>, vector<32x64xf32>
    %c1_155 = arith.constant 1 : index
    %c0_156 = arith.constant 0 : index
    %c0_157 = arith.constant 0 : index
    %222 = vector.load %arg18[%c1_155, %c0_156, %c0_157] : memref<4x64x64xf32, #tpu.memory_space<vmem>>, vector<1x64x64xf32>
    %223 = vector.shape_cast %222 : vector<1x64x64xf32> to vector<64x64xf32>
    %cst_158 = arith.constant dense<0.000000e+00> : vector<32x64xf32>
    %224 = tpu.matmul %221, %223, %cst_158 {dimension_numbers = #tpu.dot_dimension_numbers<[1], [0], [0], [1], [0, 0, 1, 1], [], []>} : vector<32x64xf32>, vector<64x64xf32>, vector<32x64xf32> -> vector<32x64xf32>
    %c0_159 = arith.constant 0 : index
    %c0_160 = arith.constant 0 : index
    %225 = vector.load %arg38[%c0_159, %c0_160] : memref<32x64xf32, #tpu.memory_space<vmem>>, vector<32x64xf32>
    tpu.vector_store %arg38[%c0_159, %c0_160], %224 {strides = array<i32>} : memref<32x64xf32, #tpu.memory_space<vmem>>, vector<32x64xf32>,
    %c0_161 = arith.constant 0 : index
    %c0_162 = arith.constant 0 : index
    %226 = vector.load %arg37[%c0_161, %c0_162] : memref<32x64xf32, #tpu.memory_space<vmem>>, vector<32x64xf32>
    %c1_163 = arith.constant 1 : index
    %c0_164 = arith.constant 0 : index
    %c0_165 = arith.constant 0 : index
    %227 = vector.load %arg19[%c1_163, %c0_164, %c0_165] : memref<4x64x64xf32, #tpu.memory_space<vmem>>, vector<1x64x64xf32>
    %228 = vector.shape_cast %227 : vector<1x64x64xf32> to vector<64x64xf32>
    %cst_166 = arith.constant dense<0.000000e+00> : vector<32x64xf32>
    %229 = tpu.matmul %226, %228, %cst_166 {dimension_numbers = #tpu.dot_dimension_numbers<[1], [0], [0], [1], [0, 0, 1, 1], [], []>} : vector<32x64xf32>, vector<64x64xf32>, vector<32x64xf32> -> vector<32x64xf32>
    %c1_167 = arith.constant 1 : index
    %c0_168 = arith.constant 0 : index
    %c0_169 = arith.constant 0 : index
    %230 = vector.load %arg20[%c1_167, %c0_168, %c0_169] : memref<4x1x64xf32, #tpu.memory_space<vmem>>, vector<1x1x64xf32>
    %231 = vector.shape_cast %230 : vector<1x1x64xf32> to vector<1x64xf32>
    %232 = vector.broadcast %231 : vector<1x64xf32> to vector<32x64xf32>
    %233 = arith.addf %229, %232 : vector<32x64xf32>
    %c0_170 = arith.constant 0 : index
    %c0_171 = arith.constant 0 : index
    %234 = vector.load %arg39[%c0_170, %c0_171] : memref<32x64xf32, #tpu.memory_space<vmem>>, vector<32x64xf32>
    tpu.vector_store %arg39[%c0_170, %c0_171], %233 {strides = array<i32>} : memref<32x64xf32, #tpu.memory_space<vmem>>, vector<32x64xf32>,
    %cst_172 = arith.constant 0.000000e+00 : f32
    %235 = vector.broadcast %cst_172 : f32 to vector<32x64xf32>
    %c0_173 = arith.constant 0 : index
    %c0_174 = arith.constant 0 : index
    %236 = vector.load %arg41[%c0_173, %c0_174] : memref<32x64xf32, #tpu.memory_space<vmem>>, vector<32x64xf32>
    tpu.vector_store %arg41[%c0_173, %c0_174], %235 {strides = array<i32>} : memref<32x64xf32, #tpu.memory_space<vmem>>, vector<32x64xf32>,
    %c0_i32_175 = arith.constant 0 : i32
    %237 = arith.index_cast %c0_i32_175 : i32 to index
    %c0_176 = arith.constant 0 : index
    %c0_177 = arith.constant 0 : index
    %238 = vector.load %arg2[%237, %c0_176, %c0_177] : memref<1x128x1xi32, #tpu.memory_space<vmem>>, vector<1x128x1xi32>
    %239 = vector.shape_cast %238 : vector<1x128x1xi32> to vector<128x1xi32>
    %240 = arith.index_cast %c0_i32_175 : i32 to index
    %c0_178 = arith.constant 0 : index
    %c0_179 = arith.constant 0 : index
    %241 = vector.load %arg4[%240, %c0_178, %c0_179] : memref<1x128x1xi32, #tpu.memory_space<vmem>>, vector<1x128x1xi32>
    %242 = vector.shape_cast %241 : vector<1x128x1xi32> to vector<128x1xi32>
    %243 = arith.index_cast %c0_i32_175 : i32 to index
    %c0_180 = arith.constant 0 : index
    %c0_181 = arith.constant 0 : index
    %244 = vector.load %arg5[%243, %c0_180, %c0_181] : memref<1x1x128xi32, #tpu.memory_space<vmem>>, vector<1x1x128xi32>
    %245 = vector.shape_cast %244 : vector<1x1x128xi32> to vector<1x128xi32>
    %246 = tpu.iota {dimensions = array<i32: 1>} : vector<128x32xi32>
    %247 = vector.broadcast %239 : vector<128x1xi32> to vector<128x32xi32>
    %248 = arith.cmpi eq, %247, %246 : vector<128x32xi32>
    %249 = arith.extui %248 : vector<128x32xi1> to vector<128x32xi32>
    %250 = arith.sitofp %249 : vector<128x32xi32> to vector<128x32xf32>
    %251 = tpu.iota {dimensions = array<i32: 1>} : vector<128x32xi32>
    %252 = vector.broadcast %242 : vector<128x1xi32> to vector<128x32xi32>
    %253 = arith.cmpi eq, %252, %251 : vector<128x32xi32>
    %254 = arith.extui %253 : vector<128x32xi1> to vector<128x32xi32>
    %255 = arith.sitofp %254 : vector<128x32xi32> to vector<128x32xf32>
    %c0_182 = arith.constant 0 : index
    %c0_183 = arith.constant 0 : index
    %256 = vector.load %arg38[%c0_182, %c0_183] : memref<32x64xf32, #tpu.memory_space<vmem>>, vector<32x64xf32>
    %cst_184 = arith.constant dense<0.000000e+00> : vector<128x64xf32>
    %257 = tpu.matmul %250, %256, %cst_184 {dimension_numbers = #tpu.dot_dimension_numbers<[1], [0], [0], [1], [0, 0, 1, 1], [], []>} : vector<128x32xf32>, vector<32x64xf32>, vector<128x64xf32> -> vector<128x64xf32>
    %c0_185 = arith.constant 0 : index
    %c0_186 = arith.constant 0 : index
    %258 = vector.load %arg39[%c0_185, %c0_186] : memref<32x64xf32, #tpu.memory_space<vmem>>, vector<32x64xf32>
    %cst_187 = arith.constant dense<0.000000e+00> : vector<128x64xf32>
    %259 = tpu.matmul %255, %258, %cst_187 {dimension_numbers = #tpu.dot_dimension_numbers<[1], [0], [0], [1], [0, 0, 1, 1], [], []>} : vector<128x32xf32>, vector<32x64xf32>, vector<128x64xf32> -> vector<128x64xf32>
    %260 = arith.addf %257, %259 : vector<128x64xf32>
    %cst_188 = arith.constant dense<0.000000e+00> : vector<128xf32>
    %261 = vector.multi_reduction <add>, %260, %cst_188 [1] : vector<128x64xf32> to vector<128xf32>
    %262 = vector.shape_cast %261 : vector<128xf32> to vector<128x1xf32>
    %cst_189 = arith.constant 6.400000e+01 : f32
    %263 = vector.broadcast %cst_189 : f32 to vector<128x1xf32>
    %264 = arith.divf %262, %263 : vector<128x1xf32>
    %265 = vector.broadcast %264 : vector<128x1xf32> to vector<128x64xf32>
    %266 = arith.subf %260, %265 : vector<128x64xf32>
    %267 = arith.mulf %266, %266 : vector<128x64xf32>
    %cst_190 = arith.constant dense<0.000000e+00> : vector<128xf32>
    %268 = vector.multi_reduction <add>, %267, %cst_190 [1] : vector<128x64xf32> to vector<128xf32>
    %269 = vector.shape_cast %268 : vector<128xf32> to vector<128x1xf32>
    %cst_191 = arith.constant 6.400000e+01 : f32
    %270 = vector.broadcast %cst_191 : f32 to vector<128x1xf32>
    %271 = arith.divf %269, %270 : vector<128x1xf32>
    %272 = vector.broadcast %264 : vector<128x1xf32> to vector<128x64xf32>
    %273 = arith.subf %260, %272 : vector<128x64xf32>
    %cst_192 = arith.constant 9.99999974E-6 : f32
    %274 = vector.broadcast %cst_192 : f32 to vector<128x1xf32>
    %275 = arith.addf %271, %274 : vector<128x1xf32>
    %276 = math.rsqrt %275 : vector<128x1xf32>
    %277 = vector.broadcast %276 : vector<128x1xf32> to vector<128x64xf32>
    %278 = arith.mulf %273, %277 : vector<128x64xf32>
    %279 = vector.broadcast %214 : vector<1x64xf32> to vector<128x64xf32>
    %280 = arith.mulf %278, %279 : vector<128x64xf32>
    %281 = vector.broadcast %216 : vector<1x64xf32> to vector<128x64xf32>
    %282 = arith.addf %280, %281 : vector<128x64xf32>
    %cst_193 = arith.constant 0.000000e+00 : f32
    %283 = vector.broadcast %cst_193 : f32 to vector<128x64xf32>
    %284 = arith.maximumf %282, %283 : vector<128x64xf32>
    %cst_194 = arith.constant dense<0.000000e+00> : vector<128x64xf32>
    %285 = tpu.matmul %284, %218, %cst_194 {dimension_numbers = #tpu.dot_dimension_numbers<[1], [0], [0], [1], [0, 0, 1, 1], [], []>} : vector<128x64xf32>, vector<64x64xf32>, vector<128x64xf32> -> vector<128x64xf32>
    %286 = vector.broadcast %220 : vector<1x64xf32> to vector<128x64xf32>
    %287 = arith.addf %285, %286 : vector<128x64xf32>
    %288 = tpu.iota {dimensions = array<i32: 0>} : vector<32x128xi32>
    %289 = vector.broadcast %245 : vector<1x128xi32> to vector<32x128xi32>
    %290 = arith.cmpi eq, %289, %288 : vector<32x128xi32>
    %291 = arith.extui %290 : vector<32x128xi1> to vector<32x128xi32>
    %292 = arith.sitofp %291 : vector<32x128xi32> to vector<32x128xf32>
    %c0_195 = arith.constant 0 : index
    %c0_196 = arith.constant 0 : index
    %293 = vector.load %arg41[%c0_195, %c0_196] : memref<32x64xf32, #tpu.memory_space<vmem>>, vector<32x64xf32>
    %cst_197 = arith.constant dense<0.000000e+00> : vector<32x64xf32>
    %294 = tpu.matmul %292, %287, %cst_197 {dimension_numbers = #tpu.dot_dimension_numbers<[1], [0], [0], [1], [0, 0, 1, 1], [], []>} : vector<32x128xf32>, vector<128x64xf32>, vector<32x64xf32> -> vector<32x64xf32>
    %295 = arith.addf %293, %294 : vector<32x64xf32>
    %c0_198 = arith.constant 0 : index
    %c0_199 = arith.constant 0 : index
    %296 = vector.load %arg41[%c0_198, %c0_199] : memref<32x64xf32, #tpu.memory_space<vmem>>, vector<32x64xf32>
    tpu.vector_store %arg41[%c0_198, %c0_199], %295 {strides = array<i32>} : memref<32x64xf32, #tpu.memory_space<vmem>>, vector<32x64xf32>,
    %c1_i32_200 = arith.constant 1 : i32
    %c0_201 = arith.constant 0 : index
    %c0_202 = arith.constant 0 : index
    %297 = vector.load %arg41[%c0_201, %c0_202] : memref<32x64xf32, #tpu.memory_space<vmem>>, vector<32x64xf32>
    %c1_203 = arith.constant 1 : index
    %c0_204 = arith.constant 0 : index
    %c0_205 = arith.constant 0 : index
    %298 = vector.load %arg25[%c1_203, %c0_204, %c0_205] : memref<4x1x64xf32, #tpu.memory_space<vmem>>, vector<1x1x64xf32>
    %299 = vector.shape_cast %298 : vector<1x1x64xf32> to vector<1x64xf32>
    %c1_206 = arith.constant 1 : index
    %c0_207 = arith.constant 0 : index
    %c0_208 = arith.constant 0 : index
    %300 = vector.load %arg26[%c1_206, %c0_207, %c0_208] : memref<4x1x64xf32, #tpu.memory_space<vmem>>, vector<1x1x64xf32>
    %301 = vector.shape_cast %300 : vector<1x1x64xf32> to vector<1x64xf32>
    %cst_209 = arith.constant dense<0.000000e+00> : vector<32xf32>
    %302 = vector.multi_reduction <add>, %297, %cst_209 [1] : vector<32x64xf32> to vector<32xf32>
    %303 = vector.shape_cast %302 : vector<32xf32> to vector<32x1xf32>
    %cst_210 = arith.constant 6.400000e+01 : f32
    %304 = vector.broadcast %cst_210 : f32 to vector<32x1xf32>
    %305 = arith.divf %303, %304 : vector<32x1xf32>
    %306 = vector.broadcast %305 : vector<32x1xf32> to vector<32x64xf32>
    %307 = arith.subf %297, %306 : vector<32x64xf32>
    %308 = arith.mulf %307, %307 : vector<32x64xf32>
    %cst_211 = arith.constant dense<0.000000e+00> : vector<32xf32>
    %309 = vector.multi_reduction <add>, %308, %cst_211 [1] : vector<32x64xf32> to vector<32xf32>
    %310 = vector.shape_cast %309 : vector<32xf32> to vector<32x1xf32>
    %cst_212 = arith.constant 6.400000e+01 : f32
    %311 = vector.broadcast %cst_212 : f32 to vector<32x1xf32>
    %312 = arith.divf %310, %311 : vector<32x1xf32>
    %313 = vector.broadcast %305 : vector<32x1xf32> to vector<32x64xf32>
    %314 = arith.subf %297, %313 : vector<32x64xf32>
    %cst_213 = arith.constant 9.99999974E-6 : f32
    %315 = vector.broadcast %cst_213 : f32 to vector<32x1xf32>
    %316 = arith.addf %312, %315 : vector<32x1xf32>
    %317 = math.rsqrt %316 : vector<32x1xf32>
    %318 = vector.broadcast %317 : vector<32x1xf32> to vector<32x64xf32>
    %319 = arith.mulf %314, %318 : vector<32x64xf32>
    %320 = vector.broadcast %299 : vector<1x64xf32> to vector<32x64xf32>
    %321 = arith.mulf %319, %320 : vector<32x64xf32>
    %322 = vector.broadcast %301 : vector<1x64xf32> to vector<32x64xf32>
    %323 = arith.addf %321, %322 : vector<32x64xf32>
    %c1_214 = arith.constant 1 : index
    %c0_215 = arith.constant 0 : index
    %c0_216 = arith.constant 0 : index
    %324 = vector.load %arg27[%c1_214, %c0_215, %c0_216] : memref<4x64x64xf32, #tpu.memory_space<vmem>>, vector<1x64x64xf32>
    %325 = vector.shape_cast %324 : vector<1x64x64xf32> to vector<64x64xf32>
    %cst_217 = arith.constant dense<0.000000e+00> : vector<32x64xf32>
    %326 = tpu.matmul %323, %325, %cst_217 {dimension_numbers = #tpu.dot_dimension_numbers<[1], [0], [0], [1], [0, 0, 1, 1], [], []>} : vector<32x64xf32>, vector<64x64xf32>, vector<32x64xf32> -> vector<32x64xf32>
    %c0_218 = arith.constant 0 : index
    %c0_219 = arith.constant 0 : index
    %327 = vector.load %arg37[%c0_218, %c0_219] : memref<32x64xf32, #tpu.memory_space<vmem>>, vector<32x64xf32>
    %c1_220 = arith.constant 1 : index
    %c0_221 = arith.constant 0 : index
    %c0_222 = arith.constant 0 : index
    %328 = vector.load %arg28[%c1_220, %c0_221, %c0_222] : memref<4x64x64xf32, #tpu.memory_space<vmem>>, vector<1x64x64xf32>
    %329 = vector.shape_cast %328 : vector<1x64x64xf32> to vector<64x64xf32>
    %cst_223 = arith.constant dense<0.000000e+00> : vector<32x64xf32>
    %330 = tpu.matmul %327, %329, %cst_223 {dimension_numbers = #tpu.dot_dimension_numbers<[1], [0], [0], [1], [0, 0, 1, 1], [], []>} : vector<32x64xf32>, vector<64x64xf32>, vector<32x64xf32> -> vector<32x64xf32>
    %331 = arith.addf %326, %330 : vector<32x64xf32>
    %c1_224 = arith.constant 1 : index
    %c0_225 = arith.constant 0 : index
    %c0_226 = arith.constant 0 : index
    %332 = vector.load %arg29[%c1_224, %c0_225, %c0_226] : memref<4x1x64xf32, #tpu.memory_space<vmem>>, vector<1x1x64xf32>
    %333 = vector.shape_cast %332 : vector<1x1x64xf32> to vector<1x64xf32>
    %334 = vector.broadcast %333 : vector<1x64xf32> to vector<32x64xf32>
    %335 = arith.addf %331, %334 : vector<32x64xf32>
    %cst_227 = arith.constant 0.000000e+00 : f32
    %336 = vector.broadcast %cst_227 : f32 to vector<32x64xf32>
    %337 = arith.maximumf %335, %336 : vector<32x64xf32>
    %c1_228 = arith.constant 1 : index
    %c0_229 = arith.constant 0 : index
    %c0_230 = arith.constant 0 : index
    %338 = vector.load %arg30[%c1_228, %c0_229, %c0_230] : memref<4x64x64xf32, #tpu.memory_space<vmem>>, vector<1x64x64xf32>
    %339 = vector.shape_cast %338 : vector<1x64x64xf32> to vector<64x64xf32>
    %cst_231 = arith.constant dense<0.000000e+00> : vector<32x64xf32>
    %340 = tpu.matmul %337, %339, %cst_231 {dimension_numbers = #tpu.dot_dimension_numbers<[1], [0], [0], [1], [0, 0, 1, 1], [], []>} : vector<32x64xf32>, vector<64x64xf32>, vector<32x64xf32> -> vector<32x64xf32>
    %c1_232 = arith.constant 1 : index
    %c0_233 = arith.constant 0 : index
    %c0_234 = arith.constant 0 : index
    %341 = vector.load %arg31[%c1_232, %c0_233, %c0_234] : memref<4x1x64xf32, #tpu.memory_space<vmem>>, vector<1x1x64xf32>
    %342 = vector.shape_cast %341 : vector<1x1x64xf32> to vector<1x64xf32>
    %343 = vector.broadcast %342 : vector<1x64xf32> to vector<32x64xf32>
    %344 = arith.addf %340, %343 : vector<32x64xf32>
    %c0_235 = arith.constant 0 : index
    %c0_236 = arith.constant 0 : index
    %345 = vector.load %arg37[%c0_235, %c0_236] : memref<32x64xf32, #tpu.memory_space<vmem>>, vector<32x64xf32>
    tpu.vector_store %arg37[%c0_235, %c0_236], %344 {strides = array<i32>} : memref<32x64xf32, #tpu.memory_space<vmem>>, vector<32x64xf32>,
    %c2 = arith.constant 2 : index
    %c0_237 = arith.constant 0 : index
    %c0_238 = arith.constant 0 : index
    %346 = vector.load %arg21[%c2, %c0_237, %c0_238] : memref<4x1x64xf32, #tpu.memory_space<vmem>>, vector<1x1x64xf32>
    %347 = vector.shape_cast %346 : vector<1x1x64xf32> to vector<1x64xf32>
    %c2_239 = arith.constant 2 : index
    %c0_240 = arith.constant 0 : index
    %c0_241 = arith.constant 0 : index
    %348 = vector.load %arg22[%c2_239, %c0_240, %c0_241] : memref<4x1x64xf32, #tpu.memory_space<vmem>>, vector<1x1x64xf32>
    %349 = vector.shape_cast %348 : vector<1x1x64xf32> to vector<1x64xf32>
    %c2_242 = arith.constant 2 : index
    %c0_243 = arith.constant 0 : index
    %c0_244 = arith.constant 0 : index
    %350 = vector.load %arg23[%c2_242, %c0_243, %c0_244] : memref<4x64x64xf32, #tpu.memory_space<vmem>>, vector<1x64x64xf32>
    %351 = vector.shape_cast %350 : vector<1x64x64xf32> to vector<64x64xf32>
    %c2_245 = arith.constant 2 : index
    %c0_246 = arith.constant 0 : index
    %c0_247 = arith.constant 0 : index
    %352 = vector.load %arg24[%c2_245, %c0_246, %c0_247] : memref<4x1x64xf32, #tpu.memory_space<vmem>>, vector<1x1x64xf32>
    %353 = vector.shape_cast %352 : vector<1x1x64xf32> to vector<1x64xf32>
    %c0_248 = arith.constant 0 : index
    %c0_249 = arith.constant 0 : index
    %354 = vector.load %arg37[%c0_248, %c0_249] : memref<32x64xf32, #tpu.memory_space<vmem>>, vector<32x64xf32>
    %c2_250 = arith.constant 2 : index
    %c0_251 = arith.constant 0 : index
    %c0_252 = arith.constant 0 : index
    %355 = vector.load %arg18[%c2_250, %c0_251, %c0_252] : memref<4x64x64xf32, #tpu.memory_space<vmem>>, vector<1x64x64xf32>
    %356 = vector.shape_cast %355 : vector<1x64x64xf32> to vector<64x64xf32>
    %cst_253 = arith.constant dense<0.000000e+00> : vector<32x64xf32>
    %357 = tpu.matmul %354, %356, %cst_253 {dimension_numbers = #tpu.dot_dimension_numbers<[1], [0], [0], [1], [0, 0, 1, 1], [], []>} : vector<32x64xf32>, vector<64x64xf32>, vector<32x64xf32> -> vector<32x64xf32>
    %c0_254 = arith.constant 0 : index
    %c0_255 = arith.constant 0 : index
    %358 = vector.load %arg39[%c0_254, %c0_255] : memref<32x64xf32, #tpu.memory_space<vmem>>, vector<32x64xf32>
    tpu.vector_store %arg39[%c0_254, %c0_255], %357 {strides = array<i32>} : memref<32x64xf32, #tpu.memory_space<vmem>>, vector<32x64xf32>,
    %c0_256 = arith.constant 0 : index
    %c0_257 = arith.constant 0 : index
    %359 = vector.load %arg36[%c0_256, %c0_257] : memref<32x64xf32, #tpu.memory_space<vmem>>, vector<32x64xf32>
    %c2_258 = arith.constant 2 : index
    %c0_259 = arith.constant 0 : index
    %c0_260 = arith.constant 0 : index
    %360 = vector.load %arg19[%c2_258, %c0_259, %c0_260] : memref<4x64x64xf32, #tpu.memory_space<vmem>>, vector<1x64x64xf32>
    %361 = vector.shape_cast %360 : vector<1x64x64xf32> to vector<64x64xf32>
    %cst_261 = arith.constant dense<0.000000e+00> : vector<32x64xf32>
    %362 = tpu.matmul %359, %361, %cst_261 {dimension_numbers = #tpu.dot_dimension_numbers<[1], [0], [0], [1], [0, 0, 1, 1], [], []>} : vector<32x64xf32>, vector<64x64xf32>, vector<32x64xf32> -> vector<32x64xf32>
    %c2_262 = arith.constant 2 : index
    %c0_263 = arith.constant 0 : index
    %c0_264 = arith.constant 0 : index
    %363 = vector.load %arg20[%c2_262, %c0_263, %c0_264] : memref<4x1x64xf32, #tpu.memory_space<vmem>>, vector<1x1x64xf32>
    %364 = vector.shape_cast %363 : vector<1x1x64xf32> to vector<1x64xf32>
    %365 = vector.broadcast %364 : vector<1x64xf32> to vector<32x64xf32>
    %366 = arith.addf %362, %365 : vector<32x64xf32>
    %c0_265 = arith.constant 0 : index
    %c0_266 = arith.constant 0 : index
    %367 = vector.load %arg38[%c0_265, %c0_266] : memref<32x64xf32, #tpu.memory_space<vmem>>, vector<32x64xf32>
    tpu.vector_store %arg38[%c0_265, %c0_266], %366 {strides = array<i32>} : memref<32x64xf32, #tpu.memory_space<vmem>>, vector<32x64xf32>,
    %cst_267 = arith.constant 0.000000e+00 : f32
    %368 = vector.broadcast %cst_267 : f32 to vector<32x64xf32>
    %c0_268 = arith.constant 0 : index
    %c0_269 = arith.constant 0 : index
    %369 = vector.load %arg40[%c0_268, %c0_269] : memref<32x64xf32, #tpu.memory_space<vmem>>, vector<32x64xf32>
    tpu.vector_store %arg40[%c0_268, %c0_269], %368 {strides = array<i32>} : memref<32x64xf32, #tpu.memory_space<vmem>>, vector<32x64xf32>,
    %c0_i32_270 = arith.constant 0 : i32
    %370 = arith.index_cast %c0_i32_270 : i32 to index
    %c0_271 = arith.constant 0 : index
    %c0_272 = arith.constant 0 : index
    %371 = vector.load %arg4[%370, %c0_271, %c0_272] : memref<1x128x1xi32, #tpu.memory_space<vmem>>, vector<1x128x1xi32>
    %372 = vector.shape_cast %371 : vector<1x128x1xi32> to vector<128x1xi32>
    %373 = arith.index_cast %c0_i32_270 : i32 to index
    %c0_273 = arith.constant 0 : index
    %c0_274 = arith.constant 0 : index
    %374 = vector.load %arg2[%373, %c0_273, %c0_274] : memref<1x128x1xi32, #tpu.memory_space<vmem>>, vector<1x128x1xi32>
    %375 = vector.shape_cast %374 : vector<1x128x1xi32> to vector<128x1xi32>
    %376 = arith.index_cast %c0_i32_270 : i32 to index
    %c0_275 = arith.constant 0 : index
    %c0_276 = arith.constant 0 : index
    %377 = vector.load %arg3[%376, %c0_275, %c0_276] : memref<1x1x128xi32, #tpu.memory_space<vmem>>, vector<1x1x128xi32>
    %378 = vector.shape_cast %377 : vector<1x1x128xi32> to vector<1x128xi32>
    %379 = tpu.iota {dimensions = array<i32: 1>} : vector<128x32xi32>
    %380 = vector.broadcast %372 : vector<128x1xi32> to vector<128x32xi32>
    %381 = arith.cmpi eq, %380, %379 : vector<128x32xi32>
    %382 = arith.extui %381 : vector<128x32xi1> to vector<128x32xi32>
    %383 = arith.sitofp %382 : vector<128x32xi32> to vector<128x32xf32>
    %384 = tpu.iota {dimensions = array<i32: 1>} : vector<128x32xi32>
    %385 = vector.broadcast %375 : vector<128x1xi32> to vector<128x32xi32>
    %386 = arith.cmpi eq, %385, %384 : vector<128x32xi32>
    %387 = arith.extui %386 : vector<128x32xi1> to vector<128x32xi32>
    %388 = arith.sitofp %387 : vector<128x32xi32> to vector<128x32xf32>
    %c0_277 = arith.constant 0 : index
    %c0_278 = arith.constant 0 : index
    %389 = vector.load %arg39[%c0_277, %c0_278] : memref<32x64xf32, #tpu.memory_space<vmem>>, vector<32x64xf32>
    %cst_279 = arith.constant dense<0.000000e+00> : vector<128x64xf32>
    %390 = tpu.matmul %383, %389, %cst_279 {dimension_numbers = #tpu.dot_dimension_numbers<[1], [0], [0], [1], [0, 0, 1, 1], [], []>} : vector<128x32xf32>, vector<32x64xf32>, vector<128x64xf32> -> vector<128x64xf32>
    %c0_280 = arith.constant 0 : index
    %c0_281 = arith.constant 0 : index
    %391 = vector.load %arg38[%c0_280, %c0_281] : memref<32x64xf32, #tpu.memory_space<vmem>>, vector<32x64xf32>
    %cst_282 = arith.constant dense<0.000000e+00> : vector<128x64xf32>
    %392 = tpu.matmul %388, %391, %cst_282 {dimension_numbers = #tpu.dot_dimension_numbers<[1], [0], [0], [1], [0, 0, 1, 1], [], []>} : vector<128x32xf32>, vector<32x64xf32>, vector<128x64xf32> -> vector<128x64xf32>
    %393 = arith.addf %390, %392 : vector<128x64xf32>
    %cst_283 = arith.constant dense<0.000000e+00> : vector<128xf32>
    %394 = vector.multi_reduction <add>, %393, %cst_283 [1] : vector<128x64xf32> to vector<128xf32>
    %395 = vector.shape_cast %394 : vector<128xf32> to vector<128x1xf32>
    %cst_284 = arith.constant 6.400000e+01 : f32
    %396 = vector.broadcast %cst_284 : f32 to vector<128x1xf32>
    %397 = arith.divf %395, %396 : vector<128x1xf32>
    %398 = vector.broadcast %397 : vector<128x1xf32> to vector<128x64xf32>
    %399 = arith.subf %393, %398 : vector<128x64xf32>
    %400 = arith.mulf %399, %399 : vector<128x64xf32>
    %cst_285 = arith.constant dense<0.000000e+00> : vector<128xf32>
    %401 = vector.multi_reduction <add>, %400, %cst_285 [1] : vector<128x64xf32> to vector<128xf32>
    %402 = vector.shape_cast %401 : vector<128xf32> to vector<128x1xf32>
    %cst_286 = arith.constant 6.400000e+01 : f32
    %403 = vector.broadcast %cst_286 : f32 to vector<128x1xf32>
    %404 = arith.divf %402, %403 : vector<128x1xf32>
    %405 = vector.broadcast %397 : vector<128x1xf32> to vector<128x64xf32>
    %406 = arith.subf %393, %405 : vector<128x64xf32>
    %cst_287 = arith.constant 9.99999974E-6 : f32
    %407 = vector.broadcast %cst_287 : f32 to vector<128x1xf32>
    %408 = arith.addf %404, %407 : vector<128x1xf32>
    %409 = math.rsqrt %408 : vector<128x1xf32>
    %410 = vector.broadcast %409 : vector<128x1xf32> to vector<128x64xf32>
    %411 = arith.mulf %406, %410 : vector<128x64xf32>
    %412 = vector.broadcast %347 : vector<1x64xf32> to vector<128x64xf32>
    %413 = arith.mulf %411, %412 : vector<128x64xf32>
    %414 = vector.broadcast %349 : vector<1x64xf32> to vector<128x64xf32>
    %415 = arith.addf %413, %414 : vector<128x64xf32>
    %cst_288 = arith.constant 0.000000e+00 : f32
    %416 = vector.broadcast %cst_288 : f32 to vector<128x64xf32>
    %417 = arith.maximumf %415, %416 : vector<128x64xf32>
    %cst_289 = arith.constant dense<0.000000e+00> : vector<128x64xf32>
    %418 = tpu.matmul %417, %351, %cst_289 {dimension_numbers = #tpu.dot_dimension_numbers<[1], [0], [0], [1], [0, 0, 1, 1], [], []>} : vector<128x64xf32>, vector<64x64xf32>, vector<128x64xf32> -> vector<128x64xf32>
    %419 = vector.broadcast %353 : vector<1x64xf32> to vector<128x64xf32>
    %420 = arith.addf %418, %419 : vector<128x64xf32>
    %421 = tpu.iota {dimensions = array<i32: 0>} : vector<32x128xi32>
    %422 = vector.broadcast %378 : vector<1x128xi32> to vector<32x128xi32>
    %423 = arith.cmpi eq, %422, %421 : vector<32x128xi32>
    %424 = arith.extui %423 : vector<32x128xi1> to vector<32x128xi32>
    %425 = arith.sitofp %424 : vector<32x128xi32> to vector<32x128xf32>
    %c0_290 = arith.constant 0 : index
    %c0_291 = arith.constant 0 : index
    %426 = vector.load %arg40[%c0_290, %c0_291] : memref<32x64xf32, #tpu.memory_space<vmem>>, vector<32x64xf32>
    %cst_292 = arith.constant dense<0.000000e+00> : vector<32x64xf32>
    %427 = tpu.matmul %425, %420, %cst_292 {dimension_numbers = #tpu.dot_dimension_numbers<[1], [0], [0], [1], [0, 0, 1, 1], [], []>} : vector<32x128xf32>, vector<128x64xf32>, vector<32x64xf32> -> vector<32x64xf32>
    %428 = arith.addf %426, %427 : vector<32x64xf32>
    %c0_293 = arith.constant 0 : index
    %c0_294 = arith.constant 0 : index
    %429 = vector.load %arg40[%c0_293, %c0_294] : memref<32x64xf32, #tpu.memory_space<vmem>>, vector<32x64xf32>
    tpu.vector_store %arg40[%c0_293, %c0_294], %428 {strides = array<i32>} : memref<32x64xf32, #tpu.memory_space<vmem>>, vector<32x64xf32>,
    %c1_i32_295 = arith.constant 1 : i32
    %c0_296 = arith.constant 0 : index
    %c0_297 = arith.constant 0 : index
    %430 = vector.load %arg40[%c0_296, %c0_297] : memref<32x64xf32, #tpu.memory_space<vmem>>, vector<32x64xf32>
    %c2_298 = arith.constant 2 : index
    %c0_299 = arith.constant 0 : index
    %c0_300 = arith.constant 0 : index
    %431 = vector.load %arg25[%c2_298, %c0_299, %c0_300] : memref<4x1x64xf32, #tpu.memory_space<vmem>>, vector<1x1x64xf32>
    %432 = vector.shape_cast %431 : vector<1x1x64xf32> to vector<1x64xf32>
    %c2_301 = arith.constant 2 : index
    %c0_302 = arith.constant 0 : index
    %c0_303 = arith.constant 0 : index
    %433 = vector.load %arg26[%c2_301, %c0_302, %c0_303] : memref<4x1x64xf32, #tpu.memory_space<vmem>>, vector<1x1x64xf32>
    %434 = vector.shape_cast %433 : vector<1x1x64xf32> to vector<1x64xf32>
    %cst_304 = arith.constant dense<0.000000e+00> : vector<32xf32>
    %435 = vector.multi_reduction <add>, %430, %cst_304 [1] : vector<32x64xf32> to vector<32xf32>
    %436 = vector.shape_cast %435 : vector<32xf32> to vector<32x1xf32>
    %cst_305 = arith.constant 6.400000e+01 : f32
    %437 = vector.broadcast %cst_305 : f32 to vector<32x1xf32>
    %438 = arith.divf %436, %437 : vector<32x1xf32>
    %439 = vector.broadcast %438 : vector<32x1xf32> to vector<32x64xf32>
    %440 = arith.subf %430, %439 : vector<32x64xf32>
    %441 = arith.mulf %440, %440 : vector<32x64xf32>
    %cst_306 = arith.constant dense<0.000000e+00> : vector<32xf32>
    %442 = vector.multi_reduction <add>, %441, %cst_306 [1] : vector<32x64xf32> to vector<32xf32>
    %443 = vector.shape_cast %442 : vector<32xf32> to vector<32x1xf32>
    %cst_307 = arith.constant 6.400000e+01 : f32
    %444 = vector.broadcast %cst_307 : f32 to vector<32x1xf32>
    %445 = arith.divf %443, %444 : vector<32x1xf32>
    %446 = vector.broadcast %438 : vector<32x1xf32> to vector<32x64xf32>
    %447 = arith.subf %430, %446 : vector<32x64xf32>
    %cst_308 = arith.constant 9.99999974E-6 : f32
    %448 = vector.broadcast %cst_308 : f32 to vector<32x1xf32>
    %449 = arith.addf %445, %448 : vector<32x1xf32>
    %450 = math.rsqrt %449 : vector<32x1xf32>
    %451 = vector.broadcast %450 : vector<32x1xf32> to vector<32x64xf32>
    %452 = arith.mulf %447, %451 : vector<32x64xf32>
    %453 = vector.broadcast %432 : vector<1x64xf32> to vector<32x64xf32>
    %454 = arith.mulf %452, %453 : vector<32x64xf32>
    %455 = vector.broadcast %434 : vector<1x64xf32> to vector<32x64xf32>
    %456 = arith.addf %454, %455 : vector<32x64xf32>
    %c2_309 = arith.constant 2 : index
    %c0_310 = arith.constant 0 : index
    %c0_311 = arith.constant 0 : index
    %457 = vector.load %arg27[%c2_309, %c0_310, %c0_311] : memref<4x64x64xf32, #tpu.memory_space<vmem>>, vector<1x64x64xf32>
    %458 = vector.shape_cast %457 : vector<1x64x64xf32> to vector<64x64xf32>
    %cst_312 = arith.constant dense<0.000000e+00> : vector<32x64xf32>
    %459 = tpu.matmul %456, %458, %cst_312 {dimension_numbers = #tpu.dot_dimension_numbers<[1], [0], [0], [1], [0, 0, 1, 1], [], []>} : vector<32x64xf32>, vector<64x64xf32>, vector<32x64xf32> -> vector<32x64xf32>
    %c0_313 = arith.constant 0 : index
    %c0_314 = arith.constant 0 : index
    %460 = vector.load %arg36[%c0_313, %c0_314] : memref<32x64xf32, #tpu.memory_space<vmem>>, vector<32x64xf32>
    %c2_315 = arith.constant 2 : index
    %c0_316 = arith.constant 0 : index
    %c0_317 = arith.constant 0 : index
    %461 = vector.load %arg28[%c2_315, %c0_316, %c0_317] : memref<4x64x64xf32, #tpu.memory_space<vmem>>, vector<1x64x64xf32>
    %462 = vector.shape_cast %461 : vector<1x64x64xf32> to vector<64x64xf32>
    %cst_318 = arith.constant dense<0.000000e+00> : vector<32x64xf32>
    %463 = tpu.matmul %460, %462, %cst_318 {dimension_numbers = #tpu.dot_dimension_numbers<[1], [0], [0], [1], [0, 0, 1, 1], [], []>} : vector<32x64xf32>, vector<64x64xf32>, vector<32x64xf32> -> vector<32x64xf32>
    %464 = arith.addf %459, %463 : vector<32x64xf32>
    %c2_319 = arith.constant 2 : index
    %c0_320 = arith.constant 0 : index
    %c0_321 = arith.constant 0 : index
    %465 = vector.load %arg29[%c2_319, %c0_320, %c0_321] : memref<4x1x64xf32, #tpu.memory_space<vmem>>, vector<1x1x64xf32>
    %466 = vector.shape_cast %465 : vector<1x1x64xf32> to vector<1x64xf32>
    %467 = vector.broadcast %466 : vector<1x64xf32> to vector<32x64xf32>
    %468 = arith.addf %464, %467 : vector<32x64xf32>
    %cst_322 = arith.constant 0.000000e+00 : f32
    %469 = vector.broadcast %cst_322 : f32 to vector<32x64xf32>
    %470 = arith.maximumf %468, %469 : vector<32x64xf32>
    %c2_323 = arith.constant 2 : index
    %c0_324 = arith.constant 0 : index
    %c0_325 = arith.constant 0 : index
    %471 = vector.load %arg30[%c2_323, %c0_324, %c0_325] : memref<4x64x64xf32, #tpu.memory_space<vmem>>, vector<1x64x64xf32>
    %472 = vector.shape_cast %471 : vector<1x64x64xf32> to vector<64x64xf32>
    %cst_326 = arith.constant dense<0.000000e+00> : vector<32x64xf32>
    %473 = tpu.matmul %470, %472, %cst_326 {dimension_numbers = #tpu.dot_dimension_numbers<[1], [0], [0], [1], [0, 0, 1, 1], [], []>} : vector<32x64xf32>, vector<64x64xf32>, vector<32x64xf32> -> vector<32x64xf32>
    %c2_327 = arith.constant 2 : index
    %c0_328 = arith.constant 0 : index
    %c0_329 = arith.constant 0 : index
    %474 = vector.load %arg31[%c2_327, %c0_328, %c0_329] : memref<4x1x64xf32, #tpu.memory_space<vmem>>, vector<1x1x64xf32>
    %475 = vector.shape_cast %474 : vector<1x1x64xf32> to vector<1x64xf32>
    %476 = vector.broadcast %475 : vector<1x64xf32> to vector<32x64xf32>
    %477 = arith.addf %473, %476 : vector<32x64xf32>
    %c0_330 = arith.constant 0 : index
    %c0_331 = arith.constant 0 : index
    %478 = vector.load %arg36[%c0_330, %c0_331] : memref<32x64xf32, #tpu.memory_space<vmem>>, vector<32x64xf32>
    tpu.vector_store %arg36[%c0_330, %c0_331], %477 {strides = array<i32>} : memref<32x64xf32, #tpu.memory_space<vmem>>, vector<32x64xf32>,
    %c3 = arith.constant 3 : index
    %c0_332 = arith.constant 0 : index
    %c0_333 = arith.constant 0 : index
    %479 = vector.load %arg21[%c3, %c0_332, %c0_333] : memref<4x1x64xf32, #tpu.memory_space<vmem>>, vector<1x1x64xf32>
    %480 = vector.shape_cast %479 : vector<1x1x64xf32> to vector<1x64xf32>
    %c3_334 = arith.constant 3 : index
    %c0_335 = arith.constant 0 : index
    %c0_336 = arith.constant 0 : index
    %481 = vector.load %arg22[%c3_334, %c0_335, %c0_336] : memref<4x1x64xf32, #tpu.memory_space<vmem>>, vector<1x1x64xf32>
    %482 = vector.shape_cast %481 : vector<1x1x64xf32> to vector<1x64xf32>
    %c3_337 = arith.constant 3 : index
    %c0_338 = arith.constant 0 : index
    %c0_339 = arith.constant 0 : index
    %483 = vector.load %arg23[%c3_337, %c0_338, %c0_339] : memref<4x64x64xf32, #tpu.memory_space<vmem>>, vector<1x64x64xf32>
    %484 = vector.shape_cast %483 : vector<1x64x64xf32> to vector<64x64xf32>
    %c3_340 = arith.constant 3 : index
    %c0_341 = arith.constant 0 : index
    %c0_342 = arith.constant 0 : index
    %485 = vector.load %arg24[%c3_340, %c0_341, %c0_342] : memref<4x1x64xf32, #tpu.memory_space<vmem>>, vector<1x1x64xf32>
    %486 = vector.shape_cast %485 : vector<1x1x64xf32> to vector<1x64xf32>
    %c0_343 = arith.constant 0 : index
    %c0_344 = arith.constant 0 : index
    %487 = vector.load %arg36[%c0_343, %c0_344] : memref<32x64xf32, #tpu.memory_space<vmem>>, vector<32x64xf32>
    %c3_345 = arith.constant 3 : index
    %c0_346 = arith.constant 0 : index
    %c0_347 = arith.constant 0 : index
    %488 = vector.load %arg18[%c3_345, %c0_346, %c0_347] : memref<4x64x64xf32, #tpu.memory_space<vmem>>, vector<1x64x64xf32>
    %489 = vector.shape_cast %488 : vector<1x64x64xf32> to vector<64x64xf32>
    %cst_348 = arith.constant dense<0.000000e+00> : vector<32x64xf32>
    %490 = tpu.matmul %487, %489, %cst_348 {dimension_numbers = #tpu.dot_dimension_numbers<[1], [0], [0], [1], [0, 0, 1, 1], [], []>} : vector<32x64xf32>, vector<64x64xf32>, vector<32x64xf32> -> vector<32x64xf32>
    %c0_349 = arith.constant 0 : index
    %c0_350 = arith.constant 0 : index
    %491 = vector.load %arg38[%c0_349, %c0_350] : memref<32x64xf32, #tpu.memory_space<vmem>>, vector<32x64xf32>
    tpu.vector_store %arg38[%c0_349, %c0_350], %490 {strides = array<i32>} : memref<32x64xf32, #tpu.memory_space<vmem>>, vector<32x64xf32>,
    %c0_351 = arith.constant 0 : index
    %c0_352 = arith.constant 0 : index
    %492 = vector.load %arg37[%c0_351, %c0_352] : memref<32x64xf32, #tpu.memory_space<vmem>>, vector<32x64xf32>
    %c3_353 = arith.constant 3 : index
    %c0_354 = arith.constant 0 : index
    %c0_355 = arith.constant 0 : index
    %493 = vector.load %arg19[%c3_353, %c0_354, %c0_355] : memref<4x64x64xf32, #tpu.memory_space<vmem>>, vector<1x64x64xf32>
    %494 = vector.shape_cast %493 : vector<1x64x64xf32> to vector<64x64xf32>
    %cst_356 = arith.constant dense<0.000000e+00> : vector<32x64xf32>
    %495 = tpu.matmul %492, %494, %cst_356 {dimension_numbers = #tpu.dot_dimension_numbers<[1], [0], [0], [1], [0, 0, 1, 1], [], []>} : vector<32x64xf32>, vector<64x64xf32>, vector<32x64xf32> -> vector<32x64xf32>
    %c3_357 = arith.constant 3 : index
    %c0_358 = arith.constant 0 : index
    %c0_359 = arith.constant 0 : index
    %496 = vector.load %arg20[%c3_357, %c0_358, %c0_359] : memref<4x1x64xf32, #tpu.memory_space<vmem>>, vector<1x1x64xf32>
    %497 = vector.shape_cast %496 : vector<1x1x64xf32> to vector<1x64xf32>
    %498 = vector.broadcast %497 : vector<1x64xf32> to vector<32x64xf32>
    %499 = arith.addf %495, %498 : vector<32x64xf32>
    %c0_360 = arith.constant 0 : index
    %c0_361 = arith.constant 0 : index
    %500 = vector.load %arg39[%c0_360, %c0_361] : memref<32x64xf32, #tpu.memory_space<vmem>>, vector<32x64xf32>
    tpu.vector_store %arg39[%c0_360, %c0_361], %499 {strides = array<i32>} : memref<32x64xf32, #tpu.memory_space<vmem>>, vector<32x64xf32>,
    %cst_362 = arith.constant 0.000000e+00 : f32
    %501 = vector.broadcast %cst_362 : f32 to vector<32x64xf32>
    %c0_363 = arith.constant 0 : index
    %c0_364 = arith.constant 0 : index
    %502 = vector.load %arg41[%c0_363, %c0_364] : memref<32x64xf32, #tpu.memory_space<vmem>>, vector<32x64xf32>
    tpu.vector_store %arg41[%c0_363, %c0_364], %501 {strides = array<i32>} : memref<32x64xf32, #tpu.memory_space<vmem>>, vector<32x64xf32>,
    %c0_i32_365 = arith.constant 0 : i32
    %503 = arith.index_cast %c0_i32_365 : i32 to index
    %c0_366 = arith.constant 0 : index
    %c0_367 = arith.constant 0 : index
    %504 = vector.load %arg2[%503, %c0_366, %c0_367] : memref<1x128x1xi32, #tpu.memory_space<vmem>>, vector<1x128x1xi32>
    %505 = vector.shape_cast %504 : vector<1x128x1xi32> to vector<128x1xi32>
    %506 = arith.index_cast %c0_i32_365 : i32 to index
    %c0_368 = arith.constant 0 : index
    %c0_369 = arith.constant 0 : index
    %507 = vector.load %arg4[%506, %c0_368, %c0_369] : memref<1x128x1xi32, #tpu.memory_space<vmem>>, vector<1x128x1xi32>
    %508 = vector.shape_cast %507 : vector<1x128x1xi32> to vector<128x1xi32>
    %509 = arith.index_cast %c0_i32_365 : i32 to index
    %c0_370 = arith.constant 0 : index
    %c0_371 = arith.constant 0 : index
    %510 = vector.load %arg5[%509, %c0_370, %c0_371] : memref<1x1x128xi32, #tpu.memory_space<vmem>>, vector<1x1x128xi32>
    %511 = vector.shape_cast %510 : vector<1x1x128xi32> to vector<1x128xi32>
    %512 = tpu.iota {dimensions = array<i32: 1>} : vector<128x32xi32>
    %513 = vector.broadcast %505 : vector<128x1xi32> to vector<128x32xi32>
    %514 = arith.cmpi eq, %513, %512 : vector<128x32xi32>
    %515 = arith.extui %514 : vector<128x32xi1> to vector<128x32xi32>
    %516 = arith.sitofp %515 : vector<128x32xi32> to vector<128x32xf32>
    %517 = tpu.iota {dimensions = array<i32: 1>} : vector<128x32xi32>
    %518 = vector.broadcast %508 : vector<128x1xi32> to vector<128x32xi32>
    %519 = arith.cmpi eq, %518, %517 : vector<128x32xi32>
    %520 = arith.extui %519 : vector<128x32xi1> to vector<128x32xi32>
    %521 = arith.sitofp %520 : vector<128x32xi32> to vector<128x32xf32>
    %c0_372 = arith.constant 0 : index
    %c0_373 = arith.constant 0 : index
    %522 = vector.load %arg38[%c0_372, %c0_373] : memref<32x64xf32, #tpu.memory_space<vmem>>, vector<32x64xf32>
    %cst_374 = arith.constant dense<0.000000e+00> : vector<128x64xf32>
    %523 = tpu.matmul %516, %522, %cst_374 {dimension_numbers = #tpu.dot_dimension_numbers<[1], [0], [0], [1], [0, 0, 1, 1], [], []>} : vector<128x32xf32>, vector<32x64xf32>, vector<128x64xf32> -> vector<128x64xf32>
    %c0_375 = arith.constant 0 : index
    %c0_376 = arith.constant 0 : index
    %524 = vector.load %arg39[%c0_375, %c0_376] : memref<32x64xf32, #tpu.memory_space<vmem>>, vector<32x64xf32>
    %cst_377 = arith.constant dense<0.000000e+00> : vector<128x64xf32>
    %525 = tpu.matmul %521, %524, %cst_377 {dimension_numbers = #tpu.dot_dimension_numbers<[1], [0], [0], [1], [0, 0, 1, 1], [], []>} : vector<128x32xf32>, vector<32x64xf32>, vector<128x64xf32> -> vector<128x64xf32>
    %526 = arith.addf %523, %525 : vector<128x64xf32>
    %cst_378 = arith.constant dense<0.000000e+00> : vector<128xf32>
    %527 = vector.multi_reduction <add>, %526, %cst_378 [1] : vector<128x64xf32> to vector<128xf32>
    %528 = vector.shape_cast %527 : vector<128xf32> to vector<128x1xf32>
    %cst_379 = arith.constant 6.400000e+01 : f32
    %529 = vector.broadcast %cst_379 : f32 to vector<128x1xf32>
    %530 = arith.divf %528, %529 : vector<128x1xf32>
    %531 = vector.broadcast %530 : vector<128x1xf32> to vector<128x64xf32>
    %532 = arith.subf %526, %531 : vector<128x64xf32>
    %533 = arith.mulf %532, %532 : vector<128x64xf32>
    %cst_380 = arith.constant dense<0.000000e+00> : vector<128xf32>
    %534 = vector.multi_reduction <add>, %533, %cst_380 [1] : vector<128x64xf32> to vector<128xf32>
    %535 = vector.shape_cast %534 : vector<128xf32> to vector<128x1xf32>
    %cst_381 = arith.constant 6.400000e+01 : f32
    %536 = vector.broadcast %cst_381 : f32 to vector<128x1xf32>
    %537 = arith.divf %535, %536 : vector<128x1xf32>
    %538 = vector.broadcast %530 : vector<128x1xf32> to vector<128x64xf32>
    %539 = arith.subf %526, %538 : vector<128x64xf32>
    %cst_382 = arith.constant 9.99999974E-6 : f32
    %540 = vector.broadcast %cst_382 : f32 to vector<128x1xf32>
    %541 = arith.addf %537, %540 : vector<128x1xf32>
    %542 = math.rsqrt %541 : vector<128x1xf32>
    %543 = vector.broadcast %542 : vector<128x1xf32> to vector<128x64xf32>
    %544 = arith.mulf %539, %543 : vector<128x64xf32>
    %545 = vector.broadcast %480 : vector<1x64xf32> to vector<128x64xf32>
    %546 = arith.mulf %544, %545 : vector<128x64xf32>
    %547 = vector.broadcast %482 : vector<1x64xf32> to vector<128x64xf32>
    %548 = arith.addf %546, %547 : vector<128x64xf32>
    %cst_383 = arith.constant 0.000000e+00 : f32
    %549 = vector.broadcast %cst_383 : f32 to vector<128x64xf32>
    %550 = arith.maximumf %548, %549 : vector<128x64xf32>
    %cst_384 = arith.constant dense<0.000000e+00> : vector<128x64xf32>
    %551 = tpu.matmul %550, %484, %cst_384 {dimension_numbers = #tpu.dot_dimension_numbers<[1], [0], [0], [1], [0, 0, 1, 1], [], []>} : vector<128x64xf32>, vector<64x64xf32>, vector<128x64xf32> -> vector<128x64xf32>
    %552 = vector.broadcast %486 : vector<1x64xf32> to vector<128x64xf32>
    %553 = arith.addf %551, %552 : vector<128x64xf32>
    %554 = tpu.iota {dimensions = array<i32: 0>} : vector<32x128xi32>
    %555 = vector.broadcast %511 : vector<1x128xi32> to vector<32x128xi32>
    %556 = arith.cmpi eq, %555, %554 : vector<32x128xi32>
    %557 = arith.extui %556 : vector<32x128xi1> to vector<32x128xi32>
    %558 = arith.sitofp %557 : vector<32x128xi32> to vector<32x128xf32>
    %c0_385 = arith.constant 0 : index
    %c0_386 = arith.constant 0 : index
    %559 = vector.load %arg41[%c0_385, %c0_386] : memref<32x64xf32, #tpu.memory_space<vmem>>, vector<32x64xf32>
    %cst_387 = arith.constant dense<0.000000e+00> : vector<32x64xf32>
    %560 = tpu.matmul %558, %553, %cst_387 {dimension_numbers = #tpu.dot_dimension_numbers<[1], [0], [0], [1], [0, 0, 1, 1], [], []>} : vector<32x128xf32>, vector<128x64xf32>, vector<32x64xf32> -> vector<32x64xf32>
    %561 = arith.addf %559, %560 : vector<32x64xf32>
    %c0_388 = arith.constant 0 : index
    %c0_389 = arith.constant 0 : index
    %562 = vector.load %arg41[%c0_388, %c0_389] : memref<32x64xf32, #tpu.memory_space<vmem>>, vector<32x64xf32>
    tpu.vector_store %arg41[%c0_388, %c0_389], %561 {strides = array<i32>} : memref<32x64xf32, #tpu.memory_space<vmem>>, vector<32x64xf32>,
    %c1_i32_390 = arith.constant 1 : i32
    %c0_391 = arith.constant 0 : index
    %c0_392 = arith.constant 0 : index
    %563 = vector.load %arg41[%c0_391, %c0_392] : memref<32x64xf32, #tpu.memory_space<vmem>>, vector<32x64xf32>
    %c3_393 = arith.constant 3 : index
    %c0_394 = arith.constant 0 : index
    %c0_395 = arith.constant 0 : index
    %564 = vector.load %arg25[%c3_393, %c0_394, %c0_395] : memref<4x1x64xf32, #tpu.memory_space<vmem>>, vector<1x1x64xf32>
    %565 = vector.shape_cast %564 : vector<1x1x64xf32> to vector<1x64xf32>
    %c3_396 = arith.constant 3 : index
    %c0_397 = arith.constant 0 : index
    %c0_398 = arith.constant 0 : index
    %566 = vector.load %arg26[%c3_396, %c0_397, %c0_398] : memref<4x1x64xf32, #tpu.memory_space<vmem>>, vector<1x1x64xf32>
    %567 = vector.shape_cast %566 : vector<1x1x64xf32> to vector<1x64xf32>
    %cst_399 = arith.constant dense<0.000000e+00> : vector<32xf32>
    %568 = vector.multi_reduction <add>, %563, %cst_399 [1] : vector<32x64xf32> to vector<32xf32>
    %569 = vector.shape_cast %568 : vector<32xf32> to vector<32x1xf32>
    %cst_400 = arith.constant 6.400000e+01 : f32
    %570 = vector.broadcast %cst_400 : f32 to vector<32x1xf32>
    %571 = arith.divf %569, %570 : vector<32x1xf32>
    %572 = vector.broadcast %571 : vector<32x1xf32> to vector<32x64xf32>
    %573 = arith.subf %563, %572 : vector<32x64xf32>
    %574 = arith.mulf %573, %573 : vector<32x64xf32>
    %cst_401 = arith.constant dense<0.000000e+00> : vector<32xf32>
    %575 = vector.multi_reduction <add>, %574, %cst_401 [1] : vector<32x64xf32> to vector<32xf32>
    %576 = vector.shape_cast %575 : vector<32xf32> to vector<32x1xf32>
    %cst_402 = arith.constant 6.400000e+01 : f32
    %577 = vector.broadcast %cst_402 : f32 to vector<32x1xf32>
    %578 = arith.divf %576, %577 : vector<32x1xf32>
    %579 = vector.broadcast %571 : vector<32x1xf32> to vector<32x64xf32>
    %580 = arith.subf %563, %579 : vector<32x64xf32>
    %cst_403 = arith.constant 9.99999974E-6 : f32
    %581 = vector.broadcast %cst_403 : f32 to vector<32x1xf32>
    %582 = arith.addf %578, %581 : vector<32x1xf32>
    %583 = math.rsqrt %582 : vector<32x1xf32>
    %584 = vector.broadcast %583 : vector<32x1xf32> to vector<32x64xf32>
    %585 = arith.mulf %580, %584 : vector<32x64xf32>
    %586 = vector.broadcast %565 : vector<1x64xf32> to vector<32x64xf32>
    %587 = arith.mulf %585, %586 : vector<32x64xf32>
    %588 = vector.broadcast %567 : vector<1x64xf32> to vector<32x64xf32>
    %589 = arith.addf %587, %588 : vector<32x64xf32>
    %c3_404 = arith.constant 3 : index
    %c0_405 = arith.constant 0 : index
    %c0_406 = arith.constant 0 : index
    %590 = vector.load %arg27[%c3_404, %c0_405, %c0_406] : memref<4x64x64xf32, #tpu.memory_space<vmem>>, vector<1x64x64xf32>
    %591 = vector.shape_cast %590 : vector<1x64x64xf32> to vector<64x64xf32>
    %cst_407 = arith.constant dense<0.000000e+00> : vector<32x64xf32>
    %592 = tpu.matmul %589, %591, %cst_407 {dimension_numbers = #tpu.dot_dimension_numbers<[1], [0], [0], [1], [0, 0, 1, 1], [], []>} : vector<32x64xf32>, vector<64x64xf32>, vector<32x64xf32> -> vector<32x64xf32>
    %c0_408 = arith.constant 0 : index
    %c0_409 = arith.constant 0 : index
    %593 = vector.load %arg37[%c0_408, %c0_409] : memref<32x64xf32, #tpu.memory_space<vmem>>, vector<32x64xf32>
    %c3_410 = arith.constant 3 : index
    %c0_411 = arith.constant 0 : index
    %c0_412 = arith.constant 0 : index
    %594 = vector.load %arg28[%c3_410, %c0_411, %c0_412] : memref<4x64x64xf32, #tpu.memory_space<vmem>>, vector<1x64x64xf32>
    %595 = vector.shape_cast %594 : vector<1x64x64xf32> to vector<64x64xf32>
    %cst_413 = arith.constant dense<0.000000e+00> : vector<32x64xf32>
    %596 = tpu.matmul %593, %595, %cst_413 {dimension_numbers = #tpu.dot_dimension_numbers<[1], [0], [0], [1], [0, 0, 1, 1], [], []>} : vector<32x64xf32>, vector<64x64xf32>, vector<32x64xf32> -> vector<32x64xf32>
    %597 = arith.addf %592, %596 : vector<32x64xf32>
    %c3_414 = arith.constant 3 : index
    %c0_415 = arith.constant 0 : index
    %c0_416 = arith.constant 0 : index
    %598 = vector.load %arg29[%c3_414, %c0_415, %c0_416] : memref<4x1x64xf32, #tpu.memory_space<vmem>>, vector<1x1x64xf32>
    %599 = vector.shape_cast %598 : vector<1x1x64xf32> to vector<1x64xf32>
    %600 = vector.broadcast %599 : vector<1x64xf32> to vector<32x64xf32>
    %601 = arith.addf %597, %600 : vector<32x64xf32>
    %cst_417 = arith.constant 0.000000e+00 : f32
    %602 = vector.broadcast %cst_417 : f32 to vector<32x64xf32>
    %603 = arith.maximumf %601, %602 : vector<32x64xf32>
    %c3_418 = arith.constant 3 : index
    %c0_419 = arith.constant 0 : index
    %c0_420 = arith.constant 0 : index
    %604 = vector.load %arg30[%c3_418, %c0_419, %c0_420] : memref<4x64x64xf32, #tpu.memory_space<vmem>>, vector<1x64x64xf32>
    %605 = vector.shape_cast %604 : vector<1x64x64xf32> to vector<64x64xf32>
    %cst_421 = arith.constant dense<0.000000e+00> : vector<32x64xf32>
    %606 = tpu.matmul %603, %605, %cst_421 {dimension_numbers = #tpu.dot_dimension_numbers<[1], [0], [0], [1], [0, 0, 1, 1], [], []>} : vector<32x64xf32>, vector<64x64xf32>, vector<32x64xf32> -> vector<32x64xf32>
    %c3_422 = arith.constant 3 : index
    %c0_423 = arith.constant 0 : index
    %c0_424 = arith.constant 0 : index
    %607 = vector.load %arg31[%c3_422, %c0_423, %c0_424] : memref<4x1x64xf32, #tpu.memory_space<vmem>>, vector<1x1x64xf32>
    %608 = vector.shape_cast %607 : vector<1x1x64xf32> to vector<1x64xf32>
    %609 = vector.broadcast %608 : vector<1x64xf32> to vector<32x64xf32>
    %610 = arith.addf %606, %609 : vector<32x64xf32>
    %c0_425 = arith.constant 0 : index
    %c0_426 = arith.constant 0 : index
    %611 = vector.load %arg32[%c0_425, %c0_426] : memref<64x64xf32, #tpu.memory_space<vmem>>, vector<64x64xf32>
    %cst_427 = arith.constant dense<0.000000e+00> : vector<32x64xf32>
    %612 = tpu.matmul %610, %611, %cst_427 {dimension_numbers = #tpu.dot_dimension_numbers<[1], [0], [0], [1], [0, 0, 1, 1], [], []>} : vector<32x64xf32>, vector<64x64xf32>, vector<32x64xf32> -> vector<32x64xf32>
    %c0_428 = arith.constant 0 : index
    %c0_429 = arith.constant 0 : index
    %613 = vector.load %arg33[%c0_428, %c0_429] : memref<1x64xf32, #tpu.memory_space<vmem>>, vector<1x64xf32>
    %614 = vector.broadcast %613 : vector<1x64xf32> to vector<32x64xf32>
    %615 = arith.addf %612, %614 : vector<32x64xf32>
    %cst_430 = arith.constant 0.000000e+00 : f32
    %616 = vector.broadcast %cst_430 : f32 to vector<32x64xf32>
    %617 = arith.maximumf %615, %616 : vector<32x64xf32>
    %c0_431 = arith.constant 0 : index
    %c0_432 = arith.constant 0 : index
    %618 = vector.load %arg34[%c0_431, %c0_432] : memref<64x128xf32, #tpu.memory_space<vmem>>, vector<64x128xf32>
    %cst_433 = arith.constant dense<0.000000e+00> : vector<32x128xf32>
    %619 = tpu.matmul %617, %618, %cst_433 {dimension_numbers = #tpu.dot_dimension_numbers<[1], [0], [0], [1], [0, 0, 1, 1], [], []>} : vector<32x64xf32>, vector<64x128xf32>, vector<32x128xf32> -> vector<32x128xf32>
    %c0_434 = arith.constant 0 : index
    %c0_435 = arith.constant 0 : index
    %620 = vector.load %arg35[%c0_434, %c0_435] : memref<32x128xf32, #tpu.memory_space<vmem>>, vector<32x128xf32>
    tpu.vector_store %arg35[%c0_434, %c0_435], %619 {strides = array<i32>} : memref<32x128xf32, #tpu.memory_space<vmem>>, vector<32x128xf32>,
    return
  }
}

</mosaic_0001>

<bundles_post_ra>
// kernel: tpu_custom_call.1
= control target key start
LH: loop header
LB: loop body
LE: loop exit
PB: predicated region body
PF: predicated region fallthrough
CT: control target
= control target key end

     0   :  { %s12711_s6 = smov 1   ;;  %s12712_s10 = smov 2   ;;  %s15060_s0 = inlined_call_operand.smem [shape: u32[36], index: -1, kind: input, shape index: {}] }
   0x1   :  { %s12786_s5 = sld [smem:[%s15060_s0]]   ;;  %s12713_s14 = smov 3  }
   0x2   :  { %s12791_s9 = sld [smem:[%s15060_s0 + %s12711_s6]]   ;;  %s12714_s18 = smov 4  }
   0x3   :  { %s12796_s13 = sld [smem:[%s15060_s0 + %s12712_s10]]   ;;  %s12715_s22 = smov 5  }
   0x4   :  { %s12801_s17 = sld [smem:[%s15060_s0 + %s12713_s14]]   ;;  %s12716_s26 = smov 6  }
   0x5   :  { %s12806_s21 = sld [smem:[%s15060_s0 + %s12714_s18]]   ;;  %s12717_s30 = smov 7  }
   0x6   :  { %s12811_s25 = sld [smem:[%s15060_s0 + %s12715_s22]]   ;;  %s12718_s4 = smov 8  }
   0x7   :  { %15078 = sst [smem:[#allocation61_spill]] %s12786_s5  ;;  %s12719_s10 = smov 9  }
   0x8   :  { %15079 = sst [smem:[#allocation62_spill]] %s12791_s9  ;;  %s12720_s15 = smov 10  }
   0x9   :  { %15080 = sst [smem:[#allocation63_spill]] %s12796_s13  ;;  %s12721_s20 = smov 11  }
   0xa   :  { %15081 = sst [smem:[#allocation64_spill]] %s12801_s17  ;;  %s12723_s1 = smov 13  }
   0xb   :  { %15082 = sst [smem:[#allocation65_spill]] %s12806_s21  ;;  %s12724_s7 = smov 14  }
   0xc   :  { %15083 = sst [smem:[#allocation66_spill]] %s12811_s25  ;;  %s12726_s22 = smov 16  }
   0xd   :  { %s12816_s29 = sld [smem:[%s15060_s0 + %s12716_s26]]   ;;  %s12722_s26 = smov 12  }
   0xe   :  { %s12821_s3 = sld [smem:[%s15060_s0 + %s12717_s30]]   ;;  %s12727_s28 = smov 17  }
   0xf   :  { %s12826_s8 = sld [smem:[%s15060_s0 + %s12718_s4]]  }
  0x10   :  { %s12831_s14 = sld [smem:[%s15060_s0 + %s12719_s10]]  }
  0x11   :  { %s12836_s19 = sld [smem:[%s15060_s0 + %s12720_s15]]   ;;  %s12725_s15 = smov 15  }
  0x12   :  { %s12841_s24 = sld [smem:[%s15060_s0 + %s12721_s20]]  }
  0x13   :  { %s12846_s30 = sld [smem:[%s15060_s0 + %s12722_s26]]  }
  0x14   :  { %s12851_s6 = sld [smem:[%s15060_s0 + %s12723_s1]]  }
  0x15   :  { %15084 = sst [smem:[#allocation67_spill]] %s12826_s8 }
  0x16   :  { %s12856_s12 = sld [smem:[%s15060_s0 + %s12724_s7]]   ;;  %s12728_s7 = smov 18  }
  0x17   :  { %15085 = sst [smem:[#allocation68_spill]] %s12836_s19 }
  0x18   :  { %s12861_s20 = sld [smem:[%s15060_s0 + %s12725_s15]]   ;;  %s12729_s15 = smov 19  }
  0x19   :  { %s12866_s27 = sld [smem:[%s15060_s0 + %s12726_s22]]   ;;  %s12730_s22 = smov 20  }
  0x1a   :  { %s12871_s4 = sld [smem:[%s15060_s0 + %s12727_s28]]   ;;  %s12731_s28 = smov 21  }
  0x1b   :  { %s12876_s25 = sld [smem:[%s15060_s0 + %s12728_s7]]   ;;  %s12732_s7 = smov 22  }
  0x1c   :  { %15086 = sst [smem:[#allocation69_spill]] %s12856_s12 }
  0x1d   :  { %s12881_s17 = sld [smem:[%s15060_s0 + %s12729_s15]]   ;;  %s12733_s15 = smov 23  }
  0x1e   :  { %s12886_s21 = sld [smem:[%s15060_s0 + %s12730_s22]]   ;;  %s12734_s22 = smov 24  }
  0x1f   :  { %15087 = sst [smem:[#allocation70_spill]] %s12866_s27 }
  0x20   :  { %15088 = sst [smem:[#allocation71_spill]] %s12871_s4 }
  0x21   :  { %15089 = sst [smem:[#allocation72_spill]] %s12876_s25 }
  0x22   :  { %s12891_s13 = sld [smem:[%s15060_s0 + %s12731_s28]]   ;;  %s12735_s28 = smov 25  }
  0x23   :  { %s12896_s25 = sld [smem:[%s15060_s0 + %s12732_s7]]   ;;  %s12736_s7 = smov 26  }
  0x24   :  { %15090 = sst [smem:[#allocation73_spill]] %s12886_s21 }
  0x25   :  { %s12901_s27 = sld [smem:[%s15060_s0 + %s12733_s15]]   ;;  %s12737_s15 = smov 27  }
  0x26   :  { %s12906_s19 = sld [smem:[%s15060_s0 + %s12734_s22]]   ;;  %s12738_s22 = smov 28  }
  0x27   :  { %s12911_s8 = sld [smem:[%s15060_s0 + %s12735_s28]]   ;;  %s12739_s28 = smov 29  }
  0x28   :  { %s12916_s9 = sld [smem:[%s15060_s0 + %s12736_s7]]   ;;  %s12740_s7 = smov 30  }
  0x29   :  { %15091 = sst [smem:[#allocation74_spill]] %s12896_s25 }
  0x2a   :  { %s12921_s5 = sld [smem:[%s15060_s0 + %s12737_s15]]   ;;  %s12741_s15 = smov 31  }
  0x2b   :  { %s12931_s25 = sld [smem:[%s15060_s0 + %s12739_s28]]   ;;  %s12743_s28 = smov 33  }
  0x2c   :  { %15092 = sst [smem:[#allocation75_spill]] %s12906_s19 }
  0x2d   :  { %s12926_s19 = sld [smem:[%s15060_s0 + %s12738_s22]]   ;;  %s12742_s22 = smov 32  }
  0x2e   :  { %15093 = sst [smem:[#allocation76_spill]] %s12916_s9 }
  0x2f   :  { %s12936_s9 = sld [smem:[%s15060_s0 + %s12740_s7]]   ;;  %s12744_s7 = smov 34  }
  0x30   :  { %s12941_s21 = sld [smem:[%s15060_s0 + %s12741_s15]]   ;;  %s12745_s15 = smov 35  }
  0x31   :  { %s12951_s4 = sld [smem:[%s15060_s0 + %s12743_s28]]  }
  0x32   :  { %s12961_s12 = sld [smem:[%s15060_s0 + %s12745_s15]]  }
  0x33   :  { %15094 = sst [smem:[#allocation77_spill]] %s12926_s19 }
  0x34   :  { %s12946_s19 = sld [smem:[%s15060_s0 + %s12742_s22]]  }
  0x35   :  { %15095 = sst [smem:[#allocation78_spill]] %s12936_s9 }
  0x36   :  { %s12956_s9 = sld [smem:[%s15060_s0 + %s12744_s7]]  }
  0x37   :  { %76 = vsyncpa [#allocation9], 0 }
  0x38   :  { %77 = vsyncpa [#allocation12], 0 }
  0x39   :  { %78 = vsyncpa [#allocation15], 0 }
  0x3a   :  { %79 = vsyncpa [#allocation18], 0 }
  0x3b   :  { %80 = vsyncpa [#allocation21], 0 }
  0x3c   :  { %81 = vsyncpa [#allocation24], 0 }
  0x3d   :  { %82 = vsyncpa [#allocation27], 0 }
  0x3e   :  { %83 = vsyncpa [#allocation30], 0 }
  0x3f   :  { %84 = vsyncpa [#allocation33], 0 }
  0x40   :  { %85 = vsyncpa [#allocation36], 0 }
  0x41   :  { %86 = vsyncpa [#allocation39], 0 }
  0x42   :  { %87 = vsyncpa [#allocation42], 0 }
  0x43   :  { %88 = vsyncpa [#allocation45], 0 }
  0x44   :  { %89 = vsyncpa [#allocation10], 0  ;;  %s12746_s22 = smov [#allocation11]   ;;  %s12747_s23 = smov [#allocation14]  }
  0x45   :  { %s118_s0 = sshll.u32 %s12746_s22, 4  ;;  %s142_s26 = sshll.u32 %s12747_s23, 4  ;;  %s119_s0 = int_to_ptr.vmem [resolvable:$true] %s118_s0  ;;  %s143_s26 = int_to_ptr.vmem [resolvable:$true] %s142_s26 }
  0x46   :  { %s12133_s28 = scalar_lea.hbm %s12821_s3, 16 }
  0x47   :  { %p12134_p0 = scmp.ne.s32.totalorder %s12821_s3, %s12133_s28  ;;  %p12137_p1 = scmp.lt.u32.totalorder %s12133_s28, %s12821_s3 }
  0x49   :  { %p12139_p2 = pnand %p12137_p1, %p12134_p0 }
  0x4b   :  { %12142 = shalt.err (!%p12139_p2)
}
  0x4c   :  { %s12143_s1 = scalar_lea.vmem %s119_s0, 16  ;;  %s12147_s2 = scalar_lea.vmem %s119_s0, 32 }
  0x4d   :  { %p12144_p3 = scmp.ne.s32.totalorder %s119_s0, %s12143_s1  ;;  %p12148_p4 = scmp.lt.s32.totalorder %s119_s0, %s119_s0 }
  0x4e   :  { %p12149_p5 = scmp.lt.s32.totalorder %s12147_s2, %s12143_s1 }
  0x50   :  { %p12150_p6 = por %p12149_p5, %p12148_p4 }
  0x52   :  { %p12151_p7 = pnand %p12150_p6, %p12144_p3 }
  0x54   :  { %12154 = shalt.err (!%p12151_p7)
}
  0x55   :  { %121 = dma.hbm_to_vmem [thread:$0]  %s12821_s3, 16, %s119_s0, [#allocation12]  }
  0x56   :  { %s12155_s7 = scalar_lea.hbm %s12841_s24, 16 }
  0x57   :  { %p12156_p8 = scmp.ne.s32.totalorder %s12841_s24, %s12155_s7  ;;  %p12159_p9 = scmp.lt.u32.totalorder %s12155_s7, %s12841_s24 }
  0x59   :  { %p12161_p10 = pnand %p12159_p9, %p12156_p8 }
  0x5b   :  { %12164 = shalt.err (!%p12161_p10)
}
  0x5c   :  { %s12165_s10 = scalar_lea.vmem %s143_s26, 16  ;;  %s12169_s11 = scalar_lea.vmem %s143_s26, 32 }
  0x5d   :  { %p12166_p11 = scmp.ne.s32.totalorder %s143_s26, %s12165_s10  ;;  %p12170_p12 = scmp.lt.s32.totalorder %s143_s26, %s143_s26 }
  0x5e   :  { %p12171_p13 = scmp.lt.s32.totalorder %s12169_s11, %s12165_s10 }
  0x60   :  { %p12172_p0 = por %p12171_p13, %p12170_p12 }
  0x62   :  { %p12173_p1 = pnand %p12172_p0, %p12166_p11 }
  0x64   :  { %12176 = shalt.err (!%p12173_p1)
}
  0x65   :  { %145 = dma.hbm_to_vmem [thread:$0]  %s12841_s24, 16, %s143_s26, [#allocation15]  }
  0x66   :  { %s12748_s15 = smov [#allocation17]   ;;  %s12749_s16 = smov [#allocation20]  }
  0x67   :  { %s162_s3 = sshll.u32 %s12748_s15, 4  ;;  %s182_s18 = sshll.u32 %s12749_s16, 4  ;;  %s163_s3 = int_to_ptr.vmem [resolvable:$true] %s162_s3  ;;  %s183_s18 = int_to_ptr.vmem [resolvable:$true] %s182_s18 }
  0x68   :  { %s12177_s22 = scalar_lea.hbm %s12851_s6, 16 }
  0x69   :  { %p12178_p2 = scmp.ne.s32.totalorder %s12851_s6, %s12177_s22  ;;  %p12181_p3 = scmp.lt.u32.totalorder %s12177_s22, %s12851_s6 }
  0x6b   :  { %p12183_p4 = pnand %p12181_p3, %p12178_p2 }
  0x6d   :  { %12186 = shalt.err (!%p12183_p4)
}
  0x6e   :  { %s12187_s0 = scalar_lea.vmem %s163_s3, 16  ;;  %s12191_s23 = scalar_lea.vmem %s163_s3, 32 }
  0x6f   :  { %p12188_p5 = scmp.ne.s32.totalorder %s163_s3, %s12187_s0  ;;  %p12192_p6 = scmp.lt.s32.totalorder %s163_s3, %s163_s3 }
  0x70   :  { %p12193_p7 = scmp.lt.s32.totalorder %s12191_s23, %s12187_s0 }
  0x72   :  { %p12194_p8 = por %p12193_p7, %p12192_p6 }
  0x74   :  { %p12195_p9 = pnand %p12194_p8, %p12188_p5 }
  0x76   :  { %12198 = shalt.err (!%p12195_p9)
}
  0x77   :  { %165 = dma.hbm_to_vmem [thread:$0]  %s12851_s6, 16, %s163_s3, [#allocation18]  }
  0x78   :  { %s12199_s24 = scalar_lea.hbm %s12861_s20, 16 }
  0x79   :  { %p12200_p10 = scmp.ne.s32.totalorder %s12861_s20, %s12199_s24  ;;  %p12203_p11 = scmp.lt.u32.totalorder %s12199_s24, %s12861_s20 }
  0x7b   :  { %p12205_p12 = pnand %p12203_p11, %p12200_p10 }
  0x7d   :  { %12208 = shalt.err (!%p12205_p12)
}
  0x7e   :  { %s12209_s26 = scalar_lea.vmem %s183_s18, 16  ;;  %s12213_s28 = scalar_lea.vmem %s183_s18, 32 }
  0x7f   :  { %p12210_p13 = scmp.ne.s32.totalorder %s183_s18, %s12209_s26  ;;  %p12214_p0 = scmp.lt.s32.totalorder %s183_s18, %s183_s18 }
  0x80   :  { %p12215_p1 = scmp.lt.s32.totalorder %s12213_s28, %s12209_s26 }
  0x82   :  { %p12216_p2 = por %p12215_p1, %p12214_p0 }
  0x84   :  { %p12217_p3 = pnand %p12216_p2, %p12210_p13 }
  0x86   :  { %12220 = shalt.err (!%p12217_p3)
}
  0x87   :  { %185 = dma.hbm_to_vmem [thread:$0]  %s12861_s20, 16, %s183_s18, [#allocation21]  }
  0x88   :  { %s12750_s1 = smov [#allocation23]   ;;  %s12221_s2 = scalar_lea.hbm %s12881_s17, 4096 }
  0x89   :  { %s205_s6 = sshll.u32 %s12750_s1, 4  ;;  %p12222_p4 = scmp.ne.s32.totalorder %s12881_s17, %s12221_s2  ;;  %s206_s6 = int_to_ptr.vmem [resolvable:$true] %s205_s6 }
  0x8a   :  { %p12225_p5 = scmp.lt.u32.totalorder %s12221_s2, %s12881_s17 }
  0x8c   :  { %p12227_p6 = pnand %p12225_p5, %p12222_p4 }
  0x8e   :  { %12230 = shalt.err (!%p12227_p6)
}
  0x8f   :  { %s12231_s7 = scalar_lea.vmem %s206_s6, 4096  ;;  %p12236_p8 = scmp.lt.s32.totalorder %s206_s6, %s206_s6 }
  0x90   :  { %p12232_p7 = scmp.ne.s32.totalorder %s206_s6, %s12231_s7  ;;  %p12237_p9 = scmp.lt.s32.totalorder %s12231_s7, %s12231_s7 }
  0x92   :  { %p12238_p10 = por %p12237_p9, %p12236_p8 }
  0x94   :  { %p12239_p11 = pnand %p12238_p10, %p12232_p7 }
  0x96   :  { %12242 = shalt.err (!%p12239_p11)
}
  0x97   :  { %s12751_s10 = smov 128   ;;  %s12752_s20 = smov 8  }
  0x98   :  { %211 = dma.hbm_to_vmem [thread:$0]  %s12881_s17, 4096, %s206_s6, [#allocation24], %s12751_s10, %s12751_s10, %s12752_s20  }
  0x99   :  { %s12753_s11 = smov [#allocation26]   ;;  %s12754_s3 = smov [#allocation29]  }
  0x9a   :  { %s229_s15 = sshll.u32 %s12753_s11, 4  ;;  %s253_s16 = sshll.u32 %s12754_s3, 4  ;;  %s230_s15 = int_to_ptr.vmem [resolvable:$true] %s229_s15  ;;  %s254_s16 = int_to_ptr.vmem [resolvable:$true] %s253_s16 }
  0x9b   :  { %s12243_s18 = scalar_lea.hbm %s12891_s13, 64 }
  0x9c   :  { %p12244_p12 = scmp.ne.s32.totalorder %s12891_s13, %s12243_s18  ;;  %p12247_p13 = scmp.lt.u32.totalorder %s12243_s18, %s12891_s13 }
  0x9e   :  { %p12249_p0 = pnand %p12247_p13, %p12244_p12 }
  0xa0   :  { %12252 = shalt.err (!%p12249_p0)
}
  0xa1   :  { %s12253_s22 = scalar_lea.vmem %s230_s15, 64  ;;  %p12258_p2 = scmp.lt.s32.totalorder %s230_s15, %s230_s15 }
  0xa2   :  { %p12254_p1 = scmp.ne.s32.totalorder %s230_s15, %s12253_s22  ;;  %p12259_p3 = scmp.lt.s32.totalorder %s12253_s22, %s12253_s22 }
  0xa4   :  { %p12260_p4 = por %p12259_p3, %p12258_p2 }
  0xa6   :  { %p12261_p5 = pnand %p12260_p4, %p12254_p1 }
  0xa8   :  { %12264 = shalt.err (!%p12261_p5)
}
  0xa9   :  { %s12755_s0 = smov 16   ;;  %s12756_s17 = smov 1  }
  0xaa   :  { %235 = dma.hbm_to_vmem [thread:$0]  %s12891_s13, 64, %s230_s15, [#allocation27], %s12755_s0, %s12755_s0, %s12756_s17  }
  0xab   :  { %s12265_s23 = scalar_lea.hbm %s12901_s27, 4096 }
  0xac   :  { %p12266_p6 = scmp.ne.s32.totalorder %s12901_s27, %s12265_s23  ;;  %p12269_p7 = scmp.lt.u32.totalorder %s12265_s23, %s12901_s27 }
  0xae   :  { %p12271_p8 = pnand %p12269_p7, %p12266_p6 }
  0xb0   :  { %12274 = shalt.err (!%p12271_p8)
}
  0xb1   :  { %s12275_s24 = scalar_lea.vmem %s254_s16, 4096  ;;  %p12280_p10 = scmp.lt.s32.totalorder %s254_s16, %s254_s16 }
  0xb2   :  { %p12276_p9 = scmp.ne.s32.totalorder %s254_s16, %s12275_s24  ;;  %p12281_p11 = scmp.lt.s32.totalorder %s12275_s24, %s12275_s24 }
  0xb4   :  { %p12282_p12 = por %p12281_p11, %p12280_p10 }
  0xb6   :  { %p12283_p13 = pnand %p12282_p12, %p12276_p9 }
  0xb8   :  { %12286 = shalt.err (!%p12283_p13)
}
  0xb9   :  { %259 = dma.hbm_to_vmem [thread:$0]  %s12901_s27, 4096, %s254_s16, [#allocation30], %s12751_s10, %s12751_s10, %s12752_s20  }
  0xba   :  { %s12757_s13 = smov [#allocation32]   ;;  %s12758_s28 = smov [#allocation35]  }
  0xbb   :  { %s277_s26 = sshll.u32 %s12757_s13, 4  ;;  %s301_s1 = sshll.u32 %s12758_s28, 4  ;;  %s278_s26 = int_to_ptr.vmem [resolvable:$true] %s277_s26  ;;  %s302_s1 = int_to_ptr.vmem [resolvable:$true] %s301_s1 }
  0xbc   :  { %s12287_s6 = scalar_lea.hbm %s12911_s8, 64 }
  0xbd   :  { %p12288_p0 = scmp.ne.s32.totalorder %s12911_s8, %s12287_s6  ;;  %p12291_p1 = scmp.lt.u32.totalorder %s12287_s6, %s12911_s8 }
  0xbf   :  { %p12293_p2 = pnand %p12291_p1, %p12288_p0 }
  0xc1   :  { %12296 = shalt.err (!%p12293_p2)
}
  0xc2   :  { %s12297_s2 = scalar_lea.vmem %s278_s26, 64  ;;  %p12302_p4 = scmp.lt.s32.totalorder %s278_s26, %s278_s26 }
  0xc3   :  { %p12298_p3 = scmp.ne.s32.totalorder %s278_s26, %s12297_s2  ;;  %p12303_p5 = scmp.lt.s32.totalorder %s12297_s2, %s12297_s2 }
  0xc5   :  { %p12304_p6 = por %p12303_p5, %p12302_p4 }
  0xc7   :  { %p12305_p7 = pnand %p12304_p6, %p12298_p3 }
  0xc9   :  { %12308 = shalt.err (!%p12305_p7)
}
  0xca   :  { %283 = dma.hbm_to_vmem [thread:$0]  %s12911_s8, 64, %s278_s26, [#allocation33], %s12755_s0, %s12755_s0, %s12756_s17  }
  0xcb   :  { %s12309_s27 = scalar_lea.hbm %s12921_s5, 4096 }
  0xcc   :  { %p12310_p8 = scmp.ne.s32.totalorder %s12921_s5, %s12309_s27  ;;  %p12313_p9 = scmp.lt.u32.totalorder %s12309_s27, %s12921_s5 }
  0xce   :  { %p12315_p10 = pnand %p12313_p9, %p12310_p8 }
  0xd0   :  { %12318 = shalt.err (!%p12315_p10)
}
  0xd1   :  { %s12319_s7 = scalar_lea.vmem %s302_s1, 4096  ;;  %p12324_p12 = scmp.lt.s32.totalorder %s302_s1, %s302_s1 }
  0xd2   :  { %p12320_p11 = scmp.ne.s32.totalorder %s302_s1, %s12319_s7  ;;  %p12325_p13 = scmp.lt.s32.totalorder %s12319_s7, %s12319_s7 }
  0xd4   :  { %p12326_p0 = por %p12325_p13, %p12324_p12 }
  0xd6   :  { %p12327_p1 = pnand %p12326_p0, %p12320_p11 }
  0xd8   :  { %12330 = shalt.err (!%p12327_p1)
}
  0xd9   :  { %307 = dma.hbm_to_vmem [thread:$0]  %s12921_s5, 4096, %s302_s1, [#allocation36], %s12751_s10, %s12751_s10, %s12752_s20  }
  0xda   :  { %s12759_s8 = smov [#allocation38]   ;;  %s12760_s15 = smov [#allocation41]  }
  0xdb   :  { %s325_s11 = sshll.u32 %s12759_s8, 4  ;;  %s349_s3 = sshll.u32 %s12760_s15, 4  ;;  %s326_s11 = int_to_ptr.vmem [resolvable:$true] %s325_s11  ;;  %s350_s3 = int_to_ptr.vmem [resolvable:$true] %s349_s3 }
  0xdc   :  { %s12331_s16 = scalar_lea.hbm %s12931_s25, 64 }
  0xdd   :  { %p12332_p2 = scmp.ne.s32.totalorder %s12931_s25, %s12331_s16  ;;  %p12335_p3 = scmp.lt.u32.totalorder %s12331_s16, %s12931_s25 }
  0xdf   :  { %p12337_p4 = pnand %p12335_p3, %p12332_p2 }
  0xe1   :  { %12340 = shalt.err (!%p12337_p4)
}
  0xe2   :  { %s12341_s18 = scalar_lea.vmem %s326_s11, 64  ;;  %p12346_p6 = scmp.lt.s32.totalorder %s326_s11, %s326_s11 }
  0xe3   :  { %p12342_p5 = scmp.ne.s32.totalorder %s326_s11, %s12341_s18  ;;  %p12347_p7 = scmp.lt.s32.totalorder %s12341_s18, %s12341_s18 }
  0xe5   :  { %p12348_p8 = por %p12347_p7, %p12346_p6 }
  0xe7   :  { %p12349_p9 = pnand %p12348_p8, %p12342_p5 }
  0xe9   :  { %12352 = shalt.err (!%p12349_p9)
}
  0xea   :  { %331 = dma.hbm_to_vmem [thread:$0]  %s12931_s25, 64, %s326_s11, [#allocation39], %s12755_s0, %s12755_s0, %s12756_s17  }
  0xeb   :  { %s12353_s5 = scalar_lea.hbm %s12941_s21, 64 }
  0xec   :  { %p12354_p10 = scmp.ne.s32.totalorder %s12941_s21, %s12353_s5  ;;  %p12357_p11 = scmp.lt.u32.totalorder %s12353_s5, %s12941_s21 }
  0xee   :  { %p12359_p12 = pnand %p12357_p11, %p12354_p10 }
  0xf0   :  { %12362 = shalt.err (!%p12359_p12)
}
  0xf1   :  { %s12363_s22 = scalar_lea.vmem %s350_s3, 64  ;;  %p12368_p0 = scmp.lt.s32.totalorder %s350_s3, %s350_s3 }
  0xf2   :  { %p12364_p13 = scmp.ne.s32.totalorder %s350_s3, %s12363_s22  ;;  %p12369_p1 = scmp.lt.s32.totalorder %s12363_s22, %s12363_s22 }
  0xf4   :  { %p12370_p2 = por %p12369_p1, %p12368_p0 }
  0xf6   :  { %p12371_p3 = pnand %p12370_p2, %p12364_p13 }
  0xf8   :  { %12374 = shalt.err (!%p12371_p3)
}
  0xf9   :  { %355 = dma.hbm_to_vmem [thread:$0]  %s12941_s21, 64, %s350_s3, [#allocation42], %s12755_s0, %s12755_s0, %s12756_s17  }
  0xfa   :  { %s12761_s25 = smov [#allocation8]   ;;  %s12762_s24 = smov [#allocation13]  }
  0xfb   :  { %s108_s23 = sshll.u32 %s12761_s25, 4  ;;  %s130_s13 = sshll.u32 %s12762_s24, 4  ;;  %s109_s23 = int_to_ptr.vmem [resolvable:$true] %s108_s23  ;;  %s131_s13 = int_to_ptr.vmem [resolvable:$true] %s130_s13 }
  0xfc   :  { %s12375_s26 = scalar_lea.hbm %s12816_s29, 16 }
  0xfd   :  { %p12376_p4 = scmp.ne.s32.totalorder %s12816_s29, %s12375_s26  ;;  %p12379_p5 = scmp.lt.u32.totalorder %s12375_s26, %s12816_s29 }
  0xff   :  { %p12381_p6 = pnand %p12379_p5, %p12376_p4 }
 0x101   :  { %12384 = shalt.err (!%p12381_p6)
}
 0x102   :  { %s12385_s28 = scalar_lea.vmem %s109_s23, 16  ;;  %s12389_s1 = scalar_lea.vmem %s109_s23, 32 }
 0x103   :  { %p12386_p7 = scmp.ne.s32.totalorder %s109_s23, %s12385_s28  ;;  %p12390_p8 = scmp.lt.s32.totalorder %s109_s23, %s109_s23 }
 0x104   :  { %p12391_p9 = scmp.lt.s32.totalorder %s12389_s1, %s12385_s28 }
 0x106   :  { %p12392_p10 = por %p12391_p9, %p12390_p8 }
 0x108   :  { %p12393_p11 = pnand %p12392_p10, %p12386_p7 }
 0x10a   :  { %12396 = shalt.err (!%p12393_p11)
}
 0x10b   :  { %111 = dma.hbm_to_vmem [thread:$0]  %s12816_s29, 16, %s109_s23, [#allocation9]  }
 0x10c   :  { %s12397_s21 = scalar_lea.hbm %s12831_s14, 16 }
 0x10d   :  { %p12398_p12 = scmp.ne.s32.totalorder %s12831_s14, %s12397_s21  ;;  %p12401_p13 = scmp.lt.u32.totalorder %s12397_s21, %s12831_s14 }
 0x10f   :  { %p12403_p0 = pnand %p12401_p13, %p12398_p12 }
 0x111   :  { %12406 = shalt.err (!%p12403_p0)
}
 0x112   :  { %s12407_s6 = scalar_lea.vmem %s131_s13, 16  ;;  %s12411_s2 = scalar_lea.vmem %s131_s13, 32 }
 0x113   :  { %p12408_p1 = scmp.ne.s32.totalorder %s131_s13, %s12407_s6  ;;  %p12412_p2 = scmp.lt.s32.totalorder %s131_s13, %s131_s13 }
 0x114   :  { %p12413_p3 = scmp.lt.s32.totalorder %s12411_s2, %s12407_s6 }
 0x116   :  { %p12414_p4 = por %p12413_p3, %p12412_p2 }
 0x118   :  { %p12415_p5 = pnand %p12414_p4, %p12408_p1 }
 0x11a   :  { %12418 = shalt.err (!%p12415_p5)
}
 0x11b   :  { %133 = dma.hbm_to_vmem [thread:$0]  %s12831_s14, 16, %s131_s13, [#allocation12]  }
 0x11c   :  { %s12763_s29 = smov [#allocation16]   ;;  %s12764_s7 = smov [#allocation19]  }
 0x11d   :  { %s152_s27 = sshll.u32 %s12763_s29, 4  ;;  %s172_s8 = sshll.u32 %s12764_s7, 4  ;;  %s153_s27 = int_to_ptr.vmem [resolvable:$true] %s152_s27  ;;  %s173_s8 = int_to_ptr.vmem [resolvable:$true] %s172_s8 }
 0x11e   :  { %s12419_s11 = scalar_lea.hbm %s12846_s30, 16 }
 0x11f   :  { %p12420_p6 = scmp.ne.s32.totalorder %s12846_s30, %s12419_s11  ;;  %p12423_p7 = scmp.lt.u32.totalorder %s12419_s11, %s12846_s30 }
 0x121   :  { %p12425_p8 = pnand %p12423_p7, %p12420_p6 }
 0x123   :  { %12428 = shalt.err (!%p12425_p8)
}
 0x124   :  { %s12429_s15 = scalar_lea.vmem %s153_s27, 16  ;;  %s12433_s3 = scalar_lea.vmem %s153_s27, 32 }
 0x125   :  { %p12430_p9 = scmp.ne.s32.totalorder %s153_s27, %s12429_s15  ;;  %p12434_p10 = scmp.lt.s32.totalorder %s153_s27, %s153_s27 }
 0x126   :  { %p12435_p11 = scmp.lt.s32.totalorder %s12433_s3, %s12429_s15 }
 0x128   :  { %p12436_p12 = por %p12435_p11, %p12434_p10 }
 0x12a   :  { %p12437_p13 = pnand %p12436_p12, %p12430_p9 }
 0x12c   :  { %12440 = shalt.err (!%p12437_p13)
}
 0x12d   :  { %s15096_s14 = sld [smem:[#allocation69_spill]] }
 0x12e   :  { %155 = dma.hbm_to_vmem [thread:$0]  %s12846_s30, 16, %s153_s27, [#allocation15]  }
 0x133   :  { %s12441_s16 = scalar_lea.hbm %s15096_s14, 128 }
 0x134   :  { %p12442_p0 = scmp.ne.s32.totalorder %s15096_s14, %s12441_s16  ;;  %p12445_p1 = scmp.lt.u32.totalorder %s12441_s16, %s15096_s14 }
 0x136   :  { %p12447_p2 = pnand %p12445_p1, %p12442_p0 }
 0x138   :  { %12450 = shalt.err (!%p12447_p2)
}
 0x139   :  { %s12451_s18 = scalar_lea.vmem %s173_s8, 128  ;;  %p12456_p4 = scmp.lt.s32.totalorder %s173_s8, %s173_s8 }
 0x13a   :  { %p12452_p3 = scmp.ne.s32.totalorder %s173_s8, %s12451_s18  ;;  %p12457_p5 = scmp.lt.s32.totalorder %s12451_s18, %s12451_s18 }
 0x13c   :  { %p12458_p6 = por %p12457_p5, %p12456_p4 }
 0x13e   :  { %p12459_p7 = pnand %p12458_p6, %p12452_p3 }
 0x140   :  { %12462 = shalt.err (!%p12459_p7)
}
 0x141   :  { %s15097_s5 = sld [smem:[#allocation71_spill]]  ;;  %s12765_s22 = smov [#allocation22]  }
 0x142   :  { %175 = dma.hbm_to_vmem [thread:$0]  %s15096_s14, 128, %s173_s8, [#allocation18]  }
 0x143   :  { %s194_s30 = sshll.u32 %s12765_s22, 4  ;;  %s12766_s25 = smov [#allocation25]   ;;  %s195_s30 = int_to_ptr.vmem [resolvable:$true] %s194_s30 }
 0x144   :  { %s217_s23 = sshll.u32 %s12766_s25, 4  ;;  %s218_s23 = int_to_ptr.vmem [resolvable:$true] %s217_s23 }
 0x147   :  { %s12463_s24 = scalar_lea.hbm %s15097_s5, 16 }
 0x148   :  { %p12464_p8 = scmp.ne.s32.totalorder %s15097_s5, %s12463_s24  ;;  %p12467_p9 = scmp.lt.u32.totalorder %s12463_s24, %s15097_s5 }
 0x14a   :  { %p12469_p10 = pnand %p12467_p9, %p12464_p8 }
 0x14c   :  { %12472 = shalt.err (!%p12469_p10)
}
 0x14d   :  { %s12473_s13 = scalar_lea.vmem %s195_s30, 16  ;;  %s12477_s26 = scalar_lea.vmem %s195_s30, 32 }
 0x14e   :  { %p12474_p11 = scmp.ne.s32.totalorder %s195_s30, %s12473_s13  ;;  %p12478_p12 = scmp.lt.s32.totalorder %s195_s30, %s195_s30 }
 0x14f   :  { %p12479_p13 = scmp.lt.s32.totalorder %s12477_s26, %s12473_s13 }
 0x151   :  { %p12480_p0 = por %p12479_p13, %p12478_p12 }
 0x153   :  { %p12481_p1 = pnand %p12480_p0, %p12474_p11 }
 0x155   :  { %12484 = shalt.err (!%p12481_p1)
}
 0x156   :  { %s15098_s28 = sld [smem:[#allocation73_spill]] }
 0x157   :  { %197 = dma.hbm_to_vmem [thread:$0]  %s15097_s5, 16, %s195_s30, [#allocation21]  }
 0x15c   :  { %s12485_s1 = scalar_lea.hbm %s15098_s28, 64 }
 0x15d   :  { %p12486_p2 = scmp.ne.s32.totalorder %s15098_s28, %s12485_s1  ;;  %p12489_p3 = scmp.lt.u32.totalorder %s12485_s1, %s15098_s28 }
 0x15f   :  { %p12491_p4 = pnand %p12489_p3, %p12486_p2 }
 0x161   :  { %12494 = shalt.err (!%p12491_p4)
}
 0x162   :  { %s12495_s21 = scalar_lea.vmem %s218_s23, 64  ;;  %p12500_p6 = scmp.lt.s32.totalorder %s218_s23, %s218_s23 }
 0x163   :  { %p12496_p5 = scmp.ne.s32.totalorder %s218_s23, %s12495_s21  ;;  %p12501_p7 = scmp.lt.s32.totalorder %s12495_s21, %s12495_s21 }
 0x165   :  { %p12502_p8 = por %p12501_p7, %p12500_p6 }
 0x167   :  { %p12503_p9 = pnand %p12502_p8, %p12496_p5 }
 0x169   :  { %12506 = shalt.err (!%p12503_p9)
}
 0x16a   :  { %s15099_s6 = sld [smem:[#allocation74_spill]]  ;;  %s12767_s2 = smov [#allocation28]  }
 0x16b   :  { %223 = dma.hbm_to_vmem [thread:$0]  %s15098_s28, 64, %s218_s23, [#allocation24], %s12755_s0, %s12755_s0, %s12756_s17  }
 0x16c   :  { %s241_s29 = sshll.u32 %s12767_s2, 4  ;;  %s12768_s27 = smov [#allocation31]   ;;  %s242_s29 = int_to_ptr.vmem [resolvable:$true] %s241_s29 }
 0x16d   :  { %s265_s7 = sshll.u32 %s12768_s27, 4  ;;  %s266_s7 = int_to_ptr.vmem [resolvable:$true] %s265_s7 }
 0x170   :  { %s12507_s8 = scalar_lea.hbm %s15099_s6, 64 }
 0x171   :  { %p12508_p10 = scmp.ne.s32.totalorder %s15099_s6, %s12507_s8  ;;  %p12511_p11 = scmp.lt.u32.totalorder %s12507_s8, %s15099_s6 }
 0x173   :  { %p12513_p12 = pnand %p12511_p11, %p12508_p10 }
 0x175   :  { %12516 = shalt.err (!%p12513_p12)
}
 0x176   :  { %s12517_s11 = scalar_lea.vmem %s242_s29, 64  ;;  %p12522_p0 = scmp.lt.s32.totalorder %s242_s29, %s242_s29 }
 0x177   :  { %p12518_p13 = scmp.ne.s32.totalorder %s242_s29, %s12517_s11  ;;  %p12523_p1 = scmp.lt.s32.totalorder %s12517_s11, %s12517_s11 }
 0x179   :  { %p12524_p2 = por %p12523_p1, %p12522_p0 }
 0x17b   :  { %p12525_p3 = pnand %p12524_p2, %p12518_p13 }
 0x17d   :  { %12528 = shalt.err (!%p12525_p3)
}
 0x17e   :  { %s15100_s15 = sld [smem:[#allocation75_spill]] }
 0x17f   :  { %247 = dma.hbm_to_vmem [thread:$0]  %s15099_s6, 64, %s242_s29, [#allocation27], %s12755_s0, %s12755_s0, %s12756_s17  }
 0x184   :  { %s12529_s3 = scalar_lea.hbm %s15100_s15, 64 }
 0x185   :  { %p12530_p4 = scmp.ne.s32.totalorder %s15100_s15, %s12529_s3  ;;  %p12533_p5 = scmp.lt.u32.totalorder %s12529_s3, %s15100_s15 }
 0x187   :  { %p12535_p6 = pnand %p12533_p5, %p12530_p4 }
 0x189   :  { %12538 = shalt.err (!%p12535_p6)
}
 0x18a   :  { %s12539_s14 = scalar_lea.vmem %s266_s7, 64  ;;  %p12544_p8 = scmp.lt.s32.totalorder %s266_s7, %s266_s7 }
 0x18b   :  { %p12540_p7 = scmp.ne.s32.totalorder %s266_s7, %s12539_s14  ;;  %p12545_p9 = scmp.lt.s32.totalorder %s12539_s14, %s12539_s14 }
 0x18d   :  { %p12546_p10 = por %p12545_p9, %p12544_p8 }
 0x18f   :  { %p12547_p11 = pnand %p12546_p10, %p12540_p7 }
 0x191   :  { %12550 = shalt.err (!%p12547_p11)
}
 0x192   :  { %s15101_s16 = sld [smem:[#allocation76_spill]]  ;;  %s12769_s18 = smov [#allocation34]  }
 0x193   :  { %271 = dma.hbm_to_vmem [thread:$0]  %s15100_s15, 64, %s266_s7, [#allocation30], %s12755_s0, %s12755_s0, %s12756_s17  }
 0x194   :  { %s289_s5 = sshll.u32 %s12769_s18, 4  ;;  %s12770_s22 = smov [#allocation37]   ;;  %s290_s5 = int_to_ptr.vmem [resolvable:$true] %s289_s5 }
 0x195   :  { %s313_s30 = sshll.u32 %s12770_s22, 4  ;;  %s314_s30 = int_to_ptr.vmem [resolvable:$true] %s313_s30 }
 0x198   :  { %s12551_s25 = scalar_lea.hbm %s15101_s16, 64 }
 0x199   :  { %p12552_p12 = scmp.ne.s32.totalorder %s15101_s16, %s12551_s25  ;;  %p12555_p13 = scmp.lt.u32.totalorder %s12551_s25, %s15101_s16 }
 0x19b   :  { %p12557_p0 = pnand %p12555_p13, %p12552_p12 }
 0x19d   :  { %12560 = shalt.err (!%p12557_p0)
}
 0x19e   :  { %s12561_s23 = scalar_lea.vmem %s290_s5, 64  ;;  %p12566_p2 = scmp.lt.s32.totalorder %s290_s5, %s290_s5 }
 0x19f   :  { %p12562_p1 = scmp.ne.s32.totalorder %s290_s5, %s12561_s23  ;;  %p12567_p3 = scmp.lt.s32.totalorder %s12561_s23, %s12561_s23 }
 0x1a1   :  { %p12568_p4 = por %p12567_p3, %p12566_p2 }
 0x1a3   :  { %p12569_p5 = pnand %p12568_p4, %p12562_p1 }
 0x1a5   :  { %12572 = shalt.err (!%p12569_p5)
}
 0x1a6   :  { %s15102_s24 = sld [smem:[#allocation77_spill]] }
 0x1a7   :  { %295 = dma.hbm_to_vmem [thread:$0]  %s15101_s16, 64, %s290_s5, [#allocation33], %s12755_s0, %s12755_s0, %s12756_s17  }
 0x1ac   :  { %s12573_s13 = scalar_lea.hbm %s15102_s24, 4096 }
 0x1ad   :  { %p12574_p6 = scmp.ne.s32.totalorder %s15102_s24, %s12573_s13  ;;  %p12577_p7 = scmp.lt.u32.totalorder %s12573_s13, %s15102_s24 }
 0x1af   :  { %p12579_p8 = pnand %p12577_p7, %p12574_p6 }
 0x1b1   :  { %12582 = shalt.err (!%p12579_p8)
}
 0x1b2   :  { %s12583_s26 = scalar_lea.vmem %s314_s30, 4096  ;;  %p12588_p10 = scmp.lt.s32.totalorder %s314_s30, %s314_s30 }
 0x1b3   :  { %p12584_p9 = scmp.ne.s32.totalorder %s314_s30, %s12583_s26  ;;  %p12589_p11 = scmp.lt.s32.totalorder %s12583_s26, %s12583_s26 }
 0x1b5   :  { %p12590_p12 = por %p12589_p11, %p12588_p10 }
 0x1b7   :  { %p12591_p13 = pnand %p12590_p12, %p12584_p9 }
 0x1b9   :  { %12594 = shalt.err (!%p12591_p13)
}
 0x1ba   :  { %s15103_s28 = sld [smem:[#allocation78_spill]]  ;;  %s12771_s0 = smov [#allocation40]  }
 0x1bb   :  { %319 = dma.hbm_to_vmem [thread:$0]  %s15102_s24, 4096, %s314_s30, [#allocation36], %s12751_s10, %s12751_s10, %s12752_s20  }
 0x1bc   :  { %s337_s17 = sshll.u32 %s12771_s0, 4  ;;  %s12772_s1 = smov [#allocation43]   ;;  %s338_s17 = int_to_ptr.vmem [resolvable:$true] %s337_s17 }
 0x1bd   :  { %s364_s21 = sshll.u32 %s12772_s1, 4  ;;  %s365_s21 = int_to_ptr.vmem [resolvable:$true] %s364_s21 }
 0x1c0   :  { %s12595_s6 = scalar_lea.hbm %s15103_s28, 4096 }
 0x1c1   :  { %p12596_p0 = scmp.ne.s32.totalorder %s15103_s28, %s12595_s6  ;;  %p12599_p1 = scmp.lt.u32.totalorder %s12595_s6, %s15103_s28 }
 0x1c3   :  { %p12601_p2 = pnand %p12599_p1, %p12596_p0 }
 0x1c5   :  { %12604 = shalt.err (!%p12601_p2)
}
 0x1c6   :  { %s12605_s2 = scalar_lea.vmem %s338_s17, 4096  ;;  %p12610_p4 = scmp.lt.s32.totalorder %s338_s17, %s338_s17 }
 0x1c7   :  { %p12606_p3 = scmp.ne.s32.totalorder %s338_s17, %s12605_s2  ;;  %p12611_p5 = scmp.lt.s32.totalorder %s12605_s2, %s12605_s2 }
 0x1c9   :  { %p12612_p6 = por %p12611_p5, %p12610_p4 }
 0x1cb   :  { %p12613_p7 = pnand %p12612_p6, %p12606_p3 }
 0x1cd   :  { %12616 = shalt.err (!%p12613_p7)
}
 0x1ce   :  { %343 = dma.hbm_to_vmem [thread:$0]  %s15103_s28, 4096, %s338_s17, [#allocation39], %s12751_s10, %s12751_s10, %s12752_s20  }
 0x1cf   :  { %s12617_s29 = scalar_lea.hbm %s12951_s4, 16 }
 0x1d0   :  { %p12618_p8 = scmp.ne.s32.totalorder %s12951_s4, %s12617_s29  ;;  %p12621_p9 = scmp.lt.u32.totalorder %s12617_s29, %s12951_s4 }
 0x1d2   :  { %p12623_p10 = pnand %p12621_p9, %p12618_p8 }
 0x1d4   :  { %12626 = shalt.err (!%p12623_p10)
}
 0x1d5   :  { %s12627_s27 = scalar_lea.vmem %s365_s21, 16  ;;  %s12631_s7 = scalar_lea.vmem %s365_s21, 32 }
 0x1d6   :  { %p12628_p11 = scmp.ne.s32.totalorder %s365_s21, %s12627_s27  ;;  %p12632_p12 = scmp.lt.s32.totalorder %s365_s21, %s365_s21 }
 0x1d7   :  { %p12633_p13 = scmp.lt.s32.totalorder %s12631_s7, %s12627_s27 }
 0x1d9   :  { %p12634_p0 = por %p12633_p13, %p12632_p12 }
 0x1db   :  { %p12635_p1 = pnand %p12634_p0, %p12628_p11 }
 0x1dd   :  { %12638 = shalt.err (!%p12635_p1)
}
 0x1de   :  { %367 = dma.hbm_to_vmem [thread:$0]  %s12951_s4, 16, %s365_s21, [#allocation42]  }
 0x1df   :  { %s12773_s8 = smov [#allocation44]   ;;  %s12639_s15 = scalar_lea.hbm %s12956_s9, 1024 }
 0x1e0   :  { %s373_s11 = sshll.u32 %s12773_s8, 4  ;;  %p12640_p2 = scmp.ne.s32.totalorder %s12956_s9, %s12639_s15  ;;  %s374_s11 = int_to_ptr.vmem [resolvable:$true] %s373_s11 }
 0x1e1   :  { %p12643_p3 = scmp.lt.u32.totalorder %s12639_s15, %s12956_s9 }
 0x1e3   :  { %p12645_p4 = pnand %p12643_p3, %p12640_p2 }
 0x1e5   :  { %12648 = shalt.err (!%p12645_p4)
}
 0x1e6   :  { %s12649_s3 = scalar_lea.vmem %s374_s11, 1024  ;;  %p12654_p6 = scmp.lt.s32.totalorder %s374_s11, %s374_s11 }
 0x1e7   :  { %p12650_p5 = scmp.ne.s32.totalorder %s374_s11, %s12649_s3  ;;  %p12655_p7 = scmp.lt.s32.totalorder %s12649_s3, %s12649_s3 }
 0x1e9   :  { %p12656_p8 = por %p12655_p7, %p12654_p6 }
 0x1eb   :  { %p12657_p9 = pnand %p12656_p8, %p12650_p5 }
 0x1ed   :  { %12660 = shalt.err (!%p12657_p9)
}
 0x1ee   :  { %379 = dma.hbm_to_vmem [thread:$0]  %s12956_s9, 1024, %s374_s11, [#allocation45], %s12751_s10, %s12751_s10, %s12752_s20  }
 0x1ef   :  { %12683 = dma.done.wait [#allocation9], 16  }
 0x1f0   :  { %12684 = vsyncadd [#allocation9], 4294967280 }
 0x1f1   :  { %12685 = dma.done.wait [#allocation12], 32  }
 0x1f2   :  { %12686 = vsyncadd [#allocation12], 4294967264 }
 0x1f3   :  { %12687 = dma.done.wait [#allocation15], 32  }
 0x1f4   :  { %12688 = vsyncadd [#allocation15], 4294967264 }
 0x1f5   :  { %12689 = dma.done.wait [#allocation18], 144  }
 0x1f6   :  { %12690 = vsyncadd [#allocation18], 4294967152 }
 0x1f7   :  { %12691 = dma.done.wait [#allocation21], 32  }
 0x1f8   :  { %12692 = vsyncadd [#allocation21], 4294967264 }
 0x1f9   :  { %12693 = dma.done.wait [#allocation24], 4160  }
 0x1fa   :  { %12694 = vsyncadd [#allocation24], 4294963136 }
 0x1fb   :  { %12695 = dma.done.wait [#allocation27], 128  }
 0x1fc   :  { %12696 = vsyncadd [#allocation27], 4294967168 }
 0x1fd   :  { %12697 = dma.done.wait [#allocation30], 4160  }
 0x1fe   :  { %12698 = vsyncadd [#allocation30], 4294963136 }
 0x1ff   :  { %12699 = dma.done.wait [#allocation33], 128  }
 0x200   :  { %12700 = vsyncadd [#allocation33], 4294967168 }
 0x201   :  { %12701 = dma.done.wait [#allocation36], 8192  }
 0x202   :  { %12702 = vsyncadd [#allocation36], 4294959104 }
 0x203   :  { %12703 = dma.done.wait [#allocation39], 4160  }
 0x204   :  { %12704 = vsyncadd [#allocation39], 4294963136 }
 0x205   :  { %12705 = dma.done.wait [#allocation42], 80  }
 0x206   :  { %12706 = vsyncadd [#allocation42], 4294967216 }
 0x207   :  { %12707 = dma.done.wait [#allocation45], 1024  }
 0x208   :  { %12708 = vsyncadd [#allocation45], 4294966272  ;;  %s15104_s9 = sld [smem:[#allocation61_spill]]  ;;  %s15105_s4 = sld [smem:[#allocation62_spill]]  ;;  %vm458_vm0 = vcmask 31744   ;;  %vm772_vm1 = vcmask 48128  }
 0x209   :  { %s15106_s14 = sld [smem:[#allocation67_spill]]  ;;  %s15107_s16 = sld [smem:[#allocation68_spill]]  ;;  %vm552_vm2 = vcmask 1043456   ;;  %v846_v57 = vld [vmem:[#allocation19] sm:$0x3f]  ;;  %vm866_vm3 = vcmask 1045504  }
 0x20a   :  { %s15108_s18 = sld [smem:[#allocation70_spill]]  ;;  %10086 = vmatprep.subr.msk.mxu0 %vm866_vm3, %v846_v57  ;;  %vm660_vm4 = vcmask 523264   ;;  %s15109_s5 = sld [smem:[#allocation72_spill]]  ;;  %vm1562_vm6 = vcmask 261120  }
 0x20b   :  { %10087 = vmatpush3.msk.msra.mxu0 %vm866_vm3, %v846_v57  ;;  %s15110_s22 = sld [smem:[#allocation63_spill]]  ;;  %s15111_s30 = sld [smem:[#allocation65_spill]] }
 0x20c   :  { %s15112_s25 = sld [smem:[#allocation64_spill]]  ;;  %s15113_s23 = sld [smem:[#allocation66_spill]] }
 0x20e   :  { %v452_v0 = vld [vmem:[%s15104_s9] sm:$0xff]  ;;  %v454_v1 = vld [vmem:[%s15104_s9 + $0x10] sm:$0xff]  ;;  %v453_v2 = vld [vmem:[%s15104_s9 + $0x8] sm:$0xff] }
 0x20f   :  { %v459_v3 = vsel %vm458_vm0, %v452_v0, 0.0  ;;  %v465_v4 = vsel %vm458_vm0, %v454_v1, 0.0  ;;  %v455_v5 = vld [vmem:[%s15104_s9 + $0x18] sm:$0xff]  ;;  %v462_v6 = vsel %vm458_vm0, %v453_v2, 0.0  ;;  %v766_v8 = vld [vmem:[%s15105_s4] sm:$0xff]  ;;  %v767_v9 = vld [vmem:[%s15105_s4 + $0x8] sm:$0xff] }
 0x210   :  { %460 = vadd.xlane.f32.xlu0 %v459_v3  ;;  %466 = vadd.xlane.f32.xlu1 %v465_v4  ;;  %v468_v7 = vsel %vm458_vm0, %v455_v5, 0.0  ;;  %v773_v10 = vsel %vm772_vm1, %v766_v8, 0.0  ;;  %v776_v11 = vsel %vm772_vm1, %v767_v9, 0.0  ;;  %v768_v12 = vld [vmem:[%s15105_s4 + $0x10] sm:$0xff]  ;;  %v769_v13 = vld [vmem:[%s15105_s4 + $0x18] sm:$0xff]  ;;  %v645_v58 = vld [vmem:[%s15107_s16] sm:$0xff] }
 0x211   :  { %v779_v14 = vsel %vm772_vm1, %v768_v12, 0.0  ;;  %v782_v15 = vsel %vm772_vm1, %v769_v13, 0.0  ;;  %v532_v56 = vld [vmem:[%s15106_s14] sm:$0xf]  ;;  %v646_v59 = vld [vmem:[%s15107_s16 + $0x8] sm:$0xff] }
 0x212   :  { %10056 = vmatprep.subr.msk.mxu1 %vm552_vm2, %v532_v56  ;;  %v13160_v60 = vpack.c.bf16 %v646_v59, %v645_v58  ;;  %v959_v61 = vld [vmem:[%s15108_s18] sm:$0xff]  ;;  %v960_v62 = vld [vmem:[%s15108_s18 + $0x8] sm:$0xff] }
 0x213   :  { %10057 = vmatpush3.msk.msra.mxu1 %vm552_vm2, %v532_v56  ;;  %v13165_v63 = vpack.c.bf16 %v960_v62, %v959_v61 }
 0x214   :  { %463 = vadd.xlane.f32.xlu0 %v462_v6  ;;  %469 = vadd.xlane.f32.xlu1 %v468_v7 }
 0x215   :  { %11169 = vmatprep.subr.bf16.mxu1 %v13160_v60  ;;  %11185 = vmatprep.subr.bf16.mxu0 %v13165_v63 }
 0x218   :  { %774 = vadd.xlane.f32.xlu0 %v773_v10  ;;  %777 = vadd.xlane.f32.xlu1 %v776_v11 }
 0x21c   :  { %780 = vadd.xlane.f32.xlu0 %v779_v14  ;;  %783 = vadd.xlane.f32.xlu1 %v782_v15 }
 0x29d   :  { %v461_v16 = vpop.xlane.xlu0 %460  ;;  %v467_v17 = vpop.xlane.xlu1 %466 }
 0x29e   :  { %v472_v18 = vmul.f32 0.25, %v461_v16  ;;  %v474_v19 = vmul.f32 0.25, %v467_v17 }
 0x2a0   :  { %v13117_v20 = vsub.f32 %v452_v0, %v472_v18  ;;  %v13119_v21 = vsub.f32 %v454_v1, %v474_v19 }
 0x2a1   :  { %v464_v22 = vpop.xlane.xlu0 %463  ;;  %v470_v23 = vpop.xlane.xlu1 %469 }
 0x2a2   :  { %v473_v24 = vmul.f32 0.25, %v464_v22  ;;  %v475_v25 = vmul.f32 0.25, %v470_v23  ;;  %v480_v26 = vmul.f32 %v13117_v20, %v13117_v20  ;;  %v482_v27 = vmul.f32 %v13119_v21, %v13119_v21 }
 0x2a4   :  { %v13125_v28 = vsub.f32 %v453_v2, %v473_v24  ;;  %v13127_v29 = vsub.f32 %v455_v5, %v475_v25  ;;  %v484_v30 = vsel %vm458_vm0, %v480_v26, 0.0  ;;  %v490_v33 = vsel %vm458_vm0, %v482_v27, 0.0  ;;  %v8895_v24 = vld [vmem:[#allocation8] ss:$0 sm:$0xff] }
 0x2a5   :  { %485 = vadd.xlane.f32.xlu0 %v484_v30  ;;  %v775_v31 = vpop.xlane.xlu0 %774  ;;  %v778_v32 = vpop.xlane.xlu1 %777  ;;  %v8896_v30 = vld [vmem:[#allocation11] ss:$0 sm:$0xff] }
 0x2a6   :  { %v786_v34 = vmul.f32 0.16666667, %v775_v31  ;;  %v787_v35 = vmul.f32 0.16666667, %v778_v32  ;;  %v481_v36 = vmul.f32 %v13125_v28, %v13125_v28  ;;  %v483_v37 = vmul.f32 %v13127_v29, %v13127_v29 }
 0x2a8   :  { %v13135_v38 = vsub.f32 %v766_v8, %v786_v34  ;;  %v13137_v39 = vsub.f32 %v767_v9, %v787_v35  ;;  %v487_v40 = vsel %vm458_vm0, %v481_v36, 0.0  ;;  %v493_v43 = vsel %vm458_vm0, %v483_v37, 0.0 }
 0x2a9   :  { %491 = vadd.xlane.f32.xlu0 %v490_v33  ;;  %488 = vadd.xlane.f32.xlu1 %v487_v40  ;;  %v781_v41 = vpop.xlane.xlu0 %780  ;;  %v784_v42 = vpop.xlane.xlu1 %783  ;;  %v647_v40 = vld [vmem:[%s15107_s16 + $0x10] sm:$0xff] }
 0x2aa   :  { %v788_v44 = vmul.f32 0.16666667, %v781_v41  ;;  %v789_v45 = vmul.f32 0.16666667, %v784_v42  ;;  %v794_v46 = vmul.f32 %v13135_v38, %v13135_v38  ;;  %v795_v47 = vmul.f32 %v13137_v39, %v13137_v39  ;;  %v648_v41 = vld [vmem:[%s15107_s16 + $0x18] sm:$0xff] }
 0x2ac   :  { %v13145_v48 = vsub.f32 %v768_v12, %v788_v44  ;;  %v13147_v49 = vsub.f32 %v769_v13, %v789_v45  ;;  %v798_v50 = vsel %vm772_vm1, %v794_v46, 0.0  ;;  %v801_v51 = vsel %vm772_vm1, %v795_v47, 0.0  ;;  %v8908_v47 = vld [vmem:[#allocation16] ss:$0 sm:$0xff] }
 0x2ad   :  { %494 = vadd.xlane.f32.xlu1 %v493_v43  ;;  %799 = vadd.xlane.f32.xlu0 %v798_v50  ;;  %v11172_v50 = vpack.c.bf16 %v648_v41, %v647_v40 }
 0x2ae   :  { %v796_v52 = vmul.f32 %v13145_v48, %v13145_v48  ;;  %v797_v53 = vmul.f32 %v13147_v49, %v13147_v49 }
 0x2b0   :  { %v804_v54 = vsel %vm772_vm1, %v796_v52, 0.0  ;;  %v807_v55 = vsel %vm772_vm1, %v797_v53, 0.0  ;;  %v649_v52 = vld [vmem:[%s15107_s16 + $0x20] sm:$0xff]  ;;  %v650_v53 = vld [vmem:[%s15107_s16 + $0x28] sm:$0xff] }
 0x2b1   :  { %802 = vadd.xlane.f32.xlu1 %v801_v51  ;;  %805 = vadd.xlane.f32.xlu0 %v804_v54  ;;  %v8909_v54 = vld [vmem:[#allocation17] ss:$0 sm:$0xff]  ;;  %v11176_v59 = vpack.c.bf16 %v650_v53, %v649_v52  ;;  %v1094_v52 = vld [vmem:[%s15109_s5] sm:$0xff] }
 0x2b2   :  { %v1095_v53 = vld [vmem:[%s15109_s5 + $0x8] sm:$0xff] }
 0x2b5   :  { %808 = vadd.xlane.f32.xlu1 %v807_v55 }
 0x332   :  { %v486_v0 = vpop.xlane.xlu0 %485 }
 0x333   :  { %v496_v1 = vmul.f32 0.25, %v486_v0 }
 0x335   :  { %v500_v2 = vadd.f32 1e-05, %v496_v1 }
 0x336   :  { %v489_v3 = vpop.xlane.xlu1 %488  ;;  %v492_v4 = vpop.xlane.xlu0 %491 }
 0x337   :  { %11957 = vrsqrt.f32 %v500_v2  ;;  %v497_v5 = vmul.f32 0.25, %v489_v3  ;;  %v498_v6 = vmul.f32 0.25, %v492_v4  ;;  %v651_v4 = vld [vmem:[%s15107_s16 + $0x30] sm:$0xff] }
 0x339   :  { %v501_v7 = vadd.f32 1e-05, %v497_v5  ;;  %v502_v8 = vadd.f32 1e-05, %v498_v6  ;;  %v652_v5 = vld [vmem:[%s15107_s16 + $0x38] sm:$0xff] }
 0x33a   :  { %v495_v9 = vpop.xlane.xlu1 %494  ;;  %v800_v10 = vpop.xlane.xlu0 %799  ;;  %v11180_v6 = vpack.c.bf16 %v652_v5, %v651_v4  ;;  %v12775_v4 = vmov 0.0   ;;  %v1345_v5 = vld [vmem:[%s15110_s22 + $0x10] sm:$0xff] }
 0x33b   :  { %11959 = vrsqrt.f32 %v501_v7  ;;  %v499_v11 = vmul.f32 0.25, %v495_v9  ;;  %v810_v12 = vmul.f32 0.16666667, %v800_v10  ;;  %v962_v7 = vld [vmem:[%s15108_s18 + $0x18] sm:$0xff]  ;;  %v963_v9 = vld [vmem:[%s15108_s18 + $0x20] sm:$0xff]  ;;  %v964_v10 = vld [vmem:[%s15108_s18 + $0x28] sm:$0xff] }
 0x33c   :  { %11961 = vrsqrt.f32 %v502_v8  ;;  %1323 = vst.msk [vmem:[#allocation6] sm:$0xff] %vm660_vm4, %v12775_v4  ;;  %1324 = vst.msk [vmem:[#allocation6 + $0x8] sm:$0xff] %vm660_vm4, %v12775_v4 }
 0x33d   :  { %v503_v13 = vadd.f32 1e-05, %v499_v11  ;;  %v814_v14 = vadd.f32 1e-05, %v810_v12  ;;  %v11192_v11 = vpack.c.bf16 %v964_v10, %v963_v9  ;;  %v965_v12 = vld [vmem:[%s15108_s18 + $0x30] sm:$0xff]  ;;  %1325 = vst.msk [vmem:[#allocation6 + $0x10] sm:$0xff] %vm660_vm4, %v12775_v4 }
 0x33e   :  { %v803_v15 = vpop.xlane.xlu1 %802  ;;  %v806_v16 = vpop.xlane.xlu0 %805  ;;  %1326 = vst.msk [vmem:[#allocation6 + $0x18] sm:$0xff] %vm660_vm4, %v12775_v4  ;;  %3209 = vst.msk [vmem:[#allocation7] sm:$0xff] %vm660_vm4, %v12775_v4  ;;  %v1347_v9 = vld [vmem:[%s15110_s22 + $0x20] sm:$0xff]  ;;  %v1356_v10 = vld [vmem:[%s15110_s22 + $0x68] sm:$0xff] }
 0x33f   :  { %11963 = vrsqrt.f32 %v503_v13  ;;  %v811_v17 = vmul.f32 0.16666667, %v803_v15  ;;  %v812_v18 = vmul.f32 0.16666667, %v806_v16  ;;  %v1208_v15 = vld [vmem:[#allocation23 + $0x8] sm:$0xff]  ;;  %3210 = vst.msk [vmem:[#allocation7 + $0x8] sm:$0xff] %vm660_vm4, %v12775_v4 }
 0x340   :  { %11965 = vrsqrt.f32 %v814_v14  ;;  %v1207_v14 = vld [vmem:[#allocation23] sm:$0xff]  ;;  %3211 = vst.msk [vmem:[#allocation7 + $0x10] sm:$0xff] %vm660_vm4, %v12775_v4  ;;  %3212 = vst.msk [vmem:[#allocation7 + $0x18] sm:$0xff] %vm660_vm4, %v12775_v4 }
 0x341   :  { %v11958_v19 = vpop.eup %11957  ;;  %v815_v22 = vadd.f32 1e-05, %v811_v17  ;;  %v816_v23 = vadd.f32 1e-05, %v812_v18  ;;  %v11216_v16 = vpack.c.bf16 %v1208_v15, %v1207_v14  ;;  %v8897_v17 = vld [vmem:[#allocation13] ss:$0 sm:$0xff] }
 0x342   :  { %v809_v25 = vpop.xlane.xlu1 %808  ;;  %v508_v26 = vmul.f32 %v11958_v19, %v13117_v20  ;;  %v1350_v14 = vld [vmem:[%s15110_s22 + $0x38] sm:$0xff] }
 0x343   :  { %11967 = vrsqrt.f32 %v815_v22  ;;  %v813_v27 = vmul.f32 0.16666667, %v809_v25  ;;  %v1330_v15 = vld [vmem:[%s15111_s30 + $0x18] sm:$0xff] }
 0x344   :  { %11969 = vrsqrt.f32 %v816_v23  ;;  %v518_v31 = vmul.f32 %v8895_v24, %v508_v26 }
 0x345   :  { %v11960_v32 = vpop.eup %11959  ;;  %v817_v33 = vadd.f32 1e-05, %v813_v27 }
 0x346   :  { %v11962_v34 = vpop.eup %11961  ;;  %v528_v35 = vadd.f32 %v8896_v30, %v518_v31  ;;  %v509_v36 = vmul.f32 %v11960_v32, %v13125_v28  ;;  %v8910_v32 = vld [vmem:[#allocation20] ss:$0 sm:$0xff] }
 0x347   :  { %11971 = vrsqrt.f32 %v817_v33  ;;  %v510_v37 = vmul.f32 %v11962_v34, %v13119_v21 }
 0x348   :  { %10058 = vmatprep.mubr.msk.f32.mxu1 %vm458_vm0, %v528_v35  ;;  %v519_v20 = vmul.f32 %v8895_v24, %v509_v36 }
 0x349   :  { %v11964_v42 = vpop.eup %11963  ;;  %v520_v43 = vmul.f32 %v8895_v24, %v510_v37 }
 0x34a   :  { %v11966_v44 = vpop.eup %11965  ;;  %v529_v45 = vadd.f32 %v8896_v30, %v519_v20  ;;  %v511_v46 = vmul.f32 %v11964_v42, %v13127_v29 }
 0x34b   :  { %v530_v51 = vadd.f32 %v8896_v30, %v520_v43  ;;  %v822_v28 = vmul.f32 %v11966_v44, %v13135_v38 }
 0x34c   :  { %10059 = vmatmul.mubr.msk.f32.vlgmr.msra.gmra.mrb[0].mxu1 %vm458_vm0, %v529_v45  ;;  %v521_v21 = vmul.f32 %v8895_v24, %v511_v46 }
 0x34d   :  { %v11968_v55 = vpop.eup %11967  ;;  %10061 = vmatprep.mubr.msk.f32.mxu1 %vm458_vm0, %v530_v51  ;;  %v832_v56 = vmul.f32 %v8908_v47, %v822_v28  ;;  %11171 = vmatpush3.bf16.msra.mxu1 %v13160_v60  ;;  %v1210_v51 = vld [vmem:[#allocation23 + $0x18] sm:$0xff] }
 0x34e   :  { %v11970_v57 = vpop.eup %11969  ;;  %v531_v58 = vadd.f32 %v8896_v30, %v521_v21  ;;  %v823_v29 = vmul.f32 %v11968_v55, %v13137_v39  ;;  %11173 = vmatprep.subr.bf16.mxu1 %v11172_v50  ;;  %v1211_v21 = vld [vmem:[#allocation23 + $0x20] sm:$0xff]  ;;  %v1212_v55 = vld [vmem:[#allocation23 + $0x28] sm:$0xff] }
 0x34f   :  { %v842_v61 = vadd.f32 %v8909_v54, %v832_v56  ;;  %v824_v38 = vmul.f32 %v11970_v57, %v13145_v48  ;;  %v11224_v56 = vpack.c.bf16 %v1212_v55, %v1211_v21  ;;  %v1096_v57 = vld [vmem:[%s15109_s5 + $0x10] sm:$0xff] }
 0x350   :  { %10062 = vmatmul.mubr.msk.f32.gmra.mrb[2].mxu1 %vm458_vm0, %v531_v58  ;;  %v833_v62 = vmul.f32 %v8908_v47, %v823_v29  ;;  %v1097_v58 = vld [vmem:[%s15109_s5 + $0x18] sm:$0xff] }
 0x351   :  { %v11972_v0 = vpop.eup %11971  ;;  %10088 = vmatprep.mubr.msk.f32.mxu0 %vm772_vm1, %v842_v61  ;;  %v834_v1 = vmul.f32 %v8908_v47, %v824_v38  ;;  %11175 = vmatpush3.bf16.msra.mxu1 %v11172_v50  ;;  %v1209_v50 = vld [vmem:[#allocation23 + $0x10] sm:$0xff]  ;;  %v11204_v29 = vpack.c.bf16 %v1097_v58, %v1096_v57  ;;  %v1214_v61 = vld [vmem:[#allocation23 + $0x38] sm:$0xff] }
 0x352   :  { %v843_v60 = vadd.f32 %v8909_v54, %v833_v62  ;;  %v825_v39 = vmul.f32 %v11972_v0, %v13147_v49  ;;  %11177 = vmatprep.subr.bf16.mxu1 %v11176_v59  ;;  %v961_v49 = vld [vmem:[%s15108_s18 + $0x10] sm:$0xff]  ;;  %v11220_v28 = vpack.c.bf16 %v1210_v51, %v1209_v50  ;;  %v1098_v62 = vld [vmem:[%s15109_s5 + $0x20] sm:$0xff]  ;;  %v1099_v0 = vld [vmem:[%s15109_s5 + $0x28] sm:$0xff] }
 0x353   :  { %v844_v2 = vadd.f32 %v8909_v54, %v834_v1  ;;  %v11188_v8 = vpack.c.bf16 %v962_v7, %v961_v49  ;;  %v11208_v1 = vpack.c.bf16 %v1099_v0, %v1098_v62  ;;  %v1343_v49 = vld [vmem:[%s15110_s22] sm:$0xff]  ;;  %v1346_v7 = vld [vmem:[%s15110_s22 + $0x18] sm:$0xff] }
 0x354   :  { %10089 = vmatmul.mubr.msk.f32.vlgmr.msra.gmra.mrb[0].mxu0 %vm772_vm1, %v843_v60  ;;  %v835_v48 = vmul.f32 %v8908_v47, %v825_v39  ;;  %v1100_v60 = vld [vmem:[%s15109_s5 + $0x30] sm:$0xff]  ;;  %v1101_v39 = vld [vmem:[%s15109_s5 + $0x38] sm:$0xff] }
 0x355   :  { %10091 = vmatprep.mubr.msk.f32.mxu0 %vm772_vm1, %v844_v2  ;;  %11179 = vmatpush3.bf16.msra.mxu1 %v11176_v59  ;;  %v1213_v59 = vld [vmem:[#allocation23 + $0x30] sm:$0xff]  ;;  %v11212_v2 = vpack.c.bf16 %v1101_v39, %v1100_v60 }
 0x356   :  { %v845_v3 = vadd.f32 %v8909_v54, %v835_v48  ;;  %11187 = vmatpush3.bf16.msra.mxu0 %v13165_v63  ;;  %11181 = vmatprep.subr.bf16.mxu1 %v11180_v6  ;;  %v966_v63 = vld [vmem:[%s15108_s18 + $0x38] sm:$0xff]  ;;  %v11200_v54 = vpack.c.bf16 %v1095_v53, %v1094_v52  ;;  %v11228_v38 = vpack.c.bf16 %v1214_v61, %v1213_v59  ;;  %v1344_v48 = vld [vmem:[%s15110_s22 + $0x8] sm:$0xff] }
 0x357   :  { %11189 = vmatprep.subr.bf16.mxu0 %v11188_v8  ;;  %v11196_v13 = vpack.c.bf16 %v966_v63, %v965_v12  ;;  %v1358_v12 = vld [vmem:[%s15110_s22 + $0x78] sm:$0xff]  ;;  %v1349_v63 = vld [vmem:[%s15110_s22 + $0x30] sm:$0xff] }
 0x358   :  { %10092 = vmatmul.mubr.msk.f32.gmra.mrb[2].mxu0 %vm772_vm1, %v845_v3  ;;  %v12774_v3 = vmov 0  }
 0x359   :  { %11183 = vmatpush3.bf16.msra.mxu1 %v11180_v6  ;;  %11956 = vset.pattern.permute.xlu1 %v12774_v3  ;;  %v1352_v6 = vld [vmem:[%s15110_s22 + $0x48] sm:$0xff] }
 0x35a   :  { %11191 = vmatpush3.bf16.msra.mxu0 %v11188_v8  ;;  %11201 = vmatprep.subr.bf16.mxu1 %v11200_v54  ;;  %v1354_v8 = vld [vmem:[%s15110_s22 + $0x58] sm:$0xff] }
 0x35b   :  { %11193 = vmatprep.subr.bf16.mxu0 %v11192_v11  ;;  %11955 = vset.pattern.permute.xlu0 %v12774_v3 }
 0x35c   :  { %1462 = vperm.xlu1 %11956, %v1344_v48   ;;  %1459 = vperm.xlu0 %11955, %v1343_v49  }
 0x35e   :  { %11195 = vmatpush3.bf16.msra.mxu0 %v11192_v11  ;;  %v1348_v11 = vld [vmem:[%s15110_s22 + $0x28] sm:$0xff] }
 0x35f   :  { %11197 = vmatprep.subr.bf16.mxu0 %v11196_v13 }
 0x360   :  { %1465 = vperm.xlu1 %11956, %v1345_v5   ;;  %1486 = vperm.xlu0 %11955, %v1352_v6   ;;  %v1360_v6 = vlaneseq }
 0x362   :  { %11199 = vmatpush3.bf16.msra.mxu0 %v11196_v13  ;;  %v1328_v13 = vld [vmem:[%s15111_s30 + $0x8] sm:$0xff] }
 0x363   :  { %11217 = vmatprep.subr.bf16.mxu0 %v11216_v16 }
 0x364   :  { %1468 = vperm.xlu1 %11956, %v1346_v7   ;;  %1492 = vperm.xlu0 %11955, %v1354_v8   ;;  %v13291_v7 = vand.u32 127, %v1360_v6 }
 0x368   :  { %1471 = vperm.xlu1 %11956, %v1347_v9   ;;  %1498 = vperm.xlu0 %11955, %v1356_v10  }
 0x36c   :  { %1474 = vperm.xlu1 %11956, %v1348_v11   ;;  %1504 = vperm.xlu0 %11955, %v1358_v12  }
 0x370   :  { %1477 = vperm.xlu1 %11956, %v1349_v63   ;;  %1366 = vperm.xlu0 %11955, %v1328_v13  }
 0x374   :  { %1480 = vperm.xlu1 %11956, %v1350_v14   ;;  %1372 = vperm.xlu0 %11955, %v1330_v15   ;;  %v8925_v15 = vld [vmem:[#allocation25] ss:$0 sm:$0xff] }
 0x3db   :  { %v1460_v8 = vpop.permute.xlu0 %1459  ;;  %v1463_v10 = vpop.permute.xlu1 %1462 }
 0x3dc   :  { %vm1506_vm5 = vcmp.eq.s32.totalorder %v1460_v8, %v13291_v7  ;;  %vm1507_vm7 = vcmp.eq.s32.totalorder %v1463_v10, %v13291_v7 }
 0x3dd   :  { %v8946_v9 = vsel %vm1506_vm5, 1.0, %v12775_v4 }
 0x3df   :  { %v1466_v11 = vpop.permute.xlu1 %1465 }
 0x3e0   :  { %vm1508_vm8 = vcmp.eq.s32.totalorder %v1466_v11, %v13291_v7 }
 0x3e3   :  { %v13296_v12 = vpop.permute.xlu1 %1468 }
 0x3e4   :  { %vm1509_vm9 = vcmp.eq.s32.totalorder %v13296_v12, %v13291_v7 }
 0x3e7   :  { %v13298_v63 = vpop.permute.xlu1 %1471 }
 0x3e8   :  { %vm1510_vm10 = vcmp.eq.s32.totalorder %v13298_v63, %v13291_v7 }
 0x3eb   :  { %v13300_v13 = vpop.permute.xlu1 %1474 }
 0x3ec   :  { %vm1511_vm11 = vcmp.eq.s32.totalorder %v13300_v13, %v13291_v7 }
 0x3ef   :  { %v13302_v14 = vpop.permute.xlu1 %1477 }
 0x3f0   :  { %vm1512_vm12 = vcmp.eq.s32.totalorder %v13302_v14, %v13291_v7 }
 0x41f   :  { %v10060_v18 = vpop.f32.mrb[0].mxu1 }
 0x420   :  { %v628_v19 = vadd.f32 %v10060_v18, %v8897_v17  ;;  %v622_v22 = vpop.f32.mrb[1].mxu1  ;;  %v1353_v18 = vld [vmem:[%s15110_s22 + $0x50] sm:$0xff] }
 0x421   :  { %v623_v23 = vadd.f32 %v8897_v17, %v622_v22  ;;  %v1355_v22 = vld [vmem:[%s15110_s22 + $0x60] sm:$0xff] }
 0x422   :  { %v642_v26 = vmax.f32 %v628_v19, 0.0  ;;  %v1334_v19 = vld [vmem:[%s15111_s30 + $0x38] sm:$0xff] }
 0x423   :  { %v641_v24 = vmax.f32 %v623_v23, 0.0  ;;  %v10063_v25 = vpop.f32.mrb[2].mxu1  ;;  %v1336_v23 = vld [vmem:[%s15111_s30 + $0x48] sm:$0xff] }
 0x424   :  { %v638_v27 = vadd.f32 %v10063_v25, %v8897_v17  ;;  %v632_v30 = vpop.f32.mrb[3].mxu1  ;;  %v1338_v25 = vld [vmem:[%s15111_s30 + $0x58] sm:$0xff] }
 0x425   :  { %v633_v31 = vadd.f32 %v8897_v17, %v632_v30  ;;  %10080 = vmatprep.mubr.msk.f32.mxu1 %vm660_vm4, %v641_v24  ;;  %v1332_v17 = vld [vmem:[%s15111_s30 + $0x28] sm:$0xff]  ;;  %v1357_v24 = vld [vmem:[%s15110_s22 + $0x70] sm:$0xff] }
 0x426   :  { %10081 = vmatmul.mubr.msk.f32.vlgmr.msra.gmra.mrb[4].mxu1 %vm660_vm4, %v642_v26  ;;  %v644_v35 = vmax.f32 %v638_v27, 0.0  ;;  %1378 = vperm.xlu0 %11955, %v1332_v17   ;;  %v1327_v26 = vld [vmem:[%s15111_s30] sm:$0xff]  ;;  %v1340_v27 = vld [vmem:[%s15111_s30 + $0x68] sm:$0xff]  ;;  %v1329_v30 = vld [vmem:[%s15111_s30 + $0x10] sm:$0xff] }
 0x427   :  { %v643_v33 = vmax.f32 %v633_v31, 0.0  ;;  %v10090_v34 = vpop.f32.mrb[0].mxu0  ;;  %11203 = vmatpush3.bf16.msra.mxu1 %v11200_v54  ;;  %v1342_v31 = vld [vmem:[%s15111_s30 + $0x78] sm:$0xff] }
 0x428   :  { %v942_v36 = vadd.f32 %v10090_v34, %v8910_v32  ;;  %v936_v37 = vpop.f32.mrb[1].mxu0  ;;  %11205 = vmatprep.subr.bf16.mxu1 %v11204_v29  ;;  %v1335_v34 = vld [vmem:[%s15111_s30 + $0x40] sm:$0xff] }
 0x429   :  { %v937_v40 = vadd.f32 %v8910_v32, %v936_v37  ;;  %10083 = vmatprep.mubr.msk.f32.mxu1 %vm660_vm4, %v643_v33  ;;  %v1333_v33 = vld [vmem:[%s15111_s30 + $0x30] sm:$0xff] }
 0x42a   :  { %10084 = vmatmul.mubr.msk.f32.gmra.mrb[6].mxu1 %vm660_vm4, %v644_v35  ;;  %v956_v42 = vmax.f32 %v942_v36, 0.0  ;;  %1384 = vperm.xlu0 %11955, %v1334_v19   ;;  %v1337_v35 = vld [vmem:[%s15111_s30 + $0x50] sm:$0xff]  ;;  %v1339_v36 = vld [vmem:[%s15111_s30 + $0x60] sm:$0xff] }
 0x42b   :  { %v955_v41 = vmax.f32 %v937_v40, 0.0  ;;  %v10093_v20 = vpop.f32.mrb[2].mxu0  ;;  %11207 = vmatpush3.bf16.msra.mxu1 %v11204_v29  ;;  %v1341_v37 = vld [vmem:[%s15111_s30 + $0x70] sm:$0xff]  ;;  %v8903_v40 = vld [vmem:[#allocation14] ss:$0 sm:$0xff] }
 0x42c   :  { %v952_v43 = vadd.f32 %v10093_v20, %v8910_v32  ;;  %v946_v44 = vpop.f32.mrb[3].mxu0  ;;  %11209 = vmatprep.subr.bf16.mxu1 %v11208_v1 }
 0x42d   :  { %v947_v45 = vadd.f32 %v8910_v32, %v946_v44  ;;  %10110 = vmatprep.mubr.msk.f32.mxu0 %vm660_vm4, %v955_v41  ;;  %v1331_v32 = vld [vmem:[%s15111_s30 + $0x20] sm:$0xff] }
 0x42e   :  { %10111 = vmatmul.mubr.msk.f32.vlgmr.msra.gmra.mrb[4].mxu0 %vm660_vm4, %v956_v42  ;;  %v958_v47 = vmax.f32 %v952_v43, 0.0  ;;  %1390 = vperm.xlu0 %11955, %v1336_v23  }
 0x42f   :  { %v957_v46 = vmax.f32 %v947_v45, 0.0  ;;  %11219 = vmatpush3.bf16.msra.mxu0 %v11216_v16  ;;  %11211 = vmatpush3.bf16.msra.mxu1 %v11208_v1  ;;  %v1351_v16 = vld [vmem:[%s15110_s22 + $0x40] sm:$0xff] }
 0x430   :  { %11221 = vmatprep.subr.bf16.mxu0 %v11220_v28  ;;  %11213 = vmatprep.subr.bf16.mxu1 %v11212_v2 }
 0x431   :  { %10113 = vmatprep.mubr.msk.f32.mxu0 %vm660_vm4, %v957_v46  ;;  %1483 = vperm.xlu1 %11956, %v1351_v16   ;;  %v13304_v16 = vpop.permute.xlu1 %1480 }
 0x432   :  { %10114 = vmatmul.mubr.msk.f32.gmra.mrb[6].mxu0 %vm660_vm4, %v958_v47  ;;  %1396 = vperm.xlu0 %11955, %v1338_v25   ;;  %vm1513_vm13 = vcmp.eq.s32.totalorder %v13304_v16, %v13291_v7 }
 0x433   :  { %11223 = vmatpush3.bf16.msra.mxu0 %v11220_v28  ;;  %11215 = vmatpush3.bf16.msra.mxu1 %v11212_v2  ;;  %v8916_v28 = vld [vmem:[#allocation22] ss:$0 sm:$0xff] }
 0x434   :  { %11225 = vmatprep.subr.bf16.mxu0 %v11224_v56 }
 0x435   :  { %1489 = vperm.xlu1 %11956, %v1353_v18  }
 0x436   :  { %1402 = vperm.xlu0 %11955, %v1340_v27  }
 0x437   :  { %11227 = vmatpush3.bf16.msra.mxu0 %v11224_v56 }
 0x438   :  { %11229 = vmatprep.subr.bf16.mxu0 %v11228_v38 }
 0x439   :  { %1495 = vperm.xlu1 %11956, %v1355_v22  }
 0x43a   :  { %1408 = vperm.xlu0 %11955, %v1342_v31   ;;  %v13312_v31 = vpop.permute.xlu0 %1486 }
 0x43b   :  { %11231 = vmatpush3.bf16.msra.mxu0 %v11228_v38  ;;  %vm1515_vm15 = vcmp.eq.s32.totalorder %v13312_v31, %v13291_v7 }
 0x43d   :  { %1501 = vperm.xlu1 %11956, %v1357_v24  }
 0x441   :  { %1363 = vperm.xlu1 %11956, %v1327_v26  }
 0x445   :  { %1369 = vperm.xlu1 %11956, %v1329_v30  }
 0x449   :  { %1375 = vperm.xlu1 %11956, %v1331_v32  }
 0x44d   :  { %1381 = vperm.xlu1 %11956, %v1333_v33  }
 0x451   :  { %1387 = vperm.xlu1 %11956, %v1335_v34  }
 0x455   :  { %1393 = vperm.xlu1 %11956, %v1337_v35  }
 0x459   :  { %1399 = vperm.xlu1 %11956, %v1339_v36  }
 0x45d   :  { %1405 = vperm.xlu1 %11956, %v1341_v37  }
 0x4b0   :  { %v13308_v26 = vpop.permute.xlu1 %1483 }
 0x4b1   :  { %vm1514_vm14 = vcmp.eq.s32.totalorder %v13308_v26, %v13291_v7  ;;  %v2630_v26 = vld [vmem:[#allocation37 + $0x28] sm:$0xff] }
 0x4b4   :  { %v13316_v35 = vpop.permute.xlu1 %1489 }
 0x4b5   :  { %vm1516_vm0 = vcmp.eq.s32.totalorder %v13316_v35, %v13291_v7  ;;  %v2632_v35 = vld [vmem:[#allocation37 + $0x38] sm:$0xff] }
 0x4b6   :  { %v8956_v8 = vsel %vm1516_vm0, 1.0, %v12775_v4 }
 0x4f9   :  { %v10082_v41 = vpop.f32.mrb[4].mxu1 }
 0x4fa   :  { %v745_v20 = vadd.f32 %v10082_v41, %v8903_v40  ;;  %v739_v42 = vpop.f32.mrb[5].mxu1 }
 0x4fb   :  { %v740_v43 = vadd.f32 %v8903_v40, %v739_v42 }
 0x4fc   :  { %v759_v44 = vmax.f32 %v745_v20, 0.0  ;;  %v1493_v20 = vpop.permute.xlu0 %1492 }
 0x4fd   :  { %v758_v45 = vmax.f32 %v740_v43, 0.0  ;;  %v10085_v46 = vpop.f32.mrb[6].mxu1  ;;  %vm1517_vm1 = vcmp.eq.s32.totalorder %v1493_v20, %v13291_v7 }
 0x4fe   :  { %763 = vst.msk [vmem:[#allocation2 + $0x8] sm:$0xff] %vm660_vm4, %v759_v44  ;;  %v755_v47 = vadd.f32 %v10085_v46, %v8903_v40  ;;  %v749_v50 = vpop.f32.mrb[7].mxu1  ;;  %v1496_v46 = vpop.permute.xlu1 %1495  ;;  %v8957_v10 = vsel %vm1517_vm1, 1.0, %v12775_v4 }
 0x4ff   :  { %762 = vst.msk [vmem:[#allocation2] sm:$0xff] %vm660_vm4, %v758_v45  ;;  %v750_v51 = vadd.f32 %v8903_v40, %v749_v50  ;;  %vm1518_vm2 = vcmp.eq.s32.totalorder %v1496_v46, %v13291_v7 }
 0x500   :  { %v761_v52 = vmax.f32 %v755_v47, 0.0  ;;  %v8958_v11 = vsel %vm1518_vm2, 1.0, %v12775_v4 }
 0x501   :  { %v760_v53 = vmax.f32 %v750_v51, 0.0  ;;  %v10112_v21 = vpop.f32.mrb[4].mxu0  ;;  %v8947_v51 = vsel %vm1507_vm7, 1.0, %v12775_v4 }
 0x502   :  { %765 = vst.msk [vmem:[#allocation2 + $0x18] sm:$0xff] %vm660_vm4, %v761_v52  ;;  %v1058_v54 = vadd.f32 %v10112_v21, %v8916_v28  ;;  %v1052_v55 = vpop.f32.mrb[5].mxu0  ;;  %v2626_v21 = vld [vmem:[#allocation37 + $0x8] sm:$0xff] }
 0x503   :  { %764 = vst.msk [vmem:[#allocation2 + $0x10] sm:$0xff] %vm660_vm4, %v760_v53  ;;  %v1053_v56 = vadd.f32 %v8916_v28, %v1052_v55  ;;  %v2625_v53 = vld [vmem:[#allocation37] sm:$0xff] }
 0x504   :  { %v1072_v57 = vmax.f32 %v1058_v54, 0.0  ;;  %v8948_v54 = vsel %vm1508_vm8, 1.0, %v12775_v4 }
 0x505   :  { %v1071_v58 = vmax.f32 %v1053_v56, 0.0  ;;  %v10115_v29 = vpop.f32.mrb[6].mxu0  ;;  %v13272_v0 = vld [vmem:[#allocation2 + $0x8] sm:$0xff]  ;;  %v1502_v56 = vpop.permute.xlu1 %1501 }
 0x506   :  { %1076 = vst.msk [vmem:[#allocation3 + $0x8] sm:$0xff] %vm660_vm4, %v1072_v57  ;;  %v1068_v59 = vadd.f32 %v10115_v29, %v8916_v28  ;;  %v1062_v61 = vpop.f32.mrb[7].mxu0  ;;  %v13267_v38 = vld [vmem:[#allocation2] sm:$0xff]  ;;  %v13330_v57 = vpack.c.bf16 %v2626_v21, %v2625_v53  ;;  %v8950_v29 = vsel %vm1510_vm10, 1.0, %v12775_v4  ;;  %vm1520_vm5 = vcmp.eq.s32.totalorder %v1502_v56, %v13291_v7 }
 0x507   :  { %1075 = vst.msk [vmem:[#allocation3] sm:$0xff] %vm660_vm4, %v1071_v58  ;;  %v1063_v62 = vadd.f32 %v8916_v28, %v1062_v61  ;;  %10154 = vmatprep.mubr.msk.f32.mxu0 %vm660_vm4, %v13267_v38  ;;  %v1499_v28 = vpop.permute.xlu0 %1498  ;;  %v8949_v58 = vsel %vm1509_vm9, 1.0, %v12775_v4  ;;  %v8951_v61 = vsel %vm1511_vm11, 1.0, %v12775_v4  ;;  %v8960_v14 = vsel %vm1520_vm5, 1.0, %v12775_v4 }
 0x508   :  { %v1074_v1 = vmax.f32 %v1068_v59, 0.0  ;;  %10155 = vmatmul.mubr.msk.f32.vlgmr.msra.gmra.mrb[8].mxu0 %vm660_vm4, %v13272_v0  ;;  %vm1519_vm3 = vcmp.eq.s32.totalorder %v1499_v28, %v13291_v7 }
 0x509   :  { %v1073_v60 = vmax.f32 %v1063_v62, 0.0  ;;  %v13282_v2 = vld [vmem:[#allocation2 + $0x18] sm:$0xff]  ;;  %v8952_v62 = vsel %vm1512_vm12, 1.0, %v12775_v4  ;;  %v8959_v63 = vsel %vm1519_vm3, 1.0, %v12775_v4 }
 0x50a   :  { %1078 = vst.msk [vmem:[#allocation3 + $0x18] sm:$0xff] %vm660_vm4, %v1074_v1  ;;  %v13277_v39 = vld [vmem:[#allocation2 + $0x10] sm:$0xff]  ;;  %v1364_v1 = vpop.permute.xlu1 %1363 }
 0x50b   :  { %1077 = vst.msk [vmem:[#allocation3 + $0x10] sm:$0xff] %vm660_vm4, %v1073_v60  ;;  %10157 = vmatprep.mubr.msk.f32.mxu0 %vm660_vm4, %v13277_v39  ;;  %v1505_v59 = vpop.permute.xlu0 %1504  ;;  %v8953_v60 = vsel %vm1513_vm13, 1.0, %v12775_v4  ;;  %vm1410_vm8 = vcmp.eq.s32.totalorder %v1364_v1, %v13291_v7 }
 0x50c   :  { %10158 = vmatmul.mubr.msk.f32.gmra.mrb[10].mxu0 %vm660_vm4, %v13282_v2  ;;  %vm1521_vm7 = vcmp.eq.s32.totalorder %v1505_v59, %v13291_v7 }
 0x50d   :  { %v1091_v3 = vld [vmem:[#allocation3 + $0x8] sm:$0xff]  ;;  %v8961_v16 = vsel %vm1521_vm7, 1.0, %v12775_v4 }
 0x50e   :  { %v1090_v48 = vld [vmem:[#allocation3] sm:$0xff] }
 0x50f   :  { %10132 = vmatprep.mubr.msk.f32.mxu1 %vm660_vm4, %v1090_v48  ;;  %v1367_v48 = vpop.permute.xlu0 %1366 }
 0x510   :  { %10133 = vmatmul.mubr.msk.f32.vlgmr.msra.gmra.mrb[8].mxu1 %vm660_vm4, %v1091_v3  ;;  %v8954_v3 = vsel %vm1514_vm14, 1.0, %v12775_v4  ;;  %vm1411_vm9 = vcmp.eq.s32.totalorder %v1367_v48, %v13291_v7 }
 0x511   :  { %v1093_v49 = vld [vmem:[#allocation3 + $0x18] sm:$0xff] }
 0x512   :  { %v1092_v5 = vld [vmem:[#allocation3 + $0x10] sm:$0xff] }
 0x513   :  { %10135 = vmatprep.mubr.msk.f32.mxu1 %vm660_vm4, %v1092_v5  ;;  %v1370_v5 = vpop.permute.xlu1 %1369 }
 0x514   :  { %10136 = vmatmul.mubr.msk.f32.gmra.mrb[10].mxu1 %vm660_vm4, %v1093_v49  ;;  %v8955_v49 = vsel %vm1515_vm15, 1.0, %v12775_v4  ;;  %vm1412_vm10 = vcmp.eq.s32.totalorder %v1370_v5, %v13291_v7 }
 0x515   :  { %10168 = vmatprep.mubr.msk.f32.mxu1 %vm1562_vm6, %v8946_v9  ;;  %v1373_v9 = vpop.permute.xlu0 %1372 }
 0x516   :  { %vm1413_vm11 = vcmp.eq.s32.totalorder %v1373_v9, %v13291_v7 }
 0x517   :  { %v1376_v12 = vpop.permute.xlu1 %1375 }
 0x518   :  { %vm1414_vm12 = vcmp.eq.s32.totalorder %v1376_v12, %v13291_v7 }
 0x519   :  { %v1379_v13 = vpop.permute.xlu0 %1378 }
 0x51a   :  { %vm1415_vm13 = vcmp.eq.s32.totalorder %v1379_v13, %v13291_v7 }
 0x5db   :  { %v10156_v17 = vpop.f32.mrb[8].mxu0 }
 0x5dc   :  { %v1306_v18 = vadd.f32 %v10156_v17, %v8925_v15  ;;  %v1300_v19 = vpop.f32.mrb[9].mxu0  ;;  %v2627_v17 = vld [vmem:[#allocation37 + $0x10] sm:$0xff] }
 0x5dd   :  { %v1301_v22 = vadd.f32 %v8925_v15, %v1300_v19  ;;  %v8930_v19 = vsel %vm1410_vm8, 1.0, %v12775_v4 }
 0x5de   :  { %1320 = vst.msk [vmem:[#allocation4 + $0x8] sm:$0xff] %vm660_vm4, %v1306_v18  ;;  %v2628_v18 = vld [vmem:[#allocation37 + $0x18] sm:$0xff] }
 0x5df   :  { %1319 = vst.msk [vmem:[#allocation4] sm:$0xff] %vm660_vm4, %v1301_v22  ;;  %v10159_v23 = vpop.f32.mrb[10].mxu0  ;;  %v1385_v22 = vpop.permute.xlu0 %1384 }
 0x5e0   :  { %v1316_v24 = vadd.f32 %v10159_v23, %v8925_v15  ;;  %v1310_v25 = vpop.f32.mrb[11].mxu0  ;;  %v11300_v23 = vpack.c.bf16 %v2628_v18, %v2627_v17  ;;  %vm1417_vm15 = vcmp.eq.s32.totalorder %v1385_v22, %v13291_v7 }
 0x5e1   :  { %v1311_v27 = vadd.f32 %v8925_v15, %v1310_v25  ;;  %v1382_v15 = vpop.permute.xlu1 %1381  ;;  %v2629_v25 = vld [vmem:[#allocation37 + $0x20] sm:$0xff] }
 0x5e2   :  { %1322 = vst.msk [vmem:[#allocation4 + $0x18] sm:$0xff] %vm660_vm4, %v1316_v24  ;;  %v8931_v24 = vsel %vm1411_vm9, 1.0, %v12775_v4  ;;  %v11304_v31 = vpack.c.bf16 %v2630_v26, %v2629_v25  ;;  %vm1416_vm14 = vcmp.eq.s32.totalorder %v1382_v15, %v13291_v7 }
 0x5e3   :  { %1321 = vst.msk [vmem:[#allocation4 + $0x10] sm:$0xff] %vm660_vm4, %v1311_v27  ;;  %v10134_v30 = vpop.f32.mrb[8].mxu1  ;;  %v8932_v27 = vsel %vm1412_vm10, 1.0, %v12775_v4  ;;  %v8936_v20 = vsel %vm1416_vm14, 1.0, %v12775_v4 }
 0x5e4   :  { %1200 = vst.msk [vmem:[#allocation5 + $0x8] sm:$0xff] %vm660_vm4, %v10134_v30  ;;  %v1180_v32 = vpop.f32.mrb[9].mxu1 }
 0x5e5   :  { %1199 = vst.msk [vmem:[#allocation5] sm:$0xff] %vm660_vm4, %v1180_v32  ;;  %v1559_v33 = vld [vmem:[#allocation4 + $0x8] sm:$0xff]  ;;  %v1388_v30 = vpop.permute.xlu1 %1387  ;;  %v8933_v32 = vsel %vm1413_vm11, 1.0, %v12775_v4 }
 0x5e6   :  { %v1558_v34 = vld [vmem:[#allocation4] sm:$0xff]  ;;  %vm1418_vm0 = vcmp.eq.s32.totalorder %v1388_v30, %v13291_v7 }
 0x5e7   :  { %v10137_v36 = vpop.f32.mrb[10].mxu1  ;;  %v11232_v37 = vpack.c.bf16 %v1559_v33, %v1558_v34  ;;  %v1391_v33 = vpop.permute.xlu0 %1390  ;;  %v2631_v34 = vld [vmem:[#allocation37 + $0x30] sm:$0xff] }
 0x5e8   :  { %1202 = vst.msk [vmem:[#allocation5 + $0x18] sm:$0xff] %vm660_vm4, %v10137_v36  ;;  %v1190_v40 = vpop.f32.mrb[11].mxu1  ;;  %v8934_v36 = vsel %vm1414_vm12, 1.0, %v12775_v4  ;;  %vm1419_vm1 = vcmp.eq.s32.totalorder %v1391_v33, %v13291_v7 }
 0x5e9   :  { %1201 = vst.msk [vmem:[#allocation5 + $0x10] sm:$0xff] %vm660_vm4, %v1190_v40  ;;  %11233 = vmatprep.subr.bf16.mxu1 %v11232_v37  ;;  %v1561_v41 = vld [vmem:[#allocation4 + $0x18] sm:$0xff]  ;;  %v11308_v40 = vpack.c.bf16 %v2632_v35, %v2631_v34  ;;  %v8939_v46 = vsel %vm1419_vm1, 1.0, %v12775_v4 }
 0x5ea   :  { %11235 = vmatpush3.bf16.msra.mxu1 %v11232_v37  ;;  %v1560_v42 = vld [vmem:[#allocation4 + $0x10] sm:$0xff]  ;;  %v1394_v37 = vpop.permute.xlu1 %1393 }
 0x5eb   :  { %v11236_v43 = vpack.c.bf16 %v1561_v41, %v1560_v42  ;;  %v1555_v44 = vld [vmem:[#allocation5 + $0x8] sm:$0xff]  ;;  %v8935_v41 = vsel %vm1415_vm13, 1.0, %v12775_v4  ;;  %v1397_v42 = vpop.permute.xlu0 %1396  ;;  %vm1420_vm2 = vcmp.eq.s32.totalorder %v1394_v37, %v13291_v7 }
 0x5ec   :  { %v1554_v45 = vld [vmem:[#allocation5] sm:$0xff]  ;;  %vm1421_vm3 = vcmp.eq.s32.totalorder %v1397_v42, %v13291_v7 }
 0x5ed   :  { %11237 = vmatprep.subr.bf16.mxu1 %v11236_v43  ;;  %v11240_v47 = vpack.c.bf16 %v1555_v44, %v1554_v45  ;;  %v8938_v44 = vsel %vm1418_vm0, 1.0, %v12775_v4  ;;  %v8941_v28 = vsel %vm1421_vm3, 1.0, %v12775_v4 }
 0x5ee   :  { %11239 = vmatpush3.bf16.msra.mxu1 %v11236_v43  ;;  %v8937_v43 = vsel %vm1417_vm15, 1.0, %v12775_v4  ;;  %v1400_v45 = vpop.permute.xlu1 %1399 }
 0x5ef   :  { %11241 = vmatprep.subr.bf16.mxu1 %v11240_v47  ;;  %v1557_v50 = vld [vmem:[#allocation5 + $0x18] sm:$0xff]  ;;  %vm1422_vm5 = vcmp.eq.s32.totalorder %v1400_v45, %v13291_v7 }
 0x5f0   :  { %v1556_v52 = vld [vmem:[#allocation5 + $0x10] sm:$0xff] }
 0x5f1   :  { %10169 = vmatmul.mubr.msk.f32.vlgmr.msra.gmra.mrb[12].mxu1 %vm1562_vm6, %v8947_v51  ;;  %v11244_v55 = vpack.c.bf16 %v1557_v50, %v1556_v52  ;;  %v8940_v50 = vsel %vm1420_vm2, 1.0, %v12775_v4  ;;  %v8942_v52 = vsel %vm1422_vm5, 1.0, %v12775_v4 }
 0x5f2   :  { %10171 = vmatprep.mubr.msk.f32.mxu1 %vm1562_vm6, %v8948_v54  ;;  %11243 = vmatpush3.bf16.msra.mxu1 %v11240_v47  ;;  %v1403_v47 = vpop.permute.xlu0 %1402  ;;  %v1406_v51 = vpop.permute.xlu1 %1405 }
 0x5f3   :  { %11245 = vmatprep.subr.bf16.mxu1 %v11244_v55  ;;  %vm1423_vm7 = vcmp.eq.s32.totalorder %v1403_v47, %v13291_v7  ;;  %vm1424_vm8 = vcmp.eq.s32.totalorder %v1406_v51, %v13291_v7 }
 0x5f4   :  { %v8943_v21 = vsel %vm1423_vm7, 1.0, %v12775_v4  ;;  %v8944_v54 = vsel %vm1424_vm8, 1.0, %v12775_v4 }
 0x5f5   :  { %10172 = vmatmul.mubr.msk.f32.gmra.mrb[14].mxu1 %vm1562_vm6, %v8949_v58 }
 0x5f6   :  { %10174 = vmatprep.mubr.msk.f32.mxu1 %vm1562_vm6, %v8950_v29  ;;  %11247 = vmatpush3.bf16.msra.mxu1 %v11244_v55  ;;  %v1409_v53 = vpop.permute.xlu0 %1408 }
 0x5f7   :  { %11297 = vmatprep.subr.bf16.mxu1 %v13330_v57  ;;  %vm1425_vm9 = vcmp.eq.s32.totalorder %v1409_v53, %v13291_v7 }
 0x5f8   :  { %v8945_v55 = vsel %vm1425_vm9, 1.0, %v12775_v4 }
 0x5f9   :  { %10175 = vmatmul.mubr.msk.f32.gmra.mrb[16].mxu1 %vm1562_vm6, %v8951_v61 }
 0x5fa   :  { %10177 = vmatprep.mubr.msk.f32.mxu1 %vm1562_vm6, %v8952_v62 }
 0x5fd   :  { %10178 = vmatmul.mubr.msk.f32.gmra.mrb[18].mxu1 %vm1562_vm6, %v8953_v60 }
 0x5fe   :  { %10180 = vmatprep.mubr.msk.f32.mxu1 %vm1562_vm6, %v8954_v3 }
 0x601   :  { %10181 = vmatmul.mubr.msk.f32.gmra.mrb[20].mxu1 %vm1562_vm6, %v8955_v49 }
 0x602   :  { %10183 = vmatprep.mubr.msk.f32.mxu1 %vm1562_vm6, %v8956_v8 }
 0x605   :  { %10184 = vmatmul.mubr.msk.f32.gmra.mrb[22].mxu1 %vm1562_vm6, %v8957_v10 }
 0x606   :  { %10186 = vmatprep.mubr.msk.f32.mxu1 %vm1562_vm6, %v8958_v11 }
 0x609   :  { %10187 = vmatmul.mubr.msk.f32.gmra.mrb[24].mxu1 %vm1562_vm6, %v8959_v63 }
 0x60a   :  { %10189 = vmatprep.mubr.msk.f32.mxu1 %vm1562_vm6, %v8960_v14 }
 0x60d   :  { %10190 = vmatmul.mubr.msk.f32.gmra.mrb[26].mxu1 %vm1562_vm6, %v8961_v16 }
 0x60e   :  { %10200 = vmatprep.mubr.msk.f32.mxu1 %vm1562_vm6, %v8930_v19 }
 0x611   :  { %10201 = vmatmul.mubr.msk.f32.vlgmr.msra.gmra.mrb[12].mxu1 %vm1562_vm6, %v8931_v24 }
 0x612   :  { %10203 = vmatprep.mubr.msk.f32.mxu1 %vm1562_vm6, %v8932_v27  ;;  %11299 = vmatpush3.bf16.msra.mxu1 %v13330_v57 }
 0x613   :  { %11301 = vmatprep.subr.bf16.mxu1 %v11300_v23 }
 0x615   :  { %10204 = vmatmul.mubr.msk.f32.gmra.mrb[14].mxu1 %vm1562_vm6, %v8933_v32 }
 0x616   :  { %10206 = vmatprep.mubr.msk.f32.mxu1 %vm1562_vm6, %v8934_v36  ;;  %11303 = vmatpush3.bf16.msra.mxu1 %v11300_v23 }
 0x617   :  { %11305 = vmatprep.subr.bf16.mxu1 %v11304_v31 }
 0x619   :  { %10207 = vmatmul.mubr.msk.f32.gmra.mrb[16].mxu1 %vm1562_vm6, %v8935_v41 }
 0x61a   :  { %10209 = vmatprep.mubr.msk.f32.mxu1 %vm1562_vm6, %v8936_v20  ;;  %11307 = vmatpush3.bf16.msra.mxu1 %v11304_v31 }
 0x61b   :  { %11309 = vmatprep.subr.bf16.mxu1 %v11308_v40 }
 0x61d   :  { %10210 = vmatmul.mubr.msk.f32.gmra.mrb[18].mxu1 %vm1562_vm6, %v8937_v43 }
 0x61e   :  { %10212 = vmatprep.mubr.msk.f32.mxu1 %vm1562_vm6, %v8938_v44  ;;  %11311 = vmatpush3.bf16.msra.mxu1 %v11308_v40 }
 0x621   :  { %10213 = vmatmul.mubr.msk.f32.gmra.mrb[20].mxu1 %vm1562_vm6, %v8939_v46 }
 0x622   :  { %10215 = vmatprep.mubr.msk.f32.mxu1 %vm1562_vm6, %v8940_v50 }
 0x625   :  { %10216 = vmatmul.mubr.msk.f32.gmra.mrb[22].mxu1 %vm1562_vm6, %v8941_v28 }
 0x626   :  { %10218 = vmatprep.mubr.msk.f32.mxu1 %vm1562_vm6, %v8942_v52 }
 0x629   :  { %10219 = vmatmul.mubr.msk.f32.gmra.mrb[24].mxu1 %vm1562_vm6, %v8943_v21 }
 0x62a   :  { %10221 = vmatprep.mubr.msk.f32.mxu1 %vm1562_vm6, %v8944_v54 }
 0x62d   :  { %10222 = vmatmul.mubr.msk.f32.gmra.mrb[26].mxu1 %vm1562_vm6, %v8945_v55 }
 0x62e   :  { %10318 = vmatprep.mubr.msk.f32.mxu1 %vm660_vm4, %v13267_v38 }
 0x631   :  { %10319 = vmatmul.mubr.msk.f32.vlgmr.msra.gmra.mrb[28].mxu1 %vm660_vm4, %v13272_v0 }
 0x632   :  { %10321 = vmatprep.mubr.msk.f32.mxu1 %vm660_vm4, %v13277_v39 }
 0x635   :  { %10322 = vmatmul.mubr.msk.f32.gmra.mrb[30].mxu1 %vm660_vm4, %v13282_v2 }
 0x6e4   :  { %v10202_v56 = vpop.f32.mrb[12].mxu1 }
 0x6e5   :  { %v1870_v57 = vpop.f32.mrb[13].mxu1  ;;  %v1952_v58 = vsel %vm660_vm4, %v10202_v56, 0.0 }
 0x6e6   :  { %1953 = vadd.xlane.f32.xlu0 %v1952_v58  ;;  %v1949_v29 = vsel %vm660_vm4, %v1870_v57, 0.0 }
 0x6e7   :  { %1950 = vadd.xlane.f32.xlu1 %v1949_v29 }
 0x6e8   :  { %v10205_v59 = vpop.f32.mrb[14].mxu1 }
 0x6e9   :  { %v1880_v61 = vpop.f32.mrb[15].mxu1  ;;  %v1958_v38 = vsel %vm660_vm4, %v10205_v59, 0.0 }
 0x6ea   :  { %v1955_v0 = vsel %vm660_vm4, %v1880_v61, 0.0 }
 0x6eb   :  { %1959 = vadd.xlane.f32.xlu1 %v1958_v38  ;;  %1956 = vadd.xlane.f32.xlu0 %v1955_v0 }
 0x6ec   :  { %v10208_v39 = vpop.f32.mrb[16].mxu1 }
 0x6ed   :  { %v1890_v62 = vpop.f32.mrb[17].mxu1  ;;  %v1964_v2 = vsel %vm660_vm4, %v10208_v39, 0.0 }
 0x6ee   :  { %v1961_v1 = vsel %vm660_vm4, %v1890_v62, 0.0 }
 0x6ef   :  { %1965 = vadd.xlane.f32.xlu1 %v1964_v2  ;;  %1962 = vadd.xlane.f32.xlu0 %v1961_v1 }
 0x6f0   :  { %v13439_v60 = vpop.f32.mrb[18].mxu1 }
 0x6f1   :  { %v13441_v48 = vpop.f32.mrb[19].mxu1  ;;  %v1970_v3 = vsel %vm660_vm4, %v13439_v60, 0.0 }
 0x6f2   :  { %v1967_v5 = vsel %vm660_vm4, %v13441_v48, 0.0 }
 0x6f3   :  { %1971 = vadd.xlane.f32.xlu1 %v1970_v3  ;;  %1968 = vadd.xlane.f32.xlu0 %v1967_v5 }
 0x6f4   :  { %v13447_v49 = vpop.f32.mrb[20].mxu1 }
 0x6f5   :  { %v13449_v8 = vpop.f32.mrb[21].mxu1  ;;  %v1976_v9 = vsel %vm660_vm4, %v13447_v49, 0.0 }
 0x6f6   :  { %v1973_v10 = vsel %vm660_vm4, %v13449_v8, 0.0 }
 0x6f7   :  { %1977 = vadd.xlane.f32.xlu1 %v1976_v9  ;;  %1974 = vadd.xlane.f32.xlu0 %v1973_v10 }
 0x6f8   :  { %v13455_v11 = vpop.f32.mrb[22].mxu1 }
 0x6f9   :  { %v13457_v12 = vpop.f32.mrb[23].mxu1  ;;  %v1982_v63 = vsel %vm660_vm4, %v13455_v11, 0.0 }
 0x6fa   :  { %v1979_v13 = vsel %vm660_vm4, %v13457_v12, 0.0 }
 0x6fb   :  { %1983 = vadd.xlane.f32.xlu1 %v1982_v63  ;;  %1980 = vadd.xlane.f32.xlu0 %v1979_v13 }
 0x6fc   :  { %v13463_v14 = vpop.f32.mrb[24].mxu1 }
 0x6fd   :  { %v13465_v15 = vpop.f32.mrb[25].mxu1  ;;  %v1988_v16 = vsel %vm660_vm4, %v13463_v14, 0.0 }
 0x6fe   :  { %v1985_v17 = vsel %vm660_vm4, %v13465_v15, 0.0 }
 0x6ff   :  { %1989 = vadd.xlane.f32.xlu1 %v1988_v16  ;;  %1986 = vadd.xlane.f32.xlu0 %v1985_v17 }
 0x700   :  { %v13471_v18 = vpop.f32.mrb[26].mxu1 }
 0x701   :  { %v13473_v19 = vpop.f32.mrb[27].mxu1  ;;  %v1994_v22 = vsel %vm660_vm4, %v13471_v18, 0.0 }
 0x702   :  { %v1991_v23 = vsel %vm660_vm4, %v13473_v19, 0.0 }
 0x703   :  { %1995 = vadd.xlane.f32.xlu1 %v1994_v22  ;;  %1992 = vadd.xlane.f32.xlu0 %v1991_v23 }
 0x773   :  { %v1954_v24 = vpop.xlane.xlu0 %1953 }
 0x774   :  { %v1999_v25 = vmul.f32 0.015625, %v1954_v24  ;;  %v1951_v26 = vpop.xlane.xlu1 %1950 }
 0x775   :  { %v1998_v27 = vmul.f32 0.015625, %v1951_v26 }
 0x776   :  { %v13479_v30 = vsub.f32 %v10202_v56, %v1999_v25 }
 0x777   :  { %v13481_v31 = vsub.f32 %v1870_v57, %v1998_v27 }
 0x778   :  { %v1960_v32 = vpop.xlane.xlu1 %1959  ;;  %v1957_v33 = vpop.xlane.xlu0 %1956  ;;  %v2031_v34 = vmul.f32 %v13479_v30, %v13479_v30 }
 0x779   :  { %v2001_v35 = vmul.f32 0.015625, %v1960_v32  ;;  %v2000_v36 = vmul.f32 0.015625, %v1957_v33  ;;  %v2030_v37 = vmul.f32 %v13481_v31, %v13481_v31 }
 0x77a   :  { %v2049_v40 = vsel %vm660_vm4, %v2031_v34, 0.0 }
 0x77b   :  { %v13488_v41 = vsub.f32 %v10205_v59, %v2001_v35  ;;  %v13490_v20 = vsub.f32 %v1880_v61, %v2000_v36  ;;  %2050 = vadd.xlane.f32.xlu1 %v2049_v40  ;;  %v2046_v42 = vsel %vm660_vm4, %v2030_v37, 0.0 }
 0x77c   :  { %v1966_v43 = vpop.xlane.xlu1 %1965  ;;  %2047 = vadd.xlane.f32.xlu0 %v2046_v42  ;;  %v1963_v44 = vpop.xlane.xlu0 %1962  ;;  %v1081_v42 = vld [vmem:[#allocation29] sm:$0xff] }
 0x77d   :  { %v2003_v45 = vmul.f32 0.015625, %v1966_v43  ;;  %v2002_v46 = vmul.f32 0.015625, %v1963_v44  ;;  %v2033_v47 = vmul.f32 %v13488_v41, %v13488_v41  ;;  %v2032_v50 = vmul.f32 %v13490_v20, %v13490_v20  ;;  %v1082_v43 = vld [vmem:[#allocation29 + $0x8] sm:$0xff] }
 0x77f   :  { %v13497_v51 = vsub.f32 %v10208_v39, %v2003_v45  ;;  %v13499_v28 = vsub.f32 %v1890_v62, %v2002_v46  ;;  %v2055_v52 = vsel %vm660_vm4, %v2033_v47, 0.0  ;;  %v2052_v53 = vsel %vm660_vm4, %v2032_v50, 0.0 }
 0x780   :  { %v1972_v21 = vpop.xlane.xlu1 %1971  ;;  %2056 = vadd.xlane.f32.xlu1 %v2055_v52  ;;  %2053 = vadd.xlane.f32.xlu0 %v2052_v53  ;;  %v1969_v54 = vpop.xlane.xlu0 %1968 }
 0x781   :  { %v2005_v55 = vmul.f32 0.015625, %v1972_v21  ;;  %v2004_v56 = vmul.f32 0.015625, %v1969_v54  ;;  %v2035_v57 = vmul.f32 %v13497_v51, %v13497_v51  ;;  %v2034_v58 = vmul.f32 %v13499_v28, %v13499_v28  ;;  %v1083_v21 = vld [vmem:[#allocation29 + $0x10] sm:$0xff]  ;;  %v1084_v54 = vld [vmem:[#allocation29 + $0x18] sm:$0xff] }
 0x783   :  { %v13508_v29 = vsub.f32 %v13439_v60, %v2005_v55  ;;  %v13511_v59 = vsub.f32 %v13441_v48, %v2004_v56  ;;  %v2061_v61 = vsel %vm660_vm4, %v2035_v57, 0.0  ;;  %v2058_v38 = vsel %vm660_vm4, %v2034_v58, 0.0  ;;  %v1085_v58 = vld [vmem:[#allocation29 + $0x20] sm:$0xff] }
 0x784   :  { %v1978_v0 = vpop.xlane.xlu1 %1977  ;;  %2062 = vadd.xlane.f32.xlu1 %v2061_v61  ;;  %2059 = vadd.xlane.f32.xlu0 %v2058_v38  ;;  %v1975_v39 = vpop.xlane.xlu0 %1974  ;;  %v1086_v61 = vld [vmem:[#allocation29 + $0x28] sm:$0xff] }
 0x785   :  { %v2007_v62 = vmul.f32 0.015625, %v1978_v0  ;;  %v2006_v2 = vmul.f32 0.015625, %v1975_v39  ;;  %v2037_v1 = vmul.f32 %v13508_v29, %v13508_v29  ;;  %v2036_v60 = vmul.f32 %v13511_v59, %v13511_v59  ;;  %v1087_v0 = vld [vmem:[#allocation29 + $0x30] sm:$0xff]  ;;  %v1088_v39 = vld [vmem:[#allocation29 + $0x38] sm:$0xff] }
 0x786   :  { %v11256_v38 = vpack.c.bf16 %v1086_v61, %v1085_v58 }
 0x787   :  { %v13520_v3 = vsub.f32 %v13447_v49, %v2007_v62  ;;  %v13523_v48 = vsub.f32 %v13449_v8, %v2006_v2  ;;  %v2067_v5 = vsel %vm660_vm4, %v2037_v1, 0.0  ;;  %v2064_v9 = vsel %vm660_vm4, %v2036_v60, 0.0 }
 0x788   :  { %v1984_v10 = vpop.xlane.xlu1 %1983  ;;  %2068 = vadd.xlane.f32.xlu1 %v2067_v5  ;;  %2065 = vadd.xlane.f32.xlu0 %v2064_v9  ;;  %v1981_v63 = vpop.xlane.xlu0 %1980  ;;  %v11260_v62 = vpack.c.bf16 %v1088_v39, %v1087_v0 }
 0x789   :  { %v2009_v13 = vmul.f32 0.015625, %v1984_v10  ;;  %v2008_v16 = vmul.f32 0.015625, %v1981_v63  ;;  %v2039_v17 = vmul.f32 %v13520_v3, %v13520_v3  ;;  %v2038_v49 = vmul.f32 %v13523_v48, %v13523_v48 }
 0x78b   :  { %v13532_v22 = vsub.f32 %v13455_v11, %v2009_v13  ;;  %v13535_v8 = vsub.f32 %v13457_v12, %v2008_v16  ;;  %v2073_v23 = vsel %vm660_vm4, %v2039_v17, 0.0  ;;  %v2070_v24 = vsel %vm660_vm4, %v2038_v49, 0.0 }
 0x78c   :  { %v1990_v25 = vpop.xlane.xlu1 %1989  ;;  %2074 = vadd.xlane.f32.xlu1 %v2073_v23  ;;  %2071 = vadd.xlane.f32.xlu0 %v2070_v24  ;;  %v1987_v26 = vpop.xlane.xlu0 %1986 }
 0x78d   :  { %v2011_v27 = vmul.f32 0.015625, %v1990_v25  ;;  %v2010_v32 = vmul.f32 0.015625, %v1987_v26  ;;  %v2041_v33 = vmul.f32 %v13532_v22, %v13532_v22  ;;  %v2040_v11 = vmul.f32 %v13535_v8, %v13535_v8 }
 0x78f   :  { %v13544_v34 = vsub.f32 %v13463_v14, %v2011_v27  ;;  %v13547_v12 = vsub.f32 %v13465_v15, %v2010_v32  ;;  %v2079_v35 = vsel %vm660_vm4, %v2041_v33, 0.0  ;;  %v2076_v36 = vsel %vm660_vm4, %v2040_v11, 0.0 }
 0x790   :  { %v1996_v37 = vpop.xlane.xlu1 %1995  ;;  %2080 = vadd.xlane.f32.xlu1 %v2079_v35  ;;  %2077 = vadd.xlane.f32.xlu0 %v2076_v36  ;;  %v1993_v40 = vpop.xlane.xlu0 %1992  ;;  %v11248_v15 = vpack.c.bf16 %v1082_v43, %v1081_v42  ;;  %v13569_v42 = vld [vmem:[#allocation26] ss:$0 sm:$0xff] }
 0x791   :  { %v2013_v44 = vmul.f32 0.015625, %v1996_v37  ;;  %v2012_v45 = vmul.f32 0.015625, %v1993_v40  ;;  %v2043_v46 = vmul.f32 %v13544_v34, %v13544_v34  ;;  %v2042_v14 = vmul.f32 %v13547_v12, %v13547_v12 }
 0x792   :  { %11249 = vmatprep.subr.bf16.mxu0 %v11248_v15 }
 0x793   :  { %v13556_v47 = vsub.f32 %v13471_v18, %v2013_v44  ;;  %v13559_v50 = vsub.f32 %v13473_v19, %v2012_v45  ;;  %v2085_v52 = vsel %vm660_vm4, %v2043_v46, 0.0  ;;  %v2082_v53 = vsel %vm660_vm4, %v2042_v14, 0.0  ;;  %11251 = vmatpush3.bf16.msra.mxu0 %v11248_v15  ;;  %v13572_v14 = vld [vmem:[#allocation28] ss:$0 sm:$0xff] }
 0x794   :  { %2086 = vadd.xlane.f32.xlu1 %v2085_v52  ;;  %2083 = vadd.xlane.f32.xlu0 %v2082_v53  ;;  %v11252_v18 = vpack.c.bf16 %v1084_v54, %v1083_v21 }
 0x795   :  { %v2045_v55 = vmul.f32 %v13556_v47, %v13556_v47  ;;  %v2044_v56 = vmul.f32 %v13559_v50, %v13559_v50 }
 0x796   :  { %11253 = vmatprep.subr.bf16.mxu0 %v11252_v18 }
 0x797   :  { %v2091_v19 = vsel %vm660_vm4, %v2045_v55, 0.0  ;;  %v2088_v57 = vsel %vm660_vm4, %v2044_v56, 0.0  ;;  %11255 = vmatpush3.bf16.msra.mxu0 %v11252_v18 }
 0x798   :  { %2092 = vadd.xlane.f32.xlu1 %v2091_v19  ;;  %2089 = vadd.xlane.f32.xlu0 %v2088_v57 }
 0x799   :  { %11257 = vmatprep.subr.bf16.mxu0 %v11256_v38 }
 0x79b   :  { %11259 = vmatpush3.bf16.msra.mxu0 %v11256_v38 }
 0x79c   :  { %11261 = vmatprep.subr.bf16.mxu0 %v11260_v62 }
 0x79f   :  { %11263 = vmatpush3.bf16.msra.mxu0 %v11260_v62 }
 0x808   :  { %v2051_v2 = vpop.xlane.xlu1 %2050 }
 0x809   :  { %v2095_v1 = vmul.f32 0.015625, %v2051_v2  ;;  %v2048_v60 = vpop.xlane.xlu0 %2047 }
 0x80a   :  { %v2094_v5 = vmul.f32 0.015625, %v2048_v60 }
 0x80b   :  { %v2111_v9 = vadd.f32 1e-05, %v2095_v1 }
 0x80c   :  { %v2110_v10 = vadd.f32 1e-05, %v2094_v5 }
 0x80d   :  { %11973 = vrsqrt.f32 %v2111_v9  ;;  %v2057_v63 = vpop.xlane.xlu1 %2056  ;;  %v2054_v13 = vpop.xlane.xlu0 %2053 }
 0x80e   :  { %11975 = vrsqrt.f32 %v2110_v10  ;;  %v2097_v16 = vmul.f32 0.015625, %v2057_v63  ;;  %v2096_v17 = vmul.f32 0.015625, %v2054_v13 }
 0x810   :  { %v2113_v49 = vadd.f32 1e-05, %v2097_v16  ;;  %v2112_v23 = vadd.f32 1e-05, %v2096_v17 }
 0x811   :  { %v2063_v24 = vpop.xlane.xlu1 %2062  ;;  %v2060_v25 = vpop.xlane.xlu0 %2059 }
 0x812   :  { %11977 = vrsqrt.f32 %v2113_v49  ;;  %v2099_v26 = vmul.f32 0.015625, %v2063_v24  ;;  %v2098_v27 = vmul.f32 0.015625, %v2060_v25 }
 0x813   :  { %11979 = vrsqrt.f32 %v2112_v23 }
 0x814   :  { %v2115_v32 = vadd.f32 1e-05, %v2099_v26  ;;  %v2114_v33 = vadd.f32 1e-05, %v2098_v27 }
 0x815   :  { %v2069_v11 = vpop.xlane.xlu1 %2068  ;;  %v2066_v35 = vpop.xlane.xlu0 %2065 }
 0x816   :  { %11981 = vrsqrt.f32 %v2115_v32  ;;  %v2101_v36 = vmul.f32 0.015625, %v2069_v11  ;;  %v2100_v37 = vmul.f32 0.015625, %v2066_v35 }
 0x817   :  { %v11974_v40 = vpop.eup %11973  ;;  %11983 = vrsqrt.f32 %v2114_v33 }
 0x818   :  { %v11976_v43 = vpop.eup %11975  ;;  %v2143_v44 = vmul.f32 %v11974_v40, %v13479_v30  ;;  %v2117_v45 = vadd.f32 1e-05, %v2101_v36  ;;  %v2116_v46 = vadd.f32 1e-05, %v2100_v37 }
 0x819   :  { %v2075_v15 = vpop.xlane.xlu1 %2074  ;;  %v2072_v52 = vpop.xlane.xlu0 %2071  ;;  %v2142_v53 = vmul.f32 %v11976_v43, %v13481_v31 }
 0x81a   :  { %v2165_v21 = vmul.f32 %v13569_v42, %v2143_v44  ;;  %11985 = vrsqrt.f32 %v2117_v45  ;;  %v2103_v54 = vmul.f32 0.015625, %v2075_v15  ;;  %v2102_v55 = vmul.f32 0.015625, %v2072_v52 }
 0x81b   :  { %11987 = vrsqrt.f32 %v2116_v46  ;;  %v2164_v56 = vmul.f32 %v13569_v42, %v2142_v53 }
 0x81c   :  { %v11978_v18 = vpop.eup %11977  ;;  %v2187_v19 = vadd.f32 %v13572_v14, %v2165_v21  ;;  %v2119_v30 = vadd.f32 1e-05, %v2103_v54  ;;  %v2118_v57 = vadd.f32 1e-05, %v2102_v55 }
 0x81d   :  { %v11980_v58 = vpop.eup %11979  ;;  %v2081_v61 = vpop.xlane.xlu1 %2080  ;;  %v2186_v0 = vadd.f32 %v13572_v14, %v2164_v56  ;;  %v2145_v31 = vmul.f32 %v11978_v18, %v13488_v41 }
 0x81e   :  { %v2078_v38 = vpop.xlane.xlu0 %2077  ;;  %11989 = vrsqrt.f32 %v2119_v30  ;;  %v2105_v39 = vmul.f32 0.015625, %v2081_v61  ;;  %v2144_v1 = vmul.f32 %v11980_v58, %v13490_v20  ;;  %v2203_v63 = vmax.f32 %v2187_v19, 0.0 }
 0x81f   :  { %v2104_v62 = vmul.f32 0.015625, %v2078_v38  ;;  %11991 = vrsqrt.f32 %v2118_v57  ;;  %v2202_v2 = vmax.f32 %v2186_v0, 0.0  ;;  %v2167_v60 = vmul.f32 %v13569_v42, %v2145_v31 }
 0x820   :  { %v11982_v5 = vpop.eup %11981  ;;  %v2121_v9 = vadd.f32 1e-05, %v2105_v39  ;;  %v2166_v41 = vmul.f32 %v13569_v42, %v2144_v1 }
 0x821   :  { %v2120_v10 = vadd.f32 1e-05, %v2104_v62  ;;  %v11984_v13 = vpop.eup %11983  ;;  %v2087_v16 = vpop.xlane.xlu1 %2086  ;;  %10240 = vmatprep.mubr.msk.f32.mxu0 %vm660_vm4, %v2202_v2  ;;  %v2189_v49 = vadd.f32 %v13572_v14, %v2167_v60  ;;  %v2147_v23 = vmul.f32 %v11982_v5, %v13497_v51 }
 0x822   :  { %v2084_v17 = vpop.xlane.xlu0 %2083  ;;  %11993 = vrsqrt.f32 %v2121_v9  ;;  %v2107_v24 = vmul.f32 0.015625, %v2087_v16  ;;  %10241 = vmatmul.mubr.msk.f32.vlgmr.msra.gmra.mrb[12].mxu0 %vm660_vm4, %v2203_v63  ;;  %v2146_v25 = vmul.f32 %v11984_v13, %v13499_v28  ;;  %v2188_v26 = vadd.f32 %v13572_v14, %v2166_v41 }
 0x823   :  { %v2106_v20 = vmul.f32 0.015625, %v2084_v17  ;;  %11995 = vrsqrt.f32 %v2120_v10  ;;  %v2169_v27 = vmul.f32 %v13569_v42, %v2147_v23  ;;  %v2205_v35 = vmax.f32 %v2189_v49, 0.0 }
 0x824   :  { %v11986_v32 = vpop.eup %11985  ;;  %v2123_v33 = vadd.f32 1e-05, %v2107_v24  ;;  %v2168_v36 = vmul.f32 %v13569_v42, %v2146_v25  ;;  %v2204_v40 = vmax.f32 %v2188_v26, 0.0 }
 0x825   :  { %v2122_v11 = vadd.f32 1e-05, %v2106_v20  ;;  %v11988_v37 = vpop.eup %11987  ;;  %v2093_v51 = vpop.xlane.xlu1 %2092  ;;  %v2191_v44 = vadd.f32 %v13572_v14, %v2169_v27  ;;  %v2149_v45 = vmul.f32 %v11986_v32, %v13508_v29 }
 0x826   :  { %v2090_v43 = vpop.xlane.xlu0 %2089  ;;  %11997 = vrsqrt.f32 %v2123_v33  ;;  %v2109_v28 = vmul.f32 0.015625, %v2093_v51  ;;  %v2190_v15 = vadd.f32 %v13572_v14, %v2168_v36  ;;  %10243 = vmatprep.mubr.msk.f32.mxu0 %vm660_vm4, %v2204_v40  ;;  %v2148_v52 = vmul.f32 %v11988_v37, %v13511_v59  ;;  %v13641_v40 = vld [vmem:[%s15112_s25] ss:$0 sm:$0xff] }
 0x827   :  { %v2108_v46 = vmul.f32 0.015625, %v2090_v43  ;;  %11999 = vrsqrt.f32 %v2122_v11  ;;  %v2171_v53 = vmul.f32 %v13569_v42, %v2149_v45  ;;  %10244 = vmatmul.mubr.msk.f32.gmra.mrb[14].mxu0 %vm660_vm4, %v2205_v35  ;;  %v2207_v18 = vmax.f32 %v2191_v44, 0.0 }
 0x828   :  { %v11990_v21 = vpop.eup %11989  ;;  %v2125_v54 = vadd.f32 1e-05, %v2109_v28  ;;  %v2206_v56 = vmax.f32 %v2190_v15, 0.0  ;;  %v2170_v19 = vmul.f32 %v13569_v42, %v2148_v52 }
 0x829   :  { %v2124_v55 = vadd.f32 1e-05, %v2108_v46  ;;  %v11992_v29 = vpop.eup %11991  ;;  %v2193_v30 = vadd.f32 %v13572_v14, %v2171_v53  ;;  %v2151_v57 = vmul.f32 %v11990_v21, %v13520_v3 }
 0x82a   :  { %12001 = vrsqrt.f32 %v2125_v54  ;;  %10246 = vmatprep.mubr.msk.f32.mxu0 %vm660_vm4, %v2206_v56  ;;  %v2150_v59 = vmul.f32 %v11992_v29, %v13523_v48  ;;  %v2192_v58 = vadd.f32 %v13572_v14, %v2170_v19 }
 0x82b   :  { %12003 = vrsqrt.f32 %v2124_v55  ;;  %v2173_v61 = vmul.f32 %v13569_v42, %v2151_v57  ;;  %10247 = vmatmul.mubr.msk.f32.gmra.mrb[16].mxu0 %vm660_vm4, %v2207_v18  ;;  %v2209_v0 = vmax.f32 %v2193_v30, 0.0 }
 0x82c   :  { %v11994_v38 = vpop.eup %11993  ;;  %v2172_v31 = vmul.f32 %v13569_v42, %v2150_v59  ;;  %v2208_v62 = vmax.f32 %v2192_v58, 0.0 }
 0x82d   :  { %v11996_v39 = vpop.eup %11995  ;;  %v2195_v3 = vadd.f32 %v13572_v14, %v2173_v61  ;;  %v2153_v2 = vmul.f32 %v11994_v38, %v13532_v22 }
 0x82e   :  { %v2194_v1 = vadd.f32 %v13572_v14, %v2172_v31  ;;  %v2152_v48 = vmul.f32 %v11996_v39, %v13535_v8  ;;  %10249 = vmatprep.mubr.msk.f32.mxu0 %vm660_vm4, %v2208_v62 }
 0x82f   :  { %v2175_v60 = vmul.f32 %v13569_v42, %v2153_v2  ;;  %10250 = vmatmul.mubr.msk.f32.gmra.mrb[18].mxu0 %vm660_vm4, %v2209_v0  ;;  %v2211_v10 = vmax.f32 %v2195_v3, 0.0 }
 0x830   :  { %v11998_v5 = vpop.eup %11997  ;;  %v2210_v9 = vmax.f32 %v2194_v1, 0.0  ;;  %v2174_v63 = vmul.f32 %v13569_v42, %v2152_v48 }
 0x831   :  { %v12000_v13 = vpop.eup %11999  ;;  %v2197_v16 = vadd.f32 %v13572_v14, %v2175_v60  ;;  %v2155_v22 = vmul.f32 %v11998_v5, %v13544_v34 }
 0x832   :  { %10252 = vmatprep.mubr.msk.f32.mxu0 %vm660_vm4, %v2210_v9  ;;  %v2196_v8 = vadd.f32 %v13572_v14, %v2174_v63  ;;  %v2154_v17 = vmul.f32 %v12000_v13, %v13547_v12 }
 0x833   :  { %v2177_v41 = vmul.f32 %v13569_v42, %v2155_v22  ;;  %10253 = vmatmul.mubr.msk.f32.gmra.mrb[20].mxu0 %vm660_vm4, %v2211_v10  ;;  %v2213_v24 = vmax.f32 %v2197_v16, 0.0 }
 0x834   :  { %v12002_v49 = vpop.eup %12001  ;;  %v2212_v23 = vmax.f32 %v2196_v8, 0.0  ;;  %v2176_v20 = vmul.f32 %v13569_v42, %v2154_v17 }
 0x835   :  { %v12004_v25 = vpop.eup %12003  ;;  %v2199_v26 = vadd.f32 %v13572_v14, %v2177_v41  ;;  %v2157_v34 = vmul.f32 %v12002_v49, %v13556_v47 }
 0x836   :  { %10255 = vmatprep.mubr.msk.f32.mxu0 %vm660_vm4, %v2212_v23  ;;  %v2198_v27 = vadd.f32 %v13572_v14, %v2176_v20  ;;  %v2156_v12 = vmul.f32 %v12004_v25, %v13559_v50  ;;  %v13638_v50 = vshrl.u32 %v1360_v6, 7  ;;  %v2438_v20 = vld [vmem:[#allocation6] sm:$0xff] }
 0x837   :  { %v2179_v32 = vmul.f32 %v13569_v42, %v2157_v34  ;;  %10256 = vmatmul.mubr.msk.f32.gmra.mrb[22].mxu0 %vm660_vm4, %v2213_v24  ;;  %v2215_v11 = vmax.f32 %v2199_v26, 0.0  ;;  %v2439_v24 = vld [vmem:[#allocation6 + $0x8] sm:$0xff] }
 0x838   :  { %v2214_v33 = vmax.f32 %v2198_v27, 0.0  ;;  %v2178_v35 = vmul.f32 %v13569_v42, %v2156_v12  ;;  %vm2426_vm10 = vcmp.eq.s32.totalorder %v13641_v40, %v13638_v50  ;;  %v12776_v42 = vmov 1.0   ;;  %v2441_v12 = vld [vmem:[#allocation6 + $0x18] sm:$0xff] }
 0x839   :  { %v2201_v36 = vadd.f32 %v13572_v14, %v2179_v32  ;;  %v13647_v17 = vadd.s32 8, %v13638_v50  ;;  %v13650_v49 = vadd.s32 16, %v13638_v50  ;;  %v13655_v23 = vadd.s32 24, %v13638_v50  ;;  %v2440_v32 = vld [vmem:[#allocation6 + $0x10] sm:$0xff] }
 0x83a   :  { %10258 = vmatprep.mubr.msk.f32.mxu0 %vm660_vm4, %v2214_v33  ;;  %v2200_v47 = vadd.f32 %v13572_v14, %v2178_v35  ;;  %v8996_v14 = vld [vmem:[#allocation31] ss:$0 sm:$0xff] }
 0x83b   :  { %10259 = vmatmul.mubr.msk.f32.gmra.mrb[24].mxu0 %vm660_vm4, %v2215_v11  ;;  %v2217_v51 = vmax.f32 %v2201_v36, 0.0  ;;  %vm2427_vm11 = vcmp.eq.s32.totalorder %v13641_v40, %v13647_v17  ;;  %vm2428_vm12 = vcmp.eq.s32.totalorder %v13641_v40, %v13650_v49  ;;  %vm2429_vm13 = vcmp.eq.s32.totalorder %v13641_v40, %v13655_v23 }
 0x83c   :  { %v2216_v37 = vmax.f32 %v2200_v47, 0.0 }
 0x83e   :  { %10261 = vmatprep.mubr.msk.f32.mxu0 %vm660_vm4, %v2216_v37 }
 0x83f   :  { %10262 = vmatmul.mubr.msk.f32.gmra.mrb[26].mxu0 %vm660_vm4, %v2217_v51 }
 0x840   :  { %10296 = vmatprep.mubr.msk.f32.mxu0 %vm2426_vm10, %v12776_v42 }
 0x8f5   :  { %v10242_v43 = vpop.f32.mrb[12].mxu0 }
 0x8f6   :  { %v2344_v44 = vadd.f32 %v10242_v43, %v8996_v14  ;;  %v2338_v45 = vpop.f32.mrb[13].mxu0 }
 0x8f7   :  { %v2339_v28 = vadd.f32 %v8996_v14, %v2338_v45 }
 0x8f9   :  { %v11264_v46 = vpack.c.bf16 %v2344_v44, %v2339_v28 }
 0x8fa   :  { %v10245_v15 = vpop.f32.mrb[14].mxu0 }
 0x8fb   :  { %11265 = vmatprep.subr.bf16.mxu0 %v11264_v46  ;;  %v2354_v52 = vadd.f32 %v10245_v15, %v8996_v14  ;;  %v2348_v53 = vpop.f32.mrb[15].mxu0 }
 0x8fc   :  { %11267 = vmatpush3.bf16.msra.mxu0 %v11264_v46  ;;  %v2349_v6 = vadd.f32 %v8996_v14, %v2348_v53 }
 0x8fe   :  { %v11268_v21 = vpack.c.bf16 %v2354_v52, %v2349_v6  ;;  %v10248_v54 = vpop.f32.mrb[16].mxu0 }
 0x8ff   :  { %v2364_v55 = vadd.f32 %v10248_v54, %v8996_v14  ;;  %v2358_v56 = vpop.f32.mrb[17].mxu0 }
 0x900   :  { %v2359_v18 = vadd.f32 %v8996_v14, %v2358_v56  ;;  %11269 = vmatprep.subr.bf16.mxu0 %v11268_v21 }
 0x901   :  { %11271 = vmatpush3.bf16.msra.mxu0 %v11268_v21 }
 0x902   :  { %v11272_v29 = vpack.c.bf16 %v2364_v55, %v2359_v18  ;;  %v10251_v19 = vpop.f32.mrb[18].mxu0 }
 0x903   :  { %v2374_v30 = vadd.f32 %v10251_v19, %v8996_v14  ;;  %v2368_v57 = vpop.f32.mrb[19].mxu0 }
 0x904   :  { %v2369_v59 = vadd.f32 %v8996_v14, %v2368_v57  ;;  %11273 = vmatprep.subr.bf16.mxu0 %v11272_v29 }
 0x905   :  { %11275 = vmatpush3.bf16.msra.mxu0 %v11272_v29 }
 0x906   :  { %v11276_v58 = vpack.c.bf16 %v2374_v30, %v2369_v59  ;;  %v10254_v61 = vpop.f32.mrb[20].mxu0 }
 0x907   :  { %v2384_v38 = vadd.f32 %v10254_v61, %v8996_v14  ;;  %v2378_v0 = vpop.f32.mrb[21].mxu0 }
 0x908   :  { %v2379_v31 = vadd.f32 %v8996_v14, %v2378_v0  ;;  %11277 = vmatprep.subr.bf16.mxu0 %v11276_v58 }
 0x909   :  { %11279 = vmatpush3.bf16.msra.mxu0 %v11276_v58 }
 0x90a   :  { %v11280_v39 = vpack.c.bf16 %v2384_v38, %v2379_v31  ;;  %v10257_v62 = vpop.f32.mrb[22].mxu0  ;;  %v2613_v31 = vld [vmem:[#allocation35] sm:$0xff] }
 0x90b   :  { %v2394_v3 = vadd.f32 %v10257_v62, %v8996_v14  ;;  %v2388_v2 = vpop.f32.mrb[23].mxu0  ;;  %v3230_v62 = vld [vmem:[%s15111_s30 + $0x8] sm:$0xff] }
 0x90c   :  { %v2389_v1 = vadd.f32 %v8996_v14, %v2388_v2  ;;  %11281 = vmatprep.subr.bf16.mxu0 %v11280_v39  ;;  %v2615_v2 = vld [vmem:[#allocation35 + $0x10] sm:$0xff] }
 0x90d   :  { %11283 = vmatpush3.bf16.msra.mxu0 %v11280_v39  ;;  %v2614_v39 = vld [vmem:[#allocation35 + $0x8] sm:$0xff] }
 0x90e   :  { %v11284_v48 = vpack.c.bf16 %v2394_v3, %v2389_v1  ;;  %v10260_v60 = vpop.f32.mrb[24].mxu0  ;;  %v11312_v3 = vpack.c.bf16 %v2614_v39, %v2613_v31  ;;  %v2616_v1 = vld [vmem:[#allocation35 + $0x18] sm:$0xff]  ;;  %v2846_v31 = vld [vmem:[#allocation40 + $0x20] sm:$0xff]  ;;  %v2847_v39 = vld [vmem:[#allocation40 + $0x28] sm:$0xff] }
 0x90f   :  { %v2404_v5 = vadd.f32 %v10260_v60, %v8996_v14  ;;  %v2398_v9 = vpop.f32.mrb[25].mxu0  ;;  %v11316_v60 = vpack.c.bf16 %v2616_v1, %v2615_v2 }
 0x910   :  { %v2399_v10 = vadd.f32 %v8996_v14, %v2398_v9  ;;  %11285 = vmatprep.subr.bf16.mxu0 %v11284_v48  ;;  %11313 = vmatprep.subr.bf16.mxu1 %v11312_v3  ;;  %v2617_v9 = vld [vmem:[#allocation35 + $0x20] sm:$0xff] }
 0x911   :  { %11287 = vmatpush3.bf16.msra.mxu0 %v11284_v48  ;;  %11315 = vmatpush3.bf16.msra.mxu1 %v11312_v3  ;;  %v3231_v48 = vld [vmem:[%s15111_s30 + $0x10] sm:$0xff] }
 0x912   :  { %v11288_v63 = vpack.c.bf16 %v2404_v5, %v2399_v10  ;;  %v10263_v13 = vpop.f32.mrb[26].mxu0  ;;  %v3229_v5 = vld [vmem:[%s15111_s30] sm:$0xff]  ;;  %11317 = vmatprep.subr.bf16.mxu1 %v11316_v60  ;;  %v2618_v10 = vld [vmem:[#allocation35 + $0x28] sm:$0xff] }
 0x913   :  { %v2414_v16 = vadd.f32 %v10263_v13, %v8996_v14  ;;  %v2408_v22 = vpop.f32.mrb[27].mxu0  ;;  %v11320_v13 = vpack.c.bf16 %v2618_v10, %v2617_v9 }
 0x914   :  { %v2409_v8 = vadd.f32 %v8996_v14, %v2408_v22  ;;  %11289 = vmatprep.subr.bf16.mxu0 %v11288_v63  ;;  %v2619_v22 = vld [vmem:[#allocation35 + $0x30] sm:$0xff] }
 0x915   :  { %11291 = vmatpush3.bf16.msra.mxu0 %v11288_v63  ;;  %11319 = vmatpush3.bf16.msra.mxu1 %v11316_v60  ;;  %v3233_v63 = vld [vmem:[%s15111_s30 + $0x20] sm:$0xff] }
 0x916   :  { %v11292_v41 = vpack.c.bf16 %v2414_v16, %v2409_v8  ;;  %v3232_v16 = vld [vmem:[%s15111_s30 + $0x18] sm:$0xff]  ;;  %11321 = vmatprep.subr.bf16.mxu1 %v11320_v13  ;;  %v2620_v8 = vld [vmem:[#allocation35 + $0x38] sm:$0xff] }
 0x918   :  { %11293 = vmatprep.subr.bf16.mxu0 %v11292_v41 }
 0x919   :  { %11295 = vmatpush3.bf16.msra.mxu0 %v11292_v41  ;;  %11323 = vmatpush3.bf16.msra.mxu1 %v11320_v13  ;;  %v3235_v41 = vld [vmem:[%s15111_s30 + $0x30] sm:$0xff] }
 0x91c   :  { %10297 = vmatmul.mubr.msk.f32.vlgmr.msra.gmra.mrb[28].mxu0 %vm2427_vm11, %v12776_v42 }
 0x91d   :  { %10299 = vmatprep.mubr.msk.f32.mxu0 %vm2428_vm12, %v12776_v42 }
 0x920   :  { %10300 = vmatmul.mubr.msk.f32.gmra.mrb[30].mxu0 %vm2429_vm13, %v12776_v42 }
 0x9ef   :  { %v10298_v25 = vpop.f32.mrb[28].mxu0 }
 0x9f0   :  { %v2528_v26 = vadd.f32 %v10298_v25, %v2439_v24  ;;  %v2508_v34 = vpop.f32.mrb[29].mxu0  ;;  %v11324_v24 = vpack.c.bf16 %v2620_v8, %v2619_v22  ;;  %v3092_v25 = vld [vmem:[#allocation23 + $0x40] sm:$0xff] }
 0x9f1   :  { %v2527_v27 = vadd.f32 %v2508_v34, %v2438_v20  ;;  %v3234_v20 = vld [vmem:[%s15111_s30 + $0x28] sm:$0xff]  ;;  %v3237_v34 = vld [vmem:[%s15111_s30 + $0x40] sm:$0xff] }
 0x9f2   :  { %2532 = vst.msk [vmem:[#allocation6 + $0x8] sm:$0xff] %vm660_vm4, %v2528_v26  ;;  %11325 = vmatprep.subr.bf16.mxu1 %v11324_v24  ;;  %v3093_v26 = vld [vmem:[#allocation23 + $0x48] sm:$0xff] }
 0x9f3   :  { %2531 = vst.msk [vmem:[#allocation6] sm:$0xff] %vm660_vm4, %v2527_v27  ;;  %v10301_v33 = vpop.f32.mrb[30].mxu0  ;;  %11327 = vmatpush3.bf16.msra.mxu1 %v11324_v24  ;;  %v13708_v27 = vpack.c.bf16 %v3093_v26, %v3092_v25  ;;  %v9023_v26 = vld [vmem:[#allocation34] ss:$0 sm:$0xff] }
 0x9f4   :  { %v2530_v11 = vadd.f32 %v10301_v33, %v2441_v12  ;;  %v2518_v35 = vpop.f32.mrb[31].mxu0  ;;  %v3236_v12 = vld [vmem:[%s15111_s30 + $0x38] sm:$0xff]  ;;  %v3238_v33 = vld [vmem:[%s15111_s30 + $0x48] sm:$0xff] }
 0x9f5   :  { %v2529_v36 = vadd.f32 %v2518_v35, %v2440_v32  ;;  %11361 = vmatprep.subr.bf16.mxu1 %v13708_v27  ;;  %v3239_v32 = vld [vmem:[%s15111_s30 + $0x50] sm:$0xff]  ;;  %v3240_v35 = vld [vmem:[%s15111_s30 + $0x58] sm:$0xff] }
 0x9f6   :  { %2534 = vst.msk [vmem:[#allocation6 + $0x18] sm:$0xff] %vm660_vm4, %v2530_v11  ;;  %v3241_v11 = vld [vmem:[%s15111_s30 + $0x60] sm:$0xff] }
 0x9f7   :  { %2533 = vst.msk [vmem:[#allocation6 + $0x10] sm:$0xff] %vm660_vm4, %v2529_v36  ;;  %v3243_v36 = vld [vmem:[%s15111_s30 + $0x70] sm:$0xff] }
 0x9f9   :  { %v2536_v47 = vld [vmem:[#allocation6 + $0x8] sm:$0xff] }
 0x9fa   :  { %v2544_v37 = vsel %vm660_vm4, %v2536_v47, 0.0  ;;  %5094 = vst.msk [vmem:[#allocation6 + $0x8] sm:$0xff] %vm660_vm4, %v12775_v4  ;;  %v2535_v51 = vld [vmem:[#allocation6] sm:$0xff] }
 0x9fb   :  { %2545 = vadd.xlane.f32.xlu1 %v2544_v37  ;;  %v2541_v40 = vsel %vm660_vm4, %v2535_v51, 0.0  ;;  %5093 = vst.msk [vmem:[#allocation6] sm:$0xff] %vm660_vm4, %v12775_v4  ;;  %v3213_v37 = vld [vmem:[%s15110_s22] sm:$0xff] }
 0x9fc   :  { %2542 = vadd.xlane.f32.xlu0 %v2541_v40  ;;  %v3215_v40 = vld [vmem:[%s15110_s22 + $0x10] sm:$0xff] }
 0x9fd   :  { %v2538_v14 = vld [vmem:[#allocation6 + $0x18] sm:$0xff] }
 0x9fe   :  { %v2550_v43 = vsel %vm660_vm4, %v2538_v14, 0.0  ;;  %5096 = vst.msk [vmem:[#allocation6 + $0x18] sm:$0xff] %vm660_vm4, %v12775_v4  ;;  %v2537_v44 = vld [vmem:[#allocation6 + $0x10] sm:$0xff] }
 0x9ff   :  { %2551 = vadd.xlane.f32.xlu1 %v2550_v43  ;;  %v2547_v45 = vsel %vm660_vm4, %v2537_v44, 0.0  ;;  %5095 = vst.msk [vmem:[#allocation6 + $0x10] sm:$0xff] %vm660_vm4, %v12775_v4  ;;  %v3217_v43 = vld [vmem:[%s15110_s22 + $0x20] sm:$0xff] }
 0xa00   :  { %2548 = vadd.xlane.f32.xlu0 %v2547_v45  ;;  %v3219_v45 = vld [vmem:[%s15110_s22 + $0x30] sm:$0xff] }
 0xa88   :  { %v2546_v28 = vpop.xlane.xlu1 %2545 }
 0xa89   :  { %v2554_v46 = vmul.f32 0.015625, %v2546_v28  ;;  %v2543_v15 = vpop.xlane.xlu0 %2542  ;;  %v3218_v28 = vld [vmem:[%s15110_s22 + $0x28] sm:$0xff] }
 0xa8a   :  { %v2553_v52 = vmul.f32 0.015625, %v2543_v15  ;;  %v3220_v15 = vld [vmem:[%s15110_s22 + $0x38] sm:$0xff] }
 0xa8b   :  { %v13680_v53 = vsub.f32 %v2536_v47, %v2554_v46  ;;  %v3242_v47 = vld [vmem:[%s15111_s30 + $0x68] sm:$0xff]  ;;  %v3221_v46 = vld [vmem:[%s15110_s22 + $0x40] sm:$0xff] }
 0xa8c   :  { %v13682_v6 = vsub.f32 %v2535_v51, %v2553_v52  ;;  %v2552_v21 = vpop.xlane.xlu1 %2551  ;;  %v3244_v51 = vld [vmem:[%s15111_s30 + $0x78] sm:$0xff]  ;;  %v3223_v52 = vld [vmem:[%s15110_s22 + $0x50] sm:$0xff] }
 0xa8d   :  { %v2556_v54 = vmul.f32 0.015625, %v2552_v21  ;;  %v2549_v55 = vpop.xlane.xlu0 %2548  ;;  %v2562_v56 = vmul.f32 %v13680_v53, %v13680_v53  ;;  %v3222_v21 = vld [vmem:[%s15110_s22 + $0x48] sm:$0xff] }
 0xa8e   :  { %v2555_v18 = vmul.f32 0.015625, %v2549_v55  ;;  %v2561_v29 = vmul.f32 %v13682_v6, %v13682_v6  ;;  %v3224_v55 = vld [vmem:[%s15110_s22 + $0x58] sm:$0xff] }
 0xa8f   :  { %v13688_v19 = vsub.f32 %v2538_v14, %v2556_v54  ;;  %v2568_v30 = vsel %vm660_vm4, %v2562_v56, 0.0  ;;  %v3214_v14 = vld [vmem:[%s15110_s22 + $0x8] sm:$0xff]  ;;  %v3225_v54 = vld [vmem:[%s15110_s22 + $0x60] sm:$0xff]  ;;  %v3227_v56 = vld [vmem:[%s15110_s22 + $0x70] sm:$0xff] }
 0xa90   :  { %v13691_v57 = vsub.f32 %v2537_v44, %v2555_v18  ;;  %2569 = vadd.xlane.f32.xlu1 %v2568_v30  ;;  %v2565_v59 = vsel %vm660_vm4, %v2561_v29, 0.0  ;;  %v3216_v44 = vld [vmem:[%s15110_s22 + $0x18] sm:$0xff]  ;;  %v3226_v18 = vld [vmem:[%s15110_s22 + $0x68] sm:$0xff] }
 0xa91   :  { %2566 = vadd.xlane.f32.xlu0 %v2565_v59  ;;  %v2564_v58 = vmul.f32 %v13688_v19, %v13688_v19  ;;  %v3228_v29 = vld [vmem:[%s15110_s22 + $0x78] sm:$0xff] }
 0xa92   :  { %v2563_v61 = vmul.f32 %v13691_v57, %v13691_v57  ;;  %v2842_v30 = vld [vmem:[#allocation40] sm:$0xff]  ;;  %v2843_v59 = vld [vmem:[#allocation40 + $0x8] sm:$0xff] }
 0xa93   :  { %v2574_v38 = vsel %vm660_vm4, %v2564_v58, 0.0  ;;  %v2844_v58 = vld [vmem:[#allocation40 + $0x10] sm:$0xff] }
 0xa94   :  { %2575 = vadd.xlane.f32.xlu1 %v2574_v38  ;;  %v2571_v0 = vsel %vm660_vm4, %v2563_v61, 0.0  ;;  %v11328_v61 = vpack.c.bf16 %v2843_v59, %v2842_v30  ;;  %v2845_v38 = vld [vmem:[#allocation40 + $0x18] sm:$0xff] }
 0xa95   :  { %2572 = vadd.xlane.f32.xlu0 %v2571_v0  ;;  %v11332_v0 = vpack.c.bf16 %v2845_v38, %v2844_v58  ;;  %v9032_v59 = vld [vmem:[#allocation38] ss:$0 sm:$0xff] }
 0xa96   :  { %11329 = vmatprep.subr.bf16.mxu0 %v11328_v61 }
 0xa97   :  { %11331 = vmatpush3.bf16.msra.mxu0 %v11328_v61 }
 0xa98   :  { %11333 = vmatprep.subr.bf16.mxu0 %v11332_v0 }
 0xa9b   :  { %11335 = vmatpush3.bf16.msra.mxu0 %v11332_v0 }
 0xaa5   :  { %3346 = vperm.xlu1 %11956, %v3230_v62   ;;  %v11336_v62 = vpack.c.bf16 %v2847_v39, %v2846_v31  ;;  %v9040_v31 = vld [vmem:[%s15109_s5 + $0x50] sm:$0xff]  ;;  %v9041_v39 = vld [vmem:[%s15109_s5 + $0x58] sm:$0xff] }
 0xaa7   :  { %11337 = vmatprep.subr.bf16.mxu0 %v11336_v62 }
 0xaa8   :  { %11339 = vmatpush3.bf16.msra.mxu0 %v11336_v62 }
 0xaa9   :  { %3349 = vperm.xlu1 %11956, %v3231_v48  }
 0xaab   :  { %3343 = vperm.xlu0 %11955, %v3229_v5  }
 0xaad   :  { %3355 = vperm.xlu1 %11956, %v3233_v63  }
 0xaaf   :  { %3352 = vperm.xlu0 %11955, %v3232_v16  }
 0xab1   :  { %3361 = vperm.xlu1 %11956, %v3235_v41   ;;  %v9022_v41 = vld [vmem:[#allocation32] ss:$0 sm:$0xff] }
 0xab3   :  { %3358 = vperm.xlu0 %11955, %v3234_v20  }
 0xab5   :  { %3367 = vperm.xlu1 %11956, %v3237_v34  }
 0xab7   :  { %3364 = vperm.xlu0 %11955, %v3236_v12  }
 0xab9   :  { %3373 = vperm.xlu1 %11956, %v3239_v32  }
 0xabb   :  { %3370 = vperm.xlu0 %11955, %v3238_v33   ;;  %v3094_v33 = vld [vmem:[#allocation23 + $0x50] sm:$0xff] }
 0xabd   :  { %3379 = vperm.xlu1 %11956, %v3241_v11   ;;  %v3095_v11 = vld [vmem:[#allocation23 + $0x58] sm:$0xff] }
 0xabf   :  { %3376 = vperm.xlu0 %11955, %v3240_v35  }
 0xac1   :  { %3385 = vperm.xlu1 %11956, %v3243_v36  }
 0xac3   :  { %3382 = vperm.xlu0 %11955, %v3242_v47  }
 0xac5   :  { %3247 = vperm.xlu1 %11956, %v3213_v37  }
 0xac7   :  { %3388 = vperm.xlu0 %11955, %v3244_v51  }
 0xac9   :  { %3253 = vperm.xlu1 %11956, %v3215_v40   ;;  %v11364_v40 = vpack.c.bf16 %v3095_v11, %v3094_v33 }
 0xacb   :  { %3250 = vperm.xlu0 %11955, %v3214_v14  }
 0xacd   :  { %3259 = vperm.xlu1 %11956, %v3217_v43   ;;  %v3096_v43 = vld [vmem:[#allocation23 + $0x60] sm:$0xff] }
 0xacf   :  { %3256 = vperm.xlu0 %11955, %v3216_v44  }
 0xad1   :  { %3265 = vperm.xlu1 %11956, %v3219_v45  }
 0xad3   :  { %3262 = vperm.xlu0 %11955, %v3218_v28  }
 0xad5   :  { %3271 = vperm.xlu1 %11956, %v3221_v46   ;;  %v13744_v46 = vld [vmem:[#allocation3] sm:$0xff] }
 0xad7   :  { %3268 = vperm.xlu0 %11955, %v3220_v15  }
 0xad9   :  { %3277 = vperm.xlu1 %11956, %v3223_v52   ;;  %v13752_v52 = vld [vmem:[#allocation3 + $0x10] sm:$0xff] }
 0xadb   :  { %3274 = vperm.xlu0 %11955, %v3222_v21   ;;  %v13756_v21 = vld [vmem:[#allocation3 + $0x18] sm:$0xff] }
 0xadd   :  { %3283 = vperm.xlu1 %11956, %v3225_v54   ;;  %v2848_v54 = vld [vmem:[#allocation40 + $0x30] sm:$0xff] }
 0xadf   :  { %3280 = vperm.xlu0 %11955, %v3224_v55   ;;  %v2849_v55 = vld [vmem:[#allocation40 + $0x38] sm:$0xff] }
 0xae1   :  { %3289 = vperm.xlu1 %11956, %v3227_v56   ;;  %v11340_v56 = vpack.c.bf16 %v2849_v55, %v2848_v54 }
 0xae3   :  { %3286 = vperm.xlu0 %11955, %v3226_v18   ;;  %11341 = vmatprep.subr.bf16.mxu0 %v11340_v56  ;;  %v9038_v18 = vld [vmem:[%s15109_s5 + $0x40] sm:$0xff] }
 0xae4   :  { %11343 = vmatpush3.bf16.msra.mxu0 %v11340_v56 }
 0xae7   :  { %3292 = vperm.xlu0 %11955, %v3228_v29   ;;  %v9039_v29 = vld [vmem:[%s15109_s5 + $0x48] sm:$0xff] }
 0xae8   :  { %v11344_v30 = vpack.c.bf16 %v9039_v29, %v9038_v18 }
 0xaea   :  { %11345 = vmatprep.subr.bf16.mxu0 %v11344_v30 }
 0xb1d   :  { %v2570_v3 = vpop.xlane.xlu1 %2569 }
 0xb1e   :  { %v2578_v2 = vmul.f32 0.015625, %v2570_v3  ;;  %v2567_v1 = vpop.xlane.xlu0 %2566 }
 0xb1f   :  { %v2577_v48 = vmul.f32 0.015625, %v2567_v1 }
 0xb20   :  { %v2582_v60 = vadd.f32 1e-05, %v2578_v2 }
 0xb21   :  { %v2581_v5 = vadd.f32 1e-05, %v2577_v48  ;;  %v2576_v9 = vpop.xlane.xlu1 %2575 }
 0xb22   :  { %12005 = vrsqrt.f32 %v2582_v60  ;;  %v2580_v10 = vmul.f32 0.015625, %v2576_v9  ;;  %v2573_v63 = vpop.xlane.xlu0 %2572  ;;  %v11348_v60 = vpack.c.bf16 %v9041_v39, %v9040_v31  ;;  %v9042_v9 = vld [vmem:[%s15109_s5 + $0x60] sm:$0xff] }
 0xb23   :  { %12007 = vrsqrt.f32 %v2581_v5  ;;  %v2579_v13 = vmul.f32 0.015625, %v2573_v63 }
 0xb24   :  { %v2584_v16 = vadd.f32 1e-05, %v2580_v10  ;;  %v9043_v10 = vld [vmem:[%s15109_s5 + $0x68] sm:$0xff] }
 0xb25   :  { %v2583_v22 = vadd.f32 1e-05, %v2579_v13 }
 0xb26   :  { %12009 = vrsqrt.f32 %v2584_v16  ;;  %v11352_v16 = vpack.c.bf16 %v9043_v10, %v9042_v9 }
 0xb27   :  { %12011 = vrsqrt.f32 %v2583_v22  ;;  %v9044_v22 = vld [vmem:[%s15109_s5 + $0x70] sm:$0xff] }
 0xb2c   :  { %v12006_v8 = vpop.eup %12005 }
 0xb2d   :  { %v12008_v24 = vpop.eup %12007  ;;  %v2590_v20 = vmul.f32 %v12006_v8, %v13680_v53  ;;  %v9045_v8 = vld [vmem:[%s15109_s5 + $0x78] sm:$0xff] }
 0xb2e   :  { %v2589_v25 = vmul.f32 %v12008_v24, %v13682_v6  ;;  %v3097_v6 = vld [vmem:[#allocation23 + $0x68] sm:$0xff]  ;;  %v9050_v24 = vld [vmem:[#allocation25 + $0x1] ss:$0 sm:$0xff] }
 0xb2f   :  { %v2600_v34 = vmul.f32 %v9022_v41, %v2590_v20  ;;  %v11368_v28 = vpack.c.bf16 %v3097_v6, %v3096_v43 }
 0xb30   :  { %v12010_v12 = vpop.eup %12009  ;;  %v2599_v32 = vmul.f32 %v9022_v41, %v2589_v25 }
 0xb31   :  { %v12012_v35 = vpop.eup %12011  ;;  %v2592_v36 = vmul.f32 %v12010_v12, %v13688_v19  ;;  %v2610_v51 = vadd.f32 %v9023_v26, %v2600_v34  ;;  %v3098_v19 = vld [vmem:[#allocation23 + $0x70] sm:$0xff] }
 0xb32   :  { %v2609_v47 = vadd.f32 %v9023_v26, %v2599_v32  ;;  %v2591_v37 = vmul.f32 %v12012_v35, %v13691_v57  ;;  %v3099_v57 = vld [vmem:[#allocation23 + $0x78] sm:$0xff] }
 0xb33   :  { %v2602_v14 = vmul.f32 %v9022_v41, %v2592_v36  ;;  %v11372_v15 = vpack.c.bf16 %v3099_v57, %v3098_v19 }
 0xb34   :  { %10340 = vmatprep.mubr.msk.f32.mxu1 %vm660_vm4, %v2609_v47  ;;  %v2601_v53 = vmul.f32 %v9022_v41, %v2591_v37  ;;  %v11356_v41 = vpack.c.bf16 %v9045_v8, %v9044_v22  ;;  %v3347_v37 = vpop.permute.xlu1 %3346 }
 0xb35   :  { %10341 = vmatmul.mubr.msk.f32.vlgmr.msra.gmra.mrb[28].mxu1 %vm660_vm4, %v2610_v51  ;;  %v2612_v45 = vadd.f32 %v9023_v26, %v2602_v14  ;;  %v9033_v51 = vld [vmem:[#allocation41] ss:$0 sm:$0xff]  ;;  %vm3391_vm15 = vcmp.eq.s32.totalorder %v3347_v37, %v13291_v7 }
 0xb36   :  { %11363 = vmatpush3.bf16.msra.mxu1 %v13708_v27  ;;  %v2611_v44 = vadd.f32 %v9023_v26, %v2601_v53  ;;  %v13748_v27 = vld [vmem:[#allocation3 + $0x8] sm:$0xff] }
 0xb37   :  { %11365 = vmatprep.subr.bf16.mxu1 %v11364_v40 }
 0xb38   :  { %10343 = vmatprep.mubr.msk.f32.mxu1 %vm660_vm4, %v2611_v44  ;;  %v3350_v53 = vpop.permute.xlu1 %3349 }
 0xb39   :  { %10344 = vmatmul.mubr.msk.f32.gmra.mrb[30].mxu1 %vm660_vm4, %v2612_v45  ;;  %vm3392_vm0 = vcmp.eq.s32.totalorder %v3350_v53, %v13291_v7 }
 0xb3a   :  { %11367 = vmatpush3.bf16.msra.mxu1 %v11364_v40  ;;  %10406 = vmatprep.mubr.msk.f32.mxu1 %vm660_vm4, %v13744_v46  ;;  %v3344_v40 = vpop.permute.xlu0 %3343 }
 0xb3b   :  { %11369 = vmatprep.subr.bf16.mxu1 %v11368_v28  ;;  %vm3390_vm14 = vcmp.eq.s32.totalorder %v3344_v40, %v13291_v7 }
 0xb3c   :  { %v3356_v54 = vpop.permute.xlu1 %3355 }
 0xb3d   :  { %vm3394_vm2 = vcmp.eq.s32.totalorder %v3356_v54, %v13291_v7 }
 0xb3e   :  { %11371 = vmatpush3.bf16.msra.mxu1 %v11368_v28  ;;  %v3353_v57 = vpop.permute.xlu0 %3352 }
 0xb3f   :  { %11373 = vmatprep.subr.bf16.mxu1 %v11372_v15  ;;  %vm3393_vm1 = vcmp.eq.s32.totalorder %v3353_v57, %v13291_v7 }
 0xb42   :  { %11375 = vmatpush3.bf16.msra.mxu1 %v11372_v15  ;;  %v3359_v29 = vpop.permute.xlu0 %3358 }
 0xb43   :  { %vm3395_vm3 = vcmp.eq.s32.totalorder %v3359_v29, %v13291_v7  ;;  %v4509_v29 = vld [vmem:[#allocation37 + $0x58] sm:$0xff] }
 0xb45   :  { %10407 = vmatmul.mubr.msk.f32.vlgmr.msra.gmra.mrb[32].mxu1 %vm660_vm4, %v13748_v27 }
 0xb46   :  { %10409 = vmatprep.mubr.msk.f32.mxu1 %vm660_vm4, %v13752_v52  ;;  %v3365_v31 = vpop.permute.xlu0 %3364 }
 0xb47   :  { %vm3397_vm7 = vcmp.eq.s32.totalorder %v3365_v31, %v13291_v7 }
 0xb49   :  { %10410 = vmatmul.mubr.msk.f32.gmra.mrb[34].mxu1 %vm660_vm4, %v13756_v21 }
 0xc08   :  { %v10342_v58 = vpop.f32.mrb[28].mxu1 }
 0xc09   :  { %v2835_v61 = vadd.f32 %v10342_v58, %v9032_v59  ;;  %v2808_v38 = vpop.f32.mrb[29].mxu1 }
 0xc0a   :  { %v2834_v0 = vadd.f32 %v9032_v59, %v2808_v38 }
 0xc0b   :  { %v2839_v2 = vmax.f32 %v2835_v61, 0.0 }
 0xc0c   :  { %v2838_v62 = vmax.f32 %v2834_v0, 0.0  ;;  %v10345_v3 = vpop.f32.mrb[30].mxu1  ;;  %v9071_v0 = vsel %vm3390_vm14, 1.0, %v12775_v4 }
 0xc0d   :  { %v2837_v1 = vadd.f32 %v10345_v3, %v9032_v59  ;;  %v2818_v48 = vpop.f32.mrb[31].mxu1  ;;  %v9073_v3 = vsel %vm3392_vm0, 1.0, %v12775_v4 }
 0xc0e   :  { %v2836_v5 = vadd.f32 %v9032_v59, %v2818_v48  ;;  %10362 = vmatprep.mubr.msk.f32.mxu0 %vm660_vm4, %v2838_v62  ;;  %v3362_v59 = vpop.permute.xlu1 %3361  ;;  %v9072_v62 = vsel %vm3391_vm15, 1.0, %v12775_v4  ;;  %v9075_v48 = vsel %vm3394_vm2, 1.0, %v12775_v4 }
 0xc0f   :  { %10363 = vmatmul.mubr.msk.f32.vlgmr.msra.gmra.mrb[32].mxu0 %vm660_vm4, %v2839_v2  ;;  %v2841_v13 = vmax.f32 %v2837_v1, 0.0  ;;  %v9074_v2 = vsel %vm3393_vm1, 1.0, %v12775_v4  ;;  %v3371_v1 = vpop.permute.xlu0 %3370  ;;  %vm3396_vm5 = vcmp.eq.s32.totalorder %v3362_v59, %v13291_v7 }
 0xc10   :  { %v2840_v63 = vmax.f32 %v2836_v5, 0.0  ;;  %11347 = vmatpush3.bf16.msra.mxu0 %v11344_v30  ;;  %v9076_v5 = vsel %vm3395_vm3, 1.0, %v12775_v4  ;;  %v9077_v9 = vsel %vm3396_vm5, 1.0, %v12775_v4  ;;  %vm3399_vm9 = vcmp.eq.s32.totalorder %v3371_v1, %v13291_v7  ;;  %v4513_v1 = vld [vmem:[#allocation37 + $0x78] sm:$0xff] }
 0xc11   :  { %11349 = vmatprep.subr.bf16.mxu0 %v11348_v60  ;;  %v9080_v22 = vsel %vm3399_vm9, 1.0, %v12775_v4 }
 0xc12   :  { %10365 = vmatprep.mubr.msk.f32.mxu0 %vm660_vm4, %v2840_v63  ;;  %v3368_v39 = vpop.permute.xlu1 %3367 }
 0xc13   :  { %10366 = vmatmul.mubr.msk.f32.gmra.mrb[34].mxu0 %vm660_vm4, %v2841_v13  ;;  %vm3398_vm8 = vcmp.eq.s32.totalorder %v3368_v39, %v13291_v7  ;;  %v3377_v10 = vpop.permute.xlu0 %3376  ;;  %v9078_v13 = vsel %vm3397_vm7, 1.0, %v12775_v4 }
 0xc14   :  { %11351 = vmatpush3.bf16.msra.mxu0 %v11348_v60  ;;  %vm3401_vm11 = vcmp.eq.s32.totalorder %v3377_v10, %v13291_v7 }
 0xc15   :  { %11353 = vmatprep.subr.bf16.mxu0 %v11352_v16 }
 0xc16   :  { %v3374_v60 = vpop.permute.xlu1 %3373 }
 0xc17   :  { %vm3400_vm10 = vcmp.eq.s32.totalorder %v3374_v60, %v13291_v7  ;;  %v3383_v8 = vpop.permute.xlu0 %3382 }
 0xc18   :  { %v10408_v20 = vpop.f32.mrb[32].mxu1  ;;  %11355 = vmatpush3.bf16.msra.mxu0 %v11352_v16  ;;  %v9079_v16 = vsel %vm3398_vm8, 1.0, %v12775_v4  ;;  %vm3403_vm13 = vcmp.eq.s32.totalorder %v3383_v8, %v13291_v7 }
 0xc19   :  { %v3192_v25 = vadd.f32 %v10408_v20, %v9050_v24  ;;  %v3186_v26 = vpop.f32.mrb[33].mxu1  ;;  %11357 = vmatprep.subr.bf16.mxu0 %v11356_v41  ;;  %v9082_v20 = vsel %vm3401_vm11, 1.0, %v12775_v4 }
 0xc1a   :  { %v3187_v34 = vadd.f32 %v9050_v24, %v3186_v26  ;;  %v3380_v63 = vpop.permute.xlu1 %3379 }
 0xc1b   :  { %3206 = vst.msk [vmem:[#allocation5 + $0x8] sm:$0xff] %vm660_vm4, %v3192_v25  ;;  %vm3402_vm12 = vcmp.eq.s32.totalorder %v3380_v63, %v13291_v7  ;;  %v3389_v26 = vpop.permute.xlu0 %3388 }
 0xc1c   :  { %3205 = vst.msk [vmem:[#allocation5] sm:$0xff] %vm660_vm4, %v3187_v34  ;;  %v10411_v12 = vpop.f32.mrb[34].mxu1  ;;  %11359 = vmatpush3.bf16.msra.mxu0 %v11356_v41  ;;  %v9081_v41 = vsel %vm3400_vm10, 1.0, %v12775_v4  ;;  %v9083_v25 = vsel %vm3402_vm12, 1.0, %v12775_v4  ;;  %vm3405_vm15 = vcmp.eq.s32.totalorder %v3389_v26, %v13291_v7 }
 0xc1d   :  { %v3202_v32 = vadd.f32 %v10411_v12, %v9050_v24  ;;  %v3196_v33 = vpop.f32.mrb[35].mxu1  ;;  %v9084_v12 = vsel %vm3403_vm13, 1.0, %v12775_v4 }
 0xc1e   :  { %v3197_v11 = vadd.f32 %v9050_v24, %v3196_v33  ;;  %v3386_v24 = vpop.permute.xlu1 %3385  ;;  %v9086_v33 = vsel %vm3405_vm15, 1.0, %v12775_v4 }
 0xc1f   :  { %3208 = vst.msk [vmem:[#allocation5 + $0x18] sm:$0xff] %vm660_vm4, %v3202_v32  ;;  %vm3404_vm14 = vcmp.eq.s32.totalorder %v3386_v24, %v13291_v7 }
 0xc20   :  { %3207 = vst.msk [vmem:[#allocation5 + $0x10] sm:$0xff] %vm660_vm4, %v3197_v11  ;;  %v9085_v32 = vsel %vm3404_vm14, 1.0, %v12775_v4 }
 0xc22   :  { %v3443_v35 = vld [vmem:[#allocation5 + $0x8] sm:$0xff]  ;;  %v3248_v34 = vpop.permute.xlu1 %3247 }
 0xc23   :  { %v3442_v36 = vld [vmem:[#allocation5] sm:$0xff]  ;;  %vm3294_vm0 = vcmp.eq.s32.totalorder %v3248_v34, %v13291_v7 }
 0xc24   :  { %v11376_v47 = vpack.c.bf16 %v3443_v35, %v3442_v36  ;;  %v9055_v11 = vsel %vm3294_vm0, 1.0, %v12775_v4  ;;  %v3251_v35 = vpop.permute.xlu0 %3250 }
 0xc25   :  { %vm3295_vm1 = vcmp.eq.s32.totalorder %v3251_v35, %v13291_v7 }
 0xc26   :  { %11377 = vmatprep.subr.bf16.mxu0 %v11376_v47  ;;  %v3445_v56 = vld [vmem:[#allocation5 + $0x18] sm:$0xff]  ;;  %v3254_v37 = vpop.permute.xlu1 %3253 }
 0xc27   :  { %v3444_v55 = vld [vmem:[#allocation5 + $0x10] sm:$0xff]  ;;  %vm3296_vm2 = vcmp.eq.s32.totalorder %v3254_v37, %v13291_v7 }
 0xc28   :  { %v11380_v58 = vpack.c.bf16 %v3445_v56, %v3444_v55  ;;  %v3257_v40 = vpop.permute.xlu0 %3256 }
 0xc29   :  { %vm3297_vm3 = vcmp.eq.s32.totalorder %v3257_v40, %v13291_v7 }
 0xc2a   :  { %v3260_v53 = vpop.permute.xlu1 %3259 }
 0xc2b   :  { %vm3298_vm5 = vcmp.eq.s32.totalorder %v3260_v53, %v13291_v7 }
 0xc2e   :  { %v3266_v54 = vpop.permute.xlu1 %3265 }
 0xc2f   :  { %vm3300_vm8 = vcmp.eq.s32.totalorder %v3266_v54, %v13291_v7 }
 0xc30   :  { %v9061_v10 = vsel %vm3300_vm8, 1.0, %v12775_v4 }
 0xc32   :  { %v3272_v31 = vpop.permute.xlu1 %3271 }
 0xc33   :  { %vm3302_vm10 = vcmp.eq.s32.totalorder %v3272_v31, %v13291_v7 }
 0xc36   :  { %v3278_v60 = vpop.permute.xlu1 %3277 }
 0xc37   :  { %vm3304_vm12 = vcmp.eq.s32.totalorder %v3278_v60, %v13291_v7 }
 0xc38   :  { %v9065_v24 = vsel %vm3304_vm12, 1.0, %v12775_v4 }
 0xce2   :  { %v10364_v14 = vpop.f32.mrb[32].mxu0 }
 0xce3   :  { %v2941_v43 = vadd.f32 %v10364_v14, %v9033_v51  ;;  %v2935_v6 = vpop.f32.mrb[33].mxu0 }
 0xce4   :  { %v2936_v44 = vadd.f32 %v9033_v51, %v2935_v6 }
 0xce5   :  { %2955 = vst.msk [vmem:[#allocation2 + $0x8] sm:$0xff] %vm660_vm4, %v2941_v43 }
 0xce6   :  { %2954 = vst.msk [vmem:[#allocation2] sm:$0xff] %vm660_vm4, %v2936_v44  ;;  %v10367_v45 = vpop.f32.mrb[34].mxu0 }
 0xce7   :  { %v2951_v28 = vadd.f32 %v10367_v45, %v9033_v51  ;;  %v2945_v19 = vpop.f32.mrb[35].mxu0  ;;  %v3263_v45 = vpop.permute.xlu0 %3262 }
 0xce8   :  { %v2946_v15 = vadd.f32 %v9033_v51, %v2945_v19  ;;  %v4507_v19 = vld [vmem:[#allocation37 + $0x48] sm:$0xff]  ;;  %vm3299_vm7 = vcmp.eq.s32.totalorder %v3263_v45, %v13291_v7 }
 0xce9   :  { %2957 = vst.msk [vmem:[#allocation2 + $0x18] sm:$0xff] %vm660_vm4, %v2951_v28  ;;  %v4506_v28 = vld [vmem:[#allocation37 + $0x40] sm:$0xff] }
 0xcea   :  { %2956 = vst.msk [vmem:[#allocation2 + $0x10] sm:$0xff] %vm660_vm4, %v2946_v15  ;;  %v11440_v56 = vpack.c.bf16 %v4507_v19, %v4506_v28 }
 0xcec   :  { %v2974_v30 = vld [vmem:[#allocation2 + $0x8] sm:$0xff] }
 0xced   :  { %v2973_v18 = vld [vmem:[#allocation2] sm:$0xff] }
 0xcee   :  { %10384 = vmatprep.mubr.msk.f32.mxu0 %vm660_vm4, %v2973_v18  ;;  %v4508_v18 = vld [vmem:[#allocation37 + $0x50] sm:$0xff] }
 0xcef   :  { %10385 = vmatmul.mubr.msk.f32.vlgmr.msra.gmra.mrb[36].mxu0 %vm660_vm4, %v2974_v30  ;;  %v3269_v30 = vpop.permute.xlu0 %3268  ;;  %v11444_v59 = vpack.c.bf16 %v4509_v29, %v4508_v18 }
 0xcf0   :  { %11379 = vmatpush3.bf16.msra.mxu0 %v11376_v47  ;;  %v2976_v38 = vld [vmem:[#allocation2 + $0x18] sm:$0xff]  ;;  %vm3301_vm9 = vcmp.eq.s32.totalorder %v3269_v30, %v13291_v7 }
 0xcf1   :  { %11381 = vmatprep.subr.bf16.mxu0 %v11380_v58  ;;  %v2975_v61 = vld [vmem:[#allocation2 + $0x10] sm:$0xff] }
 0xcf2   :  { %10387 = vmatprep.mubr.msk.f32.mxu0 %vm660_vm4, %v2975_v61  ;;  %v4510_v61 = vld [vmem:[#allocation37 + $0x60] sm:$0xff] }
 0xcf3   :  { %10388 = vmatmul.mubr.msk.f32.gmra.mrb[38].mxu0 %vm660_vm4, %v2976_v38  ;;  %v4511_v38 = vld [vmem:[#allocation37 + $0x68] sm:$0xff] }
 0xcf4   :  { %11383 = vmatpush3.bf16.msra.mxu0 %v11380_v58  ;;  %10420 = vmatprep.mubr.msk.f32.mxu0 %vm1562_vm6, %v9071_v0  ;;  %v9056_v58 = vsel %vm3295_vm1, 1.0, %v12775_v4  ;;  %v9057_v0 = vsel %vm3296_vm2, 1.0, %v12775_v4  ;;  %v11448_v39 = vpack.c.bf16 %v4511_v38, %v4510_v61 }
 0xcf7   :  { %10421 = vmatmul.mubr.msk.f32.vlgmr.msra.gmra.mrb[40].mxu0 %vm1562_vm6, %v9072_v62  ;;  %v9058_v62 = vsel %vm3297_vm3, 1.0, %v12775_v4 }
 0xcf8   :  { %10423 = vmatprep.mubr.msk.f32.mxu0 %vm1562_vm6, %v9073_v3  ;;  %v3275_v3 = vpop.permute.xlu0 %3274 }
 0xcf9   :  { %vm3303_vm11 = vcmp.eq.s32.totalorder %v3275_v3, %v13291_v7 }
 0xcfa   :  { %v9064_v8 = vsel %vm3303_vm11, 1.0, %v12775_v4 }
 0xcfb   :  { %10424 = vmatmul.mubr.msk.f32.gmra.mrb[42].mxu0 %vm1562_vm6, %v9074_v2  ;;  %v4512_v2 = vld [vmem:[#allocation37 + $0x70] sm:$0xff] }
 0xcfc   :  { %10426 = vmatprep.mubr.msk.f32.mxu0 %vm1562_vm6, %v9075_v48  ;;  %v9059_v48 = vsel %vm3298_vm5, 1.0, %v12775_v4  ;;  %v3281_v63 = vpop.permute.xlu0 %3280 }
 0xcfd   :  { %vm3305_vm13 = vcmp.eq.s32.totalorder %v3281_v63, %v13291_v7 }
 0xcff   :  { %10427 = vmatmul.mubr.msk.f32.gmra.mrb[44].mxu0 %vm1562_vm6, %v9076_v5  ;;  %v11452_v5 = vpack.c.bf16 %v4513_v1, %v4512_v2 }
 0xd00   :  { %10429 = vmatprep.mubr.msk.f32.mxu0 %vm1562_vm6, %v9077_v9  ;;  %v9060_v9 = vsel %vm3299_vm7, 1.0, %v12775_v4 }
 0xd03   :  { %10430 = vmatmul.mubr.msk.f32.gmra.mrb[46].mxu0 %vm1562_vm6, %v9078_v13  ;;  %v9062_v13 = vsel %vm3301_vm9, 1.0, %v12775_v4 }
 0xd04   :  { %10432 = vmatprep.mubr.msk.f32.mxu0 %vm1562_vm6, %v9079_v16  ;;  %v9063_v16 = vsel %vm3302_vm10, 1.0, %v12775_v4 }
 0xd07   :  { %10433 = vmatmul.mubr.msk.f32.gmra.mrb[48].mxu0 %vm1562_vm6, %v9080_v22  ;;  %v3284_v22 = vpop.permute.xlu1 %3283 }
 0xd08   :  { %10435 = vmatprep.mubr.msk.f32.mxu0 %vm1562_vm6, %v9081_v41  ;;  %v3287_v41 = vpop.permute.xlu0 %3286  ;;  %vm3306_vm14 = vcmp.eq.s32.totalorder %v3284_v22, %v13291_v7 }
 0xd09   :  { %v9067_v26 = vsel %vm3306_vm14, 1.0, %v12775_v4  ;;  %vm3307_vm15 = vcmp.eq.s32.totalorder %v3287_v41, %v13291_v7 }
 0xd0b   :  { %10436 = vmatmul.mubr.msk.f32.gmra.mrb[50].mxu0 %vm1562_vm6, %v9082_v20  ;;  %v3290_v20 = vpop.permute.xlu1 %3289 }
 0xd0c   :  { %10438 = vmatprep.mubr.msk.f32.mxu0 %vm1562_vm6, %v9083_v25  ;;  %v9066_v25 = vsel %vm3305_vm13, 1.0, %v12775_v4  ;;  %vm3308_vm0 = vcmp.eq.s32.totalorder %v3290_v20, %v13291_v7  ;;  %v3293_v34 = vpop.permute.xlu0 %3292 }
 0xd0d   :  { %vm3309_vm1 = vcmp.eq.s32.totalorder %v3293_v34, %v13291_v7 }
 0xd0f   :  { %10439 = vmatmul.mubr.msk.f32.gmra.mrb[52].mxu0 %vm1562_vm6, %v9084_v12  ;;  %v9068_v12 = vsel %vm3307_vm15, 1.0, %v12775_v4 }
 0xd10   :  { %10441 = vmatprep.mubr.msk.f32.mxu0 %vm1562_vm6, %v9085_v32  ;;  %v9069_v32 = vsel %vm3308_vm0, 1.0, %v12775_v4 }
 0xd13   :  { %10442 = vmatmul.mubr.msk.f32.gmra.mrb[54].mxu0 %vm1562_vm6, %v9086_v33  ;;  %v9070_v33 = vsel %vm3309_vm1, 1.0, %v12775_v4 }
 0xd14   :  { %10452 = vmatprep.mubr.msk.f32.mxu0 %vm1562_vm6, %v9055_v11 }
 0xdc2   :  { %v10386_v36 = vpop.f32.mrb[36].mxu0 }
 0xdc3   :  { %3084 = vst.msk [vmem:[#allocation4 + $0x8] sm:$0xff] %vm660_vm4, %v10386_v36  ;;  %v3064_v47 = vpop.f32.mrb[37].mxu0 }
 0xdc4   :  { %3083 = vst.msk [vmem:[#allocation4] sm:$0xff] %vm660_vm4, %v3064_v47 }
 0xdc6   :  { %v10389_v51 = vpop.f32.mrb[38].mxu0 }
 0xdc7   :  { %3086 = vst.msk [vmem:[#allocation4 + $0x18] sm:$0xff] %vm660_vm4, %v10389_v51  ;;  %v3074_v14 = vpop.f32.mrb[39].mxu0 }
 0xdc8   :  { %3085 = vst.msk [vmem:[#allocation4 + $0x10] sm:$0xff] %vm660_vm4, %v3074_v14 }
 0xdca   :  { %v3439_v43 = vld [vmem:[#allocation4 + $0x8] sm:$0xff] }
 0xdcb   :  { %v3438_v6 = vld [vmem:[#allocation4] sm:$0xff] }
 0xdcc   :  { %v11384_v44 = vpack.c.bf16 %v3439_v43, %v3438_v6 }
 0xdce   :  { %11385 = vmatprep.subr.bf16.mxu0 %v11384_v44  ;;  %v3441_v57 = vld [vmem:[#allocation4 + $0x18] sm:$0xff] }
 0xdcf   :  { %11387 = vmatpush3.bf16.msra.mxu0 %v11384_v44  ;;  %v3440_v15 = vld [vmem:[#allocation4 + $0x10] sm:$0xff] }
 0xdd0   :  { %v11388_v55 = vpack.c.bf16 %v3441_v57, %v3440_v15 }
 0xdd2   :  { %11389 = vmatprep.subr.bf16.mxu0 %v11388_v55 }
 0xdd3   :  { %11391 = vmatpush3.bf16.msra.mxu0 %v11388_v55 }
 0xdd4   :  { %11441 = vmatprep.subr.bf16.mxu0 %v11440_v56 }
 0xdd6   :  { %10453 = vmatmul.mubr.msk.f32.vlgmr.msra.gmra.mrb[40].mxu0 %vm1562_vm6, %v9056_v58 }
 0xdd7   :  { %10455 = vmatprep.mubr.msk.f32.mxu0 %vm1562_vm6, %v9057_v0  ;;  %11443 = vmatpush3.bf16.msra.mxu0 %v11440_v56 }
 0xdd8   :  { %11445 = vmatprep.subr.bf16.mxu0 %v11444_v59 }
 0xdda   :  { %10456 = vmatmul.mubr.msk.f32.gmra.mrb[42].mxu0 %vm1562_vm6, %v9058_v62 }
 0xddb   :  { %10458 = vmatprep.mubr.msk.f32.mxu0 %vm1562_vm6, %v9059_v48  ;;  %11447 = vmatpush3.bf16.msra.mxu0 %v11444_v59 }
 0xddc   :  { %11449 = vmatprep.subr.bf16.mxu0 %v11448_v39 }
 0xdde   :  { %10459 = vmatmul.mubr.msk.f32.gmra.mrb[44].mxu0 %vm1562_vm6, %v9060_v9 }
 0xddf   :  { %10461 = vmatprep.mubr.msk.f32.mxu0 %vm1562_vm6, %v9061_v10  ;;  %11451 = vmatpush3.bf16.msra.mxu0 %v11448_v39 }
 0xde0   :  { %11453 = vmatprep.subr.bf16.mxu0 %v11452_v5 }
 0xde2   :  { %10462 = vmatmul.mubr.msk.f32.gmra.mrb[46].mxu0 %vm1562_vm6, %v9062_v13 }
 0xde3   :  { %10464 = vmatprep.mubr.msk.f32.mxu0 %vm1562_vm6, %v9063_v16  ;;  %11455 = vmatpush3.bf16.msra.mxu0 %v11452_v5 }
 0xde6   :  { %10465 = vmatmul.mubr.msk.f32.gmra.mrb[48].mxu0 %vm1562_vm6, %v9064_v8 }
 0xde7   :  { %10467 = vmatprep.mubr.msk.f32.mxu0 %vm1562_vm6, %v9065_v24 }
 0xdea   :  { %10468 = vmatmul.mubr.msk.f32.gmra.mrb[50].mxu0 %vm1562_vm6, %v9066_v25 }
 0xdeb   :  { %10470 = vmatprep.mubr.msk.f32.mxu0 %vm1562_vm6, %v9067_v26 }
 0xdee   :  { %10471 = vmatmul.mubr.msk.f32.gmra.mrb[52].mxu0 %vm1562_vm6, %v9068_v12 }
 0xdef   :  { %10473 = vmatprep.mubr.msk.f32.mxu0 %vm1562_vm6, %v9069_v32 }
 0xdf2   :  { %10474 = vmatmul.mubr.msk.f32.gmra.mrb[54].mxu0 %vm1562_vm6, %v9070_v33 }
 0xdf3   :  { %10570 = vmatprep.mubr.msk.f32.mxu0 %vm660_vm4, %v13744_v46 }
 0xdf6   :  { %10571 = vmatmul.mubr.msk.f32.vlgmr.msra.gmra.mrb[56].mxu0 %vm660_vm4, %v13748_v27 }
 0xdf7   :  { %10573 = vmatprep.mubr.msk.f32.mxu0 %vm660_vm4, %v13752_v52 }
 0xdfa   :  { %10574 = vmatmul.mubr.msk.f32.gmra.mrb[58].mxu0 %vm660_vm4, %v13756_v21 }
 0xea9   :  { %v10454_v11 = vpop.f32.mrb[40].mxu0 }
 0xeaa   :  { %v3753_v35 = vpop.f32.mrb[41].mxu0  ;;  %v3835_v36 = vsel %vm660_vm4, %v10454_v11, 0.0 }
 0xeab   :  { %3836 = vadd.xlane.f32.xlu0 %v3835_v36  ;;  %v3832_v47 = vsel %vm660_vm4, %v3753_v35, 0.0 }
 0xeac   :  { %3833 = vadd.xlane.f32.xlu1 %v3832_v47 }
 0xead   :  { %v10457_v37 = vpop.f32.mrb[42].mxu0 }
 0xeae   :  { %v3763_v51 = vpop.f32.mrb[43].mxu0  ;;  %v3841_v46 = vsel %vm660_vm4, %v10457_v37, 0.0 }
 0xeaf   :  { %v3838_v27 = vsel %vm660_vm4, %v3763_v51, 0.0 }
 0xeb0   :  { %3842 = vadd.xlane.f32.xlu1 %v3841_v46  ;;  %3839 = vadd.xlane.f32.xlu0 %v3838_v27 }
 0xeb1   :  { %v10460_v52 = vpop.f32.mrb[44].mxu0 }
 0xeb2   :  { %v3773_v40 = vpop.f32.mrb[45].mxu0  ;;  %v3847_v21 = vsel %vm660_vm4, %v10460_v52, 0.0 }
 0xeb3   :  { %v3844_v14 = vsel %vm660_vm4, %v3773_v40, 0.0 }
 0xeb4   :  { %3848 = vadd.xlane.f32.xlu1 %v3847_v21  ;;  %3845 = vadd.xlane.f32.xlu0 %v3844_v14 }
 0xeb5   :  { %v13898_v53 = vpop.f32.mrb[46].mxu0 }
 0xeb6   :  { %v13900_v43 = vpop.f32.mrb[47].mxu0  ;;  %v3853_v6 = vsel %vm660_vm4, %v13898_v53, 0.0 }
 0xeb7   :  { %v3850_v44 = vsel %vm660_vm4, %v13900_v43, 0.0 }
 0xeb8   :  { %3854 = vadd.xlane.f32.xlu1 %v3853_v6  ;;  %3851 = vadd.xlane.f32.xlu0 %v3850_v44 }
 0xeb9   :  { %v13906_v45 = vpop.f32.mrb[48].mxu0 }
 0xeba   :  { %v13908_v28 = vpop.f32.mrb[49].mxu0  ;;  %v3859_v19 = vsel %vm660_vm4, %v13906_v45, 0.0 }
 0xebb   :  { %v3856_v57 = vsel %vm660_vm4, %v13908_v28, 0.0 }
 0xebc   :  { %3860 = vadd.xlane.f32.xlu1 %v3859_v19  ;;  %3857 = vadd.xlane.f32.xlu0 %v3856_v57 }
 0xebd   :  { %v13914_v15 = vpop.f32.mrb[50].mxu0 }
 0xebe   :  { %v13916_v54 = vpop.f32.mrb[51].mxu0  ;;  %v3865_v55 = vsel %vm660_vm4, %v13914_v15, 0.0 }
 0xebf   :  { %v3862_v56 = vsel %vm660_vm4, %v13916_v54, 0.0 }
 0xec0   :  { %3866 = vadd.xlane.f32.xlu1 %v3865_v55  ;;  %3863 = vadd.xlane.f32.xlu0 %v3862_v56 }
 0xec1   :  { %v13922_v18 = vpop.f32.mrb[52].mxu0 }
 0xec2   :  { %v13924_v29 = vpop.f32.mrb[53].mxu0  ;;  %v3871_v30 = vsel %vm660_vm4, %v13922_v18, 0.0 }
 0xec3   :  { %v3868_v59 = vsel %vm660_vm4, %v13924_v29, 0.0 }
 0xec4   :  { %3872 = vadd.xlane.f32.xlu1 %v3871_v30  ;;  %3869 = vadd.xlane.f32.xlu0 %v3868_v59 }
 0xec5   :  { %v13930_v58 = vpop.f32.mrb[54].mxu0 }
 0xec6   :  { %v13932_v61 = vpop.f32.mrb[55].mxu0  ;;  %v3877_v38 = vsel %vm660_vm4, %v13930_v58, 0.0 }
 0xec7   :  { %v3874_v0 = vsel %vm660_vm4, %v13932_v61, 0.0 }
 0xec8   :  { %3878 = vadd.xlane.f32.xlu1 %v3877_v38  ;;  %3875 = vadd.xlane.f32.xlu0 %v3874_v0 }
 0xf38   :  { %v3837_v31 = vpop.xlane.xlu0 %3836 }
 0xf39   :  { %v3881_v39 = vmul.f32 0.015625, %v3837_v31  ;;  %v3834_v62 = vpop.xlane.xlu1 %3833 }
 0xf3a   :  { %v3880_v3 = vmul.f32 0.015625, %v3834_v62 }
 0xf3b   :  { %v13938_v2 = vsub.f32 %v10454_v11, %v3881_v39 }
 0xf3c   :  { %v13940_v1 = vsub.f32 %v3753_v35, %v3880_v3 }
 0xf3d   :  { %v3843_v48 = vpop.xlane.xlu1 %3842  ;;  %v3840_v60 = vpop.xlane.xlu0 %3839  ;;  %v3913_v5 = vmul.f32 %v13938_v2, %v13938_v2 }
 0xf3e   :  { %v3883_v9 = vmul.f32 0.015625, %v3843_v48  ;;  %v3882_v10 = vmul.f32 0.015625, %v3840_v60  ;;  %v3912_v63 = vmul.f32 %v13940_v1, %v13940_v1 }
 0xf3f   :  { %v3931_v13 = vsel %vm660_vm4, %v3913_v5, 0.0 }
 0xf40   :  { %v13947_v16 = vsub.f32 %v10457_v37, %v3883_v9  ;;  %v13949_v22 = vsub.f32 %v3763_v51, %v3882_v10  ;;  %3932 = vadd.xlane.f32.xlu1 %v3931_v13  ;;  %v3928_v8 = vsel %vm660_vm4, %v3912_v63, 0.0 }
 0xf41   :  { %v3849_v41 = vpop.xlane.xlu1 %3848  ;;  %3929 = vadd.xlane.f32.xlu0 %v3928_v8  ;;  %v3846_v24 = vpop.xlane.xlu0 %3845 }
 0xf42   :  { %v3885_v20 = vmul.f32 0.015625, %v3849_v41  ;;  %v3884_v25 = vmul.f32 0.015625, %v3846_v24  ;;  %v3915_v26 = vmul.f32 %v13947_v16, %v13947_v16  ;;  %v3914_v34 = vmul.f32 %v13949_v22, %v13949_v22 }
 0xf44   :  { %v13956_v12 = vsub.f32 %v10460_v52, %v3885_v20  ;;  %v13958_v32 = vsub.f32 %v3773_v40, %v3884_v25  ;;  %v3937_v33 = vsel %vm660_vm4, %v3915_v26, 0.0  ;;  %v3934_v11 = vsel %vm660_vm4, %v3914_v34, 0.0  ;;  %v2963_v25 = vld [vmem:[#allocation29 + $0x40] sm:$0xff]  ;;  %v2964_v26 = vld [vmem:[#allocation29 + $0x48] sm:$0xff] }
 0xf45   :  { %v3855_v35 = vpop.xlane.xlu1 %3854  ;;  %3938 = vadd.xlane.f32.xlu1 %v3937_v33  ;;  %3935 = vadd.xlane.f32.xlu0 %v3934_v11  ;;  %v3852_v36 = vpop.xlane.xlu0 %3851 }
 0xf46   :  { %v3887_v47 = vmul.f32 0.015625, %v3855_v35  ;;  %v3886_v37 = vmul.f32 0.015625, %v3852_v36  ;;  %v3917_v51 = vmul.f32 %v13956_v12, %v13956_v12  ;;  %v3916_v46 = vmul.f32 %v13958_v32, %v13958_v32 }
 0xf48   :  { %v13967_v27 = vsub.f32 %v13898_v53, %v3887_v47  ;;  %v13970_v52 = vsub.f32 %v13900_v43, %v3886_v37  ;;  %v3943_v40 = vsel %vm660_vm4, %v3917_v51, 0.0  ;;  %v3940_v21 = vsel %vm660_vm4, %v3916_v46, 0.0  ;;  %v2965_v51 = vld [vmem:[#allocation29 + $0x50] sm:$0xff]  ;;  %v2966_v46 = vld [vmem:[#allocation29 + $0x58] sm:$0xff] }
 0xf49   :  { %v3861_v14 = vpop.xlane.xlu1 %3860  ;;  %3944 = vadd.xlane.f32.xlu1 %v3943_v40  ;;  %3941 = vadd.xlane.f32.xlu0 %v3940_v21  ;;  %v3858_v6 = vpop.xlane.xlu0 %3857 }
 0xf4a   :  { %v3889_v44 = vmul.f32 0.015625, %v3861_v14  ;;  %v3888_v19 = vmul.f32 0.015625, %v3858_v6  ;;  %v3919_v57 = vmul.f32 %v13967_v27, %v13967_v27  ;;  %v3918_v53 = vmul.f32 %v13970_v52, %v13970_v52  ;;  %v2967_v6 = vld [vmem:[#allocation29 + $0x60] sm:$0xff] }
 0xf4c   :  { %v13979_v55 = vsub.f32 %v13906_v45, %v3889_v44  ;;  %v13982_v43 = vsub.f32 %v13908_v28, %v3888_v19  ;;  %v3949_v56 = vsel %vm660_vm4, %v3919_v57, 0.0  ;;  %v3946_v30 = vsel %vm660_vm4, %v3918_v53, 0.0  ;;  %v2968_v44 = vld [vmem:[#allocation29 + $0x68] sm:$0xff]  ;;  %v2969_v57 = vld [vmem:[#allocation29 + $0x70] sm:$0xff]  ;;  %v2970_v53 = vld [vmem:[#allocation29 + $0x78] sm:$0xff] }
 0xf4d   :  { %v3867_v59 = vpop.xlane.xlu1 %3866  ;;  %3950 = vadd.xlane.f32.xlu1 %v3949_v56  ;;  %3947 = vadd.xlane.f32.xlu0 %v3946_v30  ;;  %v3864_v38 = vpop.xlane.xlu0 %3863  ;;  %v11400_v19 = vpack.c.bf16 %v2968_v44, %v2967_v6  ;;  %v11404_v56 = vpack.c.bf16 %v2970_v53, %v2969_v57 }
 0xf4e   :  { %v3891_v0 = vmul.f32 0.015625, %v3867_v59  ;;  %v3890_v31 = vmul.f32 0.015625, %v3864_v38  ;;  %v3921_v39 = vmul.f32 %v13979_v55, %v13979_v55  ;;  %v3920_v45 = vmul.f32 %v13982_v43, %v13982_v43 }
 0xf50   :  { %v13991_v62 = vsub.f32 %v13914_v15, %v3891_v0  ;;  %v13994_v28 = vsub.f32 %v13916_v54, %v3890_v31  ;;  %v3955_v3 = vsel %vm660_vm4, %v3921_v39, 0.0  ;;  %v3952_v48 = vsel %vm660_vm4, %v3920_v45, 0.0 }
 0xf51   :  { %v3873_v60 = vpop.xlane.xlu1 %3872  ;;  %3956 = vadd.xlane.f32.xlu1 %v3955_v3  ;;  %3953 = vadd.xlane.f32.xlu0 %v3952_v48  ;;  %v3870_v5 = vpop.xlane.xlu0 %3869 }
 0xf52   :  { %v3893_v9 = vmul.f32 0.015625, %v3873_v60  ;;  %v3892_v10 = vmul.f32 0.015625, %v3870_v5  ;;  %v3923_v63 = vmul.f32 %v13991_v62, %v13991_v62  ;;  %v3922_v15 = vmul.f32 %v13994_v28, %v13994_v28 }
 0xf54   :  { %v14003_v13 = vsub.f32 %v13922_v18, %v3893_v9  ;;  %v14006_v54 = vsub.f32 %v13924_v29, %v3892_v10  ;;  %v3961_v8 = vsel %vm660_vm4, %v3923_v63, 0.0  ;;  %v3958_v41 = vsel %vm660_vm4, %v3922_v15, 0.0 }
 0xf55   :  { %v3879_v24 = vpop.xlane.xlu1 %3878  ;;  %3962 = vadd.xlane.f32.xlu1 %v3961_v8  ;;  %3959 = vadd.xlane.f32.xlu0 %v3958_v41  ;;  %v3876_v20 = vpop.xlane.xlu0 %3875  ;;  %v11392_v29 = vpack.c.bf16 %v2964_v26, %v2963_v25 }
 0xf56   :  { %v3895_v34 = vmul.f32 0.015625, %v3879_v24  ;;  %v3894_v33 = vmul.f32 0.015625, %v3876_v20  ;;  %v3925_v11 = vmul.f32 %v14003_v13, %v14003_v13  ;;  %v3924_v18 = vmul.f32 %v14006_v54, %v14006_v54 }
 0xf57   :  { %11393 = vmatprep.subr.bf16.mxu1 %v11392_v29 }
 0xf58   :  { %v14015_v35 = vsub.f32 %v13930_v58, %v3895_v34  ;;  %v14018_v36 = vsub.f32 %v13932_v61, %v3894_v33  ;;  %v3967_v47 = vsel %vm660_vm4, %v3925_v11, 0.0  ;;  %v3964_v37 = vsel %vm660_vm4, %v3924_v18, 0.0  ;;  %11395 = vmatpush3.bf16.msra.mxu1 %v11392_v29  ;;  %v14028_v11 = vld [vmem:[#allocation26 + $0x1] ss:$0 sm:$0xff] }
 0xf59   :  { %3968 = vadd.xlane.f32.xlu1 %v3967_v47  ;;  %3965 = vadd.xlane.f32.xlu0 %v3964_v37  ;;  %v11396_v58 = vpack.c.bf16 %v2966_v46, %v2965_v51  ;;  %v14031_v51 = vld [vmem:[#allocation28 + $0x1] ss:$0 sm:$0xff] }
 0xf5a   :  { %v3927_v40 = vmul.f32 %v14015_v35, %v14015_v35  ;;  %v3926_v21 = vmul.f32 %v14018_v36, %v14018_v36 }
 0xf5b   :  { %11397 = vmatprep.subr.bf16.mxu1 %v11396_v58 }
 0xf5c   :  { %v3973_v61 = vsel %vm660_vm4, %v3927_v40, 0.0  ;;  %v3970_v14 = vsel %vm660_vm4, %v3926_v21, 0.0  ;;  %11399 = vmatpush3.bf16.msra.mxu1 %v11396_v58 }
 0xf5d   :  { %3974 = vadd.xlane.f32.xlu1 %v3973_v61  ;;  %3971 = vadd.xlane.f32.xlu0 %v3970_v14 }
 0xf5e   :  { %11401 = vmatprep.subr.bf16.mxu1 %v11400_v19 }
 0xf60   :  { %11403 = vmatpush3.bf16.msra.mxu1 %v11400_v19 }
 0xf61   :  { %11405 = vmatprep.subr.bf16.mxu1 %v11404_v56 }
 0xf64   :  { %11407 = vmatpush3.bf16.msra.mxu1 %v11404_v56 }
 0xfcd   :  { %v3933_v30 = vpop.xlane.xlu1 %3932 }
 0xfce   :  { %v3977_v59 = vmul.f32 0.015625, %v3933_v30  ;;  %v3930_v38 = vpop.xlane.xlu0 %3929 }
 0xfcf   :  { %v3976_v0 = vmul.f32 0.015625, %v3930_v38 }
 0xfd0   :  { %v3993_v31 = vadd.f32 1e-05, %v3977_v59 }
 0xfd1   :  { %v3992_v39 = vadd.f32 1e-05, %v3976_v0 }
 0xfd2   :  { %12013 = vrsqrt.f32 %v3993_v31  ;;  %v3939_v45 = vpop.xlane.xlu1 %3938  ;;  %v3936_v3 = vpop.xlane.xlu0 %3935 }
 0xfd3   :  { %12015 = vrsqrt.f32 %v3992_v39  ;;  %v3979_v48 = vmul.f32 0.015625, %v3939_v45  ;;  %v3978_v60 = vmul.f32 0.015625, %v3936_v3 }
 0xfd5   :  { %v3995_v5 = vadd.f32 1e-05, %v3979_v48  ;;  %v3994_v9 = vadd.f32 1e-05, %v3978_v60 }
 0xfd6   :  { %v3945_v10 = vpop.xlane.xlu1 %3944  ;;  %v3942_v63 = vpop.xlane.xlu0 %3941 }
 0xfd7   :  { %12017 = vrsqrt.f32 %v3995_v5  ;;  %v3981_v15 = vmul.f32 0.015625, %v3945_v10  ;;  %v3980_v8 = vmul.f32 0.015625, %v3942_v63 }
 0xfd8   :  { %12019 = vrsqrt.f32 %v3994_v9 }
 0xfd9   :  { %v3997_v41 = vadd.f32 1e-05, %v3981_v15  ;;  %v3996_v24 = vadd.f32 1e-05, %v3980_v8 }
 0xfda   :  { %v3951_v20 = vpop.xlane.xlu1 %3950  ;;  %v3948_v25 = vpop.xlane.xlu0 %3947 }
 0xfdb   :  { %12021 = vrsqrt.f32 %v3997_v41  ;;  %v3983_v26 = vmul.f32 0.015625, %v3951_v20  ;;  %v3982_v34 = vmul.f32 0.015625, %v3948_v25 }
 0xfdc   :  { %v12014_v33 = vpop.eup %12013  ;;  %12023 = vrsqrt.f32 %v3996_v24 }
 0xfdd   :  { %v12016_v18 = vpop.eup %12015  ;;  %v4025_v29 = vmul.f32 %v12014_v33, %v13938_v2  ;;  %v3999_v47 = vadd.f32 1e-05, %v3983_v26  ;;  %v3998_v37 = vadd.f32 1e-05, %v3982_v34 }
 0xfde   :  { %v3957_v46 = vpop.xlane.xlu1 %3956  ;;  %v3954_v40 = vpop.xlane.xlu0 %3953  ;;  %v4024_v21 = vmul.f32 %v12016_v18, %v13940_v1 }
 0xfdf   :  { %v4047_v58 = vmul.f32 %v14028_v11, %v4025_v29  ;;  %12025 = vrsqrt.f32 %v3999_v47  ;;  %v3985_v61 = vmul.f32 0.015625, %v3957_v46  ;;  %v3984_v14 = vmul.f32 0.015625, %v3954_v40 }
 0xfe0   :  { %12027 = vrsqrt.f32 %v3998_v37  ;;  %v4046_v6 = vmul.f32 %v14028_v11, %v4024_v21 }
 0xfe1   :  { %v12018_v44 = vpop.eup %12017  ;;  %v4069_v19 = vadd.f32 %v14031_v51, %v4047_v58  ;;  %v4001_v2 = vadd.f32 1e-05, %v3985_v61  ;;  %v4000_v57 = vadd.f32 1e-05, %v3984_v14 }
 0xfe2   :  { %v12020_v53 = vpop.eup %12019  ;;  %v3963_v56 = vpop.xlane.xlu1 %3962  ;;  %v4068_v59 = vadd.f32 %v14031_v51, %v4046_v6  ;;  %v4027_v1 = vmul.f32 %v12018_v44, %v13947_v16 }
 0xfe3   :  { %v3960_v30 = vpop.xlane.xlu0 %3959  ;;  %12029 = vrsqrt.f32 %v4001_v2  ;;  %v3987_v38 = vmul.f32 0.015625, %v3963_v56  ;;  %v4026_v39 = vmul.f32 %v12020_v53, %v13949_v22  ;;  %v4085_v5 = vmax.f32 %v4069_v19, 0.0 }
 0xfe4   :  { %v3986_v0 = vmul.f32 0.015625, %v3960_v30  ;;  %12031 = vrsqrt.f32 %v4000_v57  ;;  %v4084_v31 = vmax.f32 %v4068_v59, 0.0  ;;  %v4049_v45 = vmul.f32 %v14028_v11, %v4027_v1 }
 0xfe5   :  { %v12022_v3 = vpop.eup %12021  ;;  %v4003_v48 = vadd.f32 1e-05, %v3987_v38  ;;  %v4048_v16 = vmul.f32 %v14028_v11, %v4026_v39 }
 0xfe6   :  { %v4002_v60 = vadd.f32 1e-05, %v3986_v0  ;;  %v12024_v9 = vpop.eup %12023  ;;  %v3969_v10 = vpop.xlane.xlu1 %3968  ;;  %10492 = vmatprep.mubr.msk.f32.mxu1 %vm660_vm4, %v4084_v31  ;;  %v4071_v15 = vadd.f32 %v14031_v51, %v4049_v45  ;;  %v4029_v8 = vmul.f32 %v12022_v3, %v13956_v12 }
 0xfe7   :  { %v3966_v63 = vpop.xlane.xlu0 %3965  ;;  %12033 = vrsqrt.f32 %v4003_v48  ;;  %v3989_v41 = vmul.f32 0.015625, %v3969_v10  ;;  %10493 = vmatmul.mubr.msk.f32.vlgmr.msra.gmra.mrb[36].mxu1 %vm660_vm4, %v4085_v5  ;;  %v4028_v24 = vmul.f32 %v12024_v9, %v13958_v32  ;;  %v4070_v20 = vadd.f32 %v14031_v51, %v4048_v16 }
 0xfe8   :  { %v3988_v22 = vmul.f32 0.015625, %v3966_v63  ;;  %12035 = vrsqrt.f32 %v4002_v60  ;;  %v4051_v25 = vmul.f32 %v14028_v11, %v4029_v8  ;;  %v4087_v18 = vmax.f32 %v4071_v15, 0.0 }
 0xfe9   :  { %v12026_v26 = vpop.eup %12025  ;;  %v4005_v34 = vadd.f32 1e-05, %v3989_v41  ;;  %v4050_v29 = vmul.f32 %v14028_v11, %v4028_v24  ;;  %v4086_v37 = vmax.f32 %v4070_v20, 0.0 }
 0xfea   :  { %v4004_v33 = vadd.f32 1e-05, %v3988_v22  ;;  %v12028_v47 = vpop.eup %12027  ;;  %v3975_v12 = vpop.xlane.xlu1 %3974  ;;  %v4073_v40 = vadd.f32 %v14031_v51, %v4051_v25  ;;  %v4031_v21 = vmul.f32 %v12026_v26, %v13967_v27 }
 0xfeb   :  { %v3972_v46 = vpop.xlane.xlu0 %3971  ;;  %12037 = vrsqrt.f32 %v4005_v34  ;;  %v3991_v32 = vmul.f32 0.015625, %v3975_v12  ;;  %v4072_v61 = vadd.f32 %v14031_v51, %v4050_v29  ;;  %10495 = vmatprep.mubr.msk.f32.mxu1 %vm660_vm4, %v4086_v37  ;;  %v4030_v14 = vmul.f32 %v12028_v47, %v13970_v52 }
 0xfec   :  { %v3990_v58 = vmul.f32 0.015625, %v3972_v46  ;;  %12039 = vrsqrt.f32 %v4004_v33  ;;  %v4053_v6 = vmul.f32 %v14028_v11, %v4031_v21  ;;  %10496 = vmatmul.mubr.msk.f32.gmra.mrb[38].mxu1 %vm660_vm4, %v4087_v18  ;;  %v4089_v53 = vmax.f32 %v4073_v40, 0.0 }
 0xfed   :  { %v12030_v44 = vpop.eup %12029  ;;  %v4007_v19 = vadd.f32 1e-05, %v3991_v32  ;;  %v4088_v57 = vmax.f32 %v4072_v61, 0.0  ;;  %v4052_v56 = vmul.f32 %v14028_v11, %v4030_v14 }
 0xfee   :  { %v4006_v2 = vadd.f32 1e-05, %v3990_v58  ;;  %v12032_v27 = vpop.eup %12031  ;;  %v4075_v30 = vadd.f32 %v14031_v51, %v4053_v6  ;;  %v4033_v59 = vmul.f32 %v12030_v44, %v13979_v55 }
 0xfef   :  { %12041 = vrsqrt.f32 %v4007_v19  ;;  %10498 = vmatprep.mubr.msk.f32.mxu1 %vm660_vm4, %v4088_v57  ;;  %v4032_v52 = vmul.f32 %v12032_v27, %v13982_v43  ;;  %v4074_v1 = vadd.f32 %v14031_v51, %v4052_v56 }
 0xff0   :  { %12043 = vrsqrt.f32 %v4006_v2  ;;  %v4055_v38 = vmul.f32 %v14028_v11, %v4033_v59  ;;  %10499 = vmatmul.mubr.msk.f32.gmra.mrb[40].mxu1 %vm660_vm4, %v4089_v53  ;;  %v4091_v31 = vmax.f32 %v4075_v30, 0.0 }
 0xff1   :  { %v12034_v0 = vpop.eup %12033  ;;  %v4054_v39 = vmul.f32 %v14028_v11, %v4032_v52  ;;  %v4090_v3 = vmax.f32 %v4074_v1, 0.0 }
 0xff2   :  { %v12036_v45 = vpop.eup %12035  ;;  %v4077_v55 = vadd.f32 %v14031_v51, %v4055_v38  ;;  %v4035_v48 = vmul.f32 %v12034_v0, %v13991_v62 }
 0xff3   :  { %v4076_v60 = vadd.f32 %v14031_v51, %v4054_v39  ;;  %v4034_v43 = vmul.f32 %v12036_v45, %v13994_v28  ;;  %10501 = vmatprep.mubr.msk.f32.mxu1 %vm660_vm4, %v4090_v3 }
 0xff4   :  { %v4057_v5 = vmul.f32 %v14028_v11, %v4035_v48  ;;  %10502 = vmatmul.mubr.msk.f32.gmra.mrb[42].mxu1 %vm660_vm4, %v4091_v31  ;;  %v4093_v63 = vmax.f32 %v4077_v55, 0.0 }
 0xff5   :  { %v12038_v9 = vpop.eup %12037  ;;  %v4092_v10 = vmax.f32 %v4076_v60, 0.0  ;;  %v4056_v16 = vmul.f32 %v14028_v11, %v4034_v43 }
 0xff6   :  { %v12040_v15 = vpop.eup %12039  ;;  %v4079_v8 = vadd.f32 %v14031_v51, %v4057_v5  ;;  %v4037_v62 = vmul.f32 %v12038_v9, %v14003_v13 }
 0xff7   :  { %10504 = vmatprep.mubr.msk.f32.mxu1 %vm660_vm4, %v4092_v10  ;;  %v4078_v28 = vadd.f32 %v14031_v51, %v4056_v16  ;;  %v4036_v41 = vmul.f32 %v12040_v15, %v14006_v54 }
 0xff8   :  { %v4059_v22 = vmul.f32 %v14028_v11, %v4037_v62  ;;  %10505 = vmatmul.mubr.msk.f32.gmra.mrb[44].mxu1 %vm660_vm4, %v4093_v63  ;;  %v4095_v25 = vmax.f32 %v4079_v8, 0.0 }
 0xff9   :  { %v12042_v24 = vpop.eup %12041  ;;  %v4094_v20 = vmax.f32 %v4078_v28, 0.0  ;;  %v4058_v26 = vmul.f32 %v14028_v11, %v4036_v41 }
 0xffa   :  { %v12044_v34 = vpop.eup %12043  ;;  %v4081_v33 = vadd.f32 %v14031_v51, %v4059_v22  ;;  %v4039_v13 = vmul.f32 %v12042_v24, %v14015_v35 }
 0xffb   :  { %10507 = vmatprep.mubr.msk.f32.mxu1 %vm660_vm4, %v4094_v20  ;;  %v4080_v18 = vadd.f32 %v14031_v51, %v4058_v26  ;;  %v4038_v54 = vmul.f32 %v12044_v34, %v14018_v36  ;;  %v14097_v36 = vld [vmem:[%s15113_s23] ss:$0 sm:$0xff] }
 0xffc   :  { %v4061_v29 = vmul.f32 %v14028_v11, %v4039_v13  ;;  %10508 = vmatmul.mubr.msk.f32.gmra.mrb[46].mxu1 %vm660_vm4, %v4095_v25  ;;  %v4097_v12 = vmax.f32 %v4081_v33, 0.0  ;;  %vm4303_vm2 = vcmp.eq.s32.totalorder %v14097_v36, %v13638_v50  ;;  %vm4304_vm3 = vcmp.eq.s32.totalorder %v14097_v36, %v13647_v17  ;;  %v4316_v25 = vld [vmem:[#allocation7 + $0x8] sm:$0xff]  ;;  %v4315_v26 = vld [vmem:[#allocation7] sm:$0xff] }
 0xffd   :  { %v4096_v47 = vmax.f32 %v4080_v18, 0.0  ;;  %v4060_v37 = vmul.f32 %v14028_v11, %v4038_v54  ;;  %v9121_v11 = vld [vmem:[#allocation31 + $0x1] ss:$0 sm:$0xff]  ;;  %vm4305_vm5 = vcmp.eq.s32.totalorder %v14097_v36, %v13650_v49  ;;  %vm4306_vm7 = vcmp.eq.s32.totalorder %v14097_v36, %v13655_v23  ;;  %v4318_v54 = vld [vmem:[#allocation7 + $0x18] sm:$0xff] }
 0xffe   :  { %v4083_v46 = vadd.f32 %v14031_v51, %v4061_v29  ;;  %v4317_v29 = vld [vmem:[#allocation7 + $0x10] sm:$0xff] }
 0xfff   :  { %10510 = vmatprep.mubr.msk.f32.mxu1 %vm660_vm4, %v4096_v47  ;;  %v4082_v35 = vadd.f32 %v14031_v51, %v4060_v37 }
0x1000   :  { %10511 = vmatmul.mubr.msk.f32.gmra.mrb[48].mxu1 %vm660_vm4, %v4097_v12  ;;  %v4099_v21 = vmax.f32 %v4083_v46, 0.0 }
0x1001   :  { %v4098_v40 = vmax.f32 %v4082_v35, 0.0 }
0x1003   :  { %10513 = vmatprep.mubr.msk.f32.mxu1 %vm660_vm4, %v4098_v40 }
0x1004   :  { %10514 = vmatmul.mubr.msk.f32.gmra.mrb[50].mxu1 %vm660_vm4, %v4099_v21 }
0x1005   :  { %10548 = vmatprep.mubr.msk.f32.mxu1 %vm4303_vm2, %v12776_v42 }
0x10ba   :  { %v10494_v32 = vpop.f32.mrb[36].mxu1 }
0x10bb   :  { %v4226_v58 = vadd.f32 %v10494_v32, %v9121_v11  ;;  %v4220_v61 = vpop.f32.mrb[37].mxu1 }
0x10bc   :  { %v4221_v51 = vadd.f32 %v9121_v11, %v4220_v61 }
0x10be   :  { %v11408_v14 = vpack.c.bf16 %v4226_v58, %v4221_v51 }
0x10bf   :  { %v10497_v6 = vpop.f32.mrb[38].mxu1 }
0x10c0   :  { %11409 = vmatprep.subr.bf16.mxu1 %v11408_v14  ;;  %v4236_v44 = vadd.f32 %v10497_v6, %v9121_v11  ;;  %v4230_v19 = vpop.f32.mrb[39].mxu1 }
0x10c1   :  { %11411 = vmatpush3.bf16.msra.mxu1 %v11408_v14  ;;  %v4231_v2 = vadd.f32 %v9121_v11, %v4230_v19 }
0x10c3   :  { %v11412_v57 = vpack.c.bf16 %v4236_v44, %v4231_v2  ;;  %v10500_v53 = vpop.f32.mrb[40].mxu1 }
0x10c4   :  { %v4246_v27 = vadd.f32 %v10500_v53, %v9121_v11  ;;  %v4240_v56 = vpop.f32.mrb[41].mxu1 }
0x10c5   :  { %v4241_v30 = vadd.f32 %v9121_v11, %v4240_v56  ;;  %11413 = vmatprep.subr.bf16.mxu1 %v11412_v57 }
0x10c6   :  { %11415 = vmatpush3.bf16.msra.mxu1 %v11412_v57 }
0x10c7   :  { %v11416_v59 = vpack.c.bf16 %v4246_v27, %v4241_v30  ;;  %v10503_v52 = vpop.f32.mrb[42].mxu1 }
0x10c8   :  { %v4256_v1 = vadd.f32 %v10503_v52, %v9121_v11  ;;  %v4250_v38 = vpop.f32.mrb[43].mxu1 }
0x10c9   :  { %v4251_v0 = vadd.f32 %v9121_v11, %v4250_v38  ;;  %11417 = vmatprep.subr.bf16.mxu1 %v11416_v59 }
0x10ca   :  { %11419 = vmatpush3.bf16.msra.mxu1 %v11416_v59 }
0x10cb   :  { %v11420_v31 = vpack.c.bf16 %v4256_v1, %v4251_v0  ;;  %v10506_v39 = vpop.f32.mrb[44].mxu1 }
0x10cc   :  { %v4266_v45 = vadd.f32 %v10506_v39, %v9121_v11  ;;  %v4260_v3 = vpop.f32.mrb[45].mxu1 }
0x10cd   :  { %v4261_v55 = vadd.f32 %v9121_v11, %v4260_v3  ;;  %11421 = vmatprep.subr.bf16.mxu1 %v11420_v31 }
0x10ce   :  { %11423 = vmatpush3.bf16.msra.mxu1 %v11420_v31 }
0x10cf   :  { %v11424_v48 = vpack.c.bf16 %v4266_v45, %v4261_v55  ;;  %v10509_v60 = vpop.f32.mrb[46].mxu1  ;;  %v4493_v55 = vld [vmem:[#allocation35 + $0x40] sm:$0xff] }
0x10d0   :  { %v4276_v43 = vadd.f32 %v10509_v60, %v9121_v11  ;;  %v4270_v5 = vpop.f32.mrb[47].mxu1  ;;  %v5114_v60 = vld [vmem:[%s15110_s22 + $0x8] sm:$0xff] }
0x10d1   :  { %v4271_v9 = vadd.f32 %v9121_v11, %v4270_v5  ;;  %11425 = vmatprep.subr.bf16.mxu1 %v11424_v48  ;;  %v4495_v5 = vld [vmem:[#allocation35 + $0x50] sm:$0xff] }
0x10d2   :  { %11427 = vmatpush3.bf16.msra.mxu1 %v11424_v48  ;;  %v4494_v48 = vld [vmem:[#allocation35 + $0x48] sm:$0xff] }
0x10d3   :  { %v11428_v10 = vpack.c.bf16 %v4276_v43, %v4271_v9  ;;  %v10512_v63 = vpop.f32.mrb[48].mxu1  ;;  %v11456_v43 = vpack.c.bf16 %v4494_v48, %v4493_v55  ;;  %v4496_v9 = vld [vmem:[#allocation35 + $0x58] sm:$0xff]  ;;  %v4729_v55 = vld [vmem:[#allocation40 + $0x60] sm:$0xff]  ;;  %v4730_v48 = vld [vmem:[#allocation40 + $0x68] sm:$0xff] }
0x10d4   :  { %v4286_v16 = vadd.f32 %v10512_v63, %v9121_v11  ;;  %v4280_v15 = vpop.f32.mrb[49].mxu1  ;;  %v11460_v63 = vpack.c.bf16 %v4496_v9, %v4495_v5 }
0x10d5   :  { %v4281_v8 = vadd.f32 %v9121_v11, %v4280_v15  ;;  %11429 = vmatprep.subr.bf16.mxu1 %v11428_v10  ;;  %11457 = vmatprep.subr.bf16.mxu0 %v11456_v43  ;;  %v4497_v15 = vld [vmem:[#allocation35 + $0x60] sm:$0xff] }
0x10d6   :  { %11431 = vmatpush3.bf16.msra.mxu1 %v11428_v10  ;;  %11459 = vmatpush3.bf16.msra.mxu0 %v11456_v43  ;;  %v5115_v10 = vld [vmem:[%s15110_s22 + $0x10] sm:$0xff] }
0x10d7   :  { %v11432_v62 = vpack.c.bf16 %v4286_v16, %v4281_v8  ;;  %v10515_v28 = vpop.f32.mrb[50].mxu1  ;;  %v5113_v16 = vld [vmem:[%s15110_s22] sm:$0xff]  ;;  %11461 = vmatprep.subr.bf16.mxu0 %v11460_v63  ;;  %v4498_v8 = vld [vmem:[#allocation35 + $0x68] sm:$0xff] }
0x10d8   :  { %v4296_v41 = vadd.f32 %v10515_v28, %v9121_v11  ;;  %v4290_v22 = vpop.f32.mrb[51].mxu1  ;;  %v11464_v28 = vpack.c.bf16 %v4498_v8, %v4497_v15 }
0x10d9   :  { %v4291_v24 = vadd.f32 %v9121_v11, %v4290_v22  ;;  %11433 = vmatprep.subr.bf16.mxu1 %v11432_v62  ;;  %v4499_v22 = vld [vmem:[#allocation35 + $0x70] sm:$0xff] }
0x10da   :  { %11435 = vmatpush3.bf16.msra.mxu1 %v11432_v62  ;;  %11463 = vmatpush3.bf16.msra.mxu0 %v11460_v63  ;;  %v5117_v62 = vld [vmem:[%s15110_s22 + $0x20] sm:$0xff] }
0x10db   :  { %v11436_v20 = vpack.c.bf16 %v4296_v41, %v4291_v24  ;;  %v5116_v41 = vld [vmem:[%s15110_s22 + $0x18] sm:$0xff]  ;;  %11465 = vmatprep.subr.bf16.mxu0 %v11464_v28  ;;  %v4500_v24 = vld [vmem:[#allocation35 + $0x78] sm:$0xff] }
0x10dd   :  { %11437 = vmatprep.subr.bf16.mxu1 %v11436_v20 }
0x10de   :  { %11439 = vmatpush3.bf16.msra.mxu1 %v11436_v20  ;;  %11467 = vmatpush3.bf16.msra.mxu0 %v11464_v28  ;;  %v5119_v20 = vld [vmem:[%s15110_s22 + $0x30] sm:$0xff] }
0x10e1   :  { %10549 = vmatmul.mubr.msk.f32.vlgmr.msra.gmra.mrb[52].mxu1 %vm4304_vm3, %v12776_v42 }
0x10e2   :  { %10551 = vmatprep.mubr.msk.f32.mxu1 %vm4305_vm5, %v12776_v42 }
0x10e5   :  { %10552 = vmatmul.mubr.msk.f32.gmra.mrb[54].mxu1 %vm4306_vm7, %v12776_v42 }
0x11b4   :  { %v10550_v34 = vpop.f32.mrb[52].mxu1 }
0x11b5   :  { %v4405_v33 = vadd.f32 %v10550_v34, %v4316_v25  ;;  %v4385_v13 = vpop.f32.mrb[53].mxu1  ;;  %v11468_v25 = vpack.c.bf16 %v4500_v24, %v4499_v22  ;;  %v4976_v34 = vld [vmem:[#allocation23 + $0x80] sm:$0xff] }
0x11b6   :  { %v4404_v18 = vadd.f32 %v4385_v13, %v4315_v26  ;;  %v5118_v26 = vld [vmem:[%s15110_s22 + $0x28] sm:$0xff]  ;;  %v5121_v13 = vld [vmem:[%s15110_s22 + $0x40] sm:$0xff] }
0x11b7   :  { %4409 = vst.msk [vmem:[#allocation7 + $0x8] sm:$0xff] %vm660_vm4, %v4405_v33  ;;  %11469 = vmatprep.subr.bf16.mxu0 %v11468_v25  ;;  %v4977_v33 = vld [vmem:[#allocation23 + $0x88] sm:$0xff] }
0x11b8   :  { %4408 = vst.msk [vmem:[#allocation7] sm:$0xff] %vm660_vm4, %v4404_v18  ;;  %v10553_v47 = vpop.f32.mrb[54].mxu1  ;;  %11471 = vmatpush3.bf16.msra.mxu0 %v11468_v25  ;;  %v14155_v18 = vpack.c.bf16 %v4977_v33, %v4976_v34  ;;  %v9148_v33 = vld [vmem:[#allocation34 + $0x1] ss:$0 sm:$0xff] }
0x11b9   :  { %v4407_v12 = vadd.f32 %v10553_v47, %v4318_v54  ;;  %v4395_v37 = vpop.f32.mrb[55].mxu1  ;;  %v5120_v54 = vld [vmem:[%s15110_s22 + $0x38] sm:$0xff]  ;;  %v5122_v47 = vld [vmem:[%s15110_s22 + $0x48] sm:$0xff] }
0x11ba   :  { %v4406_v46 = vadd.f32 %v4395_v37, %v4317_v29  ;;  %11505 = vmatprep.subr.bf16.mxu0 %v14155_v18  ;;  %v5123_v29 = vld [vmem:[%s15110_s22 + $0x50] sm:$0xff]  ;;  %v5124_v37 = vld [vmem:[%s15110_s22 + $0x58] sm:$0xff] }
0x11bb   :  { %4411 = vst.msk [vmem:[#allocation7 + $0x18] sm:$0xff] %vm660_vm4, %v4407_v12  ;;  %v5125_v12 = vld [vmem:[%s15110_s22 + $0x60] sm:$0xff] }
0x11bc   :  { %4410 = vst.msk [vmem:[#allocation7 + $0x10] sm:$0xff] %vm660_vm4, %v4406_v46  ;;  %v5127_v46 = vld [vmem:[%s15110_s22 + $0x70] sm:$0xff] }
0x11be   :  { %v4413_v35 = vld [vmem:[#allocation7 + $0x8] sm:$0xff] }
0x11bf   :  { %v4423_v40 = vsel %vm660_vm4, %v4413_v35, 0.0  ;;  %6978 = vst.msk [vmem:[#allocation7 + $0x8] sm:$0xff] %vm660_vm4, %v12775_v4  ;;  %v4412_v21 = vld [vmem:[#allocation7] sm:$0xff] }
0x11c0   :  { %4424 = vadd.xlane.f32.xlu1 %v4423_v40  ;;  %v4420_v36 = vsel %vm660_vm4, %v4412_v21, 0.0  ;;  %6977 = vst.msk [vmem:[#allocation7] sm:$0xff] %vm660_vm4, %v12775_v4  ;;  %v5097_v40 = vld [vmem:[%s15111_s30] sm:$0xff] }
0x11c1   :  { %4421 = vadd.xlane.f32.xlu0 %v4420_v36  ;;  %v5099_v36 = vld [vmem:[%s15111_s30 + $0x10] sm:$0xff] }
0x11c2   :  { %v4415_v11 = vld [vmem:[#allocation7 + $0x18] sm:$0xff] }
0x11c3   :  { %v4429_v32 = vsel %vm660_vm4, %v4415_v11, 0.0  ;;  %6980 = vst.msk [vmem:[#allocation7 + $0x18] sm:$0xff] %vm660_vm4, %v12775_v4  ;;  %v4414_v58 = vld [vmem:[#allocation7 + $0x10] sm:$0xff] }
0x11c4   :  { %4430 = vadd.xlane.f32.xlu1 %v4429_v32  ;;  %v4426_v61 = vsel %vm660_vm4, %v4414_v58, 0.0  ;;  %6979 = vst.msk [vmem:[#allocation7 + $0x10] sm:$0xff] %vm660_vm4, %v12775_v4  ;;  %v5101_v32 = vld [vmem:[%s15111_s30 + $0x20] sm:$0xff] }
0x11c5   :  { %4427 = vadd.xlane.f32.xlu0 %v4426_v61  ;;  %v5103_v61 = vld [vmem:[%s15111_s30 + $0x30] sm:$0xff] }
0x124d   :  { %v4425_v51 = vpop.xlane.xlu1 %4424 }
0x124e   :  { %v4433_v14 = vmul.f32 0.015625, %v4425_v51  ;;  %v4422_v6 = vpop.xlane.xlu0 %4421  ;;  %v5102_v51 = vld [vmem:[%s15111_s30 + $0x28] sm:$0xff] }
0x124f   :  { %v4432_v44 = vmul.f32 0.015625, %v4422_v6  ;;  %v5104_v6 = vld [vmem:[%s15111_s30 + $0x38] sm:$0xff] }
0x1250   :  { %v14127_v19 = vsub.f32 %v4413_v35, %v4433_v14  ;;  %v5126_v35 = vld [vmem:[%s15110_s22 + $0x68] sm:$0xff]  ;;  %v5105_v14 = vld [vmem:[%s15111_s30 + $0x40] sm:$0xff] }
0x1251   :  { %v14129_v2 = vsub.f32 %v4412_v21, %v4432_v44  ;;  %v4431_v57 = vpop.xlane.xlu1 %4430  ;;  %v5128_v21 = vld [vmem:[%s15110_s22 + $0x78] sm:$0xff]  ;;  %v5107_v44 = vld [vmem:[%s15111_s30 + $0x50] sm:$0xff] }
0x1252   :  { %v4435_v53 = vmul.f32 0.015625, %v4431_v57  ;;  %v4428_v27 = vpop.xlane.xlu0 %4427  ;;  %v4441_v56 = vmul.f32 %v14127_v19, %v14127_v19  ;;  %v5106_v57 = vld [vmem:[%s15111_s30 + $0x48] sm:$0xff] }
0x1253   :  { %v4434_v30 = vmul.f32 0.015625, %v4428_v27  ;;  %v4440_v59 = vmul.f32 %v14129_v2, %v14129_v2  ;;  %v5108_v27 = vld [vmem:[%s15111_s30 + $0x58] sm:$0xff] }
0x1254   :  { %v14135_v52 = vsub.f32 %v4415_v11, %v4435_v53  ;;  %v4447_v1 = vsel %vm660_vm4, %v4441_v56, 0.0  ;;  %v5098_v11 = vld [vmem:[%s15111_s30 + $0x8] sm:$0xff]  ;;  %v5109_v53 = vld [vmem:[%s15111_s30 + $0x60] sm:$0xff]  ;;  %v5111_v56 = vld [vmem:[%s15111_s30 + $0x70] sm:$0xff] }
0x1255   :  { %v14138_v38 = vsub.f32 %v4414_v58, %v4434_v30  ;;  %4448 = vadd.xlane.f32.xlu1 %v4447_v1  ;;  %v4444_v0 = vsel %vm660_vm4, %v4440_v59, 0.0  ;;  %v5100_v58 = vld [vmem:[%s15111_s30 + $0x18] sm:$0xff]  ;;  %v5110_v30 = vld [vmem:[%s15111_s30 + $0x68] sm:$0xff] }
0x1256   :  { %4445 = vadd.xlane.f32.xlu0 %v4444_v0  ;;  %v4443_v31 = vmul.f32 %v14135_v52, %v14135_v52  ;;  %v5112_v59 = vld [vmem:[%s15111_s30 + $0x78] sm:$0xff] }
0x1257   :  { %v4442_v39 = vmul.f32 %v14138_v38, %v14138_v38  ;;  %v4725_v1 = vld [vmem:[#allocation40 + $0x40] sm:$0xff]  ;;  %v4726_v0 = vld [vmem:[#allocation40 + $0x48] sm:$0xff] }
0x1258   :  { %v4453_v45 = vsel %vm660_vm4, %v4443_v31, 0.0  ;;  %v4727_v31 = vld [vmem:[#allocation40 + $0x50] sm:$0xff] }
0x1259   :  { %4454 = vadd.xlane.f32.xlu1 %v4453_v45  ;;  %v4450_v3 = vsel %vm660_vm4, %v4442_v39, 0.0  ;;  %v11472_v39 = vpack.c.bf16 %v4726_v0, %v4725_v1  ;;  %v4728_v45 = vld [vmem:[#allocation40 + $0x58] sm:$0xff] }
0x125a   :  { %4451 = vadd.xlane.f32.xlu0 %v4450_v3  ;;  %v11476_v3 = vpack.c.bf16 %v4728_v45, %v4727_v31  ;;  %v9157_v0 = vld [vmem:[#allocation38 + $0x1] ss:$0 sm:$0xff] }
0x125b   :  { %11473 = vmatprep.subr.bf16.mxu1 %v11472_v39 }
0x125c   :  { %11475 = vmatpush3.bf16.msra.mxu1 %v11472_v39 }
0x125d   :  { %11477 = vmatprep.subr.bf16.mxu1 %v11476_v3 }
0x1260   :  { %11479 = vmatpush3.bf16.msra.mxu1 %v11476_v3 }
0x126a   :  { %5230 = vperm.xlu1 %11956, %v5114_v60   ;;  %v11480_v60 = vpack.c.bf16 %v4730_v48, %v4729_v55  ;;  %v9165_v55 = vld [vmem:[%s15109_s5 + $0x90] sm:$0xff]  ;;  %v9166_v48 = vld [vmem:[%s15109_s5 + $0x98] sm:$0xff] }
0x126c   :  { %11481 = vmatprep.subr.bf16.mxu1 %v11480_v60 }
0x126d   :  { %11483 = vmatpush3.bf16.msra.mxu1 %v11480_v60 }
0x126e   :  { %5233 = vperm.xlu1 %11956, %v5115_v10  }
0x1270   :  { %5227 = vperm.xlu0 %11955, %v5113_v16  }
0x1272   :  { %5239 = vperm.xlu1 %11956, %v5117_v62  }
0x1274   :  { %5236 = vperm.xlu0 %11955, %v5116_v41  }
0x1276   :  { %5245 = vperm.xlu1 %11956, %v5119_v20   ;;  %v9147_v20 = vld [vmem:[#allocation32 + $0x1] ss:$0 sm:$0xff] }
0x1278   :  { %5242 = vperm.xlu0 %11955, %v5118_v26  }
0x127a   :  { %5251 = vperm.xlu1 %11956, %v5121_v13  }
0x127c   :  { %5248 = vperm.xlu0 %11955, %v5120_v54  }
0x127e   :  { %5257 = vperm.xlu1 %11956, %v5123_v29  }
0x1280   :  { %5254 = vperm.xlu0 %11955, %v5122_v47   ;;  %v4978_v47 = vld [vmem:[#allocation23 + $0x90] sm:$0xff] }
0x1282   :  { %5263 = vperm.xlu1 %11956, %v5125_v12   ;;  %v4979_v12 = vld [vmem:[#allocation23 + $0x98] sm:$0xff] }
0x1284   :  { %5260 = vperm.xlu0 %11955, %v5124_v37  }
0x1286   :  { %5269 = vperm.xlu1 %11956, %v5127_v46  }
0x1288   :  { %5266 = vperm.xlu0 %11955, %v5126_v35  }
0x128a   :  { %5131 = vperm.xlu1 %11956, %v5097_v40  }
0x128c   :  { %5272 = vperm.xlu0 %11955, %v5128_v21  }
0x128e   :  { %5137 = vperm.xlu1 %11956, %v5099_v36   ;;  %v11508_v36 = vpack.c.bf16 %v4979_v12, %v4978_v47 }
0x1290   :  { %5134 = vperm.xlu0 %11955, %v5098_v11  }
0x1292   :  { %5143 = vperm.xlu1 %11956, %v5101_v32   ;;  %v4980_v32 = vld [vmem:[#allocation23 + $0xa0] sm:$0xff] }
0x1294   :  { %5140 = vperm.xlu0 %11955, %v5100_v58  }
0x1296   :  { %5149 = vperm.xlu1 %11956, %v5103_v61  }
0x1298   :  { %5146 = vperm.xlu0 %11955, %v5102_v51  }
0x129a   :  { %5155 = vperm.xlu1 %11956, %v5105_v14   ;;  %v14191_v14 = vld [vmem:[#allocation2] sm:$0xff] }
0x129c   :  { %5152 = vperm.xlu0 %11955, %v5104_v6  }
0x129e   :  { %5161 = vperm.xlu1 %11956, %v5107_v44   ;;  %v14199_v44 = vld [vmem:[#allocation2 + $0x10] sm:$0xff] }
0x12a0   :  { %5158 = vperm.xlu0 %11955, %v5106_v57   ;;  %v14203_v57 = vld [vmem:[#allocation2 + $0x18] sm:$0xff] }
0x12a2   :  { %5167 = vperm.xlu1 %11956, %v5109_v53   ;;  %v4731_v53 = vld [vmem:[#allocation40 + $0x70] sm:$0xff] }
0x12a4   :  { %5164 = vperm.xlu0 %11955, %v5108_v27   ;;  %v4732_v27 = vld [vmem:[#allocation40 + $0x78] sm:$0xff] }
0x12a6   :  { %5173 = vperm.xlu1 %11956, %v5111_v56   ;;  %v11484_v56 = vpack.c.bf16 %v4732_v27, %v4731_v53 }
0x12a8   :  { %5170 = vperm.xlu0 %11955, %v5110_v30   ;;  %11485 = vmatprep.subr.bf16.mxu1 %v11484_v56  ;;  %v9163_v30 = vld [vmem:[%s15109_s5 + $0x80] sm:$0xff] }
0x12a9   :  { %11487 = vmatpush3.bf16.msra.mxu1 %v11484_v56 }
0x12ac   :  { %5176 = vperm.xlu0 %11955, %v5112_v59   ;;  %v9164_v59 = vld [vmem:[%s15109_s5 + $0x88] sm:$0xff] }
0x12ad   :  { %v11488_v1 = vpack.c.bf16 %v9164_v59, %v9163_v30 }
0x12af   :  { %11489 = vmatprep.subr.bf16.mxu1 %v11488_v1 }
0x12e2   :  { %v4449_v43 = vpop.xlane.xlu1 %4448 }
0x12e3   :  { %v4457_v5 = vmul.f32 0.015625, %v4449_v43  ;;  %v4446_v9 = vpop.xlane.xlu0 %4445 }
0x12e4   :  { %v4456_v10 = vmul.f32 0.015625, %v4446_v9 }
0x12e5   :  { %v4461_v63 = vadd.f32 1e-05, %v4457_v5 }
0x12e6   :  { %v4460_v16 = vadd.f32 1e-05, %v4456_v10  ;;  %v4455_v15 = vpop.xlane.xlu1 %4454 }
0x12e7   :  { %12045 = vrsqrt.f32 %v4461_v63  ;;  %v4459_v8 = vmul.f32 0.015625, %v4455_v15  ;;  %v4452_v62 = vpop.xlane.xlu0 %4451  ;;  %v11492_v63 = vpack.c.bf16 %v9166_v48, %v9165_v55  ;;  %v9167_v15 = vld [vmem:[%s15109_s5 + $0xa0] sm:$0xff] }
0x12e8   :  { %12047 = vrsqrt.f32 %v4460_v16  ;;  %v4458_v28 = vmul.f32 0.015625, %v4452_v62 }
0x12e9   :  { %v4463_v41 = vadd.f32 1e-05, %v4459_v8  ;;  %v9168_v8 = vld [vmem:[%s15109_s5 + $0xa8] sm:$0xff] }
0x12ea   :  { %v4462_v22 = vadd.f32 1e-05, %v4458_v28 }
0x12eb   :  { %12049 = vrsqrt.f32 %v4463_v41  ;;  %v11496_v41 = vpack.c.bf16 %v9168_v8, %v9167_v15 }
0x12ec   :  { %12051 = vrsqrt.f32 %v4462_v22  ;;  %v9169_v22 = vld [vmem:[%s15109_s5 + $0xb0] sm:$0xff] }
0x12f1   :  { %v12046_v24 = vpop.eup %12045 }
0x12f2   :  { %v12048_v25 = vpop.eup %12047  ;;  %v4469_v26 = vmul.f32 %v12046_v24, %v14127_v19  ;;  %v9170_v24 = vld [vmem:[%s15109_s5 + $0xb8] sm:$0xff] }
0x12f3   :  { %v4468_v34 = vmul.f32 %v12048_v25, %v14129_v2  ;;  %v4981_v2 = vld [vmem:[#allocation23 + $0xa8] sm:$0xff]  ;;  %v9175_v25 = vld [vmem:[#allocation25 + $0x2] ss:$0 sm:$0xff] }
0x12f4   :  { %v4479_v13 = vmul.f32 %v9147_v20, %v4469_v26  ;;  %v11512_v51 = vpack.c.bf16 %v4981_v2, %v4980_v32 }
0x12f5   :  { %v12050_v54 = vpop.eup %12049  ;;  %v4478_v29 = vmul.f32 %v9147_v20, %v4468_v34 }
0x12f6   :  { %v12052_v37 = vpop.eup %12051  ;;  %v4471_v46 = vmul.f32 %v12050_v54, %v14135_v52  ;;  %v4489_v21 = vadd.f32 %v9148_v33, %v4479_v13  ;;  %v4982_v52 = vld [vmem:[#allocation23 + $0xb0] sm:$0xff] }
0x12f7   :  { %v4488_v35 = vadd.f32 %v9148_v33, %v4478_v29  ;;  %v4470_v40 = vmul.f32 %v12052_v37, %v14138_v38  ;;  %v4983_v38 = vld [vmem:[#allocation23 + $0xb8] sm:$0xff] }
0x12f8   :  { %v4481_v11 = vmul.f32 %v9147_v20, %v4471_v46  ;;  %v11516_v6 = vpack.c.bf16 %v4983_v38, %v4982_v52 }
0x12f9   :  { %10592 = vmatprep.mubr.msk.f32.mxu0 %vm660_vm4, %v4488_v35  ;;  %v4480_v19 = vmul.f32 %v9147_v20, %v4470_v40  ;;  %v11500_v20 = vpack.c.bf16 %v9170_v24, %v9169_v22  ;;  %v5231_v40 = vpop.permute.xlu1 %5230 }
0x12fa   :  { %10593 = vmatmul.mubr.msk.f32.vlgmr.msra.gmra.mrb[56].mxu0 %vm660_vm4, %v4489_v21  ;;  %v4491_v61 = vadd.f32 %v9148_v33, %v4481_v11  ;;  %v9158_v21 = vld [vmem:[#allocation41 + $0x1] ss:$0 sm:$0xff]  ;;  %vm5275_vm9 = vcmp.eq.s32.totalorder %v5231_v40, %v13291_v7 }
0x12fb   :  { %11507 = vmatpush3.bf16.msra.mxu0 %v14155_v18  ;;  %v4490_v58 = vadd.f32 %v9148_v33, %v4480_v19  ;;  %v14195_v18 = vld [vmem:[#allocation2 + $0x8] sm:$0xff] }
0x12fc   :  { %11509 = vmatprep.subr.bf16.mxu0 %v11508_v36 }
0x12fd   :  { %10595 = vmatprep.mubr.msk.f32.mxu0 %vm660_vm4, %v4490_v58  ;;  %v5234_v19 = vpop.permute.xlu1 %5233 }
0x12fe   :  { %10596 = vmatmul.mubr.msk.f32.gmra.mrb[58].mxu0 %vm660_vm4, %v4491_v61  ;;  %vm5276_vm10 = vcmp.eq.s32.totalorder %v5234_v19, %v13291_v7 }
0x12ff   :  { %11511 = vmatpush3.bf16.msra.mxu0 %v11508_v36  ;;  %10658 = vmatprep.mubr.msk.f32.mxu0 %vm660_vm4, %v14191_v14  ;;  %v5228_v36 = vpop.permute.xlu0 %5227 }
0x1300   :  { %11513 = vmatprep.subr.bf16.mxu0 %v11512_v51  ;;  %vm5274_vm8 = vcmp.eq.s32.totalorder %v5228_v36, %v13291_v7 }
0x1301   :  { %v5240_v53 = vpop.permute.xlu1 %5239 }
0x1302   :  { %vm5278_vm12 = vcmp.eq.s32.totalorder %v5240_v53, %v13291_v7 }
0x1303   :  { %11515 = vmatpush3.bf16.msra.mxu0 %v11512_v51  ;;  %v5237_v38 = vpop.permute.xlu0 %5236 }
0x1304   :  { %11517 = vmatprep.subr.bf16.mxu0 %v11516_v6  ;;  %vm5277_vm11 = vcmp.eq.s32.totalorder %v5237_v38, %v13291_v7 }
0x1307   :  { %11519 = vmatpush3.bf16.msra.mxu0 %v11516_v6  ;;  %v5243_v59 = vpop.permute.xlu0 %5242 }
0x1308   :  { %vm5279_vm13 = vcmp.eq.s32.totalorder %v5243_v59, %v13291_v7  ;;  %v6393_v59 = vld [vmem:[#allocation37 + $0x98] sm:$0xff] }
0x130a   :  { %10659 = vmatmul.mubr.msk.f32.vlgmr.msra.gmra.mrb[60].mxu0 %vm660_vm4, %v14195_v18 }
0x130b   :  { %10661 = vmatprep.mubr.msk.f32.mxu0 %vm660_vm4, %v14199_v44  ;;  %v5249_v55 = vpop.permute.xlu0 %5248 }
0x130c   :  { %vm5281_vm15 = vcmp.eq.s32.totalorder %v5249_v55, %v13291_v7 }
0x130e   :  { %10662 = vmatmul.mubr.msk.f32.gmra.mrb[62].mxu0 %vm660_vm4, %v14203_v57 }
0x13cd   :  { %v10594_v31 = vpop.f32.mrb[56].mxu0 }
0x13ce   :  { %v4717_v39 = vadd.f32 %v10594_v31, %v9157_v0  ;;  %v4689_v45 = vpop.f32.mrb[57].mxu0 }
0x13cf   :  { %v4716_v3 = vadd.f32 %v9157_v0, %v4689_v45 }
0x13d0   :  { %v4721_v5 = vmax.f32 %v4717_v39, 0.0 }
0x13d1   :  { %v4720_v60 = vmax.f32 %v4716_v3, 0.0  ;;  %v10597_v43 = vpop.f32.mrb[58].mxu0  ;;  %v9196_v3 = vsel %vm5274_vm8, 1.0, %v12775_v4 }
0x13d2   :  { %v4719_v9 = vadd.f32 %v10597_v43, %v9157_v0  ;;  %v4699_v10 = vpop.f32.mrb[59].mxu0  ;;  %v9198_v43 = vsel %vm5276_vm10, 1.0, %v12775_v4 }
0x13d3   :  { %v4718_v16 = vadd.f32 %v9157_v0, %v4699_v10  ;;  %10614 = vmatprep.mubr.msk.f32.mxu1 %vm660_vm4, %v4720_v60  ;;  %v5246_v0 = vpop.permute.xlu1 %5245  ;;  %v9197_v60 = vsel %vm5275_vm9, 1.0, %v12775_v4  ;;  %v9200_v10 = vsel %vm5278_vm12, 1.0, %v12775_v4 }
0x13d4   :  { %10615 = vmatmul.mubr.msk.f32.vlgmr.msra.gmra.mrb[56].mxu1 %vm660_vm4, %v4721_v5  ;;  %v4723_v28 = vmax.f32 %v4719_v9, 0.0  ;;  %v9199_v5 = vsel %vm5277_vm11, 1.0, %v12775_v4  ;;  %v5255_v9 = vpop.permute.xlu0 %5254  ;;  %vm5280_vm14 = vcmp.eq.s32.totalorder %v5246_v0, %v13291_v7 }
0x13d5   :  { %v4722_v62 = vmax.f32 %v4718_v16, 0.0  ;;  %11491 = vmatpush3.bf16.msra.mxu1 %v11488_v1  ;;  %v9201_v16 = vsel %vm5279_vm13, 1.0, %v12775_v4  ;;  %v9202_v15 = vsel %vm5280_vm14, 1.0, %v12775_v4  ;;  %vm5283_vm1 = vcmp.eq.s32.totalorder %v5255_v9, %v13291_v7  ;;  %v6397_v9 = vld [vmem:[#allocation37 + $0xb8] sm:$0xff] }
0x13d6   :  { %11493 = vmatprep.subr.bf16.mxu1 %v11492_v63  ;;  %v9205_v22 = vsel %vm5283_vm1, 1.0, %v12775_v4 }
0x13d7   :  { %10617 = vmatprep.mubr.msk.f32.mxu1 %vm660_vm4, %v4722_v62  ;;  %v5252_v48 = vpop.permute.xlu1 %5251 }
0x13d8   :  { %10618 = vmatmul.mubr.msk.f32.gmra.mrb[58].mxu1 %vm660_vm4, %v4723_v28  ;;  %vm5282_vm0 = vcmp.eq.s32.totalorder %v5252_v48, %v13291_v7  ;;  %v5261_v8 = vpop.permute.xlu0 %5260  ;;  %v9203_v28 = vsel %vm5281_vm15, 1.0, %v12775_v4 }
0x13d9   :  { %11495 = vmatpush3.bf16.msra.mxu1 %v11492_v63  ;;  %vm5285_vm3 = vcmp.eq.s32.totalorder %v5261_v8, %v13291_v7 }
0x13da   :  { %11497 = vmatprep.subr.bf16.mxu1 %v11496_v41 }
0x13db   :  { %v5258_v63 = vpop.permute.xlu1 %5257 }
0x13dc   :  { %vm5284_vm2 = vcmp.eq.s32.totalorder %v5258_v63, %v13291_v7  ;;  %v5267_v24 = vpop.permute.xlu0 %5266 }
0x13dd   :  { %v10660_v26 = vpop.f32.mrb[60].mxu0  ;;  %11499 = vmatpush3.bf16.msra.mxu1 %v11496_v41  ;;  %v9204_v41 = vsel %vm5282_vm0, 1.0, %v12775_v4  ;;  %vm5287_vm7 = vcmp.eq.s32.totalorder %v5267_v24, %v13291_v7 }
0x13de   :  { %v5076_v34 = vadd.f32 %v10660_v26, %v9175_v25  ;;  %v5070_v33 = vpop.f32.mrb[61].mxu0  ;;  %11501 = vmatprep.subr.bf16.mxu1 %v11500_v20  ;;  %v9207_v26 = vsel %vm5285_vm3, 1.0, %v12775_v4 }
0x13df   :  { %v5071_v13 = vadd.f32 %v9175_v25, %v5070_v33  ;;  %v5264_v62 = vpop.permute.xlu1 %5263 }
0x13e0   :  { %5090 = vst.msk [vmem:[#allocation4 + $0x8] sm:$0xff] %vm660_vm4, %v5076_v34  ;;  %vm5286_vm5 = vcmp.eq.s32.totalorder %v5264_v62, %v13291_v7  ;;  %v5273_v33 = vpop.permute.xlu0 %5272 }
0x13e1   :  { %5089 = vst.msk [vmem:[#allocation4] sm:$0xff] %vm660_vm4, %v5071_v13  ;;  %v10663_v54 = vpop.f32.mrb[62].mxu0  ;;  %11503 = vmatpush3.bf16.msra.mxu1 %v11500_v20  ;;  %v9206_v20 = vsel %vm5284_vm2, 1.0, %v12775_v4  ;;  %v9208_v34 = vsel %vm5286_vm5, 1.0, %v12775_v4  ;;  %vm5289_vm9 = vcmp.eq.s32.totalorder %v5273_v33, %v13291_v7 }
0x13e2   :  { %v5086_v29 = vadd.f32 %v10663_v54, %v9175_v25  ;;  %v5080_v47 = vpop.f32.mrb[63].mxu0  ;;  %v9209_v54 = vsel %vm5287_vm7, 1.0, %v12775_v4 }
0x13e3   :  { %v5081_v12 = vadd.f32 %v9175_v25, %v5080_v47  ;;  %v5270_v25 = vpop.permute.xlu1 %5269  ;;  %v9211_v47 = vsel %vm5289_vm9, 1.0, %v12775_v4 }
0x13e4   :  { %5092 = vst.msk [vmem:[#allocation4 + $0x18] sm:$0xff] %vm660_vm4, %v5086_v29  ;;  %vm5288_vm8 = vcmp.eq.s32.totalorder %v5270_v25, %v13291_v7 }
0x13e5   :  { %5091 = vst.msk [vmem:[#allocation4 + $0x10] sm:$0xff] %vm660_vm4, %v5081_v12  ;;  %v9210_v29 = vsel %vm5288_vm8, 1.0, %v12775_v4 }
0x13e7   :  { %v5327_v37 = vld [vmem:[#allocation4 + $0x8] sm:$0xff]  ;;  %v5132_v13 = vpop.permute.xlu1 %5131 }
0x13e8   :  { %v5326_v46 = vld [vmem:[#allocation4] sm:$0xff]  ;;  %vm5178_vm10 = vcmp.eq.s32.totalorder %v5132_v13, %v13291_v7 }
0x13e9   :  { %v11520_v35 = vpack.c.bf16 %v5327_v37, %v5326_v46  ;;  %v9180_v12 = vsel %vm5178_vm10, 1.0, %v12775_v4  ;;  %v5135_v37 = vpop.permute.xlu0 %5134 }
0x13ea   :  { %vm5179_vm11 = vcmp.eq.s32.totalorder %v5135_v37, %v13291_v7 }
0x13eb   :  { %11521 = vmatprep.subr.bf16.mxu1 %v11520_v35  ;;  %v5329_v56 = vld [vmem:[#allocation4 + $0x18] sm:$0xff]  ;;  %v5138_v40 = vpop.permute.xlu1 %5137 }
0x13ec   :  { %v5328_v27 = vld [vmem:[#allocation4 + $0x10] sm:$0xff]  ;;  %vm5180_vm12 = vcmp.eq.s32.totalorder %v5138_v40, %v13291_v7 }
0x13ed   :  { %v11524_v31 = vpack.c.bf16 %v5329_v56, %v5328_v27  ;;  %v5141_v36 = vpop.permute.xlu0 %5140 }
0x13ee   :  { %vm5181_vm13 = vcmp.eq.s32.totalorder %v5141_v36, %v13291_v7 }
0x13ef   :  { %v5144_v19 = vpop.permute.xlu1 %5143 }
0x13f0   :  { %vm5182_vm14 = vcmp.eq.s32.totalorder %v5144_v19, %v13291_v7 }
0x13f3   :  { %v5150_v53 = vpop.permute.xlu1 %5149 }
0x13f4   :  { %vm5184_vm0 = vcmp.eq.s32.totalorder %v5150_v53, %v13291_v7 }
0x13f5   :  { %v9186_v8 = vsel %vm5184_vm0, 1.0, %v12775_v4 }
0x13f7   :  { %v5156_v55 = vpop.permute.xlu1 %5155 }
0x13f8   :  { %vm5186_vm2 = vcmp.eq.s32.totalorder %v5156_v55, %v13291_v7 }
0x13fb   :  { %v5162_v63 = vpop.permute.xlu1 %5161 }
0x13fc   :  { %vm5188_vm5 = vcmp.eq.s32.totalorder %v5162_v63, %v13291_v7 }
0x13fd   :  { %v9190_v25 = vsel %vm5188_vm5, 1.0, %v12775_v4 }
0x14a7   :  { %v10616_v11 = vpop.f32.mrb[56].mxu1 }
0x14a8   :  { %v4825_v32 = vadd.f32 %v10616_v11, %v9158_v21  ;;  %v4819_v2 = vpop.f32.mrb[57].mxu1 }
0x14a9   :  { %v4820_v58 = vadd.f32 %v9158_v21, %v4819_v2 }
0x14aa   :  { %4839 = vst.msk [vmem:[#allocation3 + $0x8] sm:$0xff] %vm660_vm4, %v4825_v32 }
0x14ab   :  { %4838 = vst.msk [vmem:[#allocation3] sm:$0xff] %vm660_vm4, %v4820_v58  ;;  %v10619_v61 = vpop.f32.mrb[58].mxu1 }
0x14ac   :  { %v4835_v51 = vadd.f32 %v10619_v61, %v9158_v21  ;;  %v4829_v52 = vpop.f32.mrb[59].mxu1  ;;  %v5147_v61 = vpop.permute.xlu0 %5146 }
0x14ad   :  { %v4830_v6 = vadd.f32 %v9158_v21, %v4829_v52  ;;  %v6391_v52 = vld [vmem:[#allocation37 + $0x88] sm:$0xff]  ;;  %vm5183_vm15 = vcmp.eq.s32.totalorder %v5147_v61, %v13291_v7 }
0x14ae   :  { %4841 = vst.msk [vmem:[#allocation3 + $0x18] sm:$0xff] %vm660_vm4, %v4835_v51  ;;  %v6390_v51 = vld [vmem:[#allocation37 + $0x80] sm:$0xff] }
0x14af   :  { %4840 = vst.msk [vmem:[#allocation3 + $0x10] sm:$0xff] %vm660_vm4, %v4830_v6  ;;  %v11584_v56 = vpack.c.bf16 %v6391_v52, %v6390_v51 }
0x14b1   :  { %v4858_v1 = vld [vmem:[#allocation3 + $0x8] sm:$0xff] }
0x14b2   :  { %v4857_v30 = vld [vmem:[#allocation3] sm:$0xff] }
0x14b3   :  { %10636 = vmatprep.mubr.msk.f32.mxu1 %vm660_vm4, %v4857_v30  ;;  %v6392_v30 = vld [vmem:[#allocation37 + $0x90] sm:$0xff] }
0x14b4   :  { %10637 = vmatmul.mubr.msk.f32.vlgmr.msra.gmra.mrb[60].mxu1 %vm660_vm4, %v4858_v1  ;;  %v5153_v1 = vpop.permute.xlu0 %5152  ;;  %v11588_v0 = vpack.c.bf16 %v6393_v59, %v6392_v30 }
0x14b5   :  { %11523 = vmatpush3.bf16.msra.mxu1 %v11520_v35  ;;  %v4860_v45 = vld [vmem:[#allocation3 + $0x18] sm:$0xff]  ;;  %vm5185_vm1 = vcmp.eq.s32.totalorder %v5153_v1, %v13291_v7 }
0x14b6   :  { %11525 = vmatprep.subr.bf16.mxu1 %v11524_v31  ;;  %v4859_v39 = vld [vmem:[#allocation3 + $0x10] sm:$0xff] }
0x14b7   :  { %10639 = vmatprep.mubr.msk.f32.mxu1 %vm660_vm4, %v4859_v39  ;;  %v6394_v39 = vld [vmem:[#allocation37 + $0xa0] sm:$0xff] }
0x14b8   :  { %10640 = vmatmul.mubr.msk.f32.gmra.mrb[62].mxu1 %vm660_vm4, %v4860_v45  ;;  %v6395_v45 = vld [vmem:[#allocation37 + $0xa8] sm:$0xff] }
0x14b9   :  { %11527 = vmatpush3.bf16.msra.mxu1 %v11524_v31  ;;  %10672 = vmatprep.mubr.msk.f32.mxu1 %vm1562_vm6, %v9196_v3  ;;  %v9181_v31 = vsel %vm5179_vm11, 1.0, %v12775_v4  ;;  %v9182_v3 = vsel %vm5180_vm12, 1.0, %v12775_v4  ;;  %v11592_v48 = vpack.c.bf16 %v6395_v45, %v6394_v39 }
0x14bc   :  { %10673 = vmatmul.mubr.msk.f32.vlgmr.msra.gmra.mrb[64].mxu1 %vm1562_vm6, %v9197_v60  ;;  %v9183_v60 = vsel %vm5181_vm13, 1.0, %v12775_v4 }
0x14bd   :  { %10675 = vmatprep.mubr.msk.f32.mxu1 %vm1562_vm6, %v9198_v43  ;;  %v5159_v43 = vpop.permute.xlu0 %5158 }
0x14be   :  { %vm5187_vm3 = vcmp.eq.s32.totalorder %v5159_v43, %v13291_v7 }
0x14bf   :  { %v9189_v24 = vsel %vm5187_vm3, 1.0, %v12775_v4 }
0x14c0   :  { %10676 = vmatmul.mubr.msk.f32.gmra.mrb[66].mxu1 %vm1562_vm6, %v9199_v5  ;;  %v6396_v5 = vld [vmem:[#allocation37 + $0xb0] sm:$0xff] }
0x14c1   :  { %10678 = vmatprep.mubr.msk.f32.mxu1 %vm1562_vm6, %v9200_v10  ;;  %v9184_v10 = vsel %vm5182_vm14, 1.0, %v12775_v4  ;;  %v5165_v62 = vpop.permute.xlu0 %5164 }
0x14c2   :  { %vm5189_vm7 = vcmp.eq.s32.totalorder %v5165_v62, %v13291_v7 }
0x14c4   :  { %10679 = vmatmul.mubr.msk.f32.gmra.mrb[68].mxu1 %vm1562_vm6, %v9201_v16  ;;  %v11596_v16 = vpack.c.bf16 %v6397_v9, %v6396_v5 }
0x14c5   :  { %10681 = vmatprep.mubr.msk.f32.mxu1 %vm1562_vm6, %v9202_v15  ;;  %v9185_v15 = vsel %vm5183_vm15, 1.0, %v12775_v4 }
0x14c8   :  { %10682 = vmatmul.mubr.msk.f32.gmra.mrb[70].mxu1 %vm1562_vm6, %v9203_v28  ;;  %v9187_v28 = vsel %vm5185_vm1, 1.0, %v12775_v4 }
0x14c9   :  { %10684 = vmatprep.mubr.msk.f32.mxu1 %vm1562_vm6, %v9204_v41  ;;  %v9188_v41 = vsel %vm5186_vm2, 1.0, %v12775_v4 }
0x14cc   :  { %10685 = vmatmul.mubr.msk.f32.gmra.mrb[72].mxu1 %vm1562_vm6, %v9205_v22  ;;  %v5168_v22 = vpop.permute.xlu1 %5167 }
0x14cd   :  { %10687 = vmatprep.mubr.msk.f32.mxu1 %vm1562_vm6, %v9206_v20  ;;  %v5171_v20 = vpop.permute.xlu0 %5170  ;;  %vm5190_vm8 = vcmp.eq.s32.totalorder %v5168_v22, %v13291_v7 }
0x14ce   :  { %v9192_v33 = vsel %vm5190_vm8, 1.0, %v12775_v4  ;;  %vm5191_vm9 = vcmp.eq.s32.totalorder %v5171_v20, %v13291_v7 }
0x14d0   :  { %10688 = vmatmul.mubr.msk.f32.gmra.mrb[74].mxu1 %vm1562_vm6, %v9207_v26  ;;  %v5174_v26 = vpop.permute.xlu1 %5173 }
0x14d1   :  { %10690 = vmatprep.mubr.msk.f32.mxu1 %vm1562_vm6, %v9208_v34  ;;  %v9191_v34 = vsel %vm5189_vm7, 1.0, %v12775_v4  ;;  %vm5192_vm10 = vcmp.eq.s32.totalorder %v5174_v26, %v13291_v7  ;;  %v5177_v13 = vpop.permute.xlu0 %5176 }
0x14d2   :  { %vm5193_vm11 = vcmp.eq.s32.totalorder %v5177_v13, %v13291_v7 }
0x14d4   :  { %10691 = vmatmul.mubr.msk.f32.gmra.mrb[76].mxu1 %vm1562_vm6, %v9209_v54  ;;  %v9193_v54 = vsel %vm5191_vm9, 1.0, %v12775_v4 }
0x14d5   :  { %10693 = vmatprep.mubr.msk.f32.mxu1 %vm1562_vm6, %v9210_v29  ;;  %v9194_v29 = vsel %vm5192_vm10, 1.0, %v12775_v4 }
0x14d8   :  { %10694 = vmatmul.mubr.msk.f32.gmra.mrb[78].mxu1 %vm1562_vm6, %v9211_v47  ;;  %v9195_v47 = vsel %vm5193_vm11, 1.0, %v12775_v4 }
0x14d9   :  { %10704 = vmatprep.mubr.msk.f32.mxu1 %vm1562_vm6, %v9180_v12 }
0x1587   :  { %v10638_v46 = vpop.f32.mrb[60].mxu1 }
0x1588   :  { %4968 = vst.msk [vmem:[#allocation5 + $0x8] sm:$0xff] %vm660_vm4, %v10638_v46  ;;  %v4948_v35 = vpop.f32.mrb[61].mxu1 }
0x1589   :  { %4967 = vst.msk [vmem:[#allocation5] sm:$0xff] %vm660_vm4, %v4948_v35 }
0x158b   :  { %v10641_v21 = vpop.f32.mrb[62].mxu1 }
0x158c   :  { %4970 = vst.msk [vmem:[#allocation5 + $0x18] sm:$0xff] %vm660_vm4, %v10641_v21  ;;  %v4958_v11 = vpop.f32.mrb[63].mxu1 }
0x158d   :  { %4969 = vst.msk [vmem:[#allocation5 + $0x10] sm:$0xff] %vm660_vm4, %v4958_v11 }
0x158f   :  { %v5323_v32 = vld [vmem:[#allocation5 + $0x8] sm:$0xff] }
0x1590   :  { %v5322_v2 = vld [vmem:[#allocation5] sm:$0xff] }
0x1591   :  { %v11528_v58 = vpack.c.bf16 %v5323_v32, %v5322_v2 }
0x1593   :  { %11529 = vmatprep.subr.bf16.mxu1 %v11528_v58  ;;  %v5325_v38 = vld [vmem:[#allocation5 + $0x18] sm:$0xff] }
0x1594   :  { %11531 = vmatpush3.bf16.msra.mxu1 %v11528_v58  ;;  %v5324_v6 = vld [vmem:[#allocation5 + $0x10] sm:$0xff] }
0x1595   :  { %v11532_v27 = vpack.c.bf16 %v5325_v38, %v5324_v6 }
0x1597   :  { %11533 = vmatprep.subr.bf16.mxu1 %v11532_v27 }
0x1598   :  { %11535 = vmatpush3.bf16.msra.mxu1 %v11532_v27 }
0x1599   :  { %11585 = vmatprep.subr.bf16.mxu1 %v11584_v56 }
0x159b   :  { %10705 = vmatmul.mubr.msk.f32.vlgmr.msra.gmra.mrb[64].mxu1 %vm1562_vm6, %v9181_v31 }
0x159c   :  { %10707 = vmatprep.mubr.msk.f32.mxu1 %vm1562_vm6, %v9182_v3  ;;  %11587 = vmatpush3.bf16.msra.mxu1 %v11584_v56 }
0x159d   :  { %11589 = vmatprep.subr.bf16.mxu1 %v11588_v0 }
0x159f   :  { %10708 = vmatmul.mubr.msk.f32.gmra.mrb[66].mxu1 %vm1562_vm6, %v9183_v60 }
0x15a0   :  { %10710 = vmatprep.mubr.msk.f32.mxu1 %vm1562_vm6, %v9184_v10  ;;  %11591 = vmatpush3.bf16.msra.mxu1 %v11588_v0 }
0x15a1   :  { %11593 = vmatprep.subr.bf16.mxu1 %v11592_v48 }
0x15a3   :  { %10711 = vmatmul.mubr.msk.f32.gmra.mrb[68].mxu1 %vm1562_vm6, %v9185_v15 }
0x15a4   :  { %10713 = vmatprep.mubr.msk.f32.mxu1 %vm1562_vm6, %v9186_v8  ;;  %11595 = vmatpush3.bf16.msra.mxu1 %v11592_v48 }
0x15a5   :  { %11597 = vmatprep.subr.bf16.mxu1 %v11596_v16 }
0x15a7   :  { %10714 = vmatmul.mubr.msk.f32.gmra.mrb[70].mxu1 %vm1562_vm6, %v9187_v28 }
0x15a8   :  { %10716 = vmatprep.mubr.msk.f32.mxu1 %vm1562_vm6, %v9188_v41  ;;  %11599 = vmatpush3.bf16.msra.mxu1 %v11596_v16 }
0x15ab   :  { %10717 = vmatmul.mubr.msk.f32.gmra.mrb[72].mxu1 %vm1562_vm6, %v9189_v24 }
0x15ac   :  { %10719 = vmatprep.mubr.msk.f32.mxu1 %vm1562_vm6, %v9190_v25 }
0x15af   :  { %10720 = vmatmul.mubr.msk.f32.gmra.mrb[74].mxu1 %vm1562_vm6, %v9191_v34 }
0x15b0   :  { %10722 = vmatprep.mubr.msk.f32.mxu1 %vm1562_vm6, %v9192_v33 }
0x15b3   :  { %10723 = vmatmul.mubr.msk.f32.gmra.mrb[76].mxu1 %vm1562_vm6, %v9193_v54 }
0x15b4   :  { %10725 = vmatprep.mubr.msk.f32.mxu1 %vm1562_vm6, %v9194_v29 }
0x15b7   :  { %10726 = vmatmul.mubr.msk.f32.gmra.mrb[78].mxu1 %vm1562_vm6, %v9195_v47 }
0x15b8   :  { %10822 = vmatprep.mubr.msk.f32.mxu1 %vm660_vm4, %v14191_v14 }
0x15bb   :  { %10823 = vmatmul.mubr.msk.f32.vlgmr.msra.gmra.mrb[80].mxu1 %vm660_vm4, %v14195_v18 }
0x15bc   :  { %10825 = vmatprep.mubr.msk.f32.mxu1 %vm660_vm4, %v14199_v44 }
0x15bf   :  { %10826 = vmatmul.mubr.msk.f32.gmra.mrb[82].mxu1 %vm660_vm4, %v14203_v57 }
0x166e   :  { %v10706_v12 = vpop.f32.mrb[64].mxu1 }
0x166f   :  { %v5637_v37 = vpop.f32.mrb[65].mxu1  ;;  %v5719_v46 = vsel %vm660_vm4, %v10706_v12, 0.0 }
0x1670   :  { %5720 = vadd.xlane.f32.xlu0 %v5719_v46  ;;  %v5716_v35 = vsel %vm660_vm4, %v5637_v37, 0.0 }
0x1671   :  { %5717 = vadd.xlane.f32.xlu1 %v5716_v35 }
0x1672   :  { %v10709_v40 = vpop.f32.mrb[66].mxu1 }
0x1673   :  { %v5647_v21 = vpop.f32.mrb[67].mxu1  ;;  %v5725_v14 = vsel %vm660_vm4, %v10709_v40, 0.0 }
0x1674   :  { %v5722_v18 = vsel %vm660_vm4, %v5647_v21, 0.0 }
0x1675   :  { %5726 = vadd.xlane.f32.xlu1 %v5725_v14  ;;  %5723 = vadd.xlane.f32.xlu0 %v5722_v18 }
0x1676   :  { %v10712_v44 = vpop.f32.mrb[68].mxu1 }
0x1677   :  { %v5657_v36 = vpop.f32.mrb[69].mxu1  ;;  %v5731_v57 = vsel %vm660_vm4, %v10712_v44, 0.0 }
0x1678   :  { %v5728_v11 = vsel %vm660_vm4, %v5657_v36, 0.0 }
0x1679   :  { %5732 = vadd.xlane.f32.xlu1 %v5731_v57  ;;  %5729 = vadd.xlane.f32.xlu0 %v5728_v11 }
0x167a   :  { %v14345_v19 = vpop.f32.mrb[70].mxu1 }
0x167b   :  { %v14347_v32 = vpop.f32.mrb[71].mxu1  ;;  %v5737_v2 = vsel %vm660_vm4, %v14345_v19, 0.0 }
0x167c   :  { %v5734_v58 = vsel %vm660_vm4, %v14347_v32, 0.0 }
0x167d   :  { %5738 = vadd.xlane.f32.xlu1 %v5737_v2  ;;  %5735 = vadd.xlane.f32.xlu0 %v5734_v58 }
0x167e   :  { %v14353_v61 = vpop.f32.mrb[72].mxu1 }
0x167f   :  { %v14355_v51 = vpop.f32.mrb[73].mxu1  ;;  %v5743_v52 = vsel %vm660_vm4, %v14353_v61, 0.0 }
0x1680   :  { %v5740_v38 = vsel %vm660_vm4, %v14355_v51, 0.0 }
0x1681   :  { %5744 = vadd.xlane.f32.xlu1 %v5743_v52  ;;  %5741 = vadd.xlane.f32.xlu0 %v5740_v38 }
0x1682   :  { %v14361_v6 = vpop.f32.mrb[74].mxu1 }
0x1683   :  { %v14363_v53 = vpop.f32.mrb[75].mxu1  ;;  %v5749_v27 = vsel %vm660_vm4, %v14361_v6, 0.0 }
0x1684   :  { %v5746_v56 = vsel %vm660_vm4, %v14363_v53, 0.0 }
0x1685   :  { %5750 = vadd.xlane.f32.xlu1 %v5749_v27  ;;  %5747 = vadd.xlane.f32.xlu0 %v5746_v56 }
0x1686   :  { %v14369_v30 = vpop.f32.mrb[76].mxu1 }
0x1687   :  { %v14371_v59 = vpop.f32.mrb[77].mxu1  ;;  %v5755_v1 = vsel %vm660_vm4, %v14369_v30, 0.0 }
0x1688   :  { %v5752_v0 = vsel %vm660_vm4, %v14371_v59, 0.0 }
0x1689   :  { %5756 = vadd.xlane.f32.xlu1 %v5755_v1  ;;  %5753 = vadd.xlane.f32.xlu0 %v5752_v0 }
0x168a   :  { %v14377_v31 = vpop.f32.mrb[78].mxu1 }
0x168b   :  { %v14379_v39 = vpop.f32.mrb[79].mxu1  ;;  %v5761_v45 = vsel %vm660_vm4, %v14377_v31, 0.0 }
0x168c   :  { %v5758_v3 = vsel %vm660_vm4, %v14379_v39, 0.0 }
0x168d   :  { %5762 = vadd.xlane.f32.xlu1 %v5761_v45  ;;  %5759 = vadd.xlane.f32.xlu0 %v5758_v3 }
0x16fd   :  { %v5721_v55 = vpop.xlane.xlu0 %5720 }
0x16fe   :  { %v5765_v48 = vmul.f32 0.015625, %v5721_v55  ;;  %v5718_v60 = vpop.xlane.xlu1 %5717 }
0x16ff   :  { %v5764_v43 = vmul.f32 0.015625, %v5718_v60 }
0x1700   :  { %v14385_v5 = vsub.f32 %v10706_v12, %v5765_v48 }
0x1701   :  { %v14387_v9 = vsub.f32 %v5637_v37, %v5764_v43 }
0x1702   :  { %v5727_v10 = vpop.xlane.xlu1 %5726  ;;  %v5724_v63 = vpop.xlane.xlu0 %5723  ;;  %v5797_v16 = vmul.f32 %v14385_v5, %v14385_v5 }
0x1703   :  { %v5767_v15 = vmul.f32 0.015625, %v5727_v10  ;;  %v5766_v8 = vmul.f32 0.015625, %v5724_v63  ;;  %v5796_v62 = vmul.f32 %v14387_v9, %v14387_v9 }
0x1704   :  { %v5815_v28 = vsel %vm660_vm4, %v5797_v16, 0.0 }
0x1705   :  { %v14394_v41 = vsub.f32 %v10709_v40, %v5767_v15  ;;  %v14396_v22 = vsub.f32 %v5647_v21, %v5766_v8  ;;  %5816 = vadd.xlane.f32.xlu1 %v5815_v28  ;;  %v5812_v24 = vsel %vm660_vm4, %v5796_v62, 0.0 }
0x1706   :  { %v5733_v20 = vpop.xlane.xlu1 %5732  ;;  %5813 = vadd.xlane.f32.xlu0 %v5812_v24  ;;  %v5730_v25 = vpop.xlane.xlu0 %5729 }
0x1707   :  { %v5769_v26 = vmul.f32 0.015625, %v5733_v20  ;;  %v5768_v34 = vmul.f32 0.015625, %v5730_v25  ;;  %v5799_v33 = vmul.f32 %v14394_v41, %v14394_v41  ;;  %v5798_v13 = vmul.f32 %v14396_v22, %v14396_v22 }
0x1709   :  { %v14403_v54 = vsub.f32 %v10712_v44, %v5769_v26  ;;  %v14405_v29 = vsub.f32 %v5657_v36, %v5768_v34  ;;  %v5821_v47 = vsel %vm660_vm4, %v5799_v33, 0.0  ;;  %v5818_v12 = vsel %vm660_vm4, %v5798_v13, 0.0  ;;  %v4847_v34 = vld [vmem:[#allocation29 + $0x80] sm:$0xff]  ;;  %v4848_v33 = vld [vmem:[#allocation29 + $0x88] sm:$0xff] }
0x170a   :  { %v5739_v37 = vpop.xlane.xlu1 %5738  ;;  %5822 = vadd.xlane.f32.xlu1 %v5821_v47  ;;  %5819 = vadd.xlane.f32.xlu0 %v5818_v12  ;;  %v5736_v46 = vpop.xlane.xlu0 %5735 }
0x170b   :  { %v5771_v35 = vmul.f32 0.015625, %v5739_v37  ;;  %v5770_v40 = vmul.f32 0.015625, %v5736_v46  ;;  %v5801_v21 = vmul.f32 %v14403_v54, %v14403_v54  ;;  %v5800_v14 = vmul.f32 %v14405_v29, %v14405_v29 }
0x170d   :  { %v14414_v18 = vsub.f32 %v14345_v19, %v5771_v35  ;;  %v14417_v44 = vsub.f32 %v14347_v32, %v5770_v40  ;;  %v5827_v36 = vsel %vm660_vm4, %v5801_v21, 0.0  ;;  %v5824_v57 = vsel %vm660_vm4, %v5800_v14, 0.0  ;;  %v4849_v21 = vld [vmem:[#allocation29 + $0x90] sm:$0xff]  ;;  %v4850_v14 = vld [vmem:[#allocation29 + $0x98] sm:$0xff] }
0x170e   :  { %v5745_v11 = vpop.xlane.xlu1 %5744  ;;  %5828 = vadd.xlane.f32.xlu1 %v5827_v36  ;;  %5825 = vadd.xlane.f32.xlu0 %v5824_v57  ;;  %v5742_v2 = vpop.xlane.xlu0 %5741 }
0x170f   :  { %v5773_v58 = vmul.f32 0.015625, %v5745_v11  ;;  %v5772_v52 = vmul.f32 0.015625, %v5742_v2  ;;  %v5803_v38 = vmul.f32 %v14414_v18, %v14414_v18  ;;  %v5802_v19 = vmul.f32 %v14417_v44, %v14417_v44  ;;  %v4851_v2 = vld [vmem:[#allocation29 + $0xa0] sm:$0xff] }
0x1711   :  { %v14426_v27 = vsub.f32 %v14353_v61, %v5773_v58  ;;  %v14429_v32 = vsub.f32 %v14355_v51, %v5772_v52  ;;  %v5833_v56 = vsel %vm660_vm4, %v5803_v38, 0.0  ;;  %v5830_v1 = vsel %vm660_vm4, %v5802_v19, 0.0  ;;  %v4852_v58 = vld [vmem:[#allocation29 + $0xa8] sm:$0xff]  ;;  %v4853_v38 = vld [vmem:[#allocation29 + $0xb0] sm:$0xff]  ;;  %v4854_v19 = vld [vmem:[#allocation29 + $0xb8] sm:$0xff] }
0x1712   :  { %v5751_v0 = vpop.xlane.xlu1 %5750  ;;  %5834 = vadd.xlane.f32.xlu1 %v5833_v56  ;;  %5831 = vadd.xlane.f32.xlu0 %v5830_v1  ;;  %v5748_v45 = vpop.xlane.xlu0 %5747  ;;  %v11544_v52 = vpack.c.bf16 %v4852_v58, %v4851_v2  ;;  %v11548_v56 = vpack.c.bf16 %v4854_v19, %v4853_v38 }
0x1713   :  { %v5775_v3 = vmul.f32 0.015625, %v5751_v0  ;;  %v5774_v55 = vmul.f32 0.015625, %v5748_v45  ;;  %v5805_v48 = vmul.f32 %v14426_v27, %v14426_v27  ;;  %v5804_v61 = vmul.f32 %v14429_v32, %v14429_v32 }
0x1715   :  { %v14438_v60 = vsub.f32 %v14361_v6, %v5775_v3  ;;  %v14441_v51 = vsub.f32 %v14363_v53, %v5774_v55  ;;  %v5839_v43 = vsel %vm660_vm4, %v5805_v48, 0.0  ;;  %v5836_v10 = vsel %vm660_vm4, %v5804_v61, 0.0 }
0x1716   :  { %v5757_v63 = vpop.xlane.xlu1 %5756  ;;  %5840 = vadd.xlane.f32.xlu1 %v5839_v43  ;;  %5837 = vadd.xlane.f32.xlu0 %v5836_v10  ;;  %v5754_v16 = vpop.xlane.xlu0 %5753 }
0x1717   :  { %v5777_v15 = vmul.f32 0.015625, %v5757_v63  ;;  %v5776_v8 = vmul.f32 0.015625, %v5754_v16  ;;  %v5807_v62 = vmul.f32 %v14438_v60, %v14438_v60  ;;  %v5806_v6 = vmul.f32 %v14441_v51, %v14441_v51 }
0x1719   :  { %v14450_v28 = vsub.f32 %v14369_v30, %v5777_v15  ;;  %v14453_v53 = vsub.f32 %v14371_v59, %v5776_v8  ;;  %v5845_v24 = vsel %vm660_vm4, %v5807_v62, 0.0  ;;  %v5842_v20 = vsel %vm660_vm4, %v5806_v6, 0.0 }
0x171a   :  { %v5763_v25 = vpop.xlane.xlu1 %5762  ;;  %5846 = vadd.xlane.f32.xlu1 %v5845_v24  ;;  %5843 = vadd.xlane.f32.xlu0 %v5842_v20  ;;  %v5760_v26 = vpop.xlane.xlu0 %5759  ;;  %v11536_v59 = vpack.c.bf16 %v4848_v33, %v4847_v34 }
0x171b   :  { %v5779_v13 = vmul.f32 0.015625, %v5763_v25  ;;  %v5778_v47 = vmul.f32 0.015625, %v5760_v26  ;;  %v5809_v12 = vmul.f32 %v14450_v28, %v14450_v28  ;;  %v5808_v30 = vmul.f32 %v14453_v53, %v14453_v53 }
0x171c   :  { %11537 = vmatprep.subr.bf16.mxu0 %v11536_v59 }
0x171d   :  { %v14462_v37 = vsub.f32 %v14377_v31, %v5779_v13  ;;  %v14465_v46 = vsub.f32 %v14379_v39, %v5778_v47  ;;  %v5851_v35 = vsel %vm660_vm4, %v5809_v12, 0.0  ;;  %v5848_v40 = vsel %vm660_vm4, %v5808_v30, 0.0  ;;  %11539 = vmatpush3.bf16.msra.mxu0 %v11536_v59  ;;  %v14475_v12 = vld [vmem:[#allocation26 + $0x2] ss:$0 sm:$0xff] }
0x171e   :  { %5852 = vadd.xlane.f32.xlu1 %v5851_v35  ;;  %5849 = vadd.xlane.f32.xlu0 %v5848_v40  ;;  %v11540_v31 = vpack.c.bf16 %v4850_v14, %v4849_v21  ;;  %v14478_v21 = vld [vmem:[#allocation28 + $0x2] ss:$0 sm:$0xff] }
0x171f   :  { %v5811_v36 = vmul.f32 %v14462_v37, %v14462_v37  ;;  %v5810_v57 = vmul.f32 %v14465_v46, %v14465_v46 }
0x1720   :  { %11541 = vmatprep.subr.bf16.mxu0 %v11540_v31 }
0x1721   :  { %v5857_v39 = vsel %vm660_vm4, %v5811_v36, 0.0  ;;  %v5854_v11 = vsel %vm660_vm4, %v5810_v57, 0.0  ;;  %11543 = vmatpush3.bf16.msra.mxu0 %v11540_v31 }
0x1722   :  { %5858 = vadd.xlane.f32.xlu1 %v5857_v39  ;;  %5855 = vadd.xlane.f32.xlu0 %v5854_v11 }
0x1723   :  { %11545 = vmatprep.subr.bf16.mxu0 %v11544_v52 }
0x1725   :  { %11547 = vmatpush3.bf16.msra.mxu0 %v11544_v52 }
0x1726   :  { %11549 = vmatprep.subr.bf16.mxu0 %v11548_v56 }
0x1729   :  { %11551 = vmatpush3.bf16.msra.mxu0 %v11548_v56 }
0x1792   :  { %v5817_v1 = vpop.xlane.xlu1 %5816 }
0x1793   :  { %v5861_v0 = vmul.f32 0.015625, %v5817_v1  ;;  %v5814_v45 = vpop.xlane.xlu0 %5813 }
0x1794   :  { %v5860_v3 = vmul.f32 0.015625, %v5814_v45 }
0x1795   :  { %v5877_v55 = vadd.f32 1e-05, %v5861_v0 }
0x1796   :  { %v5876_v48 = vadd.f32 1e-05, %v5860_v3 }
0x1797   :  { %12053 = vrsqrt.f32 %v5877_v55  ;;  %v5823_v61 = vpop.xlane.xlu1 %5822  ;;  %v5820_v43 = vpop.xlane.xlu0 %5819 }
0x1798   :  { %12055 = vrsqrt.f32 %v5876_v48  ;;  %v5863_v10 = vmul.f32 0.015625, %v5823_v61  ;;  %v5862_v63 = vmul.f32 0.015625, %v5820_v43 }
0x179a   :  { %v5879_v16 = vadd.f32 1e-05, %v5863_v10  ;;  %v5878_v15 = vadd.f32 1e-05, %v5862_v63 }
0x179b   :  { %v5829_v8 = vpop.xlane.xlu1 %5828  ;;  %v5826_v62 = vpop.xlane.xlu0 %5825 }
0x179c   :  { %12057 = vrsqrt.f32 %v5879_v16  ;;  %v5865_v6 = vmul.f32 0.015625, %v5829_v8  ;;  %v5864_v24 = vmul.f32 0.015625, %v5826_v62 }
0x179d   :  { %12059 = vrsqrt.f32 %v5878_v15 }
0x179e   :  { %v5881_v20 = vadd.f32 1e-05, %v5865_v6  ;;  %v5880_v25 = vadd.f32 1e-05, %v5864_v24 }
0x179f   :  { %v5835_v26 = vpop.xlane.xlu1 %5834  ;;  %v5832_v34 = vpop.xlane.xlu0 %5831 }
0x17a0   :  { %12061 = vrsqrt.f32 %v5881_v20  ;;  %v5867_v33 = vmul.f32 0.015625, %v5835_v26  ;;  %v5866_v13 = vmul.f32 0.015625, %v5832_v34 }
0x17a1   :  { %v12054_v47 = vpop.eup %12053  ;;  %12063 = vrsqrt.f32 %v5880_v25 }
0x17a2   :  { %v12056_v30 = vpop.eup %12055  ;;  %v5909_v59 = vmul.f32 %v12054_v47, %v14385_v5  ;;  %v5883_v35 = vadd.f32 1e-05, %v5867_v33  ;;  %v5882_v40 = vadd.f32 1e-05, %v5866_v13 }
0x17a3   :  { %v5841_v14 = vpop.xlane.xlu1 %5840  ;;  %v5838_v36 = vpop.xlane.xlu0 %5837  ;;  %v5908_v57 = vmul.f32 %v12056_v30, %v14387_v9 }
0x17a4   :  { %v5931_v31 = vmul.f32 %v14475_v12, %v5909_v59  ;;  %12065 = vrsqrt.f32 %v5883_v35  ;;  %v5869_v39 = vmul.f32 0.015625, %v5841_v14  ;;  %v5868_v11 = vmul.f32 0.015625, %v5838_v36 }
0x17a5   :  { %12067 = vrsqrt.f32 %v5882_v40  ;;  %v5930_v2 = vmul.f32 %v14475_v12, %v5908_v57 }
0x17a6   :  { %v12058_v58 = vpop.eup %12057  ;;  %v5953_v52 = vadd.f32 %v14478_v21, %v5931_v31  ;;  %v5885_v5 = vadd.f32 1e-05, %v5869_v39  ;;  %v5884_v38 = vadd.f32 1e-05, %v5868_v11 }
0x17a7   :  { %v12060_v19 = vpop.eup %12059  ;;  %v5847_v56 = vpop.xlane.xlu1 %5846  ;;  %v5952_v0 = vadd.f32 %v14478_v21, %v5930_v2  ;;  %v5911_v9 = vmul.f32 %v12058_v58, %v14394_v41 }
0x17a8   :  { %v5844_v1 = vpop.xlane.xlu0 %5843  ;;  %12069 = vrsqrt.f32 %v5885_v5  ;;  %v5871_v45 = vmul.f32 0.015625, %v5847_v56  ;;  %v5910_v48 = vmul.f32 %v12060_v19, %v14396_v22  ;;  %v5969_v10 = vmax.f32 %v5953_v52, 0.0 }
0x17a9   :  { %v5870_v3 = vmul.f32 0.015625, %v5844_v1  ;;  %12071 = vrsqrt.f32 %v5884_v38  ;;  %v5968_v55 = vmax.f32 %v5952_v0, 0.0  ;;  %v5933_v61 = vmul.f32 %v14475_v12, %v5911_v9 }
0x17aa   :  { %v12062_v43 = vpop.eup %12061  ;;  %v5887_v63 = vadd.f32 1e-05, %v5871_v45  ;;  %v5932_v41 = vmul.f32 %v14475_v12, %v5910_v48 }
0x17ab   :  { %v5886_v16 = vadd.f32 1e-05, %v5870_v3  ;;  %v12064_v15 = vpop.eup %12063  ;;  %v5853_v8 = vpop.xlane.xlu1 %5852  ;;  %10744 = vmatprep.mubr.msk.f32.mxu0 %vm660_vm4, %v5968_v55  ;;  %v5955_v6 = vadd.f32 %v14478_v21, %v5933_v61  ;;  %v5913_v24 = vmul.f32 %v12062_v43, %v14403_v54 }
0x17ac   :  { %v5850_v62 = vpop.xlane.xlu0 %5849  ;;  %12073 = vrsqrt.f32 %v5887_v63  ;;  %v5873_v20 = vmul.f32 0.015625, %v5853_v8  ;;  %10745 = vmatmul.mubr.msk.f32.vlgmr.msra.gmra.mrb[64].mxu0 %vm660_vm4, %v5969_v10  ;;  %v5912_v25 = vmul.f32 %v12064_v15, %v14405_v29  ;;  %v5954_v26 = vadd.f32 %v14478_v21, %v5932_v41 }
0x17ad   :  { %v5872_v22 = vmul.f32 0.015625, %v5850_v62  ;;  %12075 = vrsqrt.f32 %v5886_v16  ;;  %v5935_v34 = vmul.f32 %v14475_v12, %v5913_v24  ;;  %v5971_v30 = vmax.f32 %v5955_v6, 0.0 }
0x17ae   :  { %v12066_v33 = vpop.eup %12065  ;;  %v5889_v13 = vadd.f32 1e-05, %v5873_v20  ;;  %v5934_v59 = vmul.f32 %v14475_v12, %v5912_v25  ;;  %v5970_v40 = vmax.f32 %v5954_v26, 0.0 }
0x17af   :  { %v5888_v47 = vadd.f32 1e-05, %v5872_v22  ;;  %v12068_v35 = vpop.eup %12067  ;;  %v5859_v54 = vpop.xlane.xlu1 %5858  ;;  %v5957_v36 = vadd.f32 %v14478_v21, %v5935_v34  ;;  %v5915_v57 = vmul.f32 %v12066_v33, %v14414_v18 }
0x17b0   :  { %v5856_v14 = vpop.xlane.xlu0 %5855  ;;  %12077 = vrsqrt.f32 %v5889_v13  ;;  %v5875_v29 = vmul.f32 0.015625, %v5859_v54  ;;  %v5956_v39 = vadd.f32 %v14478_v21, %v5934_v59  ;;  %10747 = vmatprep.mubr.msk.f32.mxu0 %vm660_vm4, %v5970_v40  ;;  %v5914_v11 = vmul.f32 %v12068_v35, %v14417_v44 }
0x17b1   :  { %v5874_v31 = vmul.f32 0.015625, %v5856_v14  ;;  %12079 = vrsqrt.f32 %v5888_v47  ;;  %v5937_v2 = vmul.f32 %v14475_v12, %v5915_v57  ;;  %10748 = vmatmul.mubr.msk.f32.gmra.mrb[66].mxu0 %vm660_vm4, %v5971_v30  ;;  %v5973_v19 = vmax.f32 %v5957_v36, 0.0 }
0x17b2   :  { %v12070_v58 = vpop.eup %12069  ;;  %v5891_v52 = vadd.f32 1e-05, %v5875_v29  ;;  %v5972_v38 = vmax.f32 %v5956_v39, 0.0  ;;  %v5936_v56 = vmul.f32 %v14475_v12, %v5914_v11 }
0x17b3   :  { %v5890_v5 = vadd.f32 1e-05, %v5874_v31  ;;  %v12072_v18 = vpop.eup %12071  ;;  %v5959_v1 = vadd.f32 %v14478_v21, %v5937_v2  ;;  %v5917_v0 = vmul.f32 %v12070_v58, %v14426_v27 }
0x17b4   :  { %12081 = vrsqrt.f32 %v5891_v52  ;;  %10750 = vmatprep.mubr.msk.f32.mxu0 %vm660_vm4, %v5972_v38  ;;  %v5916_v44 = vmul.f32 %v12072_v18, %v14429_v32  ;;  %v5958_v9 = vadd.f32 %v14478_v21, %v5936_v56 }
0x17b5   :  { %12083 = vrsqrt.f32 %v5890_v5  ;;  %v5939_v45 = vmul.f32 %v14475_v12, %v5917_v0  ;;  %10751 = vmatmul.mubr.msk.f32.gmra.mrb[68].mxu0 %vm660_vm4, %v5973_v19  ;;  %v5975_v55 = vmax.f32 %v5959_v1, 0.0 }
0x17b6   :  { %v12074_v3 = vpop.eup %12073  ;;  %v5938_v48 = vmul.f32 %v14475_v12, %v5916_v44  ;;  %v5974_v43 = vmax.f32 %v5958_v9, 0.0 }
0x17b7   :  { %v12076_v61 = vpop.eup %12075  ;;  %v5961_v27 = vadd.f32 %v14478_v21, %v5939_v45  ;;  %v5919_v10 = vmul.f32 %v12074_v3, %v14438_v60 }
0x17b8   :  { %v5960_v63 = vadd.f32 %v14478_v21, %v5938_v48  ;;  %v5918_v32 = vmul.f32 %v12076_v61, %v14441_v51  ;;  %10753 = vmatprep.mubr.msk.f32.mxu0 %vm660_vm4, %v5974_v43 }
0x17b9   :  { %v5941_v16 = vmul.f32 %v14475_v12, %v5919_v10  ;;  %10754 = vmatmul.mubr.msk.f32.gmra.mrb[70].mxu0 %vm660_vm4, %v5975_v55  ;;  %v5977_v62 = vmax.f32 %v5961_v27, 0.0 }
0x17ba   :  { %v12078_v15 = vpop.eup %12077  ;;  %v5976_v8 = vmax.f32 %v5960_v63, 0.0  ;;  %v5940_v41 = vmul.f32 %v14475_v12, %v5918_v32 }
0x17bb   :  { %v12080_v6 = vpop.eup %12079  ;;  %v5963_v24 = vadd.f32 %v14478_v21, %v5941_v16  ;;  %v5921_v60 = vmul.f32 %v12078_v15, %v14450_v28 }
0x17bc   :  { %10756 = vmatprep.mubr.msk.f32.mxu0 %vm660_vm4, %v5976_v8  ;;  %v5962_v51 = vadd.f32 %v14478_v21, %v5940_v41  ;;  %v5920_v20 = vmul.f32 %v12080_v6, %v14453_v53 }
0x17bd   :  { %v5943_v22 = vmul.f32 %v14475_v12, %v5921_v60  ;;  %10757 = vmatmul.mubr.msk.f32.gmra.mrb[72].mxu0 %vm660_vm4, %v5977_v62  ;;  %v5979_v34 = vmax.f32 %v5963_v24, 0.0 }
0x17be   :  { %v12082_v25 = vpop.eup %12081  ;;  %v5978_v26 = vmax.f32 %v5962_v51, 0.0  ;;  %v5942_v33 = vmul.f32 %v14475_v12, %v5920_v20 }
0x17bf   :  { %v12084_v13 = vpop.eup %12083  ;;  %v5965_v47 = vadd.f32 %v14478_v21, %v5943_v22  ;;  %v5923_v28 = vmul.f32 %v12082_v25, %v14462_v37 }
0x17c0   :  { %10759 = vmatprep.mubr.msk.f32.mxu0 %vm660_vm4, %v5978_v26  ;;  %v5964_v30 = vadd.f32 %v14478_v21, %v5942_v33  ;;  %v5922_v53 = vmul.f32 %v12084_v13, %v14465_v46  ;;  %v14544_v46 = vld [vmem:[%s15112_s25] ss:$0 sm:$0xff] }
0x17c1   :  { %v5945_v59 = vmul.f32 %v14475_v12, %v5923_v28  ;;  %10760 = vmatmul.mubr.msk.f32.gmra.mrb[74].mxu0 %vm660_vm4, %v5979_v34  ;;  %v5981_v54 = vmax.f32 %v5965_v47, 0.0  ;;  %vm6187_vm12 = vcmp.eq.s32.totalorder %v14544_v46, %v13638_v50  ;;  %vm6188_vm13 = vcmp.eq.s32.totalorder %v14544_v46, %v13647_v17  ;;  %v6200_v34 = vld [vmem:[#allocation6 + $0x8] sm:$0xff]  ;;  %v6199_v33 = vld [vmem:[#allocation6] sm:$0xff] }
0x17c2   :  { %v5980_v35 = vmax.f32 %v5964_v30, 0.0  ;;  %v5944_v40 = vmul.f32 %v14475_v12, %v5922_v53  ;;  %v9246_v12 = vld [vmem:[#allocation31 + $0x2] ss:$0 sm:$0xff]  ;;  %vm6189_vm14 = vcmp.eq.s32.totalorder %v14544_v46, %v13650_v49  ;;  %vm6190_vm15 = vcmp.eq.s32.totalorder %v14544_v46, %v13655_v23  ;;  %v6202_v53 = vld [vmem:[#allocation6 + $0x18] sm:$0xff] }
0x17c3   :  { %v5967_v14 = vadd.f32 %v14478_v21, %v5945_v59  ;;  %v6201_v59 = vld [vmem:[#allocation6 + $0x10] sm:$0xff] }
0x17c4   :  { %10762 = vmatprep.mubr.msk.f32.mxu0 %vm660_vm4, %v5980_v35  ;;  %v5966_v37 = vadd.f32 %v14478_v21, %v5944_v40 }
0x17c5   :  { %10763 = vmatmul.mubr.msk.f32.gmra.mrb[76].mxu0 %vm660_vm4, %v5981_v54  ;;  %v5983_v57 = vmax.f32 %v5967_v14, 0.0 }
0x17c6   :  { %v5982_v36 = vmax.f32 %v5966_v37, 0.0 }
0x17c8   :  { %10765 = vmatprep.mubr.msk.f32.mxu0 %vm660_vm4, %v5982_v36 }
0x17c9   :  { %10766 = vmatmul.mubr.msk.f32.gmra.mrb[78].mxu0 %vm660_vm4, %v5983_v57 }
0x17ca   :  { %10800 = vmatprep.mubr.msk.f32.mxu0 %vm6187_vm12, %v12776_v42 }
0x187f   :  { %v10746_v29 = vpop.f32.mrb[64].mxu0 }
0x1880   :  { %v6110_v31 = vadd.f32 %v10746_v29, %v9246_v12  ;;  %v6104_v39 = vpop.f32.mrb[65].mxu0 }
0x1881   :  { %v6105_v21 = vadd.f32 %v9246_v12, %v6104_v39 }
0x1883   :  { %v11552_v11 = vpack.c.bf16 %v6110_v31, %v6105_v21 }
0x1884   :  { %v10749_v2 = vpop.f32.mrb[66].mxu0 }
0x1885   :  { %11553 = vmatprep.subr.bf16.mxu0 %v11552_v11  ;;  %v6120_v58 = vadd.f32 %v10749_v2, %v9246_v12  ;;  %v6114_v52 = vpop.f32.mrb[67].mxu0 }
0x1886   :  { %11555 = vmatpush3.bf16.msra.mxu0 %v11552_v11  ;;  %v6115_v5 = vadd.f32 %v9246_v12, %v6114_v52 }
0x1888   :  { %v11556_v38 = vpack.c.bf16 %v6120_v58, %v6115_v5  ;;  %v10752_v19 = vpop.f32.mrb[68].mxu0 }
0x1889   :  { %v6130_v18 = vadd.f32 %v10752_v19, %v9246_v12  ;;  %v6124_v56 = vpop.f32.mrb[69].mxu0 }
0x188a   :  { %v6125_v1 = vadd.f32 %v9246_v12, %v6124_v56  ;;  %11557 = vmatprep.subr.bf16.mxu0 %v11556_v38 }
0x188b   :  { %11559 = vmatpush3.bf16.msra.mxu0 %v11556_v38 }
0x188c   :  { %v11560_v0 = vpack.c.bf16 %v6130_v18, %v6125_v1  ;;  %v10755_v44 = vpop.f32.mrb[70].mxu0 }
0x188d   :  { %v6140_v9 = vadd.f32 %v10755_v44, %v9246_v12  ;;  %v6134_v45 = vpop.f32.mrb[71].mxu0 }
0x188e   :  { %v6135_v3 = vadd.f32 %v9246_v12, %v6134_v45  ;;  %11561 = vmatprep.subr.bf16.mxu0 %v11560_v0 }
0x188f   :  { %11563 = vmatpush3.bf16.msra.mxu0 %v11560_v0 }
0x1890   :  { %v11564_v55 = vpack.c.bf16 %v6140_v9, %v6135_v3  ;;  %v10758_v48 = vpop.f32.mrb[72].mxu0 }
0x1891   :  { %v6150_v61 = vadd.f32 %v10758_v48, %v9246_v12  ;;  %v6144_v43 = vpop.f32.mrb[73].mxu0 }
0x1892   :  { %v6145_v27 = vadd.f32 %v9246_v12, %v6144_v43  ;;  %11565 = vmatprep.subr.bf16.mxu0 %v11564_v55 }
0x1893   :  { %11567 = vmatpush3.bf16.msra.mxu0 %v11564_v55 }
0x1894   :  { %v11568_v10 = vpack.c.bf16 %v6150_v61, %v6145_v27  ;;  %v10761_v63 = vpop.f32.mrb[74].mxu0  ;;  %v6377_v27 = vld [vmem:[#allocation35 + $0x80] sm:$0xff] }
0x1895   :  { %v6160_v32 = vadd.f32 %v10761_v63, %v9246_v12  ;;  %v6154_v16 = vpop.f32.mrb[75].mxu0  ;;  %v6998_v63 = vld [vmem:[%s15111_s30 + $0x8] sm:$0xff] }
0x1896   :  { %v6155_v15 = vadd.f32 %v9246_v12, %v6154_v16  ;;  %11569 = vmatprep.subr.bf16.mxu0 %v11568_v10  ;;  %v6379_v16 = vld [vmem:[#allocation35 + $0x90] sm:$0xff] }
0x1897   :  { %11571 = vmatpush3.bf16.msra.mxu0 %v11568_v10  ;;  %v6378_v10 = vld [vmem:[#allocation35 + $0x88] sm:$0xff] }
0x1898   :  { %v11572_v8 = vpack.c.bf16 %v6160_v32, %v6155_v15  ;;  %v10764_v62 = vpop.f32.mrb[76].mxu0  ;;  %v11600_v32 = vpack.c.bf16 %v6378_v10, %v6377_v27  ;;  %v6380_v15 = vld [vmem:[#allocation35 + $0x98] sm:$0xff]  ;;  %v6613_v27 = vld [vmem:[#allocation40 + $0xa0] sm:$0xff]  ;;  %v6614_v10 = vld [vmem:[#allocation40 + $0xa8] sm:$0xff] }
0x1899   :  { %v6170_v41 = vadd.f32 %v10764_v62, %v9246_v12  ;;  %v6164_v6 = vpop.f32.mrb[77].mxu0  ;;  %v11604_v62 = vpack.c.bf16 %v6380_v15, %v6379_v16 }
0x189a   :  { %v6165_v24 = vadd.f32 %v9246_v12, %v6164_v6  ;;  %11573 = vmatprep.subr.bf16.mxu0 %v11572_v8  ;;  %11601 = vmatprep.subr.bf16.mxu1 %v11600_v32  ;;  %v6381_v6 = vld [vmem:[#allocation35 + $0xa0] sm:$0xff] }
0x189b   :  { %11575 = vmatpush3.bf16.msra.mxu0 %v11572_v8  ;;  %11603 = vmatpush3.bf16.msra.mxu1 %v11600_v32  ;;  %v6999_v8 = vld [vmem:[%s15111_s30 + $0x10] sm:$0xff] }
0x189c   :  { %v11576_v60 = vpack.c.bf16 %v6170_v41, %v6165_v24  ;;  %v10767_v51 = vpop.f32.mrb[78].mxu0  ;;  %v6997_v41 = vld [vmem:[%s15111_s30] sm:$0xff]  ;;  %11605 = vmatprep.subr.bf16.mxu1 %v11604_v62  ;;  %v6382_v24 = vld [vmem:[#allocation35 + $0xa8] sm:$0xff] }
0x189d   :  { %v6180_v20 = vadd.f32 %v10767_v51, %v9246_v12  ;;  %v6174_v22 = vpop.f32.mrb[79].mxu0  ;;  %v11608_v51 = vpack.c.bf16 %v6382_v24, %v6381_v6 }
0x189e   :  { %v6175_v25 = vadd.f32 %v9246_v12, %v6174_v22  ;;  %11577 = vmatprep.subr.bf16.mxu0 %v11576_v60  ;;  %v6383_v22 = vld [vmem:[#allocation35 + $0xb0] sm:$0xff] }
0x189f   :  { %11579 = vmatpush3.bf16.msra.mxu0 %v11576_v60  ;;  %11607 = vmatpush3.bf16.msra.mxu1 %v11604_v62  ;;  %v7001_v60 = vld [vmem:[%s15111_s30 + $0x20] sm:$0xff] }
0x18a0   :  { %v11580_v26 = vpack.c.bf16 %v6180_v20, %v6175_v25  ;;  %v7000_v20 = vld [vmem:[%s15111_s30 + $0x18] sm:$0xff]  ;;  %11609 = vmatprep.subr.bf16.mxu1 %v11608_v51  ;;  %v6384_v25 = vld [vmem:[#allocation35 + $0xb8] sm:$0xff] }
0x18a2   :  { %11581 = vmatprep.subr.bf16.mxu0 %v11580_v26 }
0x18a3   :  { %11583 = vmatpush3.bf16.msra.mxu0 %v11580_v26  ;;  %11611 = vmatpush3.bf16.msra.mxu1 %v11608_v51  ;;  %v7003_v26 = vld [vmem:[%s15111_s30 + $0x30] sm:$0xff] }
0x18a6   :  { %10801 = vmatmul.mubr.msk.f32.vlgmr.msra.gmra.mrb[80].mxu0 %vm6188_vm13, %v12776_v42 }
0x18a7   :  { %10803 = vmatprep.mubr.msk.f32.mxu0 %vm6189_vm14, %v12776_v42 }
0x18aa   :  { %10804 = vmatmul.mubr.msk.f32.gmra.mrb[82].mxu0 %vm6190_vm15, %v12776_v42 }
0x1979   :  { %v10802_v13 = vpop.f32.mrb[80].mxu0 }
0x197a   :  { %v6289_v47 = vadd.f32 %v10802_v13, %v6200_v34  ;;  %v6269_v28 = vpop.f32.mrb[81].mxu0  ;;  %v11612_v34 = vpack.c.bf16 %v6384_v25, %v6383_v22  ;;  %v6860_v13 = vld [vmem:[#allocation23 + $0xc0] sm:$0xff] }
0x197b   :  { %v6288_v30 = vadd.f32 %v6269_v28, %v6199_v33  ;;  %v7002_v33 = vld [vmem:[%s15111_s30 + $0x28] sm:$0xff]  ;;  %v7005_v28 = vld [vmem:[%s15111_s30 + $0x40] sm:$0xff] }
0x197c   :  { %6293 = vst.msk [vmem:[#allocation6 + $0x8] sm:$0xff] %vm660_vm4, %v6289_v47  ;;  %11613 = vmatprep.subr.bf16.mxu1 %v11612_v34  ;;  %v6861_v47 = vld [vmem:[#allocation23 + $0xc8] sm:$0xff] }
0x197d   :  { %6292 = vst.msk [vmem:[#allocation6] sm:$0xff] %vm660_vm4, %v6288_v30  ;;  %v10805_v35 = vpop.f32.mrb[82].mxu0  ;;  %11615 = vmatpush3.bf16.msra.mxu1 %v11612_v34  ;;  %v14594_v30 = vpack.c.bf16 %v6861_v47, %v6860_v13  ;;  %v9273_v47 = vld [vmem:[#allocation34 + $0x2] ss:$0 sm:$0xff] }
0x197e   :  { %v6291_v54 = vadd.f32 %v10805_v35, %v6202_v53  ;;  %v6279_v40 = vpop.f32.mrb[83].mxu0  ;;  %v7004_v53 = vld [vmem:[%s15111_s30 + $0x38] sm:$0xff]  ;;  %v7006_v35 = vld [vmem:[%s15111_s30 + $0x48] sm:$0xff] }
0x197f   :  { %v6290_v14 = vadd.f32 %v6279_v40, %v6201_v59  ;;  %11649 = vmatprep.subr.bf16.mxu1 %v14594_v30  ;;  %v7007_v59 = vld [vmem:[%s15111_s30 + $0x50] sm:$0xff]  ;;  %v7008_v40 = vld [vmem:[%s15111_s30 + $0x58] sm:$0xff] }
0x1980   :  { %6295 = vst.msk [vmem:[#allocation6 + $0x18] sm:$0xff] %vm660_vm4, %v6291_v54  ;;  %v7009_v54 = vld [vmem:[%s15111_s30 + $0x60] sm:$0xff] }
0x1981   :  { %6294 = vst.msk [vmem:[#allocation6 + $0x10] sm:$0xff] %vm660_vm4, %v6290_v14  ;;  %v7011_v14 = vld [vmem:[%s15111_s30 + $0x70] sm:$0xff] }
0x1983   :  { %v6297_v37 = vld [vmem:[#allocation6 + $0x8] sm:$0xff] }
0x1984   :  { %v6307_v36 = vsel %vm660_vm4, %v6297_v37, 0.0  ;;  %v6296_v57 = vld [vmem:[#allocation6] sm:$0xff] }
0x1985   :  { %6308 = vadd.xlane.f32.xlu1 %v6307_v36  ;;  %v6304_v46 = vsel %vm660_vm4, %v6296_v57, 0.0  ;;  %v6981_v36 = vld [vmem:[%s15110_s22] sm:$0xff] }
0x1986   :  { %6305 = vadd.xlane.f32.xlu0 %v6304_v46  ;;  %v6983_v46 = vld [vmem:[%s15110_s22 + $0x10] sm:$0xff] }
0x1987   :  { %v6299_v12 = vld [vmem:[#allocation6 + $0x18] sm:$0xff] }
0x1988   :  { %v6313_v29 = vsel %vm660_vm4, %v6299_v12, 0.0  ;;  %v6298_v31 = vld [vmem:[#allocation6 + $0x10] sm:$0xff] }
0x1989   :  { %6314 = vadd.xlane.f32.xlu1 %v6313_v29  ;;  %v6310_v39 = vsel %vm660_vm4, %v6298_v31, 0.0  ;;  %v6985_v29 = vld [vmem:[%s15110_s22 + $0x20] sm:$0xff] }
0x198a   :  { %6311 = vadd.xlane.f32.xlu0 %v6310_v39  ;;  %v6987_v39 = vld [vmem:[%s15110_s22 + $0x30] sm:$0xff] }
0x1a12   :  { %v6309_v21 = vpop.xlane.xlu1 %6308 }
0x1a13   :  { %v6317_v11 = vmul.f32 0.015625, %v6309_v21  ;;  %v6306_v2 = vpop.xlane.xlu0 %6305  ;;  %v6986_v21 = vld [vmem:[%s15110_s22 + $0x28] sm:$0xff] }
0x1a14   :  { %v6316_v58 = vmul.f32 0.015625, %v6306_v2  ;;  %v6988_v2 = vld [vmem:[%s15110_s22 + $0x38] sm:$0xff] }
0x1a15   :  { %v14566_v52 = vsub.f32 %v6297_v37, %v6317_v11  ;;  %v7010_v37 = vld [vmem:[%s15111_s30 + $0x68] sm:$0xff]  ;;  %v6989_v11 = vld [vmem:[%s15110_s22 + $0x40] sm:$0xff] }
0x1a16   :  { %v14568_v5 = vsub.f32 %v6296_v57, %v6316_v58  ;;  %v6315_v38 = vpop.xlane.xlu1 %6314  ;;  %v7012_v57 = vld [vmem:[%s15111_s30 + $0x78] sm:$0xff]  ;;  %v6991_v58 = vld [vmem:[%s15110_s22 + $0x50] sm:$0xff] }
0x1a17   :  { %v6319_v19 = vmul.f32 0.015625, %v6315_v38  ;;  %v6312_v18 = vpop.xlane.xlu0 %6311  ;;  %v6325_v56 = vmul.f32 %v14566_v52, %v14566_v52  ;;  %v6990_v38 = vld [vmem:[%s15110_s22 + $0x48] sm:$0xff] }
0x1a18   :  { %v6318_v1 = vmul.f32 0.015625, %v6312_v18  ;;  %v6324_v0 = vmul.f32 %v14568_v5, %v14568_v5  ;;  %v6992_v18 = vld [vmem:[%s15110_s22 + $0x58] sm:$0xff] }
0x1a19   :  { %v14574_v44 = vsub.f32 %v6299_v12, %v6319_v19  ;;  %v6331_v9 = vsel %vm660_vm4, %v6325_v56, 0.0  ;;  %v6982_v12 = vld [vmem:[%s15110_s22 + $0x8] sm:$0xff]  ;;  %v6993_v19 = vld [vmem:[%s15110_s22 + $0x60] sm:$0xff]  ;;  %v6995_v56 = vld [vmem:[%s15110_s22 + $0x70] sm:$0xff] }
0x1a1a   :  { %v14577_v45 = vsub.f32 %v6298_v31, %v6318_v1  ;;  %6332 = vadd.xlane.f32.xlu1 %v6331_v9  ;;  %v6328_v3 = vsel %vm660_vm4, %v6324_v0, 0.0  ;;  %v6984_v31 = vld [vmem:[%s15110_s22 + $0x18] sm:$0xff]  ;;  %v6994_v1 = vld [vmem:[%s15110_s22 + $0x68] sm:$0xff] }
0x1a1b   :  { %6329 = vadd.xlane.f32.xlu0 %v6328_v3  ;;  %v6327_v55 = vmul.f32 %v14574_v44, %v14574_v44  ;;  %v6996_v0 = vld [vmem:[%s15110_s22 + $0x78] sm:$0xff] }
0x1a1c   :  { %v6326_v48 = vmul.f32 %v14577_v45, %v14577_v45  ;;  %v6609_v9 = vld [vmem:[#allocation40 + $0x80] sm:$0xff]  ;;  %v6610_v3 = vld [vmem:[#allocation40 + $0x88] sm:$0xff] }
0x1a1d   :  { %v6337_v61 = vsel %vm660_vm4, %v6327_v55, 0.0  ;;  %v6611_v55 = vld [vmem:[#allocation40 + $0x90] sm:$0xff] }
0x1a1e   :  { %6338 = vadd.xlane.f32.xlu1 %v6337_v61  ;;  %v6334_v43 = vsel %vm660_vm4, %v6326_v48, 0.0  ;;  %v11616_v48 = vpack.c.bf16 %v6610_v3, %v6609_v9  ;;  %v6612_v61 = vld [vmem:[#allocation40 + $0x98] sm:$0xff] }
0x1a1f   :  { %6335 = vadd.xlane.f32.xlu0 %v6334_v43  ;;  %v11620_v43 = vpack.c.bf16 %v6612_v61, %v6611_v55  ;;  %v9282_v3 = vld [vmem:[#allocation38 + $0x2] ss:$0 sm:$0xff] }
0x1a20   :  { %11617 = vmatprep.subr.bf16.mxu0 %v11616_v48 }
0x1a21   :  { %11619 = vmatpush3.bf16.msra.mxu0 %v11616_v48 }
0x1a22   :  { %11621 = vmatprep.subr.bf16.mxu0 %v11620_v43 }
0x1a25   :  { %11623 = vmatpush3.bf16.msra.mxu0 %v11620_v43 }
0x1a2f   :  { %7114 = vperm.xlu1 %11956, %v6998_v63   ;;  %v11624_v63 = vpack.c.bf16 %v6614_v10, %v6613_v27  ;;  %v9290_v27 = vld [vmem:[%s15109_s5 + $0xd0] sm:$0xff]  ;;  %v9291_v10 = vld [vmem:[%s15109_s5 + $0xd8] sm:$0xff] }
0x1a31   :  { %11625 = vmatprep.subr.bf16.mxu0 %v11624_v63 }
0x1a32   :  { %11627 = vmatpush3.bf16.msra.mxu0 %v11624_v63 }
0x1a33   :  { %7117 = vperm.xlu1 %11956, %v6999_v8  }
0x1a35   :  { %7111 = vperm.xlu0 %11955, %v6997_v41  }
0x1a37   :  { %7123 = vperm.xlu1 %11956, %v7001_v60  }
0x1a39   :  { %7120 = vperm.xlu0 %11955, %v7000_v20  }
0x1a3b   :  { %7129 = vperm.xlu1 %11956, %v7003_v26   ;;  %v9272_v26 = vld [vmem:[#allocation32 + $0x2] ss:$0 sm:$0xff] }
0x1a3d   :  { %7126 = vperm.xlu0 %11955, %v7002_v33  }
0x1a3f   :  { %7135 = vperm.xlu1 %11956, %v7005_v28  }
0x1a41   :  { %7132 = vperm.xlu0 %11955, %v7004_v53  }
0x1a43   :  { %7141 = vperm.xlu1 %11956, %v7007_v59  }
0x1a45   :  { %7138 = vperm.xlu0 %11955, %v7006_v35   ;;  %v6862_v35 = vld [vmem:[#allocation23 + $0xd0] sm:$0xff] }
0x1a47   :  { %7147 = vperm.xlu1 %11956, %v7009_v54   ;;  %v6863_v54 = vld [vmem:[#allocation23 + $0xd8] sm:$0xff] }
0x1a49   :  { %7144 = vperm.xlu0 %11955, %v7008_v40  }
0x1a4b   :  { %7153 = vperm.xlu1 %11956, %v7011_v14  }
0x1a4d   :  { %7150 = vperm.xlu0 %11955, %v7010_v37  }
0x1a4f   :  { %7015 = vperm.xlu1 %11956, %v6981_v36  }
0x1a51   :  { %7156 = vperm.xlu0 %11955, %v7012_v57  }
0x1a53   :  { %7021 = vperm.xlu1 %11956, %v6983_v46   ;;  %v11652_v46 = vpack.c.bf16 %v6863_v54, %v6862_v35 }
0x1a55   :  { %7018 = vperm.xlu0 %11955, %v6982_v12  }
0x1a57   :  { %7027 = vperm.xlu1 %11956, %v6985_v29   ;;  %v6864_v29 = vld [vmem:[#allocation23 + $0xe0] sm:$0xff] }
0x1a59   :  { %7024 = vperm.xlu0 %11955, %v6984_v31  }
0x1a5b   :  { %7033 = vperm.xlu1 %11956, %v6987_v39  }
0x1a5d   :  { %7030 = vperm.xlu0 %11955, %v6986_v21  }
0x1a5f   :  { %7039 = vperm.xlu1 %11956, %v6989_v11   ;;  %v14630_v11 = vld [vmem:[#allocation3] sm:$0xff] }
0x1a61   :  { %7036 = vperm.xlu0 %11955, %v6988_v2  }
0x1a63   :  { %7045 = vperm.xlu1 %11956, %v6991_v58   ;;  %v14638_v58 = vld [vmem:[#allocation3 + $0x10] sm:$0xff] }
0x1a65   :  { %7042 = vperm.xlu0 %11955, %v6990_v38   ;;  %v14642_v38 = vld [vmem:[#allocation3 + $0x18] sm:$0xff] }
0x1a67   :  { %7051 = vperm.xlu1 %11956, %v6993_v19   ;;  %v6615_v19 = vld [vmem:[#allocation40 + $0xb0] sm:$0xff] }
0x1a69   :  { %7048 = vperm.xlu0 %11955, %v6992_v18   ;;  %v6616_v18 = vld [vmem:[#allocation40 + $0xb8] sm:$0xff] }
0x1a6b   :  { %7057 = vperm.xlu1 %11956, %v6995_v56   ;;  %v11628_v56 = vpack.c.bf16 %v6616_v18, %v6615_v19 }
0x1a6d   :  { %7054 = vperm.xlu0 %11955, %v6994_v1   ;;  %11629 = vmatprep.subr.bf16.mxu0 %v11628_v56  ;;  %v9288_v1 = vld [vmem:[%s15109_s5 + $0xc0] sm:$0xff] }
0x1a6e   :  { %11631 = vmatpush3.bf16.msra.mxu0 %v11628_v56 }
0x1a71   :  { %7060 = vperm.xlu0 %11955, %v6996_v0   ;;  %v9289_v0 = vld [vmem:[%s15109_s5 + $0xc8] sm:$0xff] }
0x1a72   :  { %v11632_v9 = vpack.c.bf16 %v9289_v0, %v9288_v1 }
0x1a74   :  { %11633 = vmatprep.subr.bf16.mxu0 %v11632_v9 }
0x1aa7   :  { %v6333_v32 = vpop.xlane.xlu1 %6332 }
0x1aa8   :  { %v6341_v16 = vmul.f32 0.015625, %v6333_v32  ;;  %v6330_v15 = vpop.xlane.xlu0 %6329 }
0x1aa9   :  { %v6340_v8 = vmul.f32 0.015625, %v6330_v15 }
0x1aaa   :  { %v6345_v62 = vadd.f32 1e-05, %v6341_v16 }
0x1aab   :  { %v6344_v41 = vadd.f32 1e-05, %v6340_v8  ;;  %v6339_v6 = vpop.xlane.xlu1 %6338 }
0x1aac   :  { %12085 = vrsqrt.f32 %v6345_v62  ;;  %v6343_v24 = vmul.f32 0.015625, %v6339_v6  ;;  %v6336_v60 = vpop.xlane.xlu0 %6335  ;;  %v11636_v62 = vpack.c.bf16 %v9291_v10, %v9290_v27  ;;  %v9292_v6 = vld [vmem:[%s15109_s5 + $0xe0] sm:$0xff] }
0x1aad   :  { %12087 = vrsqrt.f32 %v6344_v41  ;;  %v6342_v51 = vmul.f32 0.015625, %v6336_v60 }
0x1aae   :  { %v6347_v20 = vadd.f32 1e-05, %v6343_v24  ;;  %v9293_v24 = vld [vmem:[%s15109_s5 + $0xe8] sm:$0xff] }
0x1aaf   :  { %v6346_v22 = vadd.f32 1e-05, %v6342_v51 }
0x1ab0   :  { %12089 = vrsqrt.f32 %v6347_v20  ;;  %v11640_v20 = vpack.c.bf16 %v9293_v24, %v9292_v6 }
0x1ab1   :  { %12091 = vrsqrt.f32 %v6346_v22  ;;  %v9294_v22 = vld [vmem:[%s15109_s5 + $0xf0] sm:$0xff] }
0x1ab6   :  { %v12086_v25 = vpop.eup %12085 }
0x1ab7   :  { %v12088_v34 = vpop.eup %12087  ;;  %v6353_v33 = vmul.f32 %v12086_v25, %v14566_v52  ;;  %v9295_v25 = vld [vmem:[%s15109_s5 + $0xf8] sm:$0xff] }
0x1ab8   :  { %v6352_v13 = vmul.f32 %v12088_v34, %v14568_v5  ;;  %v6865_v5 = vld [vmem:[#allocation23 + $0xe8] sm:$0xff]  ;;  %v9300_v34 = vld [vmem:[#allocation25 + $0x3] ss:$0 sm:$0xff] }
0x1ab9   :  { %v6363_v28 = vmul.f32 %v9272_v26, %v6353_v33  ;;  %v11656_v21 = vpack.c.bf16 %v6865_v5, %v6864_v29 }
0x1aba   :  { %v12090_v53 = vpop.eup %12089  ;;  %v6362_v59 = vmul.f32 %v9272_v26, %v6352_v13 }
0x1abb   :  { %v12092_v40 = vpop.eup %12091  ;;  %v6355_v14 = vmul.f32 %v12090_v53, %v14574_v44  ;;  %v6373_v57 = vadd.f32 %v9273_v47, %v6363_v28  ;;  %v6866_v44 = vld [vmem:[#allocation23 + $0xf0] sm:$0xff] }
0x1abc   :  { %v6372_v37 = vadd.f32 %v9273_v47, %v6362_v59  ;;  %v6354_v36 = vmul.f32 %v12092_v40, %v14577_v45  ;;  %v6867_v45 = vld [vmem:[#allocation23 + $0xf8] sm:$0xff] }
0x1abd   :  { %v6365_v12 = vmul.f32 %v9272_v26, %v6355_v14  ;;  %v11660_v2 = vpack.c.bf16 %v6867_v45, %v6866_v44 }
0x1abe   :  { %10844 = vmatprep.mubr.msk.f32.mxu1 %vm660_vm4, %v6372_v37  ;;  %v6364_v52 = vmul.f32 %v9272_v26, %v6354_v36  ;;  %v11644_v26 = vpack.c.bf16 %v9295_v25, %v9294_v22  ;;  %v7115_v36 = vpop.permute.xlu1 %7114 }
0x1abf   :  { %10845 = vmatmul.mubr.msk.f32.vlgmr.msra.gmra.mrb[80].mxu1 %vm660_vm4, %v6373_v57  ;;  %v6375_v39 = vadd.f32 %v9273_v47, %v6365_v12  ;;  %v9283_v57 = vld [vmem:[#allocation41 + $0x2] ss:$0 sm:$0xff]  ;;  %vm7159_vm1 = vcmp.eq.s32.totalorder %v7115_v36, %v13291_v7 }
0x1ac0   :  { %11651 = vmatpush3.bf16.msra.mxu1 %v14594_v30  ;;  %v6374_v31 = vadd.f32 %v9273_v47, %v6364_v52  ;;  %v14634_v30 = vld [vmem:[#allocation3 + $0x8] sm:$0xff] }
0x1ac1   :  { %11653 = vmatprep.subr.bf16.mxu1 %v11652_v46 }
0x1ac2   :  { %10847 = vmatprep.mubr.msk.f32.mxu1 %vm660_vm4, %v6374_v31  ;;  %v7118_v52 = vpop.permute.xlu1 %7117 }
0x1ac3   :  { %10848 = vmatmul.mubr.msk.f32.gmra.mrb[82].mxu1 %vm660_vm4, %v6375_v39  ;;  %vm7160_vm2 = vcmp.eq.s32.totalorder %v7118_v52, %v13291_v7 }
0x1ac4   :  { %11655 = vmatpush3.bf16.msra.mxu1 %v11652_v46  ;;  %10910 = vmatprep.mubr.msk.f32.mxu1 %vm660_vm4, %v14630_v11  ;;  %v7112_v46 = vpop.permute.xlu0 %7111 }
0x1ac5   :  { %11657 = vmatprep.subr.bf16.mxu1 %v11656_v21  ;;  %vm7158_vm0 = vcmp.eq.s32.totalorder %v7112_v46, %v13291_v7 }
0x1ac6   :  { %v7124_v19 = vpop.permute.xlu1 %7123 }
0x1ac7   :  { %vm7162_vm5 = vcmp.eq.s32.totalorder %v7124_v19, %v13291_v7 }
0x1ac8   :  { %11659 = vmatpush3.bf16.msra.mxu1 %v11656_v21  ;;  %v7121_v45 = vpop.permute.xlu0 %7120 }
0x1ac9   :  { %11661 = vmatprep.subr.bf16.mxu1 %v11660_v2  ;;  %vm7161_vm3 = vcmp.eq.s32.totalorder %v7121_v45, %v13291_v7 }
0x1acc   :  { %11663 = vmatpush3.bf16.msra.mxu1 %v11660_v2  ;;  %v7127_v0 = vpop.permute.xlu0 %7126 }
0x1acd   :  { %vm7163_vm7 = vcmp.eq.s32.totalorder %v7127_v0, %v13291_v7  ;;  %v8277_v0 = vld [vmem:[#allocation37 + $0xd8] sm:$0xff] }
0x1acf   :  { %10911 = vmatmul.mubr.msk.f32.vlgmr.msra.gmra.mrb[84].mxu1 %vm660_vm4, %v14634_v30 }
0x1ad0   :  { %10913 = vmatprep.mubr.msk.f32.mxu1 %vm660_vm4, %v14638_v58  ;;  %v7133_v27 = vpop.permute.xlu0 %7132 }
0x1ad1   :  { %vm7165_vm9 = vcmp.eq.s32.totalorder %v7133_v27, %v13291_v7 }
0x1ad3   :  { %10914 = vmatmul.mubr.msk.f32.gmra.mrb[86].mxu1 %vm660_vm4, %v14642_v38 }
0x1b92   :  { %v10846_v55 = vpop.f32.mrb[80].mxu1 }
0x1b93   :  { %v6601_v48 = vadd.f32 %v10846_v55, %v9282_v3  ;;  %v6573_v61 = vpop.f32.mrb[81].mxu1 }
0x1b94   :  { %v6600_v43 = vadd.f32 %v9282_v3, %v6573_v61 }
0x1b95   :  { %v6605_v16 = vmax.f32 %v6601_v48, 0.0 }
0x1b96   :  { %v6604_v63 = vmax.f32 %v6600_v43, 0.0  ;;  %v10849_v32 = vpop.f32.mrb[82].mxu1  ;;  %v9321_v43 = vsel %vm7158_vm0, 1.0, %v12775_v4 }
0x1b97   :  { %v6603_v15 = vadd.f32 %v10849_v32, %v9282_v3  ;;  %v6583_v8 = vpop.f32.mrb[83].mxu1  ;;  %v9323_v32 = vsel %vm7160_vm2, 1.0, %v12775_v4 }
0x1b98   :  { %v6602_v41 = vadd.f32 %v9282_v3, %v6583_v8  ;;  %10866 = vmatprep.mubr.msk.f32.mxu0 %vm660_vm4, %v6604_v63  ;;  %v7130_v3 = vpop.permute.xlu1 %7129  ;;  %v9322_v63 = vsel %vm7159_vm1, 1.0, %v12775_v4  ;;  %v9325_v8 = vsel %vm7162_vm5, 1.0, %v12775_v4 }
0x1b99   :  { %10867 = vmatmul.mubr.msk.f32.vlgmr.msra.gmra.mrb[84].mxu0 %vm660_vm4, %v6605_v16  ;;  %v6607_v51 = vmax.f32 %v6603_v15, 0.0  ;;  %v9324_v16 = vsel %vm7161_vm3, 1.0, %v12775_v4  ;;  %v7139_v15 = vpop.permute.xlu0 %7138  ;;  %vm7164_vm8 = vcmp.eq.s32.totalorder %v7130_v3, %v13291_v7 }
0x1b9a   :  { %v6606_v60 = vmax.f32 %v6602_v41, 0.0  ;;  %11635 = vmatpush3.bf16.msra.mxu0 %v11632_v9  ;;  %v9326_v41 = vsel %vm7163_vm7, 1.0, %v12775_v4  ;;  %v9327_v6 = vsel %vm7164_vm8, 1.0, %v12775_v4  ;;  %vm7167_vm11 = vcmp.eq.s32.totalorder %v7139_v15, %v13291_v7  ;;  %v8281_v15 = vld [vmem:[#allocation37 + $0xf8] sm:$0xff] }
0x1b9b   :  { %11637 = vmatprep.subr.bf16.mxu0 %v11636_v62  ;;  %v9330_v22 = vsel %vm7167_vm11, 1.0, %v12775_v4 }
0x1b9c   :  { %10869 = vmatprep.mubr.msk.f32.mxu0 %vm660_vm4, %v6606_v60  ;;  %v7136_v10 = vpop.permute.xlu1 %7135 }
0x1b9d   :  { %10870 = vmatmul.mubr.msk.f32.gmra.mrb[86].mxu0 %vm660_vm4, %v6607_v51  ;;  %vm7166_vm10 = vcmp.eq.s32.totalorder %v7136_v10, %v13291_v7  ;;  %v7145_v24 = vpop.permute.xlu0 %7144  ;;  %v9328_v51 = vsel %vm7165_vm9, 1.0, %v12775_v4 }
0x1b9e   :  { %11639 = vmatpush3.bf16.msra.mxu0 %v11636_v62  ;;  %vm7169_vm13 = vcmp.eq.s32.totalorder %v7145_v24, %v13291_v7 }
0x1b9f   :  { %11641 = vmatprep.subr.bf16.mxu0 %v11640_v20 }
0x1ba0   :  { %v7142_v62 = vpop.permute.xlu1 %7141 }
0x1ba1   :  { %vm7168_vm12 = vcmp.eq.s32.totalorder %v7142_v62, %v13291_v7  ;;  %v7151_v25 = vpop.permute.xlu0 %7150 }
0x1ba2   :  { %v10912_v33 = vpop.f32.mrb[84].mxu1  ;;  %11643 = vmatpush3.bf16.msra.mxu0 %v11640_v20  ;;  %v9329_v20 = vsel %vm7166_vm10, 1.0, %v12775_v4  ;;  %vm7171_vm15 = vcmp.eq.s32.totalorder %v7151_v25, %v13291_v7 }
0x1ba3   :  { %v6960_v13 = vadd.f32 %v10912_v33, %v9300_v34  ;;  %v6954_v47 = vpop.f32.mrb[85].mxu1  ;;  %11645 = vmatprep.subr.bf16.mxu0 %v11644_v26  ;;  %v9332_v33 = vsel %vm7169_vm13, 1.0, %v12775_v4 }
0x1ba4   :  { %v6955_v28 = vadd.f32 %v9300_v34, %v6954_v47  ;;  %v7148_v60 = vpop.permute.xlu1 %7147 }
0x1ba5   :  { %6974 = vst.msk [vmem:[#allocation5 + $0x8] sm:$0xff] %vm660_vm4, %v6960_v13  ;;  %vm7170_vm14 = vcmp.eq.s32.totalorder %v7148_v60, %v13291_v7  ;;  %v7157_v47 = vpop.permute.xlu0 %7156 }
0x1ba6   :  { %6973 = vst.msk [vmem:[#allocation5] sm:$0xff] %vm660_vm4, %v6955_v28  ;;  %v10915_v53 = vpop.f32.mrb[86].mxu1  ;;  %11647 = vmatpush3.bf16.msra.mxu0 %v11644_v26  ;;  %v9331_v26 = vsel %vm7168_vm12, 1.0, %v12775_v4  ;;  %v9333_v13 = vsel %vm7170_vm14, 1.0, %v12775_v4  ;;  %vm7173_vm1 = vcmp.eq.s32.totalorder %v7157_v47, %v13291_v7 }
0x1ba7   :  { %v6970_v59 = vadd.f32 %v10915_v53, %v9300_v34  ;;  %v6964_v35 = vpop.f32.mrb[87].mxu1  ;;  %v9334_v53 = vsel %vm7171_vm15, 1.0, %v12775_v4 }
0x1ba8   :  { %v6965_v54 = vadd.f32 %v9300_v34, %v6964_v35  ;;  %v7154_v34 = vpop.permute.xlu1 %7153  ;;  %v9336_v35 = vsel %vm7173_vm1, 1.0, %v12775_v4 }
0x1ba9   :  { %6976 = vst.msk [vmem:[#allocation5 + $0x18] sm:$0xff] %vm660_vm4, %v6970_v59  ;;  %vm7172_vm0 = vcmp.eq.s32.totalorder %v7154_v34, %v13291_v7 }
0x1baa   :  { %6975 = vst.msk [vmem:[#allocation5 + $0x10] sm:$0xff] %vm660_vm4, %v6965_v54  ;;  %v9335_v59 = vsel %vm7172_vm0, 1.0, %v12775_v4 }
0x1bac   :  { %v7211_v40 = vld [vmem:[#allocation5 + $0x8] sm:$0xff]  ;;  %v7016_v28 = vpop.permute.xlu1 %7015 }
0x1bad   :  { %v7210_v14 = vld [vmem:[#allocation5] sm:$0xff]  ;;  %vm7062_vm2 = vcmp.eq.s32.totalorder %v7016_v28, %v13291_v7 }
0x1bae   :  { %v11664_v37 = vpack.c.bf16 %v7211_v40, %v7210_v14  ;;  %v9305_v54 = vsel %vm7062_vm2, 1.0, %v12775_v4  ;;  %v7019_v40 = vpop.permute.xlu0 %7018 }
0x1baf   :  { %vm7063_vm3 = vcmp.eq.s32.totalorder %v7019_v40, %v13291_v7 }
0x1bb0   :  { %11665 = vmatprep.subr.bf16.mxu0 %v11664_v37  ;;  %v7213_v56 = vld [vmem:[#allocation5 + $0x18] sm:$0xff]  ;;  %v7022_v36 = vpop.permute.xlu1 %7021 }
0x1bb1   :  { %v7212_v18 = vld [vmem:[#allocation5 + $0x10] sm:$0xff]  ;;  %vm7064_vm5 = vcmp.eq.s32.totalorder %v7022_v36, %v13291_v7 }
0x1bb2   :  { %v11668_v55 = vpack.c.bf16 %v7213_v56, %v7212_v18  ;;  %v7025_v46 = vpop.permute.xlu0 %7024 }
0x1bb3   :  { %vm7065_vm7 = vcmp.eq.s32.totalorder %v7025_v46, %v13291_v7 }
0x1bb4   :  { %v7028_v52 = vpop.permute.xlu1 %7027 }
0x1bb5   :  { %vm7066_vm8 = vcmp.eq.s32.totalorder %v7028_v52, %v13291_v7 }
0x1bb8   :  { %v7034_v19 = vpop.permute.xlu1 %7033 }
0x1bb9   :  { %vm7068_vm10 = vcmp.eq.s32.totalorder %v7034_v19, %v13291_v7 }
0x1bba   :  { %v9311_v24 = vsel %vm7068_vm10, 1.0, %v12775_v4 }
0x1bbc   :  { %v7040_v27 = vpop.permute.xlu1 %7039 }
0x1bbd   :  { %vm7070_vm12 = vcmp.eq.s32.totalorder %v7040_v27, %v13291_v7 }
0x1bc0   :  { %v7046_v62 = vpop.permute.xlu1 %7045 }
0x1bc1   :  { %vm7072_vm14 = vcmp.eq.s32.totalorder %v7046_v62, %v13291_v7 }
0x1bc2   :  { %v9315_v34 = vsel %vm7072_vm14, 1.0, %v12775_v4 }
0x1c6c   :  { %v10868_v12 = vpop.f32.mrb[84].mxu0 }
0x1c6d   :  { %v6709_v29 = vadd.f32 %v10868_v12, %v9283_v57  ;;  %v6703_v5 = vpop.f32.mrb[85].mxu0 }
0x1c6e   :  { %v6704_v31 = vadd.f32 %v9283_v57, %v6703_v5 }
0x1c6f   :  { %6723 = vst.msk [vmem:[#allocation2 + $0x8] sm:$0xff] %vm660_vm4, %v6709_v29 }
0x1c70   :  { %6722 = vst.msk [vmem:[#allocation2] sm:$0xff] %vm660_vm4, %v6704_v31  ;;  %v10871_v39 = vpop.f32.mrb[86].mxu0 }
0x1c71   :  { %v6719_v21 = vadd.f32 %v10871_v39, %v9283_v57  ;;  %v6713_v44 = vpop.f32.mrb[87].mxu0  ;;  %v7031_v39 = vpop.permute.xlu0 %7030 }
0x1c72   :  { %v6714_v2 = vadd.f32 %v9283_v57, %v6713_v44  ;;  %v8275_v44 = vld [vmem:[#allocation37 + $0xc8] sm:$0xff]  ;;  %vm7067_vm9 = vcmp.eq.s32.totalorder %v7031_v39, %v13291_v7 }
0x1c73   :  { %6725 = vst.msk [vmem:[#allocation2 + $0x18] sm:$0xff] %vm660_vm4, %v6719_v21  ;;  %v8274_v21 = vld [vmem:[#allocation37 + $0xc0] sm:$0xff] }
0x1c74   :  { %6724 = vst.msk [vmem:[#allocation2 + $0x10] sm:$0xff] %vm660_vm4, %v6714_v2  ;;  %v11728_v56 = vpack.c.bf16 %v8275_v44, %v8274_v21 }
0x1c76   :  { %v6742_v9 = vld [vmem:[#allocation2 + $0x8] sm:$0xff] }
0x1c77   :  { %v6741_v1 = vld [vmem:[#allocation2] sm:$0xff] }
0x1c78   :  { %10888 = vmatprep.mubr.msk.f32.mxu0 %vm660_vm4, %v6741_v1  ;;  %v8276_v1 = vld [vmem:[#allocation37 + $0xd0] sm:$0xff] }
0x1c79   :  { %10889 = vmatmul.mubr.msk.f32.vlgmr.msra.gmra.mrb[88].mxu0 %vm660_vm4, %v6742_v9  ;;  %v7037_v9 = vpop.permute.xlu0 %7036  ;;  %v11732_v3 = vpack.c.bf16 %v8277_v0, %v8276_v1 }
0x1c7a   :  { %11667 = vmatpush3.bf16.msra.mxu0 %v11664_v37  ;;  %v6744_v61 = vld [vmem:[#allocation2 + $0x18] sm:$0xff]  ;;  %vm7069_vm11 = vcmp.eq.s32.totalorder %v7037_v9, %v13291_v7 }
0x1c7b   :  { %11669 = vmatprep.subr.bf16.mxu0 %v11668_v55  ;;  %v6743_v48 = vld [vmem:[#allocation2 + $0x10] sm:$0xff] }
0x1c7c   :  { %10891 = vmatprep.mubr.msk.f32.mxu0 %vm660_vm4, %v6743_v48  ;;  %v8278_v48 = vld [vmem:[#allocation37 + $0xe0] sm:$0xff] }
0x1c7d   :  { %10892 = vmatmul.mubr.msk.f32.gmra.mrb[90].mxu0 %vm660_vm4, %v6744_v61  ;;  %v8279_v61 = vld [vmem:[#allocation37 + $0xe8] sm:$0xff] }
0x1c7e   :  { %11671 = vmatpush3.bf16.msra.mxu0 %v11668_v55  ;;  %10924 = vmatprep.mubr.msk.f32.mxu0 %vm1562_vm6, %v9321_v43  ;;  %v9306_v55 = vsel %vm7063_vm3, 1.0, %v12775_v4  ;;  %v9307_v43 = vsel %vm7064_vm5, 1.0, %v12775_v4  ;;  %v11736_v10 = vpack.c.bf16 %v8279_v61, %v8278_v48 }
0x1c81   :  { %10925 = vmatmul.mubr.msk.f32.vlgmr.msra.gmra.mrb[92].mxu0 %vm1562_vm6, %v9322_v63  ;;  %v9308_v63 = vsel %vm7065_vm7, 1.0, %v12775_v4 }
0x1c82   :  { %10927 = vmatprep.mubr.msk.f32.mxu0 %vm1562_vm6, %v9323_v32  ;;  %v7043_v32 = vpop.permute.xlu0 %7042 }
0x1c83   :  { %vm7071_vm13 = vcmp.eq.s32.totalorder %v7043_v32, %v13291_v7 }
0x1c84   :  { %v9314_v25 = vsel %vm7071_vm13, 1.0, %v12775_v4 }
0x1c85   :  { %10928 = vmatmul.mubr.msk.f32.gmra.mrb[94].mxu0 %vm1562_vm6, %v9324_v16  ;;  %v8280_v16 = vld [vmem:[#allocation37 + $0xf0] sm:$0xff] }
0x1c86   :  { %10930 = vmatprep.mubr.msk.f32.mxu0 %vm1562_vm6, %v9325_v8  ;;  %v9309_v8 = vsel %vm7066_vm8, 1.0, %v12775_v4  ;;  %v7049_v60 = vpop.permute.xlu0 %7048 }
0x1c87   :  { %vm7073_vm15 = vcmp.eq.s32.totalorder %v7049_v60, %v13291_v7 }
0x1c89   :  { %10931 = vmatmul.mubr.msk.f32.gmra.mrb[96].mxu0 %vm1562_vm6, %v9326_v41  ;;  %v11740_v41 = vpack.c.bf16 %v8281_v15, %v8280_v16 }
0x1c8a   :  { %10933 = vmatprep.mubr.msk.f32.mxu0 %vm1562_vm6, %v9327_v6  ;;  %v9310_v6 = vsel %vm7067_vm9, 1.0, %v12775_v4 }
0x1c8d   :  { %10934 = vmatmul.mubr.msk.f32.gmra.mrb[98].mxu0 %vm1562_vm6, %v9328_v51  ;;  %v9312_v51 = vsel %vm7069_vm11, 1.0, %v12775_v4 }
0x1c8e   :  { %10936 = vmatprep.mubr.msk.f32.mxu0 %vm1562_vm6, %v9329_v20  ;;  %v9313_v20 = vsel %vm7070_vm12, 1.0, %v12775_v4 }
0x1c91   :  { %10937 = vmatmul.mubr.msk.f32.gmra.mrb[100].mxu0 %vm1562_vm6, %v9330_v22  ;;  %v7052_v22 = vpop.permute.xlu1 %7051 }
0x1c92   :  { %10939 = vmatprep.mubr.msk.f32.mxu0 %vm1562_vm6, %v9331_v26  ;;  %v7055_v26 = vpop.permute.xlu0 %7054  ;;  %vm7074_vm0 = vcmp.eq.s32.totalorder %v7052_v22, %v13291_v7 }
0x1c93   :  { %v9317_v47 = vsel %vm7074_vm0, 1.0, %v12775_v4  ;;  %vm7075_vm1 = vcmp.eq.s32.totalorder %v7055_v26, %v13291_v7 }
0x1c95   :  { %10940 = vmatmul.mubr.msk.f32.gmra.mrb[102].mxu0 %vm1562_vm6, %v9332_v33  ;;  %v7058_v33 = vpop.permute.xlu1 %7057 }
0x1c96   :  { %10942 = vmatprep.mubr.msk.f32.mxu0 %vm1562_vm6, %v9333_v13  ;;  %v9316_v13 = vsel %vm7073_vm15, 1.0, %v12775_v4  ;;  %vm7076_vm2 = vcmp.eq.s32.totalorder %v7058_v33, %v13291_v7  ;;  %v7061_v28 = vpop.permute.xlu0 %7060 }
0x1c97   :  { %vm7077_vm3 = vcmp.eq.s32.totalorder %v7061_v28, %v13291_v7 }
0x1c99   :  { %10943 = vmatmul.mubr.msk.f32.gmra.mrb[104].mxu0 %vm1562_vm6, %v9334_v53  ;;  %v9318_v53 = vsel %vm7075_vm1, 1.0, %v12775_v4 }
0x1c9a   :  { %10945 = vmatprep.mubr.msk.f32.mxu0 %vm1562_vm6, %v9335_v59  ;;  %v9319_v59 = vsel %vm7076_vm2, 1.0, %v12775_v4 }
0x1c9d   :  { %10946 = vmatmul.mubr.msk.f32.gmra.mrb[106].mxu0 %vm1562_vm6, %v9336_v35  ;;  %v9320_v35 = vsel %vm7077_vm3, 1.0, %v12775_v4 }
0x1c9e   :  { %10956 = vmatprep.mubr.msk.f32.mxu0 %vm1562_vm6, %v9305_v54 }
0x1d4c   :  { %v10890_v14 = vpop.f32.mrb[88].mxu0 }
0x1d4d   :  { %6852 = vst.msk [vmem:[#allocation4 + $0x8] sm:$0xff] %vm660_vm4, %v10890_v14  ;;  %v6832_v37 = vpop.f32.mrb[89].mxu0 }
0x1d4e   :  { %6851 = vst.msk [vmem:[#allocation4] sm:$0xff] %vm660_vm4, %v6832_v37 }
0x1d50   :  { %v10893_v57 = vpop.f32.mrb[90].mxu0 }
0x1d51   :  { %6854 = vst.msk [vmem:[#allocation4 + $0x18] sm:$0xff] %vm660_vm4, %v10893_v57  ;;  %v6842_v12 = vpop.f32.mrb[91].mxu0 }
0x1d52   :  { %6853 = vst.msk [vmem:[#allocation4 + $0x10] sm:$0xff] %vm660_vm4, %v6842_v12 }
0x1d54   :  { %v7207_v29 = vld [vmem:[#allocation4 + $0x8] sm:$0xff] }
0x1d55   :  { %v7206_v5 = vld [vmem:[#allocation4] sm:$0xff] }
0x1d56   :  { %v11672_v31 = vpack.c.bf16 %v7207_v29, %v7206_v5 }
0x1d58   :  { %11673 = vmatprep.subr.bf16.mxu0 %v11672_v31  ;;  %v7209_v45 = vld [vmem:[#allocation4 + $0x18] sm:$0xff] }
0x1d59   :  { %11675 = vmatpush3.bf16.msra.mxu0 %v11672_v31  ;;  %v7208_v2 = vld [vmem:[#allocation4 + $0x10] sm:$0xff] }
0x1d5a   :  { %v11676_v18 = vpack.c.bf16 %v7209_v45, %v7208_v2 }
0x1d5c   :  { %11677 = vmatprep.subr.bf16.mxu0 %v11676_v18 }
0x1d5d   :  { %11679 = vmatpush3.bf16.msra.mxu0 %v11676_v18 }
0x1d5e   :  { %11729 = vmatprep.subr.bf16.mxu0 %v11728_v56 }
0x1d60   :  { %10957 = vmatmul.mubr.msk.f32.vlgmr.msra.gmra.mrb[92].mxu0 %vm1562_vm6, %v9306_v55 }
0x1d61   :  { %10959 = vmatprep.mubr.msk.f32.mxu0 %vm1562_vm6, %v9307_v43  ;;  %11731 = vmatpush3.bf16.msra.mxu0 %v11728_v56 }
0x1d62   :  { %11733 = vmatprep.subr.bf16.mxu0 %v11732_v3 }
0x1d64   :  { %10960 = vmatmul.mubr.msk.f32.gmra.mrb[94].mxu0 %vm1562_vm6, %v9308_v63 }
0x1d65   :  { %10962 = vmatprep.mubr.msk.f32.mxu0 %vm1562_vm6, %v9309_v8  ;;  %11735 = vmatpush3.bf16.msra.mxu0 %v11732_v3 }
0x1d66   :  { %11737 = vmatprep.subr.bf16.mxu0 %v11736_v10 }
0x1d68   :  { %10963 = vmatmul.mubr.msk.f32.gmra.mrb[96].mxu0 %vm1562_vm6, %v9310_v6 }
0x1d69   :  { %10965 = vmatprep.mubr.msk.f32.mxu0 %vm1562_vm6, %v9311_v24  ;;  %11739 = vmatpush3.bf16.msra.mxu0 %v11736_v10 }
0x1d6a   :  { %11741 = vmatprep.subr.bf16.mxu0 %v11740_v41 }
0x1d6c   :  { %10966 = vmatmul.mubr.msk.f32.gmra.mrb[98].mxu0 %vm1562_vm6, %v9312_v51 }
0x1d6d   :  { %10968 = vmatprep.mubr.msk.f32.mxu0 %vm1562_vm6, %v9313_v20  ;;  %11743 = vmatpush3.bf16.msra.mxu0 %v11740_v41 }
0x1d70   :  { %10969 = vmatmul.mubr.msk.f32.gmra.mrb[100].mxu0 %vm1562_vm6, %v9314_v25 }
0x1d71   :  { %10971 = vmatprep.mubr.msk.f32.mxu0 %vm1562_vm6, %v9315_v34 }
0x1d74   :  { %10972 = vmatmul.mubr.msk.f32.gmra.mrb[102].mxu0 %vm1562_vm6, %v9316_v13 }
0x1d75   :  { %10974 = vmatprep.mubr.msk.f32.mxu0 %vm1562_vm6, %v9317_v47 }
0x1d78   :  { %10975 = vmatmul.mubr.msk.f32.gmra.mrb[104].mxu0 %vm1562_vm6, %v9318_v53 }
0x1d79   :  { %10977 = vmatprep.mubr.msk.f32.mxu0 %vm1562_vm6, %v9319_v59 }
0x1d7c   :  { %10978 = vmatmul.mubr.msk.f32.gmra.mrb[106].mxu0 %vm1562_vm6, %v9320_v35 }
0x1d7d   :  { %11074 = vmatprep.mubr.msk.f32.mxu0 %vm660_vm4, %v14630_v11 }
0x1d80   :  { %11075 = vmatmul.mubr.msk.f32.vlgmr.msra.gmra.mrb[108].mxu0 %vm660_vm4, %v14634_v30 }
0x1d81   :  { %11077 = vmatprep.mubr.msk.f32.mxu0 %vm660_vm4, %v14638_v58 }
0x1d84   :  { %11078 = vmatmul.mubr.msk.f32.gmra.mrb[110].mxu0 %vm660_vm4, %v14642_v38 }
0x1e33   :  { %v10958_v7 = vpop.f32.mrb[92].mxu0 }
0x1e34   :  { %v7521_v54 = vpop.f32.mrb[93].mxu0  ;;  %v7603_v40 = vsel %vm660_vm4, %v10958_v7, 0.0 }
0x1e35   :  { %7604 = vadd.xlane.f32.xlu0 %v7603_v40  ;;  %v7600_v4 = vsel %vm660_vm4, %v7521_v54, 0.0 }
0x1e36   :  { %7601 = vadd.xlane.f32.xlu1 %v7600_v4 }
0x1e37   :  { %v10961_v14 = vpop.f32.mrb[94].mxu0 }
0x1e38   :  { %v7531_v37 = vpop.f32.mrb[95].mxu0  ;;  %v7609_v11 = vsel %vm660_vm4, %v10961_v14, 0.0 }
0x1e39   :  { %v7606_v30 = vsel %vm660_vm4, %v7531_v37, 0.0 }
0x1e3a   :  { %7610 = vadd.xlane.f32.xlu1 %v7609_v11  ;;  %7607 = vadd.xlane.f32.xlu0 %v7606_v30 }
0x1e3b   :  { %v10964_v58 = vpop.f32.mrb[96].mxu0 }
0x1e3c   :  { %v7541_v36 = vpop.f32.mrb[97].mxu0  ;;  %v7615_v38 = vsel %vm660_vm4, %v10964_v58, 0.0 }
0x1e3d   :  { %v7612_v57 = vsel %vm660_vm4, %v7541_v36, 0.0 }
0x1e3e   :  { %7616 = vadd.xlane.f32.xlu1 %v7615_v38  ;;  %7613 = vadd.xlane.f32.xlu0 %v7612_v57 }
0x1e3f   :  { %v14784_v46 = vpop.f32.mrb[98].mxu0 }
0x1e40   :  { %v14786_v12 = vpop.f32.mrb[99].mxu0  ;;  %v7621_v52 = vsel %vm660_vm4, %v14784_v46, 0.0 }
0x1e41   :  { %v7618_v29 = vsel %vm660_vm4, %v14786_v12, 0.0 }
0x1e42   :  { %7622 = vadd.xlane.f32.xlu1 %v7621_v52  ;;  %7619 = vadd.xlane.f32.xlu0 %v7618_v29 }
0x1e43   :  { %v14792_v5 = vpop.f32.mrb[100].mxu0 }
0x1e44   :  { %v14794_v31 = vpop.f32.mrb[101].mxu0  ;;  %v7627_v39 = vsel %vm660_vm4, %v14792_v5, 0.0 }
0x1e45   :  { %v7624_v21 = vsel %vm660_vm4, %v14794_v31, 0.0 }
0x1e46   :  { %7628 = vadd.xlane.f32.xlu1 %v7627_v39  ;;  %7625 = vadd.xlane.f32.xlu0 %v7624_v21 }
0x1e47   :  { %v14800_v44 = vpop.f32.mrb[102].mxu0 }
0x1e48   :  { %v14802_v45 = vpop.f32.mrb[103].mxu0  ;;  %v7633_v2 = vsel %vm660_vm4, %v14800_v44, 0.0 }
0x1e49   :  { %v7630_v19 = vsel %vm660_vm4, %v14802_v45, 0.0 }
0x1e4a   :  { %7634 = vadd.xlane.f32.xlu1 %v7633_v2  ;;  %7631 = vadd.xlane.f32.xlu0 %v7630_v19 }
0x1e4b   :  { %v14808_v18 = vpop.f32.mrb[104].mxu0 }
0x1e4c   :  { %v14810_v56 = vpop.f32.mrb[105].mxu0  ;;  %v7639_v1 = vsel %vm660_vm4, %v14808_v18, 0.0 }
0x1e4d   :  { %v7636_v0 = vsel %vm660_vm4, %v14810_v56, 0.0 }
0x1e4e   :  { %7640 = vadd.xlane.f32.xlu1 %v7639_v1  ;;  %7637 = vadd.xlane.f32.xlu0 %v7636_v0 }
0x1e4f   :  { %v14816_v9 = vpop.f32.mrb[106].mxu0 }
0x1e50   :  { %v14818_v3 = vpop.f32.mrb[107].mxu0  ;;  %v7645_v55 = vsel %vm660_vm4, %v14816_v9, 0.0 }
0x1e51   :  { %v7642_v48 = vsel %vm660_vm4, %v14818_v3, 0.0 }
0x1e52   :  { %7646 = vadd.xlane.f32.xlu1 %v7645_v55  ;;  %7643 = vadd.xlane.f32.xlu0 %v7642_v48 }
0x1ec2   :  { %v7605_v61 = vpop.xlane.xlu0 %7604 }
0x1ec3   :  { %v7649_v43 = vmul.f32 0.015625, %v7605_v61  ;;  %v7602_v27 = vpop.xlane.xlu1 %7601 }
0x1ec4   :  { %v7648_v10 = vmul.f32 0.015625, %v7602_v27 }
0x1ec5   :  { %v14824_v63 = vsub.f32 %v10958_v7, %v7649_v43 }
0x1ec6   :  { %v14826_v32 = vsub.f32 %v7521_v54, %v7648_v10 }
0x1ec7   :  { %v7611_v16 = vpop.xlane.xlu1 %7610  ;;  %v7608_v15 = vpop.xlane.xlu0 %7607  ;;  %v7681_v8 = vmul.f32 %v14824_v63, %v14824_v63 }
0x1ec8   :  { %v7651_v62 = vmul.f32 0.015625, %v7611_v16  ;;  %v7650_v41 = vmul.f32 0.015625, %v7608_v15  ;;  %v7680_v6 = vmul.f32 %v14826_v32, %v14826_v32 }
0x1ec9   :  { %v7699_v24 = vsel %vm660_vm4, %v7681_v8, 0.0 }
0x1eca   :  { %v14833_v60 = vsub.f32 %v10961_v14, %v7651_v62  ;;  %v14835_v51 = vsub.f32 %v7531_v37, %v7650_v41  ;;  %7700 = vadd.xlane.f32.xlu1 %v7699_v24  ;;  %v7696_v20 = vsel %vm660_vm4, %v7680_v6, 0.0 }
0x1ecb   :  { %v7617_v22 = vpop.xlane.xlu1 %7616  ;;  %7697 = vadd.xlane.f32.xlu0 %v7696_v20  ;;  %v7614_v25 = vpop.xlane.xlu0 %7613 }
0x1ecc   :  { %v7653_v26 = vmul.f32 0.015625, %v7617_v22  ;;  %v7652_v34 = vmul.f32 0.015625, %v7614_v25  ;;  %v7683_v33 = vmul.f32 %v14833_v60, %v14833_v60  ;;  %v7682_v13 = vmul.f32 %v14835_v51, %v14835_v51  ;;  %v6731_v25 = vld [vmem:[#allocation29 + $0xc0] sm:$0xff] }
0x1ece   :  { %v14842_v47 = vsub.f32 %v10964_v58, %v7653_v26  ;;  %v14844_v28 = vsub.f32 %v7541_v36, %v7652_v34  ;;  %v7705_v53 = vsel %vm660_vm4, %v7683_v33, 0.0  ;;  %v7702_v59 = vsel %vm660_vm4, %v7682_v13, 0.0  ;;  %v6732_v26 = vld [vmem:[#allocation29 + $0xc8] sm:$0xff] }
0x1ecf   :  { %v7623_v35 = vpop.xlane.xlu1 %7622  ;;  %7706 = vadd.xlane.f32.xlu1 %v7705_v53  ;;  %7703 = vadd.xlane.f32.xlu0 %v7702_v59  ;;  %v7620_v7 = vpop.xlane.xlu0 %7619 }
0x1ed0   :  { %v7655_v54 = vmul.f32 0.015625, %v7623_v35  ;;  %v7654_v40 = vmul.f32 0.015625, %v7620_v7  ;;  %v7685_v4 = vmul.f32 %v14842_v47, %v14842_v47  ;;  %v7684_v14 = vmul.f32 %v14844_v28, %v14844_v28 }
0x1ed2   :  { %v14853_v37 = vsub.f32 %v14784_v46, %v7655_v54  ;;  %v14856_v11 = vsub.f32 %v14786_v12, %v7654_v40  ;;  %v7711_v30 = vsel %vm660_vm4, %v7685_v4, 0.0  ;;  %v7708_v58 = vsel %vm660_vm4, %v7684_v14, 0.0  ;;  %v6733_v54 = vld [vmem:[#allocation29 + $0xd0] sm:$0xff]  ;;  %v6734_v40 = vld [vmem:[#allocation29 + $0xd8] sm:$0xff] }
0x1ed3   :  { %v7629_v36 = vpop.xlane.xlu1 %7628  ;;  %7712 = vadd.xlane.f32.xlu1 %v7711_v30  ;;  %7709 = vadd.xlane.f32.xlu0 %v7708_v58  ;;  %v7626_v38 = vpop.xlane.xlu0 %7625  ;;  %v6735_v58 = vld [vmem:[#allocation29 + $0xe0] sm:$0xff] }
0x1ed4   :  { %v7657_v57 = vmul.f32 0.015625, %v7629_v36  ;;  %v7656_v52 = vmul.f32 0.015625, %v7626_v38  ;;  %v7687_v29 = vmul.f32 %v14853_v37, %v14853_v37  ;;  %v7686_v46 = vmul.f32 %v14856_v11, %v14856_v11  ;;  %v6736_v36 = vld [vmem:[#allocation29 + $0xe8] sm:$0xff] }
0x1ed5   :  { %v11688_v38 = vpack.c.bf16 %v6736_v36, %v6735_v58 }
0x1ed6   :  { %v14865_v39 = vsub.f32 %v14792_v5, %v7657_v57  ;;  %v14868_v12 = vsub.f32 %v14794_v31, %v7656_v52  ;;  %v7717_v21 = vsel %vm660_vm4, %v7687_v29, 0.0  ;;  %v7714_v2 = vsel %vm660_vm4, %v7686_v46, 0.0  ;;  %v6737_v57 = vld [vmem:[#allocation29 + $0xf0] sm:$0xff]  ;;  %v6738_v52 = vld [vmem:[#allocation29 + $0xf8] sm:$0xff] }
0x1ed7   :  { %v7635_v19 = vpop.xlane.xlu1 %7634  ;;  %7718 = vadd.xlane.f32.xlu1 %v7717_v21  ;;  %7715 = vadd.xlane.f32.xlu0 %v7714_v2  ;;  %v7632_v1 = vpop.xlane.xlu0 %7631  ;;  %v11692_v29 = vpack.c.bf16 %v6738_v52, %v6737_v57 }
0x1ed8   :  { %v7659_v0 = vmul.f32 0.015625, %v7635_v19  ;;  %v7658_v55 = vmul.f32 0.015625, %v7632_v1  ;;  %v7689_v48 = vmul.f32 %v14865_v39, %v14865_v39  ;;  %v7688_v5 = vmul.f32 %v14868_v12, %v14868_v12 }
0x1eda   :  { %v14877_v61 = vsub.f32 %v14800_v44, %v7659_v0  ;;  %v14880_v31 = vsub.f32 %v14802_v45, %v7658_v55  ;;  %v7723_v43 = vsel %vm660_vm4, %v7689_v48, 0.0  ;;  %v7720_v27 = vsel %vm660_vm4, %v7688_v5, 0.0 }
0x1edb   :  { %v7641_v10 = vpop.xlane.xlu1 %7640  ;;  %7724 = vadd.xlane.f32.xlu1 %v7723_v43  ;;  %7721 = vadd.xlane.f32.xlu0 %v7720_v27  ;;  %v7638_v16 = vpop.xlane.xlu0 %7637 }
0x1edc   :  { %v7661_v15 = vmul.f32 0.015625, %v7641_v10  ;;  %v7660_v8 = vmul.f32 0.015625, %v7638_v16  ;;  %v7691_v62 = vmul.f32 %v14877_v61, %v14877_v61  ;;  %v7690_v44 = vmul.f32 %v14880_v31, %v14880_v31 }
0x1ede   :  { %v14889_v41 = vsub.f32 %v14808_v18, %v7661_v15  ;;  %v14892_v45 = vsub.f32 %v14810_v56, %v7660_v8  ;;  %v7729_v6 = vsel %vm660_vm4, %v7691_v62, 0.0  ;;  %v7726_v24 = vsel %vm660_vm4, %v7690_v44, 0.0 }
0x1edf   :  { %v7647_v20 = vpop.xlane.xlu1 %7646  ;;  %7730 = vadd.xlane.f32.xlu1 %v7729_v6  ;;  %7727 = vadd.xlane.f32.xlu0 %v7726_v24  ;;  %v7644_v22 = vpop.xlane.xlu0 %7643  ;;  %v11680_v56 = vpack.c.bf16 %v6732_v26, %v6731_v25 }
0x1ee0   :  { %v7663_v34 = vmul.f32 0.015625, %v7647_v20  ;;  %v7662_v33 = vmul.f32 0.015625, %v7644_v22  ;;  %v7693_v13 = vmul.f32 %v14889_v41, %v14889_v41  ;;  %v7692_v18 = vmul.f32 %v14892_v45, %v14892_v45 }
0x1ee1   :  { %11681 = vmatprep.subr.bf16.mxu1 %v11680_v56 }
0x1ee2   :  { %v14901_v53 = vsub.f32 %v14816_v9, %v7663_v34  ;;  %v14904_v59 = vsub.f32 %v14818_v3, %v7662_v33  ;;  %v7735_v35 = vsel %vm660_vm4, %v7693_v13, 0.0  ;;  %v7732_v7 = vsel %vm660_vm4, %v7692_v18, 0.0  ;;  %11683 = vmatpush3.bf16.msra.mxu1 %v11680_v56  ;;  %v14914_v34 = vld [vmem:[#allocation26 + $0x3] ss:$0 sm:$0xff] }
0x1ee3   :  { %7736 = vadd.xlane.f32.xlu1 %v7735_v35  ;;  %7733 = vadd.xlane.f32.xlu0 %v7732_v7  ;;  %v11684_v9 = vpack.c.bf16 %v6734_v40, %v6733_v54  ;;  %v14917_v35 = vld [vmem:[#allocation28 + $0x3] ss:$0 sm:$0xff] }
0x1ee4   :  { %v7695_v4 = vmul.f32 %v14901_v53, %v14901_v53  ;;  %v7694_v14 = vmul.f32 %v14904_v59, %v14904_v59 }
0x1ee5   :  { %11685 = vmatprep.subr.bf16.mxu1 %v11684_v9 }
0x1ee6   :  { %v7741_v3 = vsel %vm660_vm4, %v7695_v4, 0.0  ;;  %v7738_v30 = vsel %vm660_vm4, %v7694_v14, 0.0  ;;  %11687 = vmatpush3.bf16.msra.mxu1 %v11684_v9 }
0x1ee7   :  { %7742 = vadd.xlane.f32.xlu1 %v7741_v3  ;;  %7739 = vadd.xlane.f32.xlu0 %v7738_v30 }
0x1ee8   :  { %11689 = vmatprep.subr.bf16.mxu1 %v11688_v38 }
0x1eea   :  { %11691 = vmatpush3.bf16.msra.mxu1 %v11688_v38 }
0x1eeb   :  { %11693 = vmatprep.subr.bf16.mxu1 %v11692_v29 }
0x1eee   :  { %11695 = vmatpush3.bf16.msra.mxu1 %v11692_v29 }
0x1f57   :  { %v7701_v46 = vpop.xlane.xlu1 %7700 }
0x1f58   :  { %v7745_v21 = vmul.f32 0.015625, %v7701_v46  ;;  %v7698_v2 = vpop.xlane.xlu0 %7697 }
0x1f59   :  { %v7744_v19 = vmul.f32 0.015625, %v7698_v2 }
0x1f5a   :  { %v7761_v1 = vadd.f32 1e-05, %v7745_v21 }
0x1f5b   :  { %v7760_v0 = vadd.f32 1e-05, %v7744_v19 }
0x1f5c   :  { %12093 = vrsqrt.f32 %v7761_v1  ;;  %v7707_v55 = vpop.xlane.xlu1 %7706  ;;  %v7704_v48 = vpop.xlane.xlu0 %7703 }
0x1f5d   :  { %12095 = vrsqrt.f32 %v7760_v0  ;;  %v7747_v5 = vmul.f32 0.015625, %v7707_v55  ;;  %v7746_v43 = vmul.f32 0.015625, %v7704_v48 }
0x1f5f   :  { %v7763_v27 = vadd.f32 1e-05, %v7747_v5  ;;  %v7762_v10 = vadd.f32 1e-05, %v7746_v43 }
0x1f60   :  { %v7713_v16 = vpop.xlane.xlu1 %7712  ;;  %v7710_v15 = vpop.xlane.xlu0 %7709 }
0x1f61   :  { %12097 = vrsqrt.f32 %v7763_v27  ;;  %v7749_v8 = vmul.f32 0.015625, %v7713_v16  ;;  %v7748_v62 = vmul.f32 0.015625, %v7710_v15 }
0x1f62   :  { %12099 = vrsqrt.f32 %v7762_v10 }
0x1f63   :  { %v7765_v44 = vadd.f32 1e-05, %v7749_v8  ;;  %v7764_v6 = vadd.f32 1e-05, %v7748_v62 }
0x1f64   :  { %v7719_v24 = vpop.xlane.xlu1 %7718  ;;  %v7716_v20 = vpop.xlane.xlu0 %7715 }
0x1f65   :  { %12101 = vrsqrt.f32 %v7765_v44  ;;  %v7751_v22 = vmul.f32 0.015625, %v7719_v24  ;;  %v7750_v25 = vmul.f32 0.015625, %v7716_v20 }
0x1f66   :  { %v12094_v26 = vpop.eup %12093  ;;  %12103 = vrsqrt.f32 %v7764_v6 }
0x1f67   :  { %v12096_v33 = vpop.eup %12095  ;;  %v7793_v13 = vmul.f32 %v12094_v26, %v14824_v63  ;;  %v7767_v18 = vadd.f32 1e-05, %v7751_v22  ;;  %v7766_v56 = vadd.f32 1e-05, %v7750_v25 }
0x1f68   :  { %v7725_v7 = vpop.xlane.xlu1 %7724  ;;  %v7722_v54 = vpop.xlane.xlu0 %7721  ;;  %v7792_v40 = vmul.f32 %v12096_v33, %v14826_v32 }
0x1f69   :  { %v7815_v4 = vmul.f32 %v14914_v34, %v7793_v13  ;;  %12105 = vrsqrt.f32 %v7767_v18  ;;  %v7753_v14 = vmul.f32 0.015625, %v7725_v7  ;;  %v7752_v9 = vmul.f32 0.015625, %v7722_v54 }
0x1f6a   :  { %12107 = vrsqrt.f32 %v7766_v56  ;;  %v7814_v3 = vmul.f32 %v14914_v34, %v7792_v40 }
0x1f6b   :  { %v12098_v30 = vpop.eup %12097  ;;  %v7837_v58 = vadd.f32 %v14917_v35, %v7815_v4  ;;  %v7769_v63 = vadd.f32 1e-05, %v7753_v14  ;;  %v7768_v36 = vadd.f32 1e-05, %v7752_v9 }
0x1f6c   :  { %v12100_v38 = vpop.eup %12099  ;;  %v7731_v57 = vpop.xlane.xlu1 %7730  ;;  %v7836_v29 = vadd.f32 %v14917_v35, %v7814_v3  ;;  %v7795_v32 = vmul.f32 %v12098_v30, %v14833_v60 }
0x1f6d   :  { %v7728_v52 = vpop.xlane.xlu0 %7727  ;;  %12109 = vrsqrt.f32 %v7769_v63  ;;  %v7755_v46 = vmul.f32 0.015625, %v7731_v57  ;;  %v7794_v19 = vmul.f32 %v12100_v38, %v14835_v51  ;;  %v7853_v55 = vmax.f32 %v7837_v58, 0.0 }
0x1f6e   :  { %v7754_v21 = vmul.f32 0.015625, %v7728_v52  ;;  %12111 = vrsqrt.f32 %v7768_v36  ;;  %v7852_v2 = vmax.f32 %v7836_v29, 0.0  ;;  %v7817_v1 = vmul.f32 %v14914_v34, %v7795_v32 }
0x1f6f   :  { %v12102_v0 = vpop.eup %12101  ;;  %v7771_v48 = vadd.f32 1e-05, %v7755_v46  ;;  %v7816_v60 = vmul.f32 %v14914_v34, %v7794_v19 }
0x1f70   :  { %v7770_v5 = vadd.f32 1e-05, %v7754_v21  ;;  %v12104_v43 = vpop.eup %12103  ;;  %v7737_v27 = vpop.xlane.xlu1 %7736  ;;  %10996 = vmatprep.mubr.msk.f32.mxu1 %vm660_vm4, %v7852_v2  ;;  %v7839_v16 = vadd.f32 %v14917_v35, %v7817_v1  ;;  %v7797_v15 = vmul.f32 %v12102_v0, %v14842_v47 }
0x1f71   :  { %v7734_v10 = vpop.xlane.xlu0 %7733  ;;  %12113 = vrsqrt.f32 %v7771_v48  ;;  %v7757_v8 = vmul.f32 0.015625, %v7737_v27  ;;  %10997 = vmatmul.mubr.msk.f32.vlgmr.msra.gmra.mrb[88].mxu1 %vm660_vm4, %v7853_v55  ;;  %v7796_v62 = vmul.f32 %v12104_v43, %v14844_v28  ;;  %v7838_v44 = vadd.f32 %v14917_v35, %v7816_v60 }
0x1f72   :  { %v7756_v51 = vmul.f32 0.015625, %v7734_v10  ;;  %12115 = vrsqrt.f32 %v7770_v5  ;;  %v7819_v6 = vmul.f32 %v14914_v34, %v7797_v15  ;;  %v7855_v25 = vmax.f32 %v7839_v16, 0.0 }
0x1f73   :  { %v12106_v24 = vpop.eup %12105  ;;  %v7773_v20 = vadd.f32 1e-05, %v7757_v8  ;;  %v7818_v26 = vmul.f32 %v14914_v34, %v7796_v62  ;;  %v7854_v13 = vmax.f32 %v7838_v44, 0.0 }
0x1f74   :  { %v7772_v22 = vadd.f32 1e-05, %v7756_v51  ;;  %v12108_v33 = vpop.eup %12107  ;;  %v7743_v47 = vpop.xlane.xlu1 %7742  ;;  %v7841_v56 = vadd.f32 %v14917_v35, %v7819_v6  ;;  %v7799_v7 = vmul.f32 %v12106_v24, %v14853_v37 }
0x1f75   :  { %v7740_v18 = vpop.xlane.xlu0 %7739  ;;  %12117 = vrsqrt.f32 %v7773_v20  ;;  %v7759_v28 = vmul.f32 0.015625, %v7743_v47  ;;  %v7840_v40 = vadd.f32 %v14917_v35, %v7818_v26  ;;  %10999 = vmatprep.mubr.msk.f32.mxu1 %vm660_vm4, %v7854_v13  ;;  %v7798_v4 = vmul.f32 %v12108_v33, %v14856_v11 }
0x1f76   :  { %v7758_v54 = vmul.f32 0.015625, %v7740_v18  ;;  %12119 = vrsqrt.f32 %v7772_v22  ;;  %v7821_v14 = vmul.f32 %v14914_v34, %v7799_v7  ;;  %11000 = vmatmul.mubr.msk.f32.gmra.mrb[90].mxu1 %vm660_vm4, %v7855_v25  ;;  %v7857_v63 = vmax.f32 %v7841_v56, 0.0 }
0x1f77   :  { %v12110_v9 = vpop.eup %12109  ;;  %v7775_v3 = vadd.f32 1e-05, %v7759_v28  ;;  %v7856_v58 = vmax.f32 %v7840_v40, 0.0  ;;  %v7820_v36 = vmul.f32 %v14914_v34, %v7798_v4 }
0x1f78   :  { %v7774_v30 = vadd.f32 1e-05, %v7758_v54  ;;  %v12112_v37 = vpop.eup %12111  ;;  %v7843_v38 = vadd.f32 %v14917_v35, %v7821_v14  ;;  %v7801_v57 = vmul.f32 %v12110_v9, %v14865_v39 }
0x1f79   :  { %12121 = vrsqrt.f32 %v7775_v3  ;;  %11002 = vmatprep.mubr.msk.f32.mxu1 %vm660_vm4, %v7856_v58  ;;  %v7800_v11 = vmul.f32 %v12112_v37, %v14868_v12  ;;  %v7842_v52 = vadd.f32 %v14917_v35, %v7820_v36 }
0x1f7a   :  { %12123 = vrsqrt.f32 %v7774_v30  ;;  %v7823_v29 = vmul.f32 %v14914_v34, %v7801_v57  ;;  %11003 = vmatmul.mubr.msk.f32.gmra.mrb[92].mxu1 %vm660_vm4, %v7857_v63  ;;  %v7859_v46 = vmax.f32 %v7843_v38, 0.0 }
0x1f7b   :  { %v12114_v32 = vpop.eup %12113  ;;  %v7822_v21 = vmul.f32 %v14914_v34, %v7800_v11  ;;  %v7858_v19 = vmax.f32 %v7842_v52, 0.0 }
0x1f7c   :  { %v12116_v2 = vpop.eup %12115  ;;  %v7845_v39 = vadd.f32 %v14917_v35, %v7823_v29  ;;  %v7803_v1 = vmul.f32 %v12114_v32, %v14877_v61 }
0x1f7d   :  { %v7844_v0 = vadd.f32 %v14917_v35, %v7822_v21  ;;  %v7802_v12 = vmul.f32 %v12116_v2, %v14880_v31  ;;  %11005 = vmatprep.mubr.msk.f32.mxu1 %vm660_vm4, %v7858_v19 }
0x1f7e   :  { %v7825_v55 = vmul.f32 %v14914_v34, %v7803_v1  ;;  %11006 = vmatmul.mubr.msk.f32.gmra.mrb[94].mxu1 %vm660_vm4, %v7859_v46  ;;  %v7861_v43 = vmax.f32 %v7845_v39, 0.0 }
0x1f7f   :  { %v12118_v48 = vpop.eup %12117  ;;  %v7860_v5 = vmax.f32 %v7844_v0, 0.0  ;;  %v7824_v27 = vmul.f32 %v14914_v34, %v7802_v12 }
0x1f80   :  { %v12120_v10 = vpop.eup %12119  ;;  %v7847_v60 = vadd.f32 %v14917_v35, %v7825_v55  ;;  %v7805_v61 = vmul.f32 %v12118_v48, %v14889_v41 }
0x1f81   :  { %11008 = vmatprep.mubr.msk.f32.mxu1 %vm660_vm4, %v7860_v5  ;;  %v7846_v31 = vadd.f32 %v14917_v35, %v7824_v27  ;;  %v7804_v16 = vmul.f32 %v12120_v10, %v14892_v45 }
0x1f82   :  { %v7827_v15 = vmul.f32 %v14914_v34, %v7805_v61  ;;  %11009 = vmatmul.mubr.msk.f32.gmra.mrb[96].mxu1 %vm660_vm4, %v7861_v43  ;;  %v7863_v62 = vmax.f32 %v7847_v60, 0.0 }
0x1f83   :  { %v12122_v8 = vpop.eup %12121  ;;  %v7862_v51 = vmax.f32 %v7846_v31, 0.0  ;;  %v7826_v44 = vmul.f32 %v14914_v34, %v7804_v16 }
0x1f84   :  { %v12124_v6 = vpop.eup %12123  ;;  %v7849_v24 = vadd.f32 %v14917_v35, %v7827_v15  ;;  %v7807_v41 = vmul.f32 %v12122_v8, %v14901_v53  ;;  %v8084_v15 = vld [vmem:[#allocation7 + $0x8] sm:$0xff]  ;;  %v8083_v8 = vld [vmem:[#allocation7] sm:$0xff] }
0x1f85   :  { %11011 = vmatprep.mubr.msk.f32.mxu1 %vm660_vm4, %v7862_v51  ;;  %v7848_v20 = vadd.f32 %v14917_v35, %v7826_v44  ;;  %v7806_v45 = vmul.f32 %v12124_v6, %v14904_v59  ;;  %v14983_v59 = vld [vmem:[%s15113_s23] ss:$0 sm:$0xff] }
0x1f86   :  { %v7829_v22 = vmul.f32 %v14914_v34, %v7807_v41  ;;  %11012 = vmatmul.mubr.msk.f32.gmra.mrb[98].mxu1 %vm660_vm4, %v7863_v62  ;;  %v7865_v26 = vmax.f32 %v7849_v24, 0.0  ;;  %vm8071_vm6 = vcmp.eq.s32.totalorder %v14983_v59, %v13638_v50  ;;  %vm8072_vm5 = vcmp.eq.s32.totalorder %v14983_v59, %v13647_v17  ;;  %v8086_v24 = vld [vmem:[#allocation7 + $0x18] sm:$0xff]  ;;  %v8085_v17 = vld [vmem:[#allocation7 + $0x10] sm:$0xff] }
0x1f87   :  { %v7864_v25 = vmax.f32 %v7848_v20, 0.0  ;;  %v7828_v33 = vmul.f32 %v14914_v34, %v7806_v45  ;;  %v9371_v34 = vld [vmem:[#allocation31 + $0x3] ss:$0 sm:$0xff]  ;;  %vm8073_vm7 = vcmp.eq.s32.totalorder %v14983_v59, %v13650_v49  ;;  %vm8074_vm8 = vcmp.eq.s32.totalorder %v14983_v59, %v13655_v23 }
0x1f88   :  { %v7851_v47 = vadd.f32 %v14917_v35, %v7829_v22 }
0x1f89   :  { %11014 = vmatprep.mubr.msk.f32.mxu1 %vm660_vm4, %v7864_v25  ;;  %v7850_v53 = vadd.f32 %v14917_v35, %v7828_v33 }
0x1f8a   :  { %11015 = vmatmul.mubr.msk.f32.gmra.mrb[100].mxu1 %vm660_vm4, %v7865_v26  ;;  %v7867_v18 = vmax.f32 %v7851_v47, 0.0 }
0x1f8b   :  { %v7866_v13 = vmax.f32 %v7850_v53, 0.0 }
0x1f8d   :  { %11017 = vmatprep.mubr.msk.f32.mxu1 %vm660_vm4, %v7866_v13 }
0x1f8e   :  { %11018 = vmatmul.mubr.msk.f32.gmra.mrb[102].mxu1 %vm660_vm4, %v7867_v18 }
0x1f8f   :  { %11052 = vmatprep.mubr.msk.f32.mxu1 %vm8071_vm6, %v12776_v42 }
0x2044   :  { %v10998_v56 = vpop.f32.mrb[88].mxu1 }
0x2045   :  { %v7994_v7 = vadd.f32 %v10998_v56, %v9371_v34  ;;  %v7988_v28 = vpop.f32.mrb[89].mxu1 }
0x2046   :  { %v7989_v35 = vadd.f32 %v9371_v34, %v7988_v28 }
0x2048   :  { %v11696_v54 = vpack.c.bf16 %v7994_v7, %v7989_v35 }
0x2049   :  { %v11001_v40 = vpop.f32.mrb[90].mxu1 }
0x204a   :  { %11697 = vmatprep.subr.bf16.mxu1 %v11696_v54  ;;  %v8004_v4 = vadd.f32 %v11001_v40, %v9371_v34  ;;  %v7998_v14 = vpop.f32.mrb[91].mxu1 }
0x204b   :  { %11699 = vmatpush3.bf16.msra.mxu1 %v11696_v54  ;;  %v7999_v9 = vadd.f32 %v9371_v34, %v7998_v14 }
0x204d   :  { %v11700_v3 = vpack.c.bf16 %v8004_v4, %v7999_v9  ;;  %v11004_v30 = vpop.f32.mrb[92].mxu1 }
0x204e   :  { %v8014_v58 = vadd.f32 %v11004_v30, %v9371_v34  ;;  %v8008_v63 = vpop.f32.mrb[93].mxu1 }
0x204f   :  { %v8009_v37 = vadd.f32 %v9371_v34, %v8008_v63  ;;  %11701 = vmatprep.subr.bf16.mxu1 %v11700_v3 }
0x2050   :  { %11703 = vmatpush3.bf16.msra.mxu1 %v11700_v3 }
0x2051   :  { %v11704_v50 = vpack.c.bf16 %v8014_v58, %v8009_v37  ;;  %v11007_v36 = vpop.f32.mrb[94].mxu1 }
0x2052   :  { %v8024_v38 = vadd.f32 %v11007_v36, %v9371_v34  ;;  %v8018_v57 = vpop.f32.mrb[95].mxu1 }
0x2053   :  { %v8019_v11 = vadd.f32 %v9371_v34, %v8018_v57  ;;  %11705 = vmatprep.subr.bf16.mxu1 %v11704_v50  ;;  %v8262_v57 = vld [vmem:[#allocation35 + $0xc8] sm:$0xff] }
0x2054   :  { %11707 = vmatpush3.bf16.msra.mxu1 %v11704_v50 }
0x2055   :  { %v11708_v52 = vpack.c.bf16 %v8024_v38, %v8019_v11  ;;  %v11010_v29 = vpop.f32.mrb[96].mxu1  ;;  %v8261_v38 = vld [vmem:[#allocation35 + $0xc0] sm:$0xff] }
0x2056   :  { %v8034_v32 = vadd.f32 %v11010_v29, %v9371_v34  ;;  %v8028_v46 = vpop.f32.mrb[97].mxu1  ;;  %v11744_v11 = vpack.c.bf16 %v8262_v57, %v8261_v38  ;;  %v8264_v29 = vld [vmem:[#allocation35 + $0xd8] sm:$0xff] }
0x2057   :  { %v8029_v21 = vadd.f32 %v9371_v34, %v8028_v46  ;;  %11709 = vmatprep.subr.bf16.mxu1 %v11708_v52  ;;  %v8265_v46 = vld [vmem:[#allocation35 + $0xe0] sm:$0xff] }
0x2058   :  { %11711 = vmatpush3.bf16.msra.mxu1 %v11708_v52  ;;  %11745 = vmatprep.subr.bf16.mxu0 %v11744_v11  ;;  %v8263_v52 = vld [vmem:[#allocation35 + $0xd0] sm:$0xff] }
0x2059   :  { %v11712_v2 = vpack.c.bf16 %v8034_v32, %v8029_v21  ;;  %v11013_v19 = vpop.f32.mrb[98].mxu1  ;;  %11747 = vmatpush3.bf16.msra.mxu0 %v11744_v11  ;;  %v11748_v32 = vpack.c.bf16 %v8264_v29, %v8263_v52  ;;  %v8266_v21 = vld [vmem:[#allocation35 + $0xe8] sm:$0xff] }
0x205a   :  { %v8044_v39 = vadd.f32 %v11013_v19, %v9371_v34  ;;  %v8038_v1 = vpop.f32.mrb[99].mxu1  ;;  %v8267_v19 = vld [vmem:[#allocation35 + $0xf0] sm:$0xff] }
0x205b   :  { %v8039_v0 = vadd.f32 %v9371_v34, %v8038_v1  ;;  %11713 = vmatprep.subr.bf16.mxu1 %v11712_v2  ;;  %11749 = vmatprep.subr.bf16.mxu0 %v11748_v32 }
0x205c   :  { %11715 = vmatpush3.bf16.msra.mxu1 %v11712_v2  ;;  %v11752_v2 = vpack.c.bf16 %v8266_v21, %v8265_v46  ;;  %v8610_v21 = vld [vmem:[%s12946_s19 + $0x20] sm:$0xff] }
0x205d   :  { %v11716_v12 = vpack.c.bf16 %v8044_v39, %v8039_v0  ;;  %v11016_v55 = vpop.f32.mrb[100].mxu1  ;;  %11751 = vmatpush3.bf16.msra.mxu0 %v11748_v32  ;;  %v8268_v39 = vld [vmem:[#allocation35 + $0xf8] sm:$0xff]  ;;  %v8493_v0 = vld [vmem:[#allocation40 + $0xc0] sm:$0xff] }
0x205e   :  { %v8054_v48 = vadd.f32 %v11016_v55, %v9371_v34  ;;  %v8048_v5 = vpop.f32.mrb[101].mxu1  ;;  %11753 = vmatprep.subr.bf16.mxu0 %v11752_v2  ;;  %v11756_v1 = vpack.c.bf16 %v8268_v39, %v8267_v19  ;;  %v8495_v55 = vld [vmem:[#allocation40 + $0xd0] sm:$0xff] }
0x205f   :  { %v8049_v43 = vadd.f32 %v9371_v34, %v8048_v5  ;;  %11717 = vmatprep.subr.bf16.mxu1 %v11716_v12  ;;  %v8496_v5 = vld [vmem:[#allocation40 + $0xd8] sm:$0xff] }
0x2060   :  { %11719 = vmatpush3.bf16.msra.mxu1 %v11716_v12  ;;  %v8494_v12 = vld [vmem:[#allocation40 + $0xc8] sm:$0xff] }
0x2061   :  { %v11720_v27 = vpack.c.bf16 %v8054_v48, %v8049_v43  ;;  %v11019_v10 = vpop.f32.mrb[102].mxu1  ;;  %11755 = vmatpush3.bf16.msra.mxu0 %v11752_v2  ;;  %v11760_v48 = vpack.c.bf16 %v8494_v12, %v8493_v0  ;;  %v11764_v43 = vpack.c.bf16 %v8496_v5, %v8495_v55  ;;  %v8611_v2 = vld [vmem:[%s12946_s19 + $0x28] sm:$0xff]  ;;  %v8612_v0 = vld [vmem:[%s12946_s19 + $0x30] sm:$0xff]  ;;  %v8613_v12 = vld [vmem:[%s12946_s19 + $0x38] sm:$0xff] }
0x2062   :  { %v8064_v60 = vadd.f32 %v11019_v10, %v9371_v34  ;;  %v8058_v61 = vpop.f32.mrb[103].mxu1  ;;  %11757 = vmatprep.subr.bf16.mxu0 %v11756_v1  ;;  %v8498_v10 = vld [vmem:[#allocation40 + $0xe8] sm:$0xff]  ;;  %v11788_v55 = vpack.c.bf16 %v8613_v12, %v8612_v0 }
0x2063   :  { %v8059_v31 = vadd.f32 %v9371_v34, %v8058_v61  ;;  %11721 = vmatprep.subr.bf16.mxu1 %v11720_v27  ;;  %v8723_v5 = vld [vmem:[#allocation44 + $0x8] sm:$0xff] }
0x2064   :  { %11723 = vmatpush3.bf16.msra.mxu1 %v11720_v27  ;;  %v8497_v27 = vld [vmem:[#allocation40 + $0xe0] sm:$0xff] }
0x2065   :  { %v11724_v16 = vpack.c.bf16 %v8064_v60, %v8059_v31  ;;  %11759 = vmatpush3.bf16.msra.mxu0 %v11756_v1  ;;  %v11768_v60 = vpack.c.bf16 %v8498_v10, %v8497_v27  ;;  %v11784_v1 = vpack.c.bf16 %v8611_v2, %v8610_v21  ;;  %v8725_v10 = vld [vmem:[#allocation44 + $0x18] sm:$0xff] }
0x2067   :  { %11725 = vmatprep.subr.bf16.mxu1 %v11724_v16 }
0x2068   :  { %11727 = vmatpush3.bf16.msra.mxu1 %v11724_v16 }
0x2069   :  { %11761 = vmatprep.subr.bf16.mxu1 %v11760_v48 }
0x206b   :  { %11053 = vmatmul.mubr.msk.f32.vlgmr.msra.gmra.mrb[104].mxu1 %vm8072_vm5, %v12776_v42 }
0x206c   :  { %11055 = vmatprep.mubr.msk.f32.mxu1 %vm8073_vm7, %v12776_v42  ;;  %11763 = vmatpush3.bf16.msra.mxu1 %v11760_v48  ;;  %v8722_v48 = vld [vmem:[#allocation44] sm:$0xff] }
0x206d   :  { %11765 = vmatprep.subr.bf16.mxu1 %v11764_v43  ;;  %v11792_v27 = vpack.c.bf16 %v8723_v5, %v8722_v48 }
0x206f   :  { %11056 = vmatmul.mubr.msk.f32.gmra.mrb[106].mxu1 %vm8074_vm8, %v12776_v42  ;;  %11793 = vmatprep.subr.bf16.mxu0 %v11792_v27 }
0x2070   :  { %11767 = vmatpush3.bf16.msra.mxu1 %v11764_v43  ;;  %v8724_v43 = vld [vmem:[#allocation44 + $0x10] sm:$0xff] }
0x2071   :  { %11769 = vmatprep.subr.bf16.mxu1 %v11768_v60 }
0x2074   :  { %11771 = vmatpush3.bf16.msra.mxu1 %v11768_v60  ;;  %v11796_v60 = vpack.c.bf16 %v8725_v10, %v8724_v43 }
0x213e   :  { %v11054_v51 = vpop.f32.mrb[104].mxu1 }
0x213f   :  { %v8173_v62 = vadd.f32 %v11054_v51, %v8084_v15  ;;  %v8153_v44 = vpop.f32.mrb[105].mxu1 }
0x2140   :  { %v8172_v6 = vadd.f32 %v8153_v44, %v8083_v8 }
0x2141   :  { %8177 = vst.msk [vmem:[#allocation7 + $0x8] sm:$0xff] %vm660_vm4, %v8173_v62 }
0x2142   :  { %8176 = vst.msk [vmem:[#allocation7] sm:$0xff] %vm660_vm4, %v8172_v6  ;;  %v11057_v49 = vpop.f32.mrb[106].mxu1 }
0x2143   :  { %v8175_v41 = vadd.f32 %v11057_v49, %v8086_v24  ;;  %v8163_v20 = vpop.f32.mrb[107].mxu1 }
0x2144   :  { %v8174_v45 = vadd.f32 %v8163_v20, %v8085_v17  ;;  %v9397_v20 = vld [vmem:[#allocation32 + $0x3] ss:$0 sm:$0xff] }
0x2145   :  { %8179 = vst.msk [vmem:[#allocation7 + $0x18] sm:$0xff] %vm660_vm4, %v8175_v41 }
0x2146   :  { %8178 = vst.msk [vmem:[#allocation7 + $0x10] sm:$0xff] %vm660_vm4, %v8174_v45 }
0x2148   :  { %v8181_v42 = vld [vmem:[#allocation7 + $0x8] sm:$0xff] }
0x2149   :  { %v8191_v23 = vsel %vm660_vm4, %v8181_v42, 0.0  ;;  %v8180_v22 = vld [vmem:[#allocation7] sm:$0xff] }
0x214a   :  { %8192 = vadd.xlane.f32.xlu1 %v8191_v23  ;;  %v8188_v25 = vsel %vm660_vm4, %v8180_v22, 0.0 }
0x214b   :  { %8189 = vadd.xlane.f32.xlu0 %v8188_v25 }
0x214c   :  { %v8183_v26 = vld [vmem:[#allocation7 + $0x18] sm:$0xff] }
0x214d   :  { %v8197_v33 = vsel %vm660_vm4, %v8183_v26, 0.0  ;;  %v8182_v47 = vld [vmem:[#allocation7 + $0x10] sm:$0xff] }
0x214e   :  { %8198 = vadd.xlane.f32.xlu1 %v8197_v33  ;;  %v8194_v53 = vsel %vm660_vm4, %v8182_v47, 0.0 }
0x214f   :  { %8195 = vadd.xlane.f32.xlu0 %v8194_v53 }
0x21d7   :  { %v8193_v13 = vpop.xlane.xlu1 %8192 }
0x21d8   :  { %v8201_v18 = vmul.f32 0.015625, %v8193_v13  ;;  %v8190_v59 = vpop.xlane.xlu0 %8189 }
0x21d9   :  { %v8200_v34 = vmul.f32 0.015625, %v8190_v59 }
0x21da   :  { %v15005_v56 = vsub.f32 %v8181_v42, %v8201_v18 }
0x21db   :  { %v15007_v7 = vsub.f32 %v8180_v22, %v8200_v34  ;;  %v8199_v28 = vpop.xlane.xlu1 %8198  ;;  %v9398_v22 = vld [vmem:[#allocation34 + $0x3] ss:$0 sm:$0xff] }
0x21dc   :  { %v8203_v35 = vmul.f32 0.015625, %v8199_v28  ;;  %v8196_v54 = vpop.xlane.xlu0 %8195  ;;  %v8209_v40 = vmul.f32 %v15005_v56, %v15005_v56 }
0x21dd   :  { %v8202_v4 = vmul.f32 0.015625, %v8196_v54  ;;  %v8208_v14 = vmul.f32 %v15007_v7, %v15007_v7  ;;  %v8500_v54 = vld [vmem:[#allocation40 + $0xf8] sm:$0xff] }
0x21de   :  { %v15013_v9 = vsub.f32 %v8183_v26, %v8203_v35  ;;  %v8215_v3 = vsel %vm660_vm4, %v8209_v40, 0.0  ;;  %v8499_v35 = vld [vmem:[#allocation40 + $0xf0] sm:$0xff] }
0x21df   :  { %v15016_v30 = vsub.f32 %v8182_v47, %v8202_v4  ;;  %8216 = vadd.xlane.f32.xlu1 %v8215_v3  ;;  %v8212_v58 = vsel %vm660_vm4, %v8208_v14, 0.0  ;;  %v11772_v40 = vpack.c.bf16 %v8500_v54, %v8499_v35  ;;  %v8606_v4 = vld [vmem:[%s12946_s19] sm:$0xff]  ;;  %v8607_v14 = vld [vmem:[%s12946_s19 + $0x8] sm:$0xff]  ;;  %v9407_v3 = vld [vmem:[#allocation38 + $0x3] ss:$0 sm:$0xff] }
0x21e0   :  { %8213 = vadd.xlane.f32.xlu0 %v8212_v58  ;;  %v8211_v63 = vmul.f32 %v15013_v9, %v15013_v9 }
0x21e1   :  { %v8210_v37 = vmul.f32 %v15016_v30, %v15016_v30  ;;  %11773 = vmatprep.subr.bf16.mxu1 %v11772_v40 }
0x21e2   :  { %v8221_v50 = vsel %vm660_vm4, %v8211_v63, 0.0  ;;  %11775 = vmatpush3.bf16.msra.mxu1 %v11772_v40 }
0x21e3   :  { %8222 = vadd.xlane.f32.xlu1 %v8221_v50  ;;  %v8218_v36 = vsel %vm660_vm4, %v8210_v37, 0.0  ;;  %v8608_v50 = vld [vmem:[%s12946_s19 + $0x10] sm:$0xff] }
0x21e4   :  { %8219 = vadd.xlane.f32.xlu0 %v8218_v36  ;;  %v8609_v36 = vld [vmem:[%s12946_s19 + $0x18] sm:$0xff]  ;;  %s12777_s19 = smov [#allocation46]  }
0x21e5   :  { %v11780_v32 = vpack.c.bf16 %v8609_v36, %v8608_v50  ;;  %s8836_s24 = sshll.u32 %s12777_s19, 4  ;;  %s8837_s24 = int_to_ptr.vmem [resolvable:$true] %s8836_s24 }
0x21e6   :  { %s12661_s13 = scalar_lea.vmem %s8837_s24, 512  ;;  %p12666_p11 = scmp.lt.s32.totalorder %s8837_s24, %s8837_s24 }
0x21e7   :  { %p12662_p10 = scmp.ne.s32.totalorder %s8837_s24, %s12661_s13  ;;  %p12667_p12 = scmp.lt.s32.totalorder %s12661_s13, %s12661_s13 }
0x21e9   :  { %p12668_p13 = por %p12667_p12, %p12666_p11 }
0x21eb   :  { %p12669_p0 = pnand %p12668_p13, %p12662_p10 }
0x226c   :  { %v8217_v61 = vpop.xlane.xlu1 %8216 }
0x226d   :  { %v8225_v31 = vmul.f32 0.015625, %v8217_v61  ;;  %v8214_v16 = vpop.xlane.xlu0 %8213  ;;  %v8726_v61 = vld [vmem:[#allocation44 + $0x20] sm:$0xff] }
0x226e   :  { %v8224_v15 = vmul.f32 0.015625, %v8214_v16 }
0x226f   :  { %v8229_v8 = vadd.f32 1e-05, %v8225_v31  ;;  %v8727_v31 = vld [vmem:[#allocation44 + $0x28] sm:$0xff] }
0x2270   :  { %v8228_v51 = vadd.f32 1e-05, %v8224_v15  ;;  %v8223_v62 = vpop.xlane.xlu1 %8222  ;;  %v11800_v16 = vpack.c.bf16 %v8727_v31, %v8726_v61  ;;  %v9408_v15 = vld [vmem:[#allocation41 + $0x3] ss:$0 sm:$0xff] }
0x2271   :  { %12125 = vrsqrt.f32 %v8229_v8  ;;  %v8227_v44 = vmul.f32 0.015625, %v8223_v62  ;;  %v8220_v6 = vpop.xlane.xlu0 %8219 }
0x2272   :  { %12127 = vrsqrt.f32 %v8228_v51  ;;  %v8226_v24 = vmul.f32 0.015625, %v8220_v6 }
0x2273   :  { %v8231_v17 = vadd.f32 1e-05, %v8227_v44 }
0x2274   :  { %v8230_v49 = vadd.f32 1e-05, %v8226_v24 }
0x2275   :  { %12129 = vrsqrt.f32 %v8231_v17 }
0x2276   :  { %12131 = vrsqrt.f32 %v8230_v49 }
0x227b   :  { %v12126_v41 = vpop.eup %12125 }
0x227c   :  { %v12128_v45 = vpop.eup %12127  ;;  %v8237_v42 = vmul.f32 %v12126_v41, %v15005_v56  ;;  %v8728_v41 = vld [vmem:[#allocation44 + $0x30] sm:$0xff] }
0x227d   :  { %v8236_v23 = vmul.f32 %v12128_v45, %v15007_v7 }
0x227e   :  { %v8247_v25 = vmul.f32 %v9397_v20, %v8237_v42  ;;  %v9413_v42 = vld [vmem:[#allocation43] ss:$0 sm:$0xff] }
0x227f   :  { %v12130_v26 = vpop.eup %12129  ;;  %v8246_v33 = vmul.f32 %v9397_v20, %v8236_v23 }
0x2280   :  { %v12132_v47 = vpop.eup %12131  ;;  %v8239_v53 = vmul.f32 %v12130_v26, %v15013_v9  ;;  %v8257_v59 = vadd.f32 %v9398_v22, %v8247_v25  ;;  %v11776_v9 = vpack.c.bf16 %v8607_v14, %v8606_v4 }
0x2281   :  { %v8256_v13 = vadd.f32 %v9398_v22, %v8246_v33  ;;  %v8238_v18 = vmul.f32 %v12132_v47, %v15016_v30 }
0x2282   :  { %v8249_v34 = vmul.f32 %v9397_v20, %v8239_v53  ;;  %11777 = vmatprep.subr.bf16.mxu1 %v11776_v9 }
0x2283   :  { %11096 = vmatprep.mubr.msk.f32.mxu0 %vm660_vm4, %v8256_v13  ;;  %v8248_v28 = vmul.f32 %v9397_v20, %v8238_v18  ;;  %v8729_v20 = vld [vmem:[#allocation44 + $0x38] sm:$0xff] }
0x2284   :  { %11097 = vmatmul.mubr.msk.f32.vlgmr.msra.gmra.mrb[108].mxu0 %vm660_vm4, %v8257_v59  ;;  %v8259_v7 = vadd.f32 %v9398_v22, %v8249_v34  ;;  %v11804_v45 = vpack.c.bf16 %v8729_v20, %v8728_v41 }
0x2285   :  { %v8258_v56 = vadd.f32 %v9398_v22, %v8248_v28  ;;  %11795 = vmatpush3.bf16.msra.mxu0 %v11792_v27 }
0x2286   :  { %11797 = vmatprep.subr.bf16.mxu0 %v11796_v60 }
0x2287   :  { %11099 = vmatprep.mubr.msk.f32.mxu0 %vm660_vm4, %v8258_v56 }
0x2288   :  { %11100 = vmatmul.mubr.msk.f32.gmra.mrb[110].mxu0 %vm660_vm4, %v8259_v7 }
0x2289   :  { %11799 = vmatpush3.bf16.msra.mxu0 %v11796_v60 }
0x228a   :  { %11801 = vmatprep.subr.bf16.mxu0 %v11800_v16 }
0x228d   :  { %11803 = vmatpush3.bf16.msra.mxu0 %v11800_v16 }
0x228e   :  { %11805 = vmatprep.subr.bf16.mxu0 %v11804_v45 }
0x2291   :  { %11807 = vmatpush3.bf16.msra.mxu0 %v11804_v45 }
0x2357   :  { %v11098_v30 = vpop.f32.mrb[108].mxu0 }
0x2358   :  { %v8485_v58 = vadd.f32 %v11098_v30, %v9407_v3  ;;  %v8457_v63 = vpop.f32.mrb[109].mxu0 }
0x2359   :  { %v8484_v37 = vadd.f32 %v9407_v3, %v8457_v63 }
0x235a   :  { %v8489_v11 = vmax.f32 %v8485_v58, 0.0 }
0x235b   :  { %v8488_v38 = vmax.f32 %v8484_v37, 0.0  ;;  %v11101_v57 = vpop.f32.mrb[110].mxu0 }
0x235c   :  { %v8487_v52 = vadd.f32 %v11101_v57, %v9407_v3  ;;  %v8467_v29 = vpop.f32.mrb[111].mxu0 }
0x235d   :  { %v8486_v46 = vadd.f32 %v9407_v3, %v8467_v29  ;;  %11118 = vmatprep.mubr.msk.f32.mxu1 %vm660_vm4, %v8488_v38 }
0x235e   :  { %11119 = vmatmul.mubr.msk.f32.vlgmr.msra.gmra.mrb[108].mxu1 %vm660_vm4, %v8489_v11  ;;  %v8491_v39 = vmax.f32 %v8487_v52, 0.0 }
0x235f   :  { %v8490_v19 = vmax.f32 %v8486_v46, 0.0  ;;  %11779 = vmatpush3.bf16.msra.mxu1 %v11776_v9 }
0x2360   :  { %11781 = vmatprep.subr.bf16.mxu1 %v11780_v32 }
0x2361   :  { %11121 = vmatprep.mubr.msk.f32.mxu1 %vm660_vm4, %v8490_v19 }
0x2362   :  { %11122 = vmatmul.mubr.msk.f32.gmra.mrb[110].mxu1 %vm660_vm4, %v8491_v39 }
0x2363   :  { %11783 = vmatpush3.bf16.msra.mxu1 %v11780_v32 }
0x2364   :  { %11785 = vmatprep.subr.bf16.mxu1 %v11784_v1 }
0x2367   :  { %11787 = vmatpush3.bf16.msra.mxu1 %v11784_v1 }
0x2368   :  { %11789 = vmatprep.subr.bf16.mxu1 %v11788_v55 }
0x236b   :  { %11791 = vmatpush3.bf16.msra.mxu1 %v11788_v55 }
0x2431   :  { %v11120_v8 = vpop.f32.mrb[108].mxu1 }
0x2432   :  { %v8587_v51 = vpop.f32.mrb[109].mxu1  ;;  %v8593_v44 = vadd.f32 %v11120_v8, %v9408_v15 }
0x2433   :  { %v8588_v62 = vadd.f32 %v9408_v15, %v8587_v51 }
0x2435   :  { %v11123_v6 = vpop.f32.mrb[110].mxu1  ;;  %11140 = vmatprep.mubr.msk.f32.mxu1 %vm660_vm4, %v8588_v62 }
0x2436   :  { %v8597_v24 = vpop.f32.mrb[111].mxu1  ;;  %11141 = vmatmul.mubr.msk.f32.vlgmr.msra.gmra.mrb[112].mxu1 %vm660_vm4, %v8593_v44  ;;  %v8603_v49 = vadd.f32 %v11123_v6, %v9408_v15 }
0x2437   :  { %v8598_v17 = vadd.f32 %v9408_v15, %v8597_v24 }
0x2439   :  { %11143 = vmatprep.mubr.msk.f32.mxu1 %vm660_vm4, %v8598_v17 }
0x243a   :  { %11144 = vmatmul.mubr.msk.f32.gmra.mrb[114].mxu1 %vm660_vm4, %v8603_v49 }
0x2509   :  { %v11142_v23 = vpop.f32.mrb[112].mxu1 }
0x250a   :  { %v8705_v22 = vadd.f32 %v11142_v23, %v9413_v42  ;;  %v8699_v25 = vpop.f32.mrb[113].mxu1 }
0x250b   :  { %v8700_v26 = vadd.f32 %v9413_v42, %v8699_v25 }
0x250c   :  { %v8719_v53 = vmax.f32 %v8705_v22, 0.0 }
0x250d   :  { %v8718_v33 = vmax.f32 %v8700_v26, 0.0  ;;  %v11145_v47 = vpop.f32.mrb[114].mxu1 }
0x250e   :  { %v8715_v13 = vadd.f32 %v11145_v47, %v9413_v42  ;;  %v8709_v18 = vpop.f32.mrb[115].mxu1 }
0x250f   :  { %v8710_v59 = vadd.f32 %v9413_v42, %v8709_v18  ;;  %11162 = vmatprep.mubr.msk.f32.mxu0 %vm660_vm4, %v8718_v33 }
0x2510   :  { %11163 = vmatmul.mubr.msk.f32.vlgmr.msra.gmra.mrb[112].mxu0 %vm660_vm4, %v8719_v53  ;;  %v8721_v28 = vmax.f32 %v8715_v13, 0.0 }
0x2511   :  { %v8720_v34 = vmax.f32 %v8710_v59, 0.0 }
0x2513   :  { %11165 = vmatprep.mubr.msk.f32.mxu0 %vm660_vm4, %v8720_v34 }
0x2514   :  { %11166 = vmatmul.mubr.msk.f32.gmra.mrb[114].mxu0 %vm660_vm4, %v8721_v28 }
0x25e3   :  { %v11164_v56 = vpop.f32.mrb[112].mxu0 }
0x25e4   :  { %8828 = vst [vmem:[#allocation46 + $0x8] sm:$0xff] %v11164_v56  ;;  %v8808_v7 = vpop.f32.mrb[113].mxu0 }
0x25e5   :  { %8827 = vst [vmem:[#allocation46] sm:$0xff] %v8808_v7 }
0x25e7   :  { %v11167_v35 = vpop.f32.mrb[114].mxu0 }
0x25e8   :  { %8830 = vst [vmem:[#allocation46 + $0x18] sm:$0xff] %v11167_v35  ;;  %v8818_v54 = vpop.f32.mrb[115].mxu0 }
0x25e9   :  { %8829 = vst [vmem:[#allocation46 + $0x10] sm:$0xff] %v8818_v54 }
0x25ea   :  { %12672 = shalt.err (!%p12669_p0)
}
0x25eb   :  { %s12673_s26 = scalar_lea.hbm %s12961_s12, 512 }
0x25ec   :  { %p12674_p1 = scmp.ne.s32.totalorder %s12961_s12, %s12673_s26  ;;  %p12677_p2 = scmp.lt.u32.totalorder %s12673_s26, %s12961_s12 }
0x25ee   :  { %p12679_p3 = pnand %p12677_p2, %p12674_p1 }
0x25f0   :  { %12682 = shalt.err (!%p12679_p3)
}
0x25f1   :  { %8842 = dma.vmem_to_hbm [thread:$0]  %s8837_s24, 512, %s12961_s12, [#allocation10], %s12751_s10, %s12751_s10, %s12752_s20  }
0x25f2   :  { %12709 = dma.done.wait [#allocation10], 512  }
0x25f3   :  { %12710 = vsyncadd [#allocation10], 4294966784 }
0x25f4   :  { %8846 = vsyncpa [#allocation9], 1 }
0x25f5   :  { %8847 = vsyncpa [#allocation12], 1 }
0x25f6   :  { %8848 = vsyncpa [#allocation15], 1 }
0x25f7   :  { %8849 = vsyncpa [#allocation18], 1 }
0x25f8   :  { %8850 = vsyncpa [#allocation21], 1 }
0x25f9   :  { %8851 = vsyncpa [#allocation24], 1 }
0x25fa   :  { %8852 = vsyncpa [#allocation27], 1 }
0x25fb   :  { %8853 = vsyncpa [#allocation30], 1 }
0x25fc   :  { %8854 = vsyncpa [#allocation33], 1 }
0x25fd   :  { %8855 = vsyncpa [#allocation36], 1 }
0x25fe   :  { %8856 = vsyncpa [#allocation39], 1 }
0x25ff   :  { %8857 = vsyncpa [#allocation42], 1 }
0x2600   :  { %8858 = vsyncpa [#allocation45], 1 }
0x2601   :  { %8859 = vsyncpa [#allocation10], 1 }

</bundles_post_ra>
